<compile_context>
chip_gen: v6e
topology: v6e:2x2x1
jax: 0.10.0
libtpu: 0.0.40
codegen_flags: <defaults>
</compile_context>

<pallas_src>
import jax
import jax.numpy as jnp
from jax.experimental import pallas as pl
from jax.experimental.pallas import tpu as pltpu

MORGAN_DIM, MACCS_DIM, RDKIT_DIM = 2048, 167, 2048
INIT_DIM = MORGAN_DIM + MACCS_DIM + RDKIT_DIM        # 4263
D_PAD = ((INIT_DIM + 127) // 128) * 128              # 4352 (lane-aligned)
H1 = 512                                             # fc2 hidden == emb_dim
BN_EPS = 1e-5


def _round_up(x, m):
    return (x + m - 1) // m * m


# ----------------------------------------------------------------------------- kernel
def fpmmoe_kernel(x_ref, w1_ref, b1_ref, w2_ref, b2_ref, s2_ref, t2_ref,
                  we1_ref, be1_ref, we2_ref, be2_ref,
                  wg_ref, bg_ref, wt1_ref, bt1_ref, wt2_ref, bt2_ref,
                  out_ref, gate_ref):
    E = we1_ref.shape[0]          # num_experts (static)
    T = wg_ref.shape[0]           # num_tasks   (static)

    # ---------------- FingerPrintEncoderx (eval) ----------------
    # fc2[0] Linear(4263,512): bf16 MXU matmul, f32 accumulate.
    h = jnp.dot(x_ref[...], w1_ref[...],
                preferred_element_type=jnp.float32) + b1_ref[...]
    # fc2[1] Dropout -> identity (eval); fc2[2] ReLU (f32 VPU).
    h = jnp.maximum(h, 0.0)
    # fc2[3] BatchNorm1d(512) is folded into w2/b2 at param-prep time.
    # fc2[4] Linear(512,512); fc2[5] ReLU.
    z = jnp.dot(h.astype(jnp.bfloat16), w2_ref[...],
                preferred_element_type=jnp.float32) + b2_ref[...]
    z = jnp.maximum(z, 0.0)
    # outer BatchNorm1d(512) (eval, folded to scale/shift) then ReLU.
    y = jnp.maximum(z * s2_ref[...] + t2_ref[...], 0.0)
    y_bf = y.astype(jnp.bfloat16)

    # small parameter tensors: load once, index with static Python ints.
    be1 = be1_ref[...]            # (E, He)  f32
    be2 = be2_ref[...]            # (E, He)  f32
    bg = bg_ref[...]              # (T, E)   f32
    bt1 = bt1_ref[...]            # (T, Ht)  f32
    wt2 = wt2_ref[...]            # (T, Ht)  f32
    bt2 = bt2_ref[...]            # (T, 1)   f32

    # ---------------- MMOE experts (static unroll, E small) ----------------
    expert_outs = []
    for e in range(E):
        eh = jnp.dot(y_bf, we1_ref[e],
                     preferred_element_type=jnp.float32) + be1[e][None, :]
        eh = jnp.maximum(eh, 0.0)
        eo = jnp.dot(eh.astype(jnp.bfloat16), we2_ref[e],
                     preferred_element_type=jnp.float32) + be2[e][None, :]
        expert_outs.append(jnp.maximum(eo, 0.0))          # [TB, He]

    # ---------------- MMOE gates / mixtures / towers ----------------
    task_cols, gate_cols = [], []
    for t in range(T):
        logits = jnp.dot(y_bf, wg_ref[t],
                         preferred_element_type=jnp.float32) + bg[t][None, :]
        g = jax.nn.softmax(logits, axis=-1)               # [TB, E]
        gate_cols.append(g)

        mix = expert_outs[0] * g[:, 0:1]
        for e in range(1, E):
            mix = mix + expert_outs[e] * g[:, e:e + 1]    # [TB, He]

        th = jnp.dot(mix.astype(jnp.bfloat16), wt1_ref[t],
                     preferred_element_type=jnp.float32) + bt1[t][None, :]
        th = jnp.maximum(th, 0.0)                         # [TB, Ht]
        # Linear(Ht,1): do it as an f32 VPU multiply + lane reduction (avoids
        # an N=1 MXU matmul and keeps elementwise in f32 for v5e).
        to = jnp.sum(th * wt2[t][None, :], axis=1, keepdims=True) + bt2[t][None, :]
        task_cols.append(jax.nn.sigmoid(to))              # [TB, 1]

    out_ref[...] = jnp.concatenate(task_cols, axis=1)     # [TB, T]
    gate_ref[...] = jnp.concatenate(gate_cols, axis=1)    # [TB, T*E]


# ----------------------------------------------------------------------------- wrapper
@jax.jit
def fp_mmoe_forward(x_pad, kparams):
    """x_pad: [B, D_PAD] bf16 pre-padded {0,1} fingerprints.

    Returns (task_outputs [B, T] f32, gate_weights [B, T, E] f32).
    """
    (w1, b1, w2, b2, s2, t2,
     we1, be1, we2, be2, wg, bg, wt1, bt1, wt2, bt2) = kparams
    B = x_pad.shape[0]
    E, T = we1.shape[0], wg.shape[0]

    # Batch tile: fill the MXU sublane dimension when the batch allows it
    # (128 rows; 256 also fits VMEM on v6e/v7x), otherwise round the small
    # batch up to a bf16-friendly sublane multiple of 16.
    TB = min(128, _round_up(B, 16))
    B_pad = _round_up(B, TB)
    if B_pad != B:
        x_pad = jnp.pad(x_pad, ((0, B_pad - B), (0, 0)))

    def const_spec(arr):
        zeros = (0,) * arr.ndim
        return pl.BlockSpec(arr.shape, lambda i, _z=zeros: _z)   # weights stay resident

    out, gates = pl.pallas_call(
        fpmmoe_kernel,
        out_shape=(jax.ShapeDtypeStruct((B_pad, T), jnp.float32),
                   jax.ShapeDtypeStruct((B_pad, T * E), jnp.float32)),
        grid=(B_pad // TB,),
        in_specs=[pl.BlockSpec((TB, D_PAD), lambda i: (i, 0))]   # x streams per tile
        + [const_spec(p) for p in kparams],
        out_specs=(pl.BlockSpec((TB, T), lambda i: (i, 0)),
                   pl.BlockSpec((TB, T * E), lambda i: (i, 0))),
        compiler_params=pltpu.CompilerParams(
            # batch tiles are independent -> megacore-shardable on v7x,
            # harmless no-op on single-TC v5e/v6e.
            dimension_semantics=("parallel",),
            # ~5.4 MiB bf16 weights (+double-buffer) + 2 x-tile buffers (~2.2 MiB)
            # + scratch; 32 MiB leaves headroom even on v7x's 64 MiB VMEM.
            vmem_limit_bytes=32 << 20,
        ),
    )(x_pad, *kparams)

    return out[:B], gates[:B].reshape(B, T, E)


# ----------------------------------------------------------------------------- params
def _xavier(key, fan_in, fan_out):
    bound = (6.0 / (fan_in + fan_out)) ** 0.5
    return jax.random.uniform(key, (fan_in, fan_out), jnp.float32, -bound, bound)


def _fold_bn(gamma, beta, mean, var, eps=BN_EPS):
    s = gamma / jnp.sqrt(var + eps)
    return s, beta - mean * s


def make_params(key, E, He, T, Ht):
    """Raw f32 parameters mirroring the PyTorch module (eval mode)."""
    keys = iter(jax.random.split(key, 64))
    nk = lambda: next(keys)

    def bn(k, n):  # random-but-plausible eval BN params so the folding is exercised
        k1, k2, k3, k4 = jax.random.split(k, 4)
        gamma = jax.random.uniform(k1, (n,), jnp.float32, 0.5, 1.5)
        beta = 0.1 * jax.random.normal(k2, (n,), jnp.float32)
        mean = 0.1 * jax.random.normal(k3, (n,), jnp.float32)
        var = jax.random.uniform(k4, (n,), jnp.float32, 0.5, 1.5)
        return gamma, beta, mean, var

    p = {}
    # FingerPrintEncoderx.fc2 (init_emb: xavier weights, zero bias); stored [in, out].
    p["w1"] = _xavier(nk(), INIT_DIM, H1)
    p["b1"] = jnp.zeros((H1,), jnp.float32)
    p["w2"] = _xavier(nk(), H1, H1)
    p["b2"] = jnp.zeros((H1,), jnp.float32)
    p["bn1"] = bn(nk(), H1)                       # fc2[3]
    p["bn2"] = bn(nk(), H1)                       # outer self.batch_norm
    # MMOE experts / gates / towers.
    p["we1"] = jnp.stack([_xavier(nk(), H1, He) for _ in range(E)])
    p["be1"] = 0.05 * jax.random.normal(nk(), (E, He), jnp.float32)
    p["we2"] = jnp.stack([_xavier(nk(), He, He) for _ in range(E)])
    p["be2"] = 0.05 * jax.random.normal(nk(), (E, He), jnp.float32)
    p["wg"] = jnp.stack([_xavier(nk(), H1, E) for _ in range(T)])
    p["bg"] = 0.05 * jax.random.normal(nk(), (T, E), jnp.float32)
    p["wt1"] = jnp.stack([_xavier(nk(), He, Ht) for _ in range(T)])
    p["bt1"] = 0.05 * jax.random.normal(nk(), (T, Ht), jnp.float32)
    p["wt2"] = jnp.stack([_xavier(nk(), Ht, 1) for _ in range(T)])
    p["bt2"] = 0.05 * jax.random.normal(nk(), (T, 1), jnp.float32)
    return p


def prepare_kernel_params(p):
    """Fold BatchNorms, pad W1, cast matmul weights to bf16 (perf feedback)."""
    s1, t1 = _fold_bn(*p["bn1"])
    s2, t2 = _fold_bn(*p["bn2"])
    # BN1 sits between ReLU and Linear(512,512): fold it into that Linear.
    w2f = p["w2"] * s1[:, None]
    b2f = t1 @ p["w2"] + p["b2"]
    # Zero-pad W1's input rows to the lane-aligned fingerprint width.
    w1p = jnp.pad(p["w1"], ((0, D_PAD - INIT_DIM), (0, 0)))
    bf = lambda a: a.astype(jnp.bfloat16)
    row = lambda a: a.reshape(1, -1).astype(jnp.float32)
    return (bf(w1p), row(p["b1"]), bf(w2f), row(b2f), row(s2), row(t2),
            bf(p["we1"]), p["be1"].astype(jnp.float32),
            bf(p["we2"]), p["be2"].astype(jnp.float32),
            bf(p["wg"]), p["bg"].astype(jnp.float32),
            bf(p["wt1"]), p["bt1"].astype(jnp.float32),
            p["wt2"][:, :, 0].astype(jnp.float32),      # (T, Ht) f32 for VPU reduce
            p["bt2"].astype(jnp.float32))


def prepare_fingerprints(fp):
    """One-time data prep: pad feature dim to the lane multiple and cast the
    {0,1} fingerprint matrix to bf16 (exactly representable)."""
    fp = jnp.asarray(fp, jnp.float32)
    fp = jnp.pad(fp, ((0, 0), (0, D_PAD - INIT_DIM)))
    return fp.astype(jnp.bfloat16)


# ----------------------------------------------------------------------------- reference
def reference_f32(fp, p):
    """Plain-JAX full-f32 re-implementation of fpMMOE.forward (eval mode)."""
    s1, t1 = _fold_bn(*p["bn1"])
    s2, t2 = _fold_bn(*p["bn2"])
    h = jnp.maximum(fp @ p["w1"] + p["b1"], 0.0)
    h = h * s1 + t1
    z = jnp.maximum(h @ p["w2"] + p["b2"], 0.0)
    y = jnp.maximum(z * s2 + t2, 0.0)

    E, T = p["we1"].shape[0], p["wg"].shape[0]
    experts = []
    for e in range(E):
        eh = jnp.maximum(y @ p["we1"][e] + p["be1"][e], 0.0)
        experts.append(jnp.maximum(eh @ p["we2"][e] + p["be2"][e], 0.0))
    experts = jnp.stack(experts, axis=1)                  # [B, E, He]

    outs, gates = [], []
    for t in range(T):
        g = jax.nn.softmax(y @ p["wg"][t] + p["bg"][t], axis=-1)
        gates.append(g)
        mix = jnp.einsum("be,beh->bh", g, experts)
        th = jnp.maximum(mix @ p["wt1"][t] + p["bt1"][t], 0.0)
        outs.append(jax.nn.sigmoid(th @ p["wt2"][t] + p["bt2"][t]))
    return jnp.concatenate(outs, axis=1), jnp.stack(gates, axis=1)


# ----------------------------------------------------------------------------- main
if __name__ == "__main__":
    key = jax.random.PRNGKey(0)
    k_fp, k_par = jax.random.split(key)

    B = 8                                 # small smoke-test batch
    E, He, T, Ht = 4, 128, 3, 64          # num_experts, expert_hidden, num_tasks, task_hidden

    # TODO(synk): generate_fingerprints (RDKit) not representable; synthetic {0,1}
    #             fingerprints stand in for the SMILES-derived bit vectors.
    fp = jax.random.bernoulli(k_fp, p=0.1, shape=(B, INIT_DIM)).astype(jnp.float32)

    raw = make_params(k_par, E, He, T, Ht)
    kparams = prepare_kernel_params(raw)
    x_pad = prepare_fingerprints(fp)      # pad + bf16 once, at data-prep time

    out, gates = fp_mmoe_forward(x_pad, kparams)
    out = jax.block_until_ready(out)
    gates = jax.block_until_ready(gates)

    ref_out, ref_gates = reference_f32(fp, raw)
    assert out.shape == (B, T) and gates.shape == (B, T, E)
    assert jnp.allclose(out, ref_out, atol=3e-2, rtol=3e-2), "task output mismatch"
    assert jnp.allclose(gates, ref_gates, atol=3e-2, rtol=3e-2), "gate weight mismatch"
    print("KERNEL_OK")
</pallas_src>

<mosaic_0001>
module attributes {stable_mosaic.version = 11 : i64} {
  func.func @fpmmoe_kernel(%arg0: i32, %arg1: memref<16x4352xbf16, #tpu.memory_space<vmem>>, %arg2: memref<4352x512xbf16, #tpu.memory_space<vmem>>, %arg3: memref<1x512xf32, #tpu.memory_space<vmem>>, %arg4: memref<512x512xbf16, #tpu.memory_space<vmem>>, %arg5: memref<1x512xf32, #tpu.memory_space<vmem>>, %arg6: memref<1x512xf32, #tpu.memory_space<vmem>>, %arg7: memref<1x512xf32, #tpu.memory_space<vmem>>, %arg8: memref<4x512x128xbf16, #tpu.memory_space<vmem>>, %arg9: memref<4x128xf32, #tpu.memory_space<vmem>>, %arg10: memref<4x128x128xbf16, #tpu.memory_space<vmem>>, %arg11: memref<4x128xf32, #tpu.memory_space<vmem>>, %arg12: memref<3x512x4xbf16, #tpu.memory_space<vmem>>, %arg13: memref<3x4xf32, #tpu.memory_space<vmem>>, %arg14: memref<3x128x64xbf16, #tpu.memory_space<vmem>>, %arg15: memref<3x64xf32, #tpu.memory_space<vmem>>, %arg16: memref<3x64xf32, #tpu.memory_space<vmem>>, %arg17: memref<3x1xf32, #tpu.memory_space<vmem>>, %arg18: memref<16x3xf32, #tpu.memory_space<vmem>>, %arg19: memref<16x12xf32, #tpu.memory_space<vmem>>) attributes {dimension_semantics = [#tpu.dimension_semantics<parallel>], iteration_bounds = array<i64: 1>, scalar_prefetch = 0 : i64, scratch_operands = 0 : i64, tpu.core_type = #tpu.core_type<tc>, window_params = [{transform_indices = @transform_0, window_bounds = array<i64: 16, 4352>}, {pipeline_mode = #tpu.pipeline_mode<synchronous>, transform_indices = @transform_1, window_bounds = array<i64: 4352, 512>}, {pipeline_mode = #tpu.pipeline_mode<synchronous>, transform_indices = @transform_2, window_bounds = array<i64: 1, 512>}, {pipeline_mode = #tpu.pipeline_mode<synchronous>, transform_indices = @transform_3, window_bounds = array<i64: 512, 512>}, {pipeline_mode = #tpu.pipeline_mode<synchronous>, transform_indices = @transform_4, window_bounds = array<i64: 1, 512>}, {pipeline_mode = #tpu.pipeline_mode<synchronous>, transform_indices = @transform_5, window_bounds = array<i64: 1, 512>}, {pipeline_mode = #tpu.pipeline_mode<synchronous>, transform_indices = @transform_6, window_bounds = array<i64: 1, 512>}, {pipeline_mode = #tpu.pipeline_mode<synchronous>, transform_indices = @transform_7, window_bounds = array<i64: 4, 512, 128>}, {pipeline_mode = #tpu.pipeline_mode<synchronous>, transform_indices = @transform_8, window_bounds = array<i64: 4, 128>}, {pipeline_mode = #tpu.pipeline_mode<synchronous>, transform_indices = @transform_9, window_bounds = array<i64: 4, 128, 128>}, {pipeline_mode = #tpu.pipeline_mode<synchronous>, transform_indices = @transform_10, window_bounds = array<i64: 4, 128>}, {pipeline_mode = #tpu.pipeline_mode<synchronous>, transform_indices = @transform_11, window_bounds = array<i64: 3, 512, 4>}, {pipeline_mode = #tpu.pipeline_mode<synchronous>, transform_indices = @transform_12, window_bounds = array<i64: 3, 4>}, {pipeline_mode = #tpu.pipeline_mode<synchronous>, transform_indices = @transform_13, window_bounds = array<i64: 3, 128, 64>}, {pipeline_mode = #tpu.pipeline_mode<synchronous>, transform_indices = @transform_14, window_bounds = array<i64: 3, 64>}, {pipeline_mode = #tpu.pipeline_mode<synchronous>, transform_indices = @transform_15, window_bounds = array<i64: 3, 64>}, {pipeline_mode = #tpu.pipeline_mode<synchronous>, transform_indices = @transform_16, window_bounds = array<i64: 3, 1>}, {transform_indices = @transform_17, window_bounds = array<i64: 16, 3>}, {transform_indices = @transform_18, window_bounds = array<i64: 16, 12>}]} {
    %c0 = arith.constant 0 : index
    %c0_0 = arith.constant 0 : index
    %0 = vector.load %arg1[%c0, %c0_0] : memref<16x4352xbf16, #tpu.memory_space<vmem>>, vector<16x4352xbf16>
    %c0_1 = arith.constant 0 : index
    %c0_2 = arith.constant 0 : index
    %1 = vector.load %arg2[%c0_1, %c0_2] : memref<4352x512xbf16, #tpu.memory_space<vmem>>, vector<4352x512xbf16>
    %cst = arith.constant dense<0.000000e+00> : vector<16x512xf32>
    %2 = tpu.matmul %0, %1, %cst {dimension_numbers = #tpu.dot_dimension_numbers<[1], [0], [0], [1], [0, 0, 1, 1], [], []>} : vector<16x4352xbf16>, vector<4352x512xbf16>, vector<16x512xf32> -> vector<16x512xf32>
    %c0_3 = arith.constant 0 : index
    %c0_4 = arith.constant 0 : index
    %3 = vector.load %arg3[%c0_3, %c0_4] : memref<1x512xf32, #tpu.memory_space<vmem>>, vector<1x512xf32>
    %4 = vector.broadcast %3 : vector<1x512xf32> to vector<16x512xf32>
    %5 = arith.addf %2, %4 : vector<16x512xf32>
    %cst_5 = arith.constant 0.000000e+00 : f32
    %6 = vector.broadcast %cst_5 : f32 to vector<16x512xf32>
    %7 = arith.maximumf %5, %6 : vector<16x512xf32>
    %8 = arith.truncf %7 : vector<16x512xf32> to vector<16x512xbf16>
    %c0_6 = arith.constant 0 : index
    %c0_7 = arith.constant 0 : index
    %9 = vector.load %arg4[%c0_6, %c0_7] : memref<512x512xbf16, #tpu.memory_space<vmem>>, vector<512x512xbf16>
    %cst_8 = arith.constant dense<0.000000e+00> : vector<16x512xf32>
    %10 = tpu.matmul %8, %9, %cst_8 {dimension_numbers = #tpu.dot_dimension_numbers<[1], [0], [0], [1], [0, 0, 1, 1], [], []>} : vector<16x512xbf16>, vector<512x512xbf16>, vector<16x512xf32> -> vector<16x512xf32>
    %c0_9 = arith.constant 0 : index
    %c0_10 = arith.constant 0 : index
    %11 = vector.load %arg5[%c0_9, %c0_10] : memref<1x512xf32, #tpu.memory_space<vmem>>, vector<1x512xf32>
    %12 = vector.broadcast %11 : vector<1x512xf32> to vector<16x512xf32>
    %13 = arith.addf %10, %12 : vector<16x512xf32>
    %cst_11 = arith.constant 0.000000e+00 : f32
    %14 = vector.broadcast %cst_11 : f32 to vector<16x512xf32>
    %15 = arith.maximumf %13, %14 : vector<16x512xf32>
    %c0_12 = arith.constant 0 : index
    %c0_13 = arith.constant 0 : index
    %16 = vector.load %arg6[%c0_12, %c0_13] : memref<1x512xf32, #tpu.memory_space<vmem>>, vector<1x512xf32>
    %17 = vector.broadcast %16 : vector<1x512xf32> to vector<16x512xf32>
    %18 = arith.mulf %15, %17 : vector<16x512xf32>
    %c0_14 = arith.constant 0 : index
    %c0_15 = arith.constant 0 : index
    %19 = vector.load %arg7[%c0_14, %c0_15] : memref<1x512xf32, #tpu.memory_space<vmem>>, vector<1x512xf32>
    %20 = vector.broadcast %19 : vector<1x512xf32> to vector<16x512xf32>
    %21 = arith.addf %18, %20 : vector<16x512xf32>
    %cst_16 = arith.constant 0.000000e+00 : f32
    %22 = vector.broadcast %cst_16 : f32 to vector<16x512xf32>
    %23 = arith.maximumf %21, %22 : vector<16x512xf32>
    %24 = arith.truncf %23 : vector<16x512xf32> to vector<16x512xbf16>
    %c0_17 = arith.constant 0 : index
    %c0_18 = arith.constant 0 : index
    %25 = vector.load %arg9[%c0_17, %c0_18] : memref<4x128xf32, #tpu.memory_space<vmem>>, vector<4x128xf32>
    %c0_19 = arith.constant 0 : index
    %c0_20 = arith.constant 0 : index
    %26 = vector.load %arg11[%c0_19, %c0_20] : memref<4x128xf32, #tpu.memory_space<vmem>>, vector<4x128xf32>
    %c0_21 = arith.constant 0 : index
    %c0_22 = arith.constant 0 : index
    %27 = vector.load %arg13[%c0_21, %c0_22] : memref<3x4xf32, #tpu.memory_space<vmem>>, vector<3x4xf32>
    %c0_23 = arith.constant 0 : index
    %c0_24 = arith.constant 0 : index
    %28 = vector.load %arg15[%c0_23, %c0_24] : memref<3x64xf32, #tpu.memory_space<vmem>>, vector<3x64xf32>
    %c0_25 = arith.constant 0 : index
    %c0_26 = arith.constant 0 : index
    %29 = vector.load %arg16[%c0_25, %c0_26] : memref<3x64xf32, #tpu.memory_space<vmem>>, vector<3x64xf32>
    %c0_27 = arith.constant 0 : index
    %c0_28 = arith.constant 0 : index
    %30 = vector.load %arg17[%c0_27, %c0_28] : memref<3x1xf32, #tpu.memory_space<vmem>>, vector<3x1xf32>
    %c0_29 = arith.constant 0 : index
    %c0_30 = arith.constant 0 : index
    %c0_31 = arith.constant 0 : index
    %31 = vector.load %arg8[%c0_29, %c0_30, %c0_31] : memref<4x512x128xbf16, #tpu.memory_space<vmem>>, vector<1x512x128xbf16>
    %32 = vector.shape_cast %31 : vector<1x512x128xbf16> to vector<512x128xbf16>
    %cst_32 = arith.constant dense<0.000000e+00> : vector<16x128xf32>
    %33 = tpu.matmul %24, %32, %cst_32 {dimension_numbers = #tpu.dot_dimension_numbers<[1], [0], [0], [1], [0, 0, 1, 1], [], []>} : vector<16x512xbf16>, vector<512x128xbf16>, vector<16x128xf32> -> vector<16x128xf32>
    %34 = vector.extract_strided_slice %25 {offsets = [0, 0], sizes = [1, 128], strides = [1, 1]} : vector<4x128xf32> to vector<1x128xf32>
    %35 = vector.shape_cast %34 : vector<1x128xf32> to vector<128xf32>
    %36 = vector.shape_cast %35 : vector<128xf32> to vector<1x128xf32>
    %37 = vector.broadcast %36 : vector<1x128xf32> to vector<16x128xf32>
    %38 = arith.addf %33, %37 : vector<16x128xf32>
    %cst_33 = arith.constant 0.000000e+00 : f32
    %39 = vector.broadcast %cst_33 : f32 to vector<16x128xf32>
    %40 = arith.maximumf %38, %39 : vector<16x128xf32>
    %41 = arith.truncf %40 : vector<16x128xf32> to vector<16x128xbf16>
    %c0_34 = arith.constant 0 : index
    %c0_35 = arith.constant 0 : index
    %c0_36 = arith.constant 0 : index
    %42 = vector.load %arg10[%c0_34, %c0_35, %c0_36] : memref<4x128x128xbf16, #tpu.memory_space<vmem>>, vector<1x128x128xbf16>
    %43 = vector.shape_cast %42 : vector<1x128x128xbf16> to vector<128x128xbf16>
    %cst_37 = arith.constant dense<0.000000e+00> : vector<16x128xf32>
    %44 = tpu.matmul %41, %43, %cst_37 {dimension_numbers = #tpu.dot_dimension_numbers<[1], [0], [0], [1], [0, 0, 1, 1], [], []>} : vector<16x128xbf16>, vector<128x128xbf16>, vector<16x128xf32> -> vector<16x128xf32>
    %45 = vector.extract_strided_slice %26 {offsets = [0, 0], sizes = [1, 128], strides = [1, 1]} : vector<4x128xf32> to vector<1x128xf32>
    %46 = vector.shape_cast %45 : vector<1x128xf32> to vector<128xf32>
    %47 = vector.shape_cast %46 : vector<128xf32> to vector<1x128xf32>
    %48 = vector.broadcast %47 : vector<1x128xf32> to vector<16x128xf32>
    %49 = arith.addf %44, %48 : vector<16x128xf32>
    %cst_38 = arith.constant 0.000000e+00 : f32
    %50 = vector.broadcast %cst_38 : f32 to vector<16x128xf32>
    %51 = arith.maximumf %49, %50 : vector<16x128xf32>
    %c1 = arith.constant 1 : index
    %c0_39 = arith.constant 0 : index
    %c0_40 = arith.constant 0 : index
    %52 = vector.load %arg8[%c1, %c0_39, %c0_40] : memref<4x512x128xbf16, #tpu.memory_space<vmem>>, vector<1x512x128xbf16>
    %53 = vector.shape_cast %52 : vector<1x512x128xbf16> to vector<512x128xbf16>
    %cst_41 = arith.constant dense<0.000000e+00> : vector<16x128xf32>
    %54 = tpu.matmul %24, %53, %cst_41 {dimension_numbers = #tpu.dot_dimension_numbers<[1], [0], [0], [1], [0, 0, 1, 1], [], []>} : vector<16x512xbf16>, vector<512x128xbf16>, vector<16x128xf32> -> vector<16x128xf32>
    %55 = vector.extract_strided_slice %25 {offsets = [1, 0], sizes = [1, 128], strides = [1, 1]} : vector<4x128xf32> to vector<1x128xf32>
    %56 = vector.shape_cast %55 : vector<1x128xf32> to vector<128xf32>
    %57 = vector.shape_cast %56 : vector<128xf32> to vector<1x128xf32>
    %58 = vector.broadcast %57 : vector<1x128xf32> to vector<16x128xf32>
    %59 = arith.addf %54, %58 : vector<16x128xf32>
    %cst_42 = arith.constant 0.000000e+00 : f32
    %60 = vector.broadcast %cst_42 : f32 to vector<16x128xf32>
    %61 = arith.maximumf %59, %60 : vector<16x128xf32>
    %62 = arith.truncf %61 : vector<16x128xf32> to vector<16x128xbf16>
    %c1_43 = arith.constant 1 : index
    %c0_44 = arith.constant 0 : index
    %c0_45 = arith.constant 0 : index
    %63 = vector.load %arg10[%c1_43, %c0_44, %c0_45] : memref<4x128x128xbf16, #tpu.memory_space<vmem>>, vector<1x128x128xbf16>
    %64 = vector.shape_cast %63 : vector<1x128x128xbf16> to vector<128x128xbf16>
    %cst_46 = arith.constant dense<0.000000e+00> : vector<16x128xf32>
    %65 = tpu.matmul %62, %64, %cst_46 {dimension_numbers = #tpu.dot_dimension_numbers<[1], [0], [0], [1], [0, 0, 1, 1], [], []>} : vector<16x128xbf16>, vector<128x128xbf16>, vector<16x128xf32> -> vector<16x128xf32>
    %66 = vector.extract_strided_slice %26 {offsets = [1, 0], sizes = [1, 128], strides = [1, 1]} : vector<4x128xf32> to vector<1x128xf32>
    %67 = vector.shape_cast %66 : vector<1x128xf32> to vector<128xf32>
    %68 = vector.shape_cast %67 : vector<128xf32> to vector<1x128xf32>
    %69 = vector.broadcast %68 : vector<1x128xf32> to vector<16x128xf32>
    %70 = arith.addf %65, %69 : vector<16x128xf32>
    %cst_47 = arith.constant 0.000000e+00 : f32
    %71 = vector.broadcast %cst_47 : f32 to vector<16x128xf32>
    %72 = arith.maximumf %70, %71 : vector<16x128xf32>
    %c2 = arith.constant 2 : index
    %c0_48 = arith.constant 0 : index
    %c0_49 = arith.constant 0 : index
    %73 = vector.load %arg8[%c2, %c0_48, %c0_49] : memref<4x512x128xbf16, #tpu.memory_space<vmem>>, vector<1x512x128xbf16>
    %74 = vector.shape_cast %73 : vector<1x512x128xbf16> to vector<512x128xbf16>
    %cst_50 = arith.constant dense<0.000000e+00> : vector<16x128xf32>
    %75 = tpu.matmul %24, %74, %cst_50 {dimension_numbers = #tpu.dot_dimension_numbers<[1], [0], [0], [1], [0, 0, 1, 1], [], []>} : vector<16x512xbf16>, vector<512x128xbf16>, vector<16x128xf32> -> vector<16x128xf32>
    %76 = vector.extract_strided_slice %25 {offsets = [2, 0], sizes = [1, 128], strides = [1, 1]} : vector<4x128xf32> to vector<1x128xf32>
    %77 = vector.shape_cast %76 : vector<1x128xf32> to vector<128xf32>
    %78 = vector.shape_cast %77 : vector<128xf32> to vector<1x128xf32>
    %79 = vector.broadcast %78 : vector<1x128xf32> to vector<16x128xf32>
    %80 = arith.addf %75, %79 : vector<16x128xf32>
    %cst_51 = arith.constant 0.000000e+00 : f32
    %81 = vector.broadcast %cst_51 : f32 to vector<16x128xf32>
    %82 = arith.maximumf %80, %81 : vector<16x128xf32>
    %83 = arith.truncf %82 : vector<16x128xf32> to vector<16x128xbf16>
    %c2_52 = arith.constant 2 : index
    %c0_53 = arith.constant 0 : index
    %c0_54 = arith.constant 0 : index
    %84 = vector.load %arg10[%c2_52, %c0_53, %c0_54] : memref<4x128x128xbf16, #tpu.memory_space<vmem>>, vector<1x128x128xbf16>
    %85 = vector.shape_cast %84 : vector<1x128x128xbf16> to vector<128x128xbf16>
    %cst_55 = arith.constant dense<0.000000e+00> : vector<16x128xf32>
    %86 = tpu.matmul %83, %85, %cst_55 {dimension_numbers = #tpu.dot_dimension_numbers<[1], [0], [0], [1], [0, 0, 1, 1], [], []>} : vector<16x128xbf16>, vector<128x128xbf16>, vector<16x128xf32> -> vector<16x128xf32>
    %87 = vector.extract_strided_slice %26 {offsets = [2, 0], sizes = [1, 128], strides = [1, 1]} : vector<4x128xf32> to vector<1x128xf32>
    %88 = vector.shape_cast %87 : vector<1x128xf32> to vector<128xf32>
    %89 = vector.shape_cast %88 : vector<128xf32> to vector<1x128xf32>
    %90 = vector.broadcast %89 : vector<1x128xf32> to vector<16x128xf32>
    %91 = arith.addf %86, %90 : vector<16x128xf32>
    %cst_56 = arith.constant 0.000000e+00 : f32
    %92 = vector.broadcast %cst_56 : f32 to vector<16x128xf32>
    %93 = arith.maximumf %91, %92 : vector<16x128xf32>
    %c3 = arith.constant 3 : index
    %c0_57 = arith.constant 0 : index
    %c0_58 = arith.constant 0 : index
    %94 = vector.load %arg8[%c3, %c0_57, %c0_58] : memref<4x512x128xbf16, #tpu.memory_space<vmem>>, vector<1x512x128xbf16>
    %95 = vector.shape_cast %94 : vector<1x512x128xbf16> to vector<512x128xbf16>
    %cst_59 = arith.constant dense<0.000000e+00> : vector<16x128xf32>
    %96 = tpu.matmul %24, %95, %cst_59 {dimension_numbers = #tpu.dot_dimension_numbers<[1], [0], [0], [1], [0, 0, 1, 1], [], []>} : vector<16x512xbf16>, vector<512x128xbf16>, vector<16x128xf32> -> vector<16x128xf32>
    %97 = vector.extract_strided_slice %25 {offsets = [3, 0], sizes = [1, 128], strides = [1, 1]} : vector<4x128xf32> to vector<1x128xf32>
    %98 = vector.shape_cast %97 : vector<1x128xf32> to vector<128xf32>
    %99 = vector.shape_cast %98 : vector<128xf32> to vector<1x128xf32>
    %100 = vector.broadcast %99 : vector<1x128xf32> to vector<16x128xf32>
    %101 = arith.addf %96, %100 : vector<16x128xf32>
    %cst_60 = arith.constant 0.000000e+00 : f32
    %102 = vector.broadcast %cst_60 : f32 to vector<16x128xf32>
    %103 = arith.maximumf %101, %102 : vector<16x128xf32>
    %104 = arith.truncf %103 : vector<16x128xf32> to vector<16x128xbf16>
    %c3_61 = arith.constant 3 : index
    %c0_62 = arith.constant 0 : index
    %c0_63 = arith.constant 0 : index
    %105 = vector.load %arg10[%c3_61, %c0_62, %c0_63] : memref<4x128x128xbf16, #tpu.memory_space<vmem>>, vector<1x128x128xbf16>
    %106 = vector.shape_cast %105 : vector<1x128x128xbf16> to vector<128x128xbf16>
    %cst_64 = arith.constant dense<0.000000e+00> : vector<16x128xf32>
    %107 = tpu.matmul %104, %106, %cst_64 {dimension_numbers = #tpu.dot_dimension_numbers<[1], [0], [0], [1], [0, 0, 1, 1], [], []>} : vector<16x128xbf16>, vector<128x128xbf16>, vector<16x128xf32> -> vector<16x128xf32>
    %108 = vector.extract_strided_slice %26 {offsets = [3, 0], sizes = [1, 128], strides = [1, 1]} : vector<4x128xf32> to vector<1x128xf32>
    %109 = vector.shape_cast %108 : vector<1x128xf32> to vector<128xf32>
    %110 = vector.shape_cast %109 : vector<128xf32> to vector<1x128xf32>
    %111 = vector.broadcast %110 : vector<1x128xf32> to vector<16x128xf32>
    %112 = arith.addf %107, %111 : vector<16x128xf32>
    %cst_65 = arith.constant 0.000000e+00 : f32
    %113 = vector.broadcast %cst_65 : f32 to vector<16x128xf32>
    %114 = arith.maximumf %112, %113 : vector<16x128xf32>
    %c0_66 = arith.constant 0 : index
    %c0_67 = arith.constant 0 : index
    %c0_68 = arith.constant 0 : index
    %115 = vector.load %arg12[%c0_66, %c0_67, %c0_68] : memref<3x512x4xbf16, #tpu.memory_space<vmem>>, vector<1x512x4xbf16>
    %116 = vector.shape_cast %115 : vector<1x512x4xbf16> to vector<512x4xbf16>
    %cst_69 = arith.constant dense<0.000000e+00> : vector<16x4xf32>
    %117 = tpu.matmul %24, %116, %cst_69 {dimension_numbers = #tpu.dot_dimension_numbers<[1], [0], [0], [1], [0, 0, 1, 1], [], []>} : vector<16x512xbf16>, vector<512x4xbf16>, vector<16x4xf32> -> vector<16x4xf32>
    %118 = vector.extract_strided_slice %27 {offsets = [0, 0], sizes = [1, 4], strides = [1, 1]} : vector<3x4xf32> to vector<1x4xf32>
    %119 = vector.shape_cast %118 : vector<1x4xf32> to vector<4xf32>
    %120 = vector.shape_cast %119 : vector<4xf32> to vector<1x4xf32>
    %121 = vector.broadcast %120 : vector<1x4xf32> to vector<16x4xf32>
    %122 = arith.addf %117, %121 : vector<16x4xf32>
    %cst_70 = arith.constant dense<0xFF800000> : vector<16xf32>
    %123 = vector.multi_reduction <maximumf>, %122, %cst_70 [1] : vector<16x4xf32> to vector<16xf32>
    %cst_71 = arith.constant 0xFF800000 : f32
    %124 = vector.broadcast %cst_71 : f32 to vector<16xf32>
    %125 = arith.maximumf %124, %123 : vector<16xf32>
    %126 = vector.shape_cast %125 : vector<16xf32> to vector<16x1xf32>
    %127 = vector.broadcast %126 : vector<16x1xf32> to vector<16x4xf32>
    %128 = arith.subf %122, %127 : vector<16x4xf32>
    %129 = math.exp %128 : vector<16x4xf32>
    %cst_72 = arith.constant dense<0.000000e+00> : vector<16xf32>
    %130 = vector.multi_reduction <add>, %129, %cst_72 [1] : vector<16x4xf32> to vector<16xf32>
    %131 = vector.shape_cast %130 : vector<16xf32> to vector<16x1xf32>
    %132 = vector.broadcast %131 : vector<16x1xf32> to vector<16x4xf32>
    %133 = arith.divf %129, %132 : vector<16x4xf32>
    %134 = vector.extract_strided_slice %133 {offsets = [0, 0], sizes = [16, 1], strides = [1, 1]} : vector<16x4xf32> to vector<16x1xf32>
    %135 = vector.broadcast %134 : vector<16x1xf32> to vector<16x128xf32>
    %136 = arith.mulf %51, %135 : vector<16x128xf32>
    %137 = vector.extract_strided_slice %133 {offsets = [0, 1], sizes = [16, 1], strides = [1, 1]} : vector<16x4xf32> to vector<16x1xf32>
    %138 = vector.broadcast %137 : vector<16x1xf32> to vector<16x128xf32>
    %139 = arith.mulf %72, %138 : vector<16x128xf32>
    %140 = arith.addf %136, %139 : vector<16x128xf32>
    %141 = vector.extract_strided_slice %133 {offsets = [0, 2], sizes = [16, 1], strides = [1, 1]} : vector<16x4xf32> to vector<16x1xf32>
    %142 = vector.broadcast %141 : vector<16x1xf32> to vector<16x128xf32>
    %143 = arith.mulf %93, %142 : vector<16x128xf32>
    %144 = arith.addf %140, %143 : vector<16x128xf32>
    %145 = vector.extract_strided_slice %133 {offsets = [0, 3], sizes = [16, 1], strides = [1, 1]} : vector<16x4xf32> to vector<16x1xf32>
    %146 = vector.broadcast %145 : vector<16x1xf32> to vector<16x128xf32>
    %147 = arith.mulf %114, %146 : vector<16x128xf32>
    %148 = arith.addf %144, %147 : vector<16x128xf32>
    %149 = arith.truncf %148 : vector<16x128xf32> to vector<16x128xbf16>
    %c0_73 = arith.constant 0 : index
    %c0_74 = arith.constant 0 : index
    %c0_75 = arith.constant 0 : index
    %150 = vector.load %arg14[%c0_73, %c0_74, %c0_75] : memref<3x128x64xbf16, #tpu.memory_space<vmem>>, vector<1x128x64xbf16>
    %151 = vector.shape_cast %150 : vector<1x128x64xbf16> to vector<128x64xbf16>
    %cst_76 = arith.constant dense<0.000000e+00> : vector<16x64xf32>
    %152 = tpu.matmul %149, %151, %cst_76 {dimension_numbers = #tpu.dot_dimension_numbers<[1], [0], [0], [1], [0, 0, 1, 1], [], []>} : vector<16x128xbf16>, vector<128x64xbf16>, vector<16x64xf32> -> vector<16x64xf32>
    %153 = vector.extract_strided_slice %28 {offsets = [0, 0], sizes = [1, 64], strides = [1, 1]} : vector<3x64xf32> to vector<1x64xf32>
    %154 = vector.shape_cast %153 : vector<1x64xf32> to vector<64xf32>
    %155 = vector.shape_cast %154 : vector<64xf32> to vector<1x64xf32>
    %156 = vector.broadcast %155 : vector<1x64xf32> to vector<16x64xf32>
    %157 = arith.addf %152, %156 : vector<16x64xf32>
    %cst_77 = arith.constant 0.000000e+00 : f32
    %158 = vector.broadcast %cst_77 : f32 to vector<16x64xf32>
    %159 = arith.maximumf %157, %158 : vector<16x64xf32>
    %160 = vector.extract_strided_slice %29 {offsets = [0, 0], sizes = [1, 64], strides = [1, 1]} : vector<3x64xf32> to vector<1x64xf32>
    %161 = vector.shape_cast %160 : vector<1x64xf32> to vector<64xf32>
    %162 = vector.shape_cast %161 : vector<64xf32> to vector<1x64xf32>
    %163 = vector.broadcast %162 : vector<1x64xf32> to vector<16x64xf32>
    %164 = arith.mulf %159, %163 : vector<16x64xf32>
    %cst_78 = arith.constant dense<0.000000e+00> : vector<16xf32>
    %165 = vector.multi_reduction <add>, %164, %cst_78 [1] : vector<16x64xf32> to vector<16xf32>
    %166 = vector.shape_cast %165 : vector<16xf32> to vector<16x1xf32>
    %167 = vector.extract_strided_slice %30 {offsets = [0, 0], sizes = [1, 1], strides = [1, 1]} : vector<3x1xf32> to vector<1x1xf32>
    %168 = vector.shape_cast %167 : vector<1x1xf32> to vector<1xf32>
    %169 = vector.shape_cast %168 : vector<1xf32> to vector<1x1xf32>
    %170 = vector.broadcast %169 : vector<1x1xf32> to vector<16x1xf32>
    %171 = arith.addf %166, %170 : vector<16x1xf32>
    %172 = arith.negf %171 : vector<16x1xf32>
    %173 = math.exp %172 : vector<16x1xf32>
    %cst_79 = arith.constant 1.000000e+00 : f32
    %174 = vector.broadcast %cst_79 : f32 to vector<16x1xf32>
    %175 = arith.addf %174, %173 : vector<16x1xf32>
    %176 = arith.divf %174, %175 : vector<16x1xf32>
    %c1_80 = arith.constant 1 : index
    %c0_81 = arith.constant 0 : index
    %c0_82 = arith.constant 0 : index
    %177 = vector.load %arg12[%c1_80, %c0_81, %c0_82] : memref<3x512x4xbf16, #tpu.memory_space<vmem>>, vector<1x512x4xbf16>
    %178 = vector.shape_cast %177 : vector<1x512x4xbf16> to vector<512x4xbf16>
    %cst_83 = arith.constant dense<0.000000e+00> : vector<16x4xf32>
    %179 = tpu.matmul %24, %178, %cst_83 {dimension_numbers = #tpu.dot_dimension_numbers<[1], [0], [0], [1], [0, 0, 1, 1], [], []>} : vector<16x512xbf16>, vector<512x4xbf16>, vector<16x4xf32> -> vector<16x4xf32>
    %180 = vector.extract_strided_slice %27 {offsets = [1, 0], sizes = [1, 4], strides = [1, 1]} : vector<3x4xf32> to vector<1x4xf32>
    %181 = vector.shape_cast %180 : vector<1x4xf32> to vector<4xf32>
    %182 = vector.shape_cast %181 : vector<4xf32> to vector<1x4xf32>
    %183 = vector.broadcast %182 : vector<1x4xf32> to vector<16x4xf32>
    %184 = arith.addf %179, %183 : vector<16x4xf32>
    %cst_84 = arith.constant dense<0xFF800000> : vector<16xf32>
    %185 = vector.multi_reduction <maximumf>, %184, %cst_84 [1] : vector<16x4xf32> to vector<16xf32>
    %cst_85 = arith.constant 0xFF800000 : f32
    %186 = vector.broadcast %cst_85 : f32 to vector<16xf32>
    %187 = arith.maximumf %186, %185 : vector<16xf32>
    %188 = vector.shape_cast %187 : vector<16xf32> to vector<16x1xf32>
    %189 = vector.broadcast %188 : vector<16x1xf32> to vector<16x4xf32>
    %190 = arith.subf %184, %189 : vector<16x4xf32>
    %191 = math.exp %190 : vector<16x4xf32>
    %cst_86 = arith.constant dense<0.000000e+00> : vector<16xf32>
    %192 = vector.multi_reduction <add>, %191, %cst_86 [1] : vector<16x4xf32> to vector<16xf32>
    %193 = vector.shape_cast %192 : vector<16xf32> to vector<16x1xf32>
    %194 = vector.broadcast %193 : vector<16x1xf32> to vector<16x4xf32>
    %195 = arith.divf %191, %194 : vector<16x4xf32>
    %196 = vector.extract_strided_slice %195 {offsets = [0, 0], sizes = [16, 1], strides = [1, 1]} : vector<16x4xf32> to vector<16x1xf32>
    %197 = vector.broadcast %196 : vector<16x1xf32> to vector<16x128xf32>
    %198 = arith.mulf %51, %197 : vector<16x128xf32>
    %199 = vector.extract_strided_slice %195 {offsets = [0, 1], sizes = [16, 1], strides = [1, 1]} : vector<16x4xf32> to vector<16x1xf32>
    %200 = vector.broadcast %199 : vector<16x1xf32> to vector<16x128xf32>
    %201 = arith.mulf %72, %200 : vector<16x128xf32>
    %202 = arith.addf %198, %201 : vector<16x128xf32>
    %203 = vector.extract_strided_slice %195 {offsets = [0, 2], sizes = [16, 1], strides = [1, 1]} : vector<16x4xf32> to vector<16x1xf32>
    %204 = vector.broadcast %203 : vector<16x1xf32> to vector<16x128xf32>
    %205 = arith.mulf %93, %204 : vector<16x128xf32>
    %206 = arith.addf %202, %205 : vector<16x128xf32>
    %207 = vector.extract_strided_slice %195 {offsets = [0, 3], sizes = [16, 1], strides = [1, 1]} : vector<16x4xf32> to vector<16x1xf32>
    %208 = vector.broadcast %207 : vector<16x1xf32> to vector<16x128xf32>
    %209 = arith.mulf %114, %208 : vector<16x128xf32>
    %210 = arith.addf %206, %209 : vector<16x128xf32>
    %211 = arith.truncf %210 : vector<16x128xf32> to vector<16x128xbf16>
    %c1_87 = arith.constant 1 : index
    %c0_88 = arith.constant 0 : index
    %c0_89 = arith.constant 0 : index
    %212 = vector.load %arg14[%c1_87, %c0_88, %c0_89] : memref<3x128x64xbf16, #tpu.memory_space<vmem>>, vector<1x128x64xbf16>
    %213 = vector.shape_cast %212 : vector<1x128x64xbf16> to vector<128x64xbf16>
    %cst_90 = arith.constant dense<0.000000e+00> : vector<16x64xf32>
    %214 = tpu.matmul %211, %213, %cst_90 {dimension_numbers = #tpu.dot_dimension_numbers<[1], [0], [0], [1], [0, 0, 1, 1], [], []>} : vector<16x128xbf16>, vector<128x64xbf16>, vector<16x64xf32> -> vector<16x64xf32>
    %215 = vector.extract_strided_slice %28 {offsets = [1, 0], sizes = [1, 64], strides = [1, 1]} : vector<3x64xf32> to vector<1x64xf32>
    %216 = vector.shape_cast %215 : vector<1x64xf32> to vector<64xf32>
    %217 = vector.shape_cast %216 : vector<64xf32> to vector<1x64xf32>
    %218 = vector.broadcast %217 : vector<1x64xf32> to vector<16x64xf32>
    %219 = arith.addf %214, %218 : vector<16x64xf32>
    %cst_91 = arith.constant 0.000000e+00 : f32
    %220 = vector.broadcast %cst_91 : f32 to vector<16x64xf32>
    %221 = arith.maximumf %219, %220 : vector<16x64xf32>
    %222 = vector.extract_strided_slice %29 {offsets = [1, 0], sizes = [1, 64], strides = [1, 1]} : vector<3x64xf32> to vector<1x64xf32>
    %223 = vector.shape_cast %222 : vector<1x64xf32> to vector<64xf32>
    %224 = vector.shape_cast %223 : vector<64xf32> to vector<1x64xf32>
    %225 = vector.broadcast %224 : vector<1x64xf32> to vector<16x64xf32>
    %226 = arith.mulf %221, %225 : vector<16x64xf32>
    %cst_92 = arith.constant dense<0.000000e+00> : vector<16xf32>
    %227 = vector.multi_reduction <add>, %226, %cst_92 [1] : vector<16x64xf32> to vector<16xf32>
    %228 = vector.shape_cast %227 : vector<16xf32> to vector<16x1xf32>
    %229 = vector.extract_strided_slice %30 {offsets = [1, 0], sizes = [1, 1], strides = [1, 1]} : vector<3x1xf32> to vector<1x1xf32>
    %230 = vector.shape_cast %229 : vector<1x1xf32> to vector<1xf32>
    %231 = vector.shape_cast %230 : vector<1xf32> to vector<1x1xf32>
    %232 = vector.broadcast %231 : vector<1x1xf32> to vector<16x1xf32>
    %233 = arith.addf %228, %232 : vector<16x1xf32>
    %234 = arith.negf %233 : vector<16x1xf32>
    %235 = math.exp %234 : vector<16x1xf32>
    %cst_93 = arith.constant 1.000000e+00 : f32
    %236 = vector.broadcast %cst_93 : f32 to vector<16x1xf32>
    %237 = arith.addf %236, %235 : vector<16x1xf32>
    %238 = arith.divf %236, %237 : vector<16x1xf32>
    %c2_94 = arith.constant 2 : index
    %c0_95 = arith.constant 0 : index
    %c0_96 = arith.constant 0 : index
    %239 = vector.load %arg12[%c2_94, %c0_95, %c0_96] : memref<3x512x4xbf16, #tpu.memory_space<vmem>>, vector<1x512x4xbf16>
    %240 = vector.shape_cast %239 : vector<1x512x4xbf16> to vector<512x4xbf16>
    %cst_97 = arith.constant dense<0.000000e+00> : vector<16x4xf32>
    %241 = tpu.matmul %24, %240, %cst_97 {dimension_numbers = #tpu.dot_dimension_numbers<[1], [0], [0], [1], [0, 0, 1, 1], [], []>} : vector<16x512xbf16>, vector<512x4xbf16>, vector<16x4xf32> -> vector<16x4xf32>
    %242 = vector.extract_strided_slice %27 {offsets = [2, 0], sizes = [1, 4], strides = [1, 1]} : vector<3x4xf32> to vector<1x4xf32>
    %243 = vector.shape_cast %242 : vector<1x4xf32> to vector<4xf32>
    %244 = vector.shape_cast %243 : vector<4xf32> to vector<1x4xf32>
    %245 = vector.broadcast %244 : vector<1x4xf32> to vector<16x4xf32>
    %246 = arith.addf %241, %245 : vector<16x4xf32>
    %cst_98 = arith.constant dense<0xFF800000> : vector<16xf32>
    %247 = vector.multi_reduction <maximumf>, %246, %cst_98 [1] : vector<16x4xf32> to vector<16xf32>
    %cst_99 = arith.constant 0xFF800000 : f32
    %248 = vector.broadcast %cst_99 : f32 to vector<16xf32>
    %249 = arith.maximumf %248, %247 : vector<16xf32>
    %250 = vector.shape_cast %249 : vector<16xf32> to vector<16x1xf32>
    %251 = vector.broadcast %250 : vector<16x1xf32> to vector<16x4xf32>
    %252 = arith.subf %246, %251 : vector<16x4xf32>
    %253 = math.exp %252 : vector<16x4xf32>
    %cst_100 = arith.constant dense<0.000000e+00> : vector<16xf32>
    %254 = vector.multi_reduction <add>, %253, %cst_100 [1] : vector<16x4xf32> to vector<16xf32>
    %255 = vector.shape_cast %254 : vector<16xf32> to vector<16x1xf32>
    %256 = vector.broadcast %255 : vector<16x1xf32> to vector<16x4xf32>
    %257 = arith.divf %253, %256 : vector<16x4xf32>
    %258 = vector.extract_strided_slice %257 {offsets = [0, 0], sizes = [16, 1], strides = [1, 1]} : vector<16x4xf32> to vector<16x1xf32>
    %259 = vector.broadcast %258 : vector<16x1xf32> to vector<16x128xf32>
    %260 = arith.mulf %51, %259 : vector<16x128xf32>
    %261 = vector.extract_strided_slice %257 {offsets = [0, 1], sizes = [16, 1], strides = [1, 1]} : vector<16x4xf32> to vector<16x1xf32>
    %262 = vector.broadcast %261 : vector<16x1xf32> to vector<16x128xf32>
    %263 = arith.mulf %72, %262 : vector<16x128xf32>
    %264 = arith.addf %260, %263 : vector<16x128xf32>
    %265 = vector.extract_strided_slice %257 {offsets = [0, 2], sizes = [16, 1], strides = [1, 1]} : vector<16x4xf32> to vector<16x1xf32>
    %266 = vector.broadcast %265 : vector<16x1xf32> to vector<16x128xf32>
    %267 = arith.mulf %93, %266 : vector<16x128xf32>
    %268 = arith.addf %264, %267 : vector<16x128xf32>
    %269 = vector.extract_strided_slice %257 {offsets = [0, 3], sizes = [16, 1], strides = [1, 1]} : vector<16x4xf32> to vector<16x1xf32>
    %270 = vector.broadcast %269 : vector<16x1xf32> to vector<16x128xf32>
    %271 = arith.mulf %114, %270 : vector<16x128xf32>
    %272 = arith.addf %268, %271 : vector<16x128xf32>
    %273 = arith.truncf %272 : vector<16x128xf32> to vector<16x128xbf16>
    %c2_101 = arith.constant 2 : index
    %c0_102 = arith.constant 0 : index
    %c0_103 = arith.constant 0 : index
    %274 = vector.load %arg14[%c2_101, %c0_102, %c0_103] : memref<3x128x64xbf16, #tpu.memory_space<vmem>>, vector<1x128x64xbf16>
    %275 = vector.shape_cast %274 : vector<1x128x64xbf16> to vector<128x64xbf16>
    %cst_104 = arith.constant dense<0.000000e+00> : vector<16x64xf32>
    %276 = tpu.matmul %273, %275, %cst_104 {dimension_numbers = #tpu.dot_dimension_numbers<[1], [0], [0], [1], [0, 0, 1, 1], [], []>} : vector<16x128xbf16>, vector<128x64xbf16>, vector<16x64xf32> -> vector<16x64xf32>
    %277 = vector.extract_strided_slice %28 {offsets = [2, 0], sizes = [1, 64], strides = [1, 1]} : vector<3x64xf32> to vector<1x64xf32>
    %278 = vector.shape_cast %277 : vector<1x64xf32> to vector<64xf32>
    %279 = vector.shape_cast %278 : vector<64xf32> to vector<1x64xf32>
    %280 = vector.broadcast %279 : vector<1x64xf32> to vector<16x64xf32>
    %281 = arith.addf %276, %280 : vector<16x64xf32>
    %cst_105 = arith.constant 0.000000e+00 : f32
    %282 = vector.broadcast %cst_105 : f32 to vector<16x64xf32>
    %283 = arith.maximumf %281, %282 : vector<16x64xf32>
    %284 = vector.extract_strided_slice %29 {offsets = [2, 0], sizes = [1, 64], strides = [1, 1]} : vector<3x64xf32> to vector<1x64xf32>
    %285 = vector.shape_cast %284 : vector<1x64xf32> to vector<64xf32>
    %286 = vector.shape_cast %285 : vector<64xf32> to vector<1x64xf32>
    %287 = vector.broadcast %286 : vector<1x64xf32> to vector<16x64xf32>
    %288 = arith.mulf %283, %287 : vector<16x64xf32>
    %cst_106 = arith.constant dense<0.000000e+00> : vector<16xf32>
    %289 = vector.multi_reduction <add>, %288, %cst_106 [1] : vector<16x64xf32> to vector<16xf32>
    %290 = vector.shape_cast %289 : vector<16xf32> to vector<16x1xf32>
    %291 = vector.extract_strided_slice %30 {offsets = [2, 0], sizes = [1, 1], strides = [1, 1]} : vector<3x1xf32> to vector<1x1xf32>
    %292 = vector.shape_cast %291 : vector<1x1xf32> to vector<1xf32>
    %293 = vector.shape_cast %292 : vector<1xf32> to vector<1x1xf32>
    %294 = vector.broadcast %293 : vector<1x1xf32> to vector<16x1xf32>
    %295 = arith.addf %290, %294 : vector<16x1xf32>
    %296 = arith.negf %295 : vector<16x1xf32>
    %297 = math.exp %296 : vector<16x1xf32>
    %cst_107 = arith.constant 1.000000e+00 : f32
    %298 = vector.broadcast %cst_107 : f32 to vector<16x1xf32>
    %299 = arith.addf %298, %297 : vector<16x1xf32>
    %300 = arith.divf %298, %299 : vector<16x1xf32>
    %301 = tpu.concatenate %176, %238, %300 in 1 : vector<16x1xf32>, vector<16x1xf32>, vector<16x1xf32> -> vector<16x3xf32>
    %c0_108 = arith.constant 0 : index
    %c0_109 = arith.constant 0 : index
    %302 = vector.load %arg18[%c0_108, %c0_109] : memref<16x3xf32, #tpu.memory_space<vmem>>, vector<16x3xf32>
    tpu.vector_store %arg18[%c0_108, %c0_109], %301 {strides = array<i32>} : memref<16x3xf32, #tpu.memory_space<vmem>>, vector<16x3xf32>,
    %303 = tpu.concatenate %133, %195, %257 in 1 : vector<16x4xf32>, vector<16x4xf32>, vector<16x4xf32> -> vector<16x12xf32>
    %c0_110 = arith.constant 0 : index
    %c0_111 = arith.constant 0 : index
    %304 = vector.load %arg19[%c0_110, %c0_111] : memref<16x12xf32, #tpu.memory_space<vmem>>, vector<16x12xf32>
    tpu.vector_store %arg19[%c0_110, %c0_111], %303 {strides = array<i32>} : memref<16x12xf32, #tpu.memory_space<vmem>>, vector<16x12xf32>,
    return
  }
  func.func @transform_0(%arg0: i32) -> (i32, i32) {
    %c0_i32 = arith.constant 0 : i32
    %c0_i32_0 = arith.constant 0 : i32
    return %arg0, %c0_i32 : i32, i32
  }
  func.func @transform_1(%arg0: i32) -> (i32, i32) {
    %c0_i32 = arith.constant 0 : i32
    %c0_i32_0 = arith.constant 0 : i32
    %c0_i32_1 = arith.constant 0 : i32
    return %c0_i32, %c0_i32_0 : i32, i32
  }
  func.func @transform_2(%arg0: i32) -> (i32, i32) {
    %c0_i32 = arith.constant 0 : i32
    %c0_i32_0 = arith.constant 0 : i32
    %c0_i32_1 = arith.constant 0 : i32
    return %c0_i32, %c0_i32_0 : i32, i32
  }
  func.func @transform_3(%arg0: i32) -> (i32, i32) {
    %c0_i32 = arith.constant 0 : i32
    %c0_i32_0 = arith.constant 0 : i32
    %c0_i32_1 = arith.constant 0 : i32
    return %c0_i32, %c0_i32_0 : i32, i32
  }
  func.func @transform_4(%arg0: i32) -> (i32, i32) {
    %c0_i32 = arith.constant 0 : i32
    %c0_i32_0 = arith.constant 0 : i32
    %c0_i32_1 = arith.constant 0 : i32
    return %c0_i32, %c0_i32_0 : i32, i32
  }
  func.func @transform_5(%arg0: i32) -> (i32, i32) {
    %c0_i32 = arith.constant 0 : i32
    %c0_i32_0 = arith.constant 0 : i32
    %c0_i32_1 = arith.constant 0 : i32
    return %c0_i32, %c0_i32_0 : i32, i32
  }
  func.func @transform_6(%arg0: i32) -> (i32, i32) {
    %c0_i32 = arith.constant 0 : i32
    %c0_i32_0 = arith.constant 0 : i32
    %c0_i32_1 = arith.constant 0 : i32
    return %c0_i32, %c0_i32_0 : i32, i32
  }
  func.func @transform_7(%arg0: i32) -> (i32, i32, i32) {
    %c0_i32 = arith.constant 0 : i32
    %c0_i32_0 = arith.constant 0 : i32
    %c0_i32_1 = arith.constant 0 : i32
    %c0_i32_2 = arith.constant 0 : i32
    return %c0_i32, %c0_i32_0, %c0_i32_1 : i32, i32, i32
  }
  func.func @transform_8(%arg0: i32) -> (i32, i32) {
    %c0_i32 = arith.constant 0 : i32
    %c0_i32_0 = arith.constant 0 : i32
    %c0_i32_1 = arith.constant 0 : i32
    return %c0_i32, %c0_i32_0 : i32, i32
  }
  func.func @transform_9(%arg0: i32) -> (i32, i32, i32) {
    %c0_i32 = arith.constant 0 : i32
    %c0_i32_0 = arith.constant 0 : i32
    %c0_i32_1 = arith.constant 0 : i32
    %c0_i32_2 = arith.constant 0 : i32
    return %c0_i32, %c0_i32_0, %c0_i32_1 : i32, i32, i32
  }
  func.func @transform_10(%arg0: i32) -> (i32, i32) {
    %c0_i32 = arith.constant 0 : i32
    %c0_i32_0 = arith.constant 0 : i32
    %c0_i32_1 = arith.constant 0 : i32
    return %c0_i32, %c0_i32_0 : i32, i32
  }
  func.func @transform_11(%arg0: i32) -> (i32, i32, i32) {
    %c0_i32 = arith.constant 0 : i32
    %c0_i32_0 = arith.constant 0 : i32
    %c0_i32_1 = arith.constant 0 : i32
    %c0_i32_2 = arith.constant 0 : i32
    return %c0_i32, %c0_i32_0, %c0_i32_1 : i32, i32, i32
  }
  func.func @transform_12(%arg0: i32) -> (i32, i32) {
    %c0_i32 = arith.constant 0 : i32
    %c0_i32_0 = arith.constant 0 : i32
    %c0_i32_1 = arith.constant 0 : i32
    return %c0_i32, %c0_i32_0 : i32, i32
  }
  func.func @transform_13(%arg0: i32) -> (i32, i32, i32) {
    %c0_i32 = arith.constant 0 : i32
    %c0_i32_0 = arith.constant 0 : i32
    %c0_i32_1 = arith.constant 0 : i32
    %c0_i32_2 = arith.constant 0 : i32
    return %c0_i32, %c0_i32_0, %c0_i32_1 : i32, i32, i32
  }
  func.func @transform_14(%arg0: i32) -> (i32, i32) {
    %c0_i32 = arith.constant 0 : i32
    %c0_i32_0 = arith.constant 0 : i32
    %c0_i32_1 = arith.constant 0 : i32
    return %c0_i32, %c0_i32_0 : i32, i32
  }
  func.func @transform_15(%arg0: i32) -> (i32, i32) {
    %c0_i32 = arith.constant 0 : i32
    %c0_i32_0 = arith.constant 0 : i32
    %c0_i32_1 = arith.constant 0 : i32
    return %c0_i32, %c0_i32_0 : i32, i32
  }
  func.func @transform_16(%arg0: i32) -> (i32, i32) {
    %c0_i32 = arith.constant 0 : i32
    %c0_i32_0 = arith.constant 0 : i32
    %c0_i32_1 = arith.constant 0 : i32
    return %c0_i32, %c0_i32_0 : i32, i32
  }
  func.func @transform_17(%arg0: i32) -> (i32, i32) {
    %c0_i32 = arith.constant 0 : i32
    %c0_i32_0 = arith.constant 0 : i32
    return %arg0, %c0_i32 : i32, i32
  }
  func.func @transform_18(%arg0: i32) -> (i32, i32) {
    %c0_i32 = arith.constant 0 : i32
    %c0_i32_0 = arith.constant 0 : i32
    return %arg0, %c0_i32 : i32, i32
  }
}

</mosaic_0001>

<bundles_post_ra>
// kernel: fp_mmoe_forward.1
= control target key start
LH: loop header
LB: loop body
LE: loop exit
PB: predicated region body
PF: predicated region fallthrough
CT: control target
= control target key end

     0   :  { %s19115_s0 = inlined_call_operand.vmem [shape: bf16[16,4352], index: 0, kind: input, shape index: {}]   ;;  %s19116_s1 = inlined_call_operand.hbm [shape: bf16[4352,512], index: 1, kind: input, shape index: {}]   ;;  %s19117_s2 = inlined_call_operand.hbm [shape: f32[1,512], index: 2, kind: input, shape index: {}]   ;;  %s19118_s3 = inlined_call_operand.hbm [shape: bf16[512,512], index: 3, kind: input, shape index: {}]   ;;  %s19119_s4 = inlined_call_operand.hbm [shape: f32[1,512], index: 4, kind: input, shape index: {}]   ;;  %s19120_s5 = inlined_call_operand.hbm [shape: f32[1,512], index: 5, kind: input, shape index: {}]   ;;  %s19121_s6 = inlined_call_operand.hbm [shape: f32[1,512], index: 6, kind: input, shape index: {}]   ;;  %s19122_s7 = inlined_call_operand.hbm [shape: bf16[4,512,128], index: 7, kind: input, shape index: {}]   ;;  %s19123_s8 = inlined_call_operand.hbm [shape: f32[4,128], index: 8, kind: input, shape index: {}]   ;;  %s19124_s9 = inlined_call_operand.hbm [shape: bf16[4,128,128], index: 9, kind: input, shape index: {}]   ;;  %s19125_s10 = inlined_call_operand.hbm [shape: f32[4,128], index: 10, kind: input, shape index: {}]   ;;  %s19126_s11 = inlined_call_operand.vmem [shape: bf16[3,512,4], index: 11, kind: input, shape index: {}]   ;;  %s19127_s12 = inlined_call_operand.hbm [shape: f32[3,4], index: 12, kind: input, shape index: {}]   ;;  %s19128_s13 = inlined_call_operand.vmem [shape: bf16[3,128,64], index: 13, kind: input, shape index: {}]   ;;  %s19129_s14 = inlined_call_operand.hbm [shape: f32[3,64], index: 14, kind: input, shape index: {}]   ;;  %s19130_s15 = inlined_call_operand.hbm [shape: f32[3,64], index: 15, kind: input, shape index: {}]   ;;  %s19131_s16 = inlined_call_operand.vmem [shape: f32[3,1], index: 16, kind: input, shape index: {}]   ;;  %s19132_s17 = inlined_call_operand.vmem [shape: f32[16,3], index: 17, kind: output, shape index: {0}]   ;;  %s19133_s18 = inlined_call_operand.vmem [shape: f32[16,12], index: 18, kind: output, shape index: {1}]  }
   0x1   :  { %19135 = sst [smem:[#allocation29_spill]] %s19115_s0 }
   0x2   :  { %19136 = sst [smem:[#allocation30_spill]] %s19116_s1 }
   0x3   :  { %19137 = sst [smem:[#allocation31_spill]] %s19117_s2 }
   0x4   :  { %24 = vsyncpa [#allocation3], 0 }
   0x5   :  { %25 = vsyncpa [#allocation5], 0 }
   0x6   :  { %26 = vsyncpa [#allocation8], 0 }
   0x7   :  { %27 = vsyncpa [#allocation11], 0 }
   0x8   :  { %28 = vsyncpa [#allocation14], 0 }
   0x9   :  { %29 = vsyncpa [#allocation17], 0 }
   0xa   :  { %30 = vsyncpa [#allocation20], 0  ;;  %s17820_s27 = smov [#allocation4]   ;;  %s17821_s29 = smov [#allocation7]  }
   0xb   :  { %s51_s28 = sshll.u32 %s17820_s27, 4  ;;  %s73_s30 = sshll.u32 %s17821_s29, 4  ;;  %s52_s28 = int_to_ptr.vmem [resolvable:$true] %s51_s28  ;;  %s74_s30 = int_to_ptr.vmem [resolvable:$true] %s73_s30 }
   0xc   :  { %s17554_s0 = scalar_lea.vmem %s52_s28, 64  ;;  %p17559_p1 = scmp.lt.s32.totalorder %s52_s28, %s52_s28 }
   0xd   :  { %p17555_p0 = scmp.ne.s32.totalorder %s52_s28, %s17554_s0  ;;  %p17560_p2 = scmp.lt.s32.totalorder %s17554_s0, %s17554_s0 }
   0xf   :  { %p17561_p3 = por %p17560_p2, %p17559_p1 }
  0x11   :  { %p17562_p4 = pnand %p17561_p3, %p17555_p0 }
  0x13   :  { %17565 = shalt.err (!%p17562_p4)
}
  0x14   :  { %s19138_s20 = sld [smem:[#allocation31_spill]]  ;;  %s17574_s21 = scalar_lea.vmem %s74_s30, 64 }
  0x15   :  { %p17575_p5 = scmp.ne.s32.totalorder %s74_s30, %s17574_s21  ;;  %p17579_p6 = scmp.lt.s32.totalorder %s74_s30, %s74_s30 }
  0x16   :  { %p17580_p7 = scmp.lt.s32.totalorder %s17574_s21, %s17574_s21 }
  0x18   :  { %p17581_p8 = por %p17580_p7, %p17579_p6 }
  0x1a   :  { %54 = dma.hbm_to_vmem [thread:$0]  %s19138_s20, 64, %s52_s28, [#allocation5]  }
  0x1b   :  { %p17582_p9 = pnand %p17581_p8, %p17575_p5 }
  0x1d   :  { %17585 = shalt.err (!%p17582_p9)
}
  0x1e   :  { %76 = dma.hbm_to_vmem [thread:$0]  %s19119_s4, 64, %s74_s30, [#allocation8]  }
  0x1f   :  { %s17822_s23 = smov [#allocation10]   ;;  %s17823_s25 = smov [#allocation13]  }
  0x20   :  { %s93_s24 = sshll.u32 %s17822_s23, 4  ;;  %s115_s26 = sshll.u32 %s17823_s25, 4  ;;  %s94_s24 = int_to_ptr.vmem [resolvable:$true] %s93_s24  ;;  %s116_s26 = int_to_ptr.vmem [resolvable:$true] %s115_s26 }
  0x21   :  { %s17594_s27 = scalar_lea.vmem %s94_s24, 64  ;;  %p17599_p11 = scmp.lt.s32.totalorder %s94_s24, %s94_s24 }
  0x22   :  { %p17595_p10 = scmp.ne.s32.totalorder %s94_s24, %s17594_s27  ;;  %p17600_p12 = scmp.lt.s32.totalorder %s17594_s27, %s17594_s27 }
  0x24   :  { %p17601_p13 = por %p17600_p12, %p17599_p11 }
  0x26   :  { %p17602_p0 = pnand %p17601_p13, %p17595_p10 }
  0x28   :  { %17605 = shalt.err (!%p17602_p0)
}
  0x29   :  { %96 = dma.hbm_to_vmem [thread:$0]  %s19121_s6, 64, %s94_s24, [#allocation11]  }
  0x2a   :  { %s17614_s0 = scalar_lea.vmem %s116_s26, 64  ;;  %p17619_p2 = scmp.lt.s32.totalorder %s116_s26, %s116_s26 }
  0x2b   :  { %p17615_p1 = scmp.ne.s32.totalorder %s116_s26, %s17614_s0  ;;  %p17620_p3 = scmp.lt.s32.totalorder %s17614_s0, %s17614_s0 }
  0x2d   :  { %p17621_p4 = por %p17620_p3, %p17619_p2 }
  0x2f   :  { %p17622_p5 = pnand %p17621_p4, %p17615_p1 }
  0x31   :  { %17625 = shalt.err (!%p17622_p5)
}
  0x32   :  { %118 = dma.hbm_to_vmem [thread:$0]  %s19123_s8, 64, %s116_s26, [#allocation14]  }
  0x33   :  { %s17824_s19 = smov [#allocation16]   ;;  %s17825_s20 = smov [#allocation19]  }
  0x34   :  { %s137_s1 = sshll.u32 %s17824_s19, 4  ;;  %s161_s21 = sshll.u32 %s17825_s20, 4  ;;  %s138_s1 = int_to_ptr.vmem [resolvable:$true] %s137_s1  ;;  %s162_s21 = int_to_ptr.vmem [resolvable:$true] %s161_s21 }
  0x35   :  { %s17634_s22 = scalar_lea.vmem %s138_s1, 64  ;;  %p17639_p7 = scmp.lt.s32.totalorder %s138_s1, %s138_s1 }
  0x36   :  { %p17635_p6 = scmp.ne.s32.totalorder %s138_s1, %s17634_s22  ;;  %p17640_p8 = scmp.lt.s32.totalorder %s17634_s22, %s17634_s22 }
  0x38   :  { %p17641_p9 = por %p17640_p8, %p17639_p7 }
  0x3a   :  { %p17642_p10 = pnand %p17641_p9, %p17635_p6 }
  0x3c   :  { %17645 = shalt.err (!%p17642_p10)
}
  0x3d   :  { %140 = dma.hbm_to_vmem [thread:$0]  %s19125_s10, 64, %s138_s1, [#allocation17]  }
  0x3e   :  { %s17654_s23 = scalar_lea.vmem %s162_s21, 64  ;;  %p17659_p12 = scmp.lt.s32.totalorder %s162_s21, %s162_s21 }
  0x3f   :  { %p17655_p11 = scmp.ne.s32.totalorder %s162_s21, %s17654_s23  ;;  %p17660_p13 = scmp.lt.s32.totalorder %s17654_s23, %s17654_s23 }
  0x41   :  { %p17661_p0 = por %p17660_p13, %p17659_p12 }
  0x43   :  { %p17662_p1 = pnand %p17661_p0, %p17655_p11 }
  0x45   :  { %17665 = shalt.err (!%p17662_p1)
}
  0x46   :  { %164 = dma.hbm_to_vmem [thread:$0]  %s19129_s14, 64, %s162_s21, [#allocation20]  }
  0x47   :  { %s17826_s25 = smov [#allocation2]  }
  0x48   :  { %s38_s26 = sshll.u32 %s17826_s25, 4  ;;  %s39_s26 = int_to_ptr.vmem [resolvable:$true] %s38_s26 }
  0x49   :  { %s17674_s27 = scalar_lea.vmem %s39_s26, 139264  ;;  %p17679_p3 = scmp.lt.s32.totalorder %s39_s26, %s39_s26 }
  0x4a   :  { %p17675_p2 = scmp.ne.s32.totalorder %s39_s26, %s17674_s27  ;;  %p17680_p4 = scmp.lt.s32.totalorder %s17674_s27, %s17674_s27 }
  0x4c   :  { %p17681_p5 = por %p17680_p4, %p17679_p3 }
  0x4e   :  { %p17682_p6 = pnand %p17681_p5, %p17675_p2 }
  0x50   :  { %17685 = shalt.err (!%p17682_p6)
}
  0x51   :  { %s17827_s10 = smov 256   ;;  %s17828_s28 = smov 16  }
  0x52   :  { %s19139_s4 = sld [smem:[#allocation30_spill]]  ;;  %s17829_s30 = smov [#allocation6]  }
  0x53   :  { %s60_s19 = sshll.u32 %s17829_s30, 4  ;;  %s17830_s14 = smov [#allocation9]   ;;  %s61_s19 = int_to_ptr.vmem [resolvable:$true] %s60_s19 }
  0x54   :  { %s83_s1 = sshll.u32 %s17830_s14, 4  ;;  %s17694_s20 = scalar_lea.vmem %s61_s19, 16384  ;;  %s84_s1 = int_to_ptr.vmem [resolvable:$true] %s83_s1 }
  0x55   :  { %p17695_p7 = scmp.ne.s32.totalorder %s61_s19, %s17694_s20  ;;  %p17699_p8 = scmp.lt.s32.totalorder %s61_s19, %s61_s19 }
  0x56   :  { %p17700_p9 = scmp.lt.s32.totalorder %s17694_s20, %s17694_s20 }
  0x58   :  { %44 = dma.hbm_to_vmem [thread:$0]  %s19139_s4, 139264, %s39_s26, [#allocation3], %s17827_s10, %s17827_s10, %s17828_s28  }
  0x59   :  { %p17701_p10 = por %p17700_p9, %p17699_p8 }
  0x5b   :  { %p17702_p11 = pnand %p17701_p10, %p17695_p7 }
  0x5d   :  { %17705 = shalt.err (!%p17702_p11)
}
  0x5e   :  { %66 = dma.hbm_to_vmem [thread:$0]  %s19118_s3, 16384, %s61_s19, [#allocation5], %s17827_s10, %s17827_s10, %s17828_s28  }
  0x5f   :  { %s17714_s6 = scalar_lea.vmem %s84_s1, 64  ;;  %p17719_p13 = scmp.lt.s32.totalorder %s84_s1, %s84_s1 }
  0x60   :  { %p17715_p12 = scmp.ne.s32.totalorder %s84_s1, %s17714_s6  ;;  %p17720_p0 = scmp.lt.s32.totalorder %s17714_s6, %s17714_s6 }
  0x62   :  { %p17721_p1 = por %p17720_p0, %p17719_p13 }
  0x64   :  { %p17722_p2 = pnand %p17721_p1, %p17715_p12 }
  0x66   :  { %17725 = shalt.err (!%p17722_p2)
}
  0x67   :  { %86 = dma.hbm_to_vmem [thread:$0]  %s19120_s5, 64, %s84_s1, [#allocation8]  }
  0x68   :  { %s17831_s8 = smov [#allocation12]  }
  0x69   :  { %s102_s24 = sshll.u32 %s17831_s8, 4  ;;  %s103_s24 = int_to_ptr.vmem [resolvable:$true] %s102_s24 }
  0x6a   :  { %s17734_s25 = scalar_lea.vmem %s103_s24, 16384  ;;  %p17739_p4 = scmp.lt.s32.totalorder %s103_s24, %s103_s24 }
  0x6b   :  { %p17735_p3 = scmp.ne.s32.totalorder %s103_s24, %s17734_s25  ;;  %p17740_p5 = scmp.lt.s32.totalorder %s17734_s25, %s17734_s25 }
  0x6d   :  { %p17741_p6 = por %p17740_p5, %p17739_p4 }
  0x6f   :  { %p17742_p7 = pnand %p17741_p6, %p17735_p3 }
  0x71   :  { %17745 = shalt.err (!%p17742_p7)
}
  0x72   :  { %s17832_s3 = smov 64   ;;  %s17833_s26 = smov 4  }
  0x73   :  { %108 = dma.hbm_to_vmem [thread:$0]  %s19122_s7, 16384, %s103_s24, [#allocation11], %s17832_s3, %s17832_s3, %s17833_s26  }
  0x74   :  { %s17834_s28 = smov [#allocation15]   ;;  %s17835_s5 = smov [#allocation18]  }
  0x75   :  { %s124_s29 = sshll.u32 %s17834_s28, 4  ;;  %s149_s0 = sshll.u32 %s17835_s5, 4  ;;  %s125_s29 = int_to_ptr.vmem [resolvable:$true] %s124_s29  ;;  %s150_s0 = int_to_ptr.vmem [resolvable:$true] %s149_s0 }
  0x76   :  { %s17754_s4 = scalar_lea.vmem %s125_s29, 4096  ;;  %p17759_p9 = scmp.lt.s32.totalorder %s125_s29, %s125_s29 }
  0x77   :  { %p17755_p8 = scmp.ne.s32.totalorder %s125_s29, %s17754_s4  ;;  %p17760_p10 = scmp.lt.s32.totalorder %s17754_s4, %s17754_s4 }
  0x79   :  { %p17761_p11 = por %p17760_p10, %p17759_p9 }
  0x7b   :  { %p17762_p12 = pnand %p17761_p11, %p17755_p8 }
  0x7d   :  { %17765 = shalt.err (!%p17762_p12)
}
  0x7e   :  { %130 = dma.hbm_to_vmem [thread:$0]  %s19124_s9, 4096, %s125_s29, [#allocation14], %s17832_s3, %s17832_s3, %s17833_s26  }
  0x7f   :  { %s17774_s14 = scalar_lea.vmem %s150_s0, 64  ;;  %p17779_p0 = scmp.lt.s32.totalorder %s150_s0, %s150_s0 }
  0x80   :  { %p17775_p13 = scmp.ne.s32.totalorder %s150_s0, %s17774_s14  ;;  %p17780_p1 = scmp.lt.s32.totalorder %s17774_s14, %s17774_s14 }
  0x82   :  { %p17781_p2 = por %p17780_p1, %p17779_p0 }
  0x84   :  { %p17782_p3 = pnand %p17781_p2, %p17775_p13 }
  0x86   :  { %17785 = shalt.err (!%p17782_p3)
}
  0x87   :  { %152 = dma.hbm_to_vmem [thread:$0]  %s19127_s12, 64, %s150_s0, [#allocation17]  }
  0x88   :  { %s17836_s20 = smov [#allocation21]  }
  0x89   :  { %s171_s21 = sshll.u32 %s17836_s20, 4  ;;  %s172_s21 = int_to_ptr.vmem [resolvable:$true] %s171_s21 }
  0x8a   :  { %s17794_s22 = scalar_lea.vmem %s172_s21, 64  ;;  %p17799_p5 = scmp.lt.s32.totalorder %s172_s21, %s172_s21 }
  0x8b   :  { %p17795_p4 = scmp.ne.s32.totalorder %s172_s21, %s17794_s22  ;;  %p17800_p6 = scmp.lt.s32.totalorder %s17794_s22, %s17794_s22 }
  0x8d   :  { %p17801_p7 = por %p17800_p6, %p17799_p5 }
  0x8f   :  { %p17802_p8 = pnand %p17801_p7, %p17795_p4 }
  0x91   :  { %17805 = shalt.err (!%p17802_p8)
}
  0x92   :  { %174 = dma.hbm_to_vmem [thread:$0]  %s19130_s15, 64, %s172_s21, [#allocation20]  }
  0x93   :  { %17806 = dma.done.wait [#allocation3], 139264  }
  0x94   :  { %17807 = vsyncadd [#allocation3], 4294828032 }
  0x95   :  { %17808 = dma.done.wait [#allocation5], 16448  }
  0x96   :  { %17809 = vsyncadd [#allocation5], 4294950848 }
  0x97   :  { %17810 = dma.done.wait [#allocation8], 128  }
  0x98   :  { %17811 = vsyncadd [#allocation8], 4294967168 }
  0x99   :  { %17812 = dma.done.wait [#allocation11], 16448  }
  0x9a   :  { %17813 = vsyncadd [#allocation11], 4294950848 }
  0x9b   :  { %17814 = dma.done.wait [#allocation14], 4160  }
  0x9c   :  { %17815 = vsyncadd [#allocation14], 4294963136 }
  0x9d   :  { %17816 = dma.done.wait [#allocation17], 128  }
  0x9e   :  { %17817 = vsyncadd [#allocation17], 4294967168 }
  0x9f   :  { %17818 = dma.done.wait [#allocation20], 128  }
  0xa0   :  { %17819 = vsyncadd [#allocation20], 4294967168  ;;  %v15308_v0 = vld [vmem:[#allocation2 + $0xe4] ss:$16 sps:$4 sm:$0xff]   ;;  %v15312_v2 = vld [vmem:[#allocation2 + $0xe0] ss:$16 sps:$4 sm:$0xff]  }
  0xa1   :  { %v15310_v1 = vld [vmem:[#allocation2 + $0x2e4] ss:$16 sps:$4 sm:$0xff]   ;;  %6971 = vmatprep.subr.bf16.mxu0 %v15308_v0  ;;  %v15313_v3 = vld [vmem:[#allocation2 + $0x2e0] ss:$16 sps:$4 sm:$0xff]   ;;  %s19140_s2 = sld [smem:[#allocation29_spill]]  ;;  %vm17838_vm0 = vmmov 0  }
  0xa2   :  { %7014 = vmatprep.subr.bf16.mxu1 %v15310_v1  ;;  %v15314_v4 = vld [vmem:[#allocation2 + $0xc4] ss:$16 sps:$4 sm:$0xff]   ;;  %6972 = vmatpush1.bf16.msra.mxu0 %v15312_v2  ;;  %v15318_v6 = vld [vmem:[#allocation2 + $0xc0] ss:$16 sps:$4 sm:$0xff]   ;;  %vm11665_vm1 = vcmask 31744   ;;  %vm11854_vm2 = vcmask 523264  }
  0xa3   :  { %7015 = vmatpush1.bf16.msra.mxu1 %v15313_v3  ;;  %v15316_v5 = vld [vmem:[#allocation2 + $0x2c4] ss:$16 sps:$4 sm:$0xff]   ;;  %6973 = vmatprep.subr.bf16.mxu0 %v15314_v4  ;;  %v15319_v7 = vld [vmem:[#allocation2 + $0x2c0] ss:$16 sps:$4 sm:$0xff]   ;;  %s17843_s3 = smov 1   ;;  %vm13007_vm3 = vcmask 7168  }
  0xa4   :  { %7016 = vmatprep.subr.bf16.mxu1 %v15316_v5  ;;  %v15320_v8 = vld [vmem:[#allocation2 + $0xa4] ss:$16 sps:$4 sm:$0xff]   ;;  %v15324_v10 = vld [vmem:[#allocation2 + $0xa0] ss:$16 sps:$4 sm:$0xff]   ;;  %vm13010_vm4 = vcmask 15360   ;;  %vm13013_vm5 = vcmask 23552  }
  0xa5   :  { %v15322_v9 = vld [vmem:[#allocation2 + $0x2a4] ss:$16 sps:$4 sm:$0xff]   ;;  %v15325_v11 = vld [vmem:[#allocation2 + $0x2a0] ss:$16 sps:$4 sm:$0xff]   ;;  %vm13030_vm6 = vcmask 64512   ;;  %vm13033_vm7 = vcmask 97280  }
  0xa6   :  { %6974 = vmatpush1.bf16.msra.mxu0 %v15318_v6  ;;  %v15326_v12 = vld [vmem:[#allocation2 + $0x84] ss:$16 sps:$4 sm:$0xff]   ;;  %v15330_v14 = vld [vmem:[#allocation2 + $0x80] ss:$16 sps:$4 sm:$0xff]  }
  0xa7   :  { %7017 = vmatpush1.bf16.msra.mxu1 %v15319_v7  ;;  %6975 = vmatprep.subr.bf16.mxu0 %v15320_v8  ;;  %v15328_v13 = vld [vmem:[#allocation2 + $0x284] ss:$16 sps:$4 sm:$0xff]   ;;  %v15331_v15 = vld [vmem:[#allocation2 + $0x280] ss:$16 sps:$4 sm:$0xff]  }
  0xa8   :  { %7018 = vmatprep.subr.bf16.mxu1 %v15322_v9  ;;  %v15332_v16 = vld [vmem:[#allocation2 + $0x64] ss:$16 sps:$4 sm:$0xff]   ;;  %v15336_v18 = vld [vmem:[#allocation2 + $0x60] ss:$16 sps:$4 sm:$0xff]  }
  0xa9   :  { %v15334_v17 = vld [vmem:[#allocation2 + $0x264] ss:$16 sps:$4 sm:$0xff]   ;;  %v15337_v19 = vld [vmem:[#allocation2 + $0x260] ss:$16 sps:$4 sm:$0xff]  }
  0xaa   :  { %6976 = vmatpush1.bf16.msra.mxu0 %v15324_v10  ;;  %v15338_v20 = vld [vmem:[#allocation2 + $0x44] ss:$16 sps:$4 sm:$0xff]   ;;  %v15342_v22 = vld [vmem:[#allocation2 + $0x40] ss:$16 sps:$4 sm:$0xff]  }
  0xab   :  { %7019 = vmatpush1.bf16.msra.mxu1 %v15325_v11  ;;  %6977 = vmatprep.subr.bf16.mxu0 %v15326_v12  ;;  %v15340_v21 = vld [vmem:[#allocation2 + $0x244] ss:$16 sps:$4 sm:$0xff]   ;;  %v15343_v23 = vld [vmem:[#allocation2 + $0x240] ss:$16 sps:$4 sm:$0xff]  }
  0xac   :  { %7020 = vmatprep.subr.bf16.mxu1 %v15328_v13  ;;  %v15344_v24 = vld [vmem:[#allocation2 + $0x24] ss:$16 sps:$4 sm:$0xff]   ;;  %v15348_v26 = vld [vmem:[#allocation2 + $0x20] ss:$16 sps:$4 sm:$0xff]  }
  0xad   :  { %v15346_v25 = vld [vmem:[#allocation2 + $0x224] ss:$16 sps:$4 sm:$0xff]   ;;  %v15349_v27 = vld [vmem:[#allocation2 + $0x220] ss:$16 sps:$4 sm:$0xff]  }
  0xae   :  { %6978 = vmatpush1.bf16.msra.mxu0 %v15330_v14  ;;  %v15350_v28 = vld [vmem:[#allocation2 + $0x4] ss:$16 sps:$4 sm:$0xff]   ;;  %v15354_v30 = vld [vmem:[#allocation2] ss:$16 sps:$4 sm:$0xff]  }
  0xaf   :  { %7021 = vmatpush1.bf16.msra.mxu1 %v15331_v15  ;;  %6979 = vmatprep.subr.bf16.mxu0 %v15332_v16  ;;  %v15352_v29 = vld [vmem:[#allocation2 + $0x204] ss:$16 sps:$4 sm:$0xff]   ;;  %v15355_v31 = vld [vmem:[#allocation2 + $0x200] ss:$16 sps:$4 sm:$0xff]  }
  0xb0   :  { %7022 = vmatprep.subr.bf16.mxu1 %v15334_v17  ;;  %v15356_v32 = vld [vmem:[#allocation2 + $0x1e4] ss:$16 sps:$4 sm:$0xff]   ;;  %v15360_v34 = vld [vmem:[#allocation2 + $0x1e0] ss:$16 sps:$4 sm:$0xff]  }
  0xb1   :  { %v15358_v33 = vld [vmem:[#allocation2 + $0x3e4] ss:$16 sps:$4 sm:$0xff]   ;;  %v15361_v35 = vld [vmem:[#allocation2 + $0x3e0] ss:$16 sps:$4 sm:$0xff]  }
  0xb2   :  { %6980 = vmatpush1.bf16.msra.mxu0 %v15336_v18  ;;  %v15362_v36 = vld [vmem:[#allocation2 + $0x1c4] ss:$16 sps:$4 sm:$0xff]   ;;  %v15366_v38 = vld [vmem:[#allocation2 + $0x1c0] ss:$16 sps:$4 sm:$0xff]  }
  0xb3   :  { %7023 = vmatpush1.bf16.msra.mxu1 %v15337_v19  ;;  %6981 = vmatprep.subr.bf16.mxu0 %v15338_v20  ;;  %v15364_v37 = vld [vmem:[#allocation2 + $0x3c4] ss:$16 sps:$4 sm:$0xff]   ;;  %v15367_v39 = vld [vmem:[#allocation2 + $0x3c0] ss:$16 sps:$4 sm:$0xff]  }
  0xb4   :  { %7024 = vmatprep.subr.bf16.mxu1 %v15340_v21  ;;  %v15368_v40 = vld [vmem:[#allocation2 + $0x1a4] ss:$16 sps:$4 sm:$0xff]   ;;  %v15372_v42 = vld [vmem:[#allocation2 + $0x1a0] ss:$16 sps:$4 sm:$0xff]  }
  0xb5   :  { %v15370_v41 = vld [vmem:[#allocation2 + $0x3a4] ss:$16 sps:$4 sm:$0xff]   ;;  %v15373_v43 = vld [vmem:[#allocation2 + $0x3a0] ss:$16 sps:$4 sm:$0xff]  }
  0xb6   :  { %6982 = vmatpush1.bf16.msra.mxu0 %v15342_v22  ;;  %v15374_v44 = vld [vmem:[#allocation2 + $0x184] ss:$16 sps:$4 sm:$0xff]   ;;  %v15378_v46 = vld [vmem:[#allocation2 + $0x180] ss:$16 sps:$4 sm:$0xff]  }
  0xb7   :  { %7025 = vmatpush1.bf16.msra.mxu1 %v15343_v23  ;;  %6983 = vmatprep.subr.bf16.mxu0 %v15344_v24  ;;  %v15376_v45 = vld [vmem:[#allocation2 + $0x384] ss:$16 sps:$4 sm:$0xff]   ;;  %v15379_v47 = vld [vmem:[#allocation2 + $0x380] ss:$16 sps:$4 sm:$0xff]  }
  0xb8   :  { %7026 = vmatprep.subr.bf16.mxu1 %v15346_v25  ;;  %v15380_v48 = vld [vmem:[#allocation2 + $0x164] ss:$16 sps:$4 sm:$0xff]   ;;  %v15384_v52 = vld [vmem:[#allocation2 + $0x160] ss:$16 sps:$4 sm:$0xff]  }
  0xb9   :  { %v15406_v49 = vld [vmem:[%s19140_s2 + $0x4] ss:$136 sps:$4 sm:$0xff]   ;;  %v15385_v53 = vld [vmem:[#allocation2 + $0x360] ss:$16 sps:$4 sm:$0xff]  }
  0xba   :  { %6984 = vmatpush1.bf16.msra.mxu0 %v15348_v26  ;;  %v15382_v50 = vld [vmem:[#allocation2 + $0x364] ss:$16 sps:$4 sm:$0xff]   ;;  %7003 = vmatprep.mubr.bf16.mxu0 %v15406_v49  ;;  %v15390_v56 = vld [vmem:[#allocation2 + $0x140] ss:$16 sps:$4 sm:$0xff]  }
  0xbb   :  { %7027 = vmatpush1.bf16.msra.mxu1 %v15349_v27  ;;  %6985 = vmatprep.subr.bf16.mxu0 %v15350_v28  ;;  %v15409_v51 = vld [vmem:[%s19140_s2 + $0xc] ss:$136 sps:$4 sm:$0xff]   ;;  %v15391_v57 = vld [vmem:[#allocation2 + $0x340] ss:$16 sps:$4 sm:$0xff]  }
  0xbc   :  { %7028 = vmatprep.subr.bf16.mxu1 %v15352_v29  ;;  %7046 = vmatprep.mubr.bf16.mxu1 %v15409_v51  ;;  %v15386_v54 = vld [vmem:[#allocation2 + $0x144] ss:$16 sps:$4 sm:$0xff]   ;;  %v15396_v60 = vld [vmem:[#allocation2 + $0x120] ss:$16 sps:$4 sm:$0xff]  }
  0xbd   :  { %v15388_v55 = vld [vmem:[#allocation2 + $0x344] ss:$16 sps:$4 sm:$0xff]   ;;  %v15397_v61 = vld [vmem:[#allocation2 + $0x320] ss:$16 sps:$4 sm:$0xff]  }
  0xbe   :  { %6986 = vmatpush1.bf16.msra.mxu0 %v15354_v30  ;;  %v15392_v58 = vld [vmem:[#allocation2 + $0x124] ss:$16 sps:$4 sm:$0xff]   ;;  %v15402_v0 = vld [vmem:[#allocation2 + $0x100] ss:$16 sps:$4 sm:$0xff]  }
  0xbf   :  { %7029 = vmatpush1.bf16.msra.mxu1 %v15355_v31  ;;  %6987 = vmatprep.subr.bf16.mxu0 %v15356_v32  ;;  %v15394_v59 = vld [vmem:[#allocation2 + $0x324] ss:$16 sps:$4 sm:$0xff]   ;;  %v15403_v1 = vld [vmem:[#allocation2 + $0x300] ss:$16 sps:$4 sm:$0xff]  }
  0xc0   :  { %7030 = vmatprep.subr.bf16.mxu1 %v15358_v33  ;;  %v15398_v62 = vld [vmem:[#allocation2 + $0x104] ss:$16 sps:$4 sm:$0xff]   ;;  %v15404_v4 = vld [vmem:[%s19140_s2] ss:$136 sps:$4 sm:$0xff]  }
  0xc1   :  { %v15400_v63 = vld [vmem:[#allocation2 + $0x304] ss:$16 sps:$4 sm:$0xff]   ;;  %v15407_v5 = vld [vmem:[%s19140_s2 + $0x8] ss:$136 sps:$4 sm:$0xff]  }
  0xc2   :  { %6988 = vmatpush2.bf16.msra.mxu0 %v15360_v34  ;;  %v15412_v2 = vld [vmem:[#allocation2 + $0x4e4] ss:$16 sps:$4 sm:$0xff]   ;;  %v15410_v6 = vld [vmem:[#allocation2 + $0x4e0] ss:$16 sps:$4 sm:$0xff]  }
  0xc3   :  { %7031 = vmatpush2.bf16.msra.mxu1 %v15361_v35  ;;  %6989 = vmatprep.subr.bf16.mxu0 %v15362_v36  ;;  %v15415_v3 = vld [vmem:[#allocation2 + $0x6e4] ss:$16 sps:$4 sm:$0xff]   ;;  %v15413_v7 = vld [vmem:[#allocation2 + $0x6e0] ss:$16 sps:$4 sm:$0xff]  }
  0xc4   :  { %7032 = vmatprep.subr.bf16.mxu1 %v15364_v37  ;;  %v15418_v8 = vld [vmem:[#allocation2 + $0x4c4] ss:$16 sps:$4 sm:$0xff]   ;;  %v15416_v10 = vld [vmem:[#allocation2 + $0x4c0] ss:$16 sps:$4 sm:$0xff]  }
  0xc5   :  { %v15421_v9 = vld [vmem:[#allocation2 + $0x6c4] ss:$16 sps:$4 sm:$0xff]   ;;  %v15419_v11 = vld [vmem:[#allocation2 + $0x6c0] ss:$16 sps:$4 sm:$0xff]  }
  0xc6   :  { %6990 = vmatpush2.bf16.msra.mxu0 %v15366_v38  ;;  %v15424_v12 = vld [vmem:[#allocation2 + $0x4a4] ss:$16 sps:$4 sm:$0xff]   ;;  %v15422_v14 = vld [vmem:[#allocation2 + $0x4a0] ss:$16 sps:$4 sm:$0xff]  }
  0xc7   :  { %7033 = vmatpush2.bf16.msra.mxu1 %v15367_v39  ;;  %6991 = vmatprep.subr.bf16.mxu0 %v15368_v40  ;;  %v15427_v13 = vld [vmem:[#allocation2 + $0x6a4] ss:$16 sps:$4 sm:$0xff]   ;;  %v15425_v15 = vld [vmem:[#allocation2 + $0x6a0] ss:$16 sps:$4 sm:$0xff]  }
  0xc8   :  { %7034 = vmatprep.subr.bf16.mxu1 %v15370_v41  ;;  %v15430_v16 = vld [vmem:[#allocation2 + $0x484] ss:$16 sps:$4 sm:$0xff]   ;;  %v15428_v18 = vld [vmem:[#allocation2 + $0x480] ss:$16 sps:$4 sm:$0xff]  }
  0xc9   :  { %v15433_v17 = vld [vmem:[#allocation2 + $0x684] ss:$16 sps:$4 sm:$0xff]   ;;  %v15431_v19 = vld [vmem:[#allocation2 + $0x680] ss:$16 sps:$4 sm:$0xff]  }
  0xca   :  { %6992 = vmatpush2.bf16.msra.mxu0 %v15372_v42  ;;  %v15436_v20 = vld [vmem:[#allocation2 + $0x464] ss:$16 sps:$4 sm:$0xff]   ;;  %v15434_v22 = vld [vmem:[#allocation2 + $0x460] ss:$16 sps:$4 sm:$0xff]  }
  0xcb   :  { %7035 = vmatpush2.bf16.msra.mxu1 %v15373_v43  ;;  %6993 = vmatprep.subr.bf16.mxu0 %v15374_v44  ;;  %v15439_v21 = vld [vmem:[#allocation2 + $0x664] ss:$16 sps:$4 sm:$0xff]   ;;  %v15437_v23 = vld [vmem:[#allocation2 + $0x660] ss:$16 sps:$4 sm:$0xff]  }
  0xcc   :  { %7036 = vmatprep.subr.bf16.mxu1 %v15376_v45  ;;  %v15442_v24 = vld [vmem:[#allocation2 + $0x444] ss:$16 sps:$4 sm:$0xff]   ;;  %v15440_v26 = vld [vmem:[#allocation2 + $0x440] ss:$16 sps:$4 sm:$0xff]  }
  0xcd   :  { %v15445_v25 = vld [vmem:[#allocation2 + $0x644] ss:$16 sps:$4 sm:$0xff]   ;;  %v15443_v27 = vld [vmem:[#allocation2 + $0x640] ss:$16 sps:$4 sm:$0xff]  }
  0xce   :  { %6994 = vmatpush2.bf16.msra.mxu0 %v15378_v46  ;;  %v15448_v28 = vld [vmem:[#allocation2 + $0x424] ss:$16 sps:$4 sm:$0xff]   ;;  %v15446_v30 = vld [vmem:[#allocation2 + $0x420] ss:$16 sps:$4 sm:$0xff]  }
  0xcf   :  { %7037 = vmatpush2.bf16.msra.mxu1 %v15379_v47  ;;  %6995 = vmatprep.subr.bf16.mxu0 %v15380_v48  ;;  %v15451_v29 = vld [vmem:[#allocation2 + $0x624] ss:$16 sps:$4 sm:$0xff]   ;;  %v15449_v31 = vld [vmem:[#allocation2 + $0x620] ss:$16 sps:$4 sm:$0xff]  }
  0xd0   :  { %7038 = vmatprep.subr.bf16.mxu1 %v15382_v50  ;;  %v15454_v32 = vld [vmem:[#allocation2 + $0x404] ss:$16 sps:$4 sm:$0xff]   ;;  %v15452_v36 = vld [vmem:[#allocation2 + $0x400] ss:$16 sps:$4 sm:$0xff]  }
  0xd1   :  { %v15457_v33 = vld [vmem:[#allocation2 + $0x604] ss:$16 sps:$4 sm:$0xff]   ;;  %v15455_v37 = vld [vmem:[#allocation2 + $0x600] ss:$16 sps:$4 sm:$0xff]  }
  0xd2   :  { %6996 = vmatpush2.bf16.msra.mxu0 %v15384_v52  ;;  %v15508_v34 = vld [vmem:[%s19140_s2 + $0x14] ss:$136 sps:$4 sm:$0xff]   ;;  %v15458_v40 = vld [vmem:[#allocation2 + $0x5e0] ss:$16 sps:$4 sm:$0xff]  }
  0xd3   :  { %7039 = vmatpush2.bf16.msra.mxu1 %v15385_v53  ;;  %6997 = vmatprep.subr.bf16.mxu0 %v15386_v54  ;;  %v15511_v35 = vld [vmem:[%s19140_s2 + $0x1c] ss:$136 sps:$4 sm:$0xff]   ;;  %v15461_v41 = vld [vmem:[#allocation2 + $0x7e0] ss:$16 sps:$4 sm:$0xff]  }
  0xd4   :  { %7040 = vmatprep.subr.bf16.mxu1 %v15388_v55  ;;  %v15460_v38 = vld [vmem:[#allocation2 + $0x5e4] ss:$16 sps:$4 sm:$0xff]   ;;  %v15464_v44 = vld [vmem:[#allocation2 + $0x5c0] ss:$16 sps:$4 sm:$0xff]  }
  0xd5   :  { %v15463_v39 = vld [vmem:[#allocation2 + $0x7e4] ss:$16 sps:$4 sm:$0xff]   ;;  %v15467_v45 = vld [vmem:[#allocation2 + $0x7c0] ss:$16 sps:$4 sm:$0xff]  }
  0xd6   :  { %6998 = vmatpush2.bf16.msra.mxu0 %v15390_v56  ;;  %v15466_v42 = vld [vmem:[#allocation2 + $0x5c4] ss:$16 sps:$4 sm:$0xff]   ;;  %v15470_v48 = vld [vmem:[#allocation2 + $0x5a0] ss:$16 sps:$4 sm:$0xff]  }
  0xd7   :  { %7041 = vmatpush2.bf16.msra.mxu1 %v15391_v57  ;;  %6999 = vmatprep.subr.bf16.mxu0 %v15392_v58  ;;  %v15469_v43 = vld [vmem:[#allocation2 + $0x7c4] ss:$16 sps:$4 sm:$0xff]   ;;  %v15473_v49 = vld [vmem:[#allocation2 + $0x7a0] ss:$16 sps:$4 sm:$0xff]  }
  0xd8   :  { %7042 = vmatprep.subr.bf16.mxu1 %v15394_v59  ;;  %v15472_v46 = vld [vmem:[#allocation2 + $0x5a4] ss:$16 sps:$4 sm:$0xff]   ;;  %v15476_v52 = vld [vmem:[#allocation2 + $0x580] ss:$16 sps:$4 sm:$0xff]  }
  0xd9   :  { %v15475_v47 = vld [vmem:[#allocation2 + $0x7a4] ss:$16 sps:$4 sm:$0xff]   ;;  %v15479_v53 = vld [vmem:[#allocation2 + $0x780] ss:$16 sps:$4 sm:$0xff]  }
  0xda   :  { %7000 = vmatpush2.bf16.msra.mxu0 %v15396_v60  ;;  %v15478_v50 = vld [vmem:[#allocation2 + $0x584] ss:$16 sps:$4 sm:$0xff]   ;;  %v15482_v56 = vld [vmem:[#allocation2 + $0x560] ss:$16 sps:$4 sm:$0xff]  }
  0xdb   :  { %7043 = vmatpush2.bf16.msra.mxu1 %v15397_v61  ;;  %7001 = vmatprep.subr.bf16.mxu0 %v15398_v62  ;;  %v15481_v51 = vld [vmem:[#allocation2 + $0x784] ss:$16 sps:$4 sm:$0xff]   ;;  %v15485_v57 = vld [vmem:[#allocation2 + $0x760] ss:$16 sps:$4 sm:$0xff]  }
  0xdc   :  { %7044 = vmatprep.subr.bf16.mxu1 %v15400_v63  ;;  %v15484_v54 = vld [vmem:[#allocation2 + $0x564] ss:$16 sps:$4 sm:$0xff]   ;;  %v15488_v60 = vld [vmem:[#allocation2 + $0x540] ss:$16 sps:$4 sm:$0xff]  }
  0xdd   :  { %v15487_v55 = vld [vmem:[#allocation2 + $0x764] ss:$16 sps:$4 sm:$0xff]   ;;  %v15491_v61 = vld [vmem:[#allocation2 + $0x740] ss:$16 sps:$4 sm:$0xff]  }
  0xde   :  { %7002 = vmatpush2.bf16.msra.mxu0 %v15402_v0  ;;  %v15490_v58 = vld [vmem:[#allocation2 + $0x544] ss:$16 sps:$4 sm:$0xff]   ;;  %v15494_v0 = vld [vmem:[#allocation2 + $0x520] ss:$16 sps:$4 sm:$0xff]  }
  0xdf   :  { %7045 = vmatpush2.bf16.msra.mxu1 %v15403_v1  ;;  %7057 = vmatprep.subr.bf16.mxu0 %v15412_v2  ;;  %v15493_v59 = vld [vmem:[#allocation2 + $0x744] ss:$16 sps:$4 sm:$0xff]   ;;  %v15497_v1 = vld [vmem:[#allocation2 + $0x720] ss:$16 sps:$4 sm:$0xff]  }
  0xe0   :  { %7100 = vmatprep.subr.bf16.mxu1 %v15415_v3  ;;  %v15496_v62 = vld [vmem:[#allocation2 + $0x524] ss:$16 sps:$4 sm:$0xff]  }
  0xe1   :  { %7004 = vmatmul.mubr.bf16.vlgmr.msra.gmra.mxu0 %v15404_v4  ;;  %v15499_v63 = vld [vmem:[#allocation2 + $0x724] ss:$16 sps:$4 sm:$0xff]   ;;  %v15500_v4 = vld [vmem:[#allocation2 + $0x500] ss:$16 sps:$4 sm:$0xff]  }
  0xe2   :  { %7047 = vmatmul.mubr.bf16.vlgmr.msra.gmra.mxu1 %v15407_v5  ;;  %7058 = vmatpush1.bf16.msra.mxu0 %v15410_v6  ;;  %v15502_v2 = vld [vmem:[#allocation2 + $0x504] ss:$16 sps:$4 sm:$0xff]   ;;  %v15503_v5 = vld [vmem:[#allocation2 + $0x700] ss:$16 sps:$4 sm:$0xff]  }
  0xe3   :  { %7101 = vmatpush1.bf16.msra.mxu1 %v15413_v7  ;;  %7059 = vmatprep.subr.bf16.mxu0 %v15418_v8  ;;  %v15505_v3 = vld [vmem:[#allocation2 + $0x704] ss:$16 sps:$4 sm:$0xff]   ;;  %v15506_v8 = vld [vmem:[%s19140_s2 + $0x10] ss:$136 sps:$4 sm:$0xff]  }
  0xe4   :  { %7102 = vmatprep.subr.bf16.mxu1 %v15421_v9  ;;  %7089 = vmatprep.mubr.bf16.mxu0 %v15508_v34  ;;  %v15514_v6 = vld [vmem:[#allocation2 + $0x8e4] ss:$16 sps:$4 sm:$0xff]   ;;  %v15509_v9 = vld [vmem:[%s19140_s2 + $0x18] ss:$136 sps:$4 sm:$0xff]  }
  0xe5   :  { %7132 = vmatprep.mubr.bf16.mxu1 %v15511_v35  ;;  %v15517_v7 = vld [vmem:[#allocation2 + $0xae4] ss:$16 sps:$4 sm:$0xff]  }
  0xe6   :  { %7060 = vmatpush1.bf16.msra.mxu0 %v15416_v10  ;;  %v15512_v10 = vld [vmem:[#allocation2 + $0x8e0] ss:$16 sps:$4 sm:$0xff]   ;;  %v15550_v34 = vld [vmem:[#allocation2 + $0x824] ss:$16 sps:$4 sm:$0xff]  }
  0xe7   :  { %7103 = vmatpush1.bf16.msra.mxu1 %v15419_v11  ;;  %7061 = vmatprep.subr.bf16.mxu0 %v15424_v12  ;;  %v15515_v11 = vld [vmem:[#allocation2 + $0xae0] ss:$16 sps:$4 sm:$0xff]   ;;  %v15520_v12 = vld [vmem:[#allocation2 + $0x8c4] ss:$16 sps:$4 sm:$0xff]  }
  0xe8   :  { %7104 = vmatprep.subr.bf16.mxu1 %v15427_v13  ;;  %v15523_v13 = vld [vmem:[#allocation2 + $0xac4] ss:$16 sps:$4 sm:$0xff]  }
  0xe9   :  { %v15553_v35 = vld [vmem:[#allocation2 + $0xa24] ss:$16 sps:$4 sm:$0xff]  }
  0xea   :  { %7062 = vmatpush1.bf16.msra.mxu0 %v15422_v14  ;;  %v15518_v14 = vld [vmem:[#allocation2 + $0x8c0] ss:$16 sps:$4 sm:$0xff]  }
  0xeb   :  { %7105 = vmatpush1.bf16.msra.mxu1 %v15425_v15  ;;  %7063 = vmatprep.subr.bf16.mxu0 %v15430_v16  ;;  %v15521_v15 = vld [vmem:[#allocation2 + $0xac0] ss:$16 sps:$4 sm:$0xff]   ;;  %v15526_v16 = vld [vmem:[#allocation2 + $0x8a4] ss:$16 sps:$4 sm:$0xff]  }
  0xec   :  { %7106 = vmatprep.subr.bf16.mxu1 %v15433_v17  ;;  %v15529_v17 = vld [vmem:[#allocation2 + $0xaa4] ss:$16 sps:$4 sm:$0xff]  }
  0xee   :  { %7064 = vmatpush1.bf16.msra.mxu0 %v15428_v18  ;;  %v15524_v18 = vld [vmem:[#allocation2 + $0x8a0] ss:$16 sps:$4 sm:$0xff]  }
  0xef   :  { %7107 = vmatpush1.bf16.msra.mxu1 %v15431_v19  ;;  %7065 = vmatprep.subr.bf16.mxu0 %v15436_v20  ;;  %v15610_v19 = vld [vmem:[%s19140_s2 + $0x24] ss:$136 sps:$4 sm:$0xff]   ;;  %v15527_v20 = vld [vmem:[#allocation2 + $0xaa0] ss:$16 sps:$4 sm:$0xff]  }
  0xf0   :  { %7108 = vmatprep.subr.bf16.mxu1 %v15439_v21  ;;  %v15613_v21 = vld [vmem:[%s19140_s2 + $0x2c] ss:$136 sps:$4 sm:$0xff]  }
  0xf2   :  { %7066 = vmatpush1.bf16.msra.mxu0 %v15434_v22  ;;  %v15532_v22 = vld [vmem:[#allocation2 + $0x884] ss:$16 sps:$4 sm:$0xff]  }
  0xf3   :  { %7109 = vmatpush1.bf16.msra.mxu1 %v15437_v23  ;;  %7067 = vmatprep.subr.bf16.mxu0 %v15442_v24  ;;  %v15535_v23 = vld [vmem:[#allocation2 + $0xa84] ss:$16 sps:$4 sm:$0xff]   ;;  %v15530_v24 = vld [vmem:[#allocation2 + $0x880] ss:$16 sps:$4 sm:$0xff]  }
  0xf4   :  { %7110 = vmatprep.subr.bf16.mxu1 %v15445_v25  ;;  %v15533_v25 = vld [vmem:[#allocation2 + $0xa80] ss:$16 sps:$4 sm:$0xff]  }
  0xf6   :  { %7068 = vmatpush1.bf16.msra.mxu0 %v15440_v26  ;;  %v15538_v26 = vld [vmem:[#allocation2 + $0x864] ss:$16 sps:$4 sm:$0xff]  }
  0xf7   :  { %7111 = vmatpush1.bf16.msra.mxu1 %v15443_v27  ;;  %7069 = vmatprep.subr.bf16.mxu0 %v15448_v28  ;;  %v15541_v27 = vld [vmem:[#allocation2 + $0xa64] ss:$16 sps:$4 sm:$0xff]   ;;  %v15536_v28 = vld [vmem:[#allocation2 + $0x860] ss:$16 sps:$4 sm:$0xff]  }
  0xf8   :  { %7112 = vmatprep.subr.bf16.mxu1 %v15451_v29  ;;  %v15539_v29 = vld [vmem:[#allocation2 + $0xa60] ss:$16 sps:$4 sm:$0xff]  }
  0xfa   :  { %7070 = vmatpush1.bf16.msra.mxu0 %v15446_v30  ;;  %v15544_v30 = vld [vmem:[#allocation2 + $0x844] ss:$16 sps:$4 sm:$0xff]  }
  0xfb   :  { %7113 = vmatpush1.bf16.msra.mxu1 %v15449_v31  ;;  %7071 = vmatprep.subr.bf16.mxu0 %v15454_v32  ;;  %v15547_v31 = vld [vmem:[#allocation2 + $0xa44] ss:$16 sps:$4 sm:$0xff]   ;;  %v15542_v32 = vld [vmem:[#allocation2 + $0x840] ss:$16 sps:$4 sm:$0xff]  }
  0xfc   :  { %7114 = vmatprep.subr.bf16.mxu1 %v15457_v33  ;;  %v15545_v33 = vld [vmem:[#allocation2 + $0xa40] ss:$16 sps:$4 sm:$0xff]  }
  0xfe   :  { %7072 = vmatpush1.bf16.msra.mxu0 %v15452_v36  ;;  %v15548_v36 = vld [vmem:[#allocation2 + $0x820] ss:$16 sps:$4 sm:$0xff]  }
  0xff   :  { %7115 = vmatpush1.bf16.msra.mxu1 %v15455_v37  ;;  %7073 = vmatprep.subr.bf16.mxu0 %v15460_v38  ;;  %v15551_v37 = vld [vmem:[#allocation2 + $0xa20] ss:$16 sps:$4 sm:$0xff]   ;;  %v15556_v38 = vld [vmem:[#allocation2 + $0x804] ss:$16 sps:$4 sm:$0xff]  }
 0x100   :  { %7116 = vmatprep.subr.bf16.mxu1 %v15463_v39  ;;  %v15559_v39 = vld [vmem:[#allocation2 + $0xa04] ss:$16 sps:$4 sm:$0xff]  }
 0x102   :  { %7074 = vmatpush2.bf16.msra.mxu0 %v15458_v40  ;;  %v15554_v40 = vld [vmem:[#allocation2 + $0x800] ss:$16 sps:$4 sm:$0xff]  }
 0x103   :  { %7117 = vmatpush2.bf16.msra.mxu1 %v15461_v41  ;;  %7075 = vmatprep.subr.bf16.mxu0 %v15466_v42  ;;  %v15557_v41 = vld [vmem:[#allocation2 + $0xa00] ss:$16 sps:$4 sm:$0xff]   ;;  %v15562_v42 = vld [vmem:[#allocation2 + $0x9e4] ss:$16 sps:$4 sm:$0xff]  }
 0x104   :  { %7118 = vmatprep.subr.bf16.mxu1 %v15469_v43  ;;  %v15565_v43 = vld [vmem:[#allocation2 + $0xbe4] ss:$16 sps:$4 sm:$0xff]  }
 0x106   :  { %7076 = vmatpush2.bf16.msra.mxu0 %v15464_v44  ;;  %v15560_v44 = vld [vmem:[#allocation2 + $0x9e0] ss:$16 sps:$4 sm:$0xff]  }
 0x107   :  { %7119 = vmatpush2.bf16.msra.mxu1 %v15467_v45  ;;  %7077 = vmatprep.subr.bf16.mxu0 %v15472_v46  ;;  %v15563_v45 = vld [vmem:[#allocation2 + $0xbe0] ss:$16 sps:$4 sm:$0xff]   ;;  %v15568_v46 = vld [vmem:[#allocation2 + $0x9c4] ss:$16 sps:$4 sm:$0xff]  }
 0x108   :  { %7120 = vmatprep.subr.bf16.mxu1 %v15475_v47  ;;  %v15571_v47 = vld [vmem:[#allocation2 + $0xbc4] ss:$16 sps:$4 sm:$0xff]  }
 0x10a   :  { %7078 = vmatpush2.bf16.msra.mxu0 %v15470_v48  ;;  %v15566_v48 = vld [vmem:[#allocation2 + $0x9c0] ss:$16 sps:$4 sm:$0xff]  }
 0x10b   :  { %7121 = vmatpush2.bf16.msra.mxu1 %v15473_v49  ;;  %7079 = vmatprep.subr.bf16.mxu0 %v15478_v50  ;;  %v15569_v49 = vld [vmem:[#allocation2 + $0xbc0] ss:$16 sps:$4 sm:$0xff]   ;;  %v15574_v50 = vld [vmem:[#allocation2 + $0x9a4] ss:$16 sps:$4 sm:$0xff]  }
 0x10c   :  { %7122 = vmatprep.subr.bf16.mxu1 %v15481_v51  ;;  %v15577_v51 = vld [vmem:[#allocation2 + $0xba4] ss:$16 sps:$4 sm:$0xff]  }
 0x10e   :  { %7080 = vmatpush2.bf16.msra.mxu0 %v15476_v52  ;;  %v15572_v52 = vld [vmem:[#allocation2 + $0x9a0] ss:$16 sps:$4 sm:$0xff]  }
 0x10f   :  { %7123 = vmatpush2.bf16.msra.mxu1 %v15479_v53  ;;  %7081 = vmatprep.subr.bf16.mxu0 %v15484_v54  ;;  %v15575_v53 = vld [vmem:[#allocation2 + $0xba0] ss:$16 sps:$4 sm:$0xff]   ;;  %v15580_v54 = vld [vmem:[#allocation2 + $0x984] ss:$16 sps:$4 sm:$0xff]  }
 0x110   :  { %7124 = vmatprep.subr.bf16.mxu1 %v15487_v55  ;;  %v15583_v55 = vld [vmem:[#allocation2 + $0xb84] ss:$16 sps:$4 sm:$0xff]  }
 0x112   :  { %7082 = vmatpush2.bf16.msra.mxu0 %v15482_v56  ;;  %v15578_v56 = vld [vmem:[#allocation2 + $0x980] ss:$16 sps:$4 sm:$0xff]  }
 0x113   :  { %7125 = vmatpush2.bf16.msra.mxu1 %v15485_v57  ;;  %7083 = vmatprep.subr.bf16.mxu0 %v15490_v58  ;;  %v15581_v57 = vld [vmem:[#allocation2 + $0xb80] ss:$16 sps:$4 sm:$0xff]   ;;  %v15586_v58 = vld [vmem:[#allocation2 + $0x964] ss:$16 sps:$4 sm:$0xff]  }
 0x114   :  { %7126 = vmatprep.subr.bf16.mxu1 %v15493_v59  ;;  %v15589_v59 = vld [vmem:[#allocation2 + $0xb64] ss:$16 sps:$4 sm:$0xff]  }
 0x116   :  { %7084 = vmatpush2.bf16.msra.mxu0 %v15488_v60  ;;  %v15584_v60 = vld [vmem:[#allocation2 + $0x960] ss:$16 sps:$4 sm:$0xff]  }
 0x117   :  { %7127 = vmatpush2.bf16.msra.mxu1 %v15491_v61  ;;  %7085 = vmatprep.subr.bf16.mxu0 %v15496_v62  ;;  %v15587_v61 = vld [vmem:[#allocation2 + $0xb60] ss:$16 sps:$4 sm:$0xff]   ;;  %v15592_v62 = vld [vmem:[#allocation2 + $0x944] ss:$16 sps:$4 sm:$0xff]  }
 0x118   :  { %7128 = vmatprep.subr.bf16.mxu1 %v15499_v63  ;;  %v15595_v63 = vld [vmem:[#allocation2 + $0xb44] ss:$16 sps:$4 sm:$0xff]  }
 0x11a   :  { %7086 = vmatpush2.bf16.msra.mxu0 %v15494_v0  ;;  %v15590_v0 = vld [vmem:[#allocation2 + $0x940] ss:$16 sps:$4 sm:$0xff]  }
 0x11b   :  { %7129 = vmatpush2.bf16.msra.mxu1 %v15497_v1  ;;  %7087 = vmatprep.subr.bf16.mxu0 %v15502_v2  ;;  %v15593_v1 = vld [vmem:[#allocation2 + $0xb40] ss:$16 sps:$4 sm:$0xff]   ;;  %v15598_v2 = vld [vmem:[#allocation2 + $0x924] ss:$16 sps:$4 sm:$0xff]  }
 0x11c   :  { %7130 = vmatprep.subr.bf16.mxu1 %v15505_v3  ;;  %v15601_v3 = vld [vmem:[#allocation2 + $0xb24] ss:$16 sps:$4 sm:$0xff]  }
 0x11e   :  { %7088 = vmatpush2.bf16.msra.mxu0 %v15500_v4  ;;  %v15596_v4 = vld [vmem:[#allocation2 + $0x920] ss:$16 sps:$4 sm:$0xff]  }
 0x11f   :  { %7131 = vmatpush2.bf16.msra.mxu1 %v15503_v5  ;;  %7143 = vmatprep.subr.bf16.mxu0 %v15514_v6  ;;  %v15599_v5 = vld [vmem:[#allocation2 + $0xb20] ss:$16 sps:$4 sm:$0xff]   ;;  %v15604_v6 = vld [vmem:[#allocation2 + $0x904] ss:$16 sps:$4 sm:$0xff]  }
 0x120   :  { %7186 = vmatprep.subr.bf16.mxu1 %v15517_v7  ;;  %v15607_v7 = vld [vmem:[#allocation2 + $0xb04] ss:$16 sps:$4 sm:$0xff]  }
 0x121   :  { %7090 = vmatmul.mubr.bf16.vlgmr.msra.gmra.mxu0 %v15506_v8  ;;  %v15602_v8 = vld [vmem:[#allocation2 + $0x900] ss:$16 sps:$4 sm:$0xff]  }
 0x122   :  { %7133 = vmatmul.mubr.bf16.vlgmr.msra.gmra.mxu1 %v15509_v9  ;;  %7144 = vmatpush1.bf16.msra.mxu0 %v15512_v10  ;;  %v15605_v9 = vld [vmem:[#allocation2 + $0xb00] ss:$16 sps:$4 sm:$0xff]   ;;  %v15616_v10 = vld [vmem:[#allocation2 + $0xce4] ss:$16 sps:$4 sm:$0xff]  }
 0x123   :  { %7187 = vmatpush1.bf16.msra.mxu1 %v15515_v11  ;;  %7145 = vmatprep.subr.bf16.mxu0 %v15520_v12  ;;  %v15619_v11 = vld [vmem:[#allocation2 + $0xee4] ss:$16 sps:$4 sm:$0xff]   ;;  %v15608_v12 = vld [vmem:[%s19140_s2 + $0x20] ss:$136 sps:$4 sm:$0xff]  }
 0x124   :  { %7188 = vmatprep.subr.bf16.mxu1 %v15523_v13  ;;  %7175 = vmatprep.mubr.bf16.mxu0 %v15610_v19  ;;  %v15611_v13 = vld [vmem:[%s19140_s2 + $0x28] ss:$136 sps:$4 sm:$0xff]   ;;  %v15715_v19 = vld [vmem:[%s19140_s2 + $0x3c] ss:$136 sps:$4 sm:$0xff]  }
 0x125   :  { %7218 = vmatprep.mubr.bf16.mxu1 %v15613_v21  ;;  %v15623_v21 = vld [vmem:[#allocation2 + $0xec0] ss:$16 sps:$4 sm:$0xff]  }
 0x126   :  { %7146 = vmatpush1.bf16.msra.mxu0 %v15518_v14  ;;  %v15614_v14 = vld [vmem:[#allocation2 + $0xce0] ss:$16 sps:$4 sm:$0xff]  }
 0x127   :  { %7189 = vmatpush1.bf16.msra.mxu1 %v15521_v15  ;;  %7147 = vmatprep.subr.bf16.mxu0 %v15526_v16  ;;  %v15617_v15 = vld [vmem:[#allocation2 + $0xee0] ss:$16 sps:$4 sm:$0xff]   ;;  %v15622_v16 = vld [vmem:[#allocation2 + $0xcc4] ss:$16 sps:$4 sm:$0xff]  }
 0x128   :  { %7190 = vmatprep.subr.bf16.mxu1 %v15529_v17  ;;  %v15625_v17 = vld [vmem:[#allocation2 + $0xec4] ss:$16 sps:$4 sm:$0xff]  }
 0x12a   :  { %7148 = vmatpush1.bf16.msra.mxu0 %v15524_v18  ;;  %v15712_v18 = vld [vmem:[%s19140_s2 + $0x34] ss:$136 sps:$4 sm:$0xff]  }
 0x12b   :  { %7191 = vmatpush1.bf16.msra.mxu1 %v15527_v20  ;;  %7149 = vmatprep.subr.bf16.mxu0 %v15532_v22  ;;  %v15620_v20 = vld [vmem:[#allocation2 + $0xcc0] ss:$16 sps:$4 sm:$0xff]   ;;  %v15628_v22 = vld [vmem:[#allocation2 + $0xca4] ss:$16 sps:$4 sm:$0xff]  }
 0x12c   :  { %7192 = vmatprep.subr.bf16.mxu1 %v15535_v23  ;;  %v15631_v23 = vld [vmem:[#allocation2 + $0xea4] ss:$16 sps:$4 sm:$0xff]  }
 0x12e   :  { %7150 = vmatpush1.bf16.msra.mxu0 %v15530_v24  ;;  %v15626_v24 = vld [vmem:[#allocation2 + $0xca0] ss:$16 sps:$4 sm:$0xff]  }
 0x12f   :  { %7193 = vmatpush1.bf16.msra.mxu1 %v15533_v25  ;;  %7151 = vmatprep.subr.bf16.mxu0 %v15538_v26  ;;  %v15629_v25 = vld [vmem:[#allocation2 + $0xea0] ss:$16 sps:$4 sm:$0xff]   ;;  %v15634_v26 = vld [vmem:[#allocation2 + $0xc84] ss:$16 sps:$4 sm:$0xff]  }
 0x130   :  { %7194 = vmatprep.subr.bf16.mxu1 %v15541_v27  ;;  %v15637_v27 = vld [vmem:[#allocation2 + $0xe84] ss:$16 sps:$4 sm:$0xff]  }
 0x132   :  { %7152 = vmatpush1.bf16.msra.mxu0 %v15536_v28  ;;  %v15632_v28 = vld [vmem:[#allocation2 + $0xc80] ss:$16 sps:$4 sm:$0xff]  }
 0x133   :  { %7195 = vmatpush1.bf16.msra.mxu1 %v15539_v29  ;;  %7153 = vmatprep.subr.bf16.mxu0 %v15544_v30  ;;  %v15635_v29 = vld [vmem:[#allocation2 + $0xe80] ss:$16 sps:$4 sm:$0xff]   ;;  %v15640_v30 = vld [vmem:[#allocation2 + $0xc64] ss:$16 sps:$4 sm:$0xff]  }
 0x134   :  { %7196 = vmatprep.subr.bf16.mxu1 %v15547_v31  ;;  %v15643_v31 = vld [vmem:[#allocation2 + $0xe64] ss:$16 sps:$4 sm:$0xff]  }
 0x136   :  { %7154 = vmatpush1.bf16.msra.mxu0 %v15542_v32  ;;  %v15638_v32 = vld [vmem:[#allocation2 + $0xc60] ss:$16 sps:$4 sm:$0xff]  }
 0x137   :  { %7197 = vmatpush1.bf16.msra.mxu1 %v15545_v33  ;;  %7155 = vmatprep.subr.bf16.mxu0 %v15550_v34  ;;  %v15641_v33 = vld [vmem:[#allocation2 + $0xe60] ss:$16 sps:$4 sm:$0xff]   ;;  %v15646_v34 = vld [vmem:[#allocation2 + $0xc44] ss:$16 sps:$4 sm:$0xff]  }
 0x138   :  { %7198 = vmatprep.subr.bf16.mxu1 %v15553_v35  ;;  %v15649_v35 = vld [vmem:[#allocation2 + $0xe44] ss:$16 sps:$4 sm:$0xff]  }
 0x13a   :  { %7156 = vmatpush1.bf16.msra.mxu0 %v15548_v36  ;;  %v15644_v36 = vld [vmem:[#allocation2 + $0xc40] ss:$16 sps:$4 sm:$0xff]  }
 0x13b   :  { %7199 = vmatpush1.bf16.msra.mxu1 %v15551_v37  ;;  %7157 = vmatprep.subr.bf16.mxu0 %v15556_v38  ;;  %v15647_v37 = vld [vmem:[#allocation2 + $0xe40] ss:$16 sps:$4 sm:$0xff]   ;;  %v15652_v38 = vld [vmem:[#allocation2 + $0xc24] ss:$16 sps:$4 sm:$0xff]  }
 0x13c   :  { %7200 = vmatprep.subr.bf16.mxu1 %v15559_v39  ;;  %v15655_v39 = vld [vmem:[#allocation2 + $0xe24] ss:$16 sps:$4 sm:$0xff]  }
 0x13e   :  { %7158 = vmatpush1.bf16.msra.mxu0 %v15554_v40  ;;  %v15650_v40 = vld [vmem:[#allocation2 + $0xc20] ss:$16 sps:$4 sm:$0xff]  }
 0x13f   :  { %7201 = vmatpush1.bf16.msra.mxu1 %v15557_v41  ;;  %7159 = vmatprep.subr.bf16.mxu0 %v15562_v42  ;;  %v15653_v41 = vld [vmem:[#allocation2 + $0xe20] ss:$16 sps:$4 sm:$0xff]   ;;  %v15658_v42 = vld [vmem:[#allocation2 + $0xc04] ss:$16 sps:$4 sm:$0xff]  }
 0x140   :  { %7202 = vmatprep.subr.bf16.mxu1 %v15565_v43  ;;  %v15661_v43 = vld [vmem:[#allocation2 + $0xe04] ss:$16 sps:$4 sm:$0xff]  }
 0x142   :  { %7160 = vmatpush2.bf16.msra.mxu0 %v15560_v44  ;;  %v15656_v44 = vld [vmem:[#allocation2 + $0xc00] ss:$16 sps:$4 sm:$0xff]  }
 0x143   :  { %7203 = vmatpush2.bf16.msra.mxu1 %v15563_v45  ;;  %7161 = vmatprep.subr.bf16.mxu0 %v15568_v46  ;;  %v15659_v45 = vld [vmem:[#allocation2 + $0xe00] ss:$16 sps:$4 sm:$0xff]   ;;  %v15664_v46 = vld [vmem:[#allocation2 + $0xde4] ss:$16 sps:$4 sm:$0xff]  }
 0x144   :  { %7204 = vmatprep.subr.bf16.mxu1 %v15571_v47  ;;  %v15667_v47 = vld [vmem:[#allocation2 + $0xfe4] ss:$16 sps:$4 sm:$0xff]  }
 0x146   :  { %7162 = vmatpush2.bf16.msra.mxu0 %v15566_v48  ;;  %v15662_v48 = vld [vmem:[#allocation2 + $0xde0] ss:$16 sps:$4 sm:$0xff]  }
 0x147   :  { %7205 = vmatpush2.bf16.msra.mxu1 %v15569_v49  ;;  %7163 = vmatprep.subr.bf16.mxu0 %v15574_v50  ;;  %v15665_v49 = vld [vmem:[#allocation2 + $0xfe0] ss:$16 sps:$4 sm:$0xff]   ;;  %v15670_v50 = vld [vmem:[#allocation2 + $0xdc4] ss:$16 sps:$4 sm:$0xff]  }
 0x148   :  { %7206 = vmatprep.subr.bf16.mxu1 %v15577_v51  ;;  %v15673_v51 = vld [vmem:[#allocation2 + $0xfc4] ss:$16 sps:$4 sm:$0xff]  }
 0x14a   :  { %7164 = vmatpush2.bf16.msra.mxu0 %v15572_v52  ;;  %v15668_v52 = vld [vmem:[#allocation2 + $0xdc0] ss:$16 sps:$4 sm:$0xff]  }
 0x14b   :  { %7207 = vmatpush2.bf16.msra.mxu1 %v15575_v53  ;;  %7165 = vmatprep.subr.bf16.mxu0 %v15580_v54  ;;  %v15671_v53 = vld [vmem:[#allocation2 + $0xfc0] ss:$16 sps:$4 sm:$0xff]   ;;  %v15676_v54 = vld [vmem:[#allocation2 + $0xda4] ss:$16 sps:$4 sm:$0xff]  }
 0x14c   :  { %7208 = vmatprep.subr.bf16.mxu1 %v15583_v55  ;;  %v15679_v55 = vld [vmem:[#allocation2 + $0xfa4] ss:$16 sps:$4 sm:$0xff]  }
 0x14e   :  { %7166 = vmatpush2.bf16.msra.mxu0 %v15578_v56  ;;  %v15674_v56 = vld [vmem:[#allocation2 + $0xda0] ss:$16 sps:$4 sm:$0xff]  }
 0x14f   :  { %7209 = vmatpush2.bf16.msra.mxu1 %v15581_v57  ;;  %7167 = vmatprep.subr.bf16.mxu0 %v15586_v58  ;;  %v15677_v57 = vld [vmem:[#allocation2 + $0xfa0] ss:$16 sps:$4 sm:$0xff]   ;;  %v15682_v58 = vld [vmem:[#allocation2 + $0xd84] ss:$16 sps:$4 sm:$0xff]  }
 0x150   :  { %7210 = vmatprep.subr.bf16.mxu1 %v15589_v59  ;;  %v15685_v59 = vld [vmem:[#allocation2 + $0xf84] ss:$16 sps:$4 sm:$0xff]  }
 0x152   :  { %7168 = vmatpush2.bf16.msra.mxu0 %v15584_v60  ;;  %v15680_v60 = vld [vmem:[#allocation2 + $0xd80] ss:$16 sps:$4 sm:$0xff]  }
 0x153   :  { %7211 = vmatpush2.bf16.msra.mxu1 %v15587_v61  ;;  %7169 = vmatprep.subr.bf16.mxu0 %v15592_v62  ;;  %v15683_v61 = vld [vmem:[#allocation2 + $0xf80] ss:$16 sps:$4 sm:$0xff]   ;;  %v15688_v62 = vld [vmem:[#allocation2 + $0xd64] ss:$16 sps:$4 sm:$0xff]  }
 0x154   :  { %7212 = vmatprep.subr.bf16.mxu1 %v15595_v63  ;;  %v15691_v63 = vld [vmem:[#allocation2 + $0xf64] ss:$16 sps:$4 sm:$0xff]  }
 0x156   :  { %7170 = vmatpush2.bf16.msra.mxu0 %v15590_v0  ;;  %v15686_v0 = vld [vmem:[#allocation2 + $0xd60] ss:$16 sps:$4 sm:$0xff]  }
 0x157   :  { %7213 = vmatpush2.bf16.msra.mxu1 %v15593_v1  ;;  %7171 = vmatprep.subr.bf16.mxu0 %v15598_v2  ;;  %v15689_v1 = vld [vmem:[#allocation2 + $0xf60] ss:$16 sps:$4 sm:$0xff]   ;;  %v15694_v2 = vld [vmem:[#allocation2 + $0xd44] ss:$16 sps:$4 sm:$0xff]  }
 0x158   :  { %7214 = vmatprep.subr.bf16.mxu1 %v15601_v3  ;;  %v15697_v3 = vld [vmem:[#allocation2 + $0xf44] ss:$16 sps:$4 sm:$0xff]  }
 0x15a   :  { %7172 = vmatpush2.bf16.msra.mxu0 %v15596_v4  ;;  %v15692_v4 = vld [vmem:[#allocation2 + $0xd40] ss:$16 sps:$4 sm:$0xff]  }
 0x15b   :  { %7215 = vmatpush2.bf16.msra.mxu1 %v15599_v5  ;;  %7173 = vmatprep.subr.bf16.mxu0 %v15604_v6  ;;  %v15695_v5 = vld [vmem:[#allocation2 + $0xf40] ss:$16 sps:$4 sm:$0xff]   ;;  %v1341_v6 = vlaneseq }
 0x15c   :  { %7216 = vmatprep.subr.bf16.mxu1 %v15607_v7  ;;  %v15700_v7 = vld [vmem:[#allocation2 + $0xd24] ss:$16 sps:$4 sm:$0xff]  }
 0x15e   :  { %7174 = vmatpush2.bf16.msra.mxu0 %v15602_v8  ;;  %v15703_v8 = vld [vmem:[#allocation2 + $0xf24] ss:$16 sps:$4 sm:$0xff]  }
 0x15f   :  { %7217 = vmatpush2.bf16.msra.mxu1 %v15605_v9  ;;  %7229 = vmatprep.subr.bf16.mxu0 %v15616_v10  ;;  %v15698_v9 = vld [vmem:[#allocation2 + $0xd20] ss:$16 sps:$4 sm:$0xff]  }
 0x160   :  { %7272 = vmatprep.subr.bf16.mxu1 %v15619_v11  ;;  %v15701_v10 = vld [vmem:[#allocation2 + $0xf20] ss:$16 sps:$4 sm:$0xff]   ;;  %v18024_v11 = vshrl.u32 %v1341_v6, 7  ;;  %v15775_v6 = vld [vmem:[#allocation2 + $0x13c4] ss:$16 sps:$4 sm:$0xff]  }
 0x161   :  { %7176 = vmatmul.mubr.bf16.vlgmr.msra.gmra.mxu0 %v15608_v12  ;;  %v15706_v12 = vld [vmem:[#allocation2 + $0xd04] ss:$16 sps:$4 sm:$0xff]  }
 0x162   :  { %7219 = vmatmul.mubr.bf16.vlgmr.msra.gmra.mxu1 %v15611_v13  ;;  %7230 = vmatpush1.bf16.msra.mxu0 %v15614_v14  ;;  %v15709_v13 = vld [vmem:[#allocation2 + $0xf04] ss:$16 sps:$4 sm:$0xff]   ;;  %v15704_v14 = vld [vmem:[#allocation2 + $0xd00] ss:$16 sps:$4 sm:$0xff]  }
 0x163   :  { %7273 = vmatpush1.bf16.msra.mxu1 %v15617_v15  ;;  %7231 = vmatprep.subr.bf16.mxu0 %v15622_v16  ;;  %v15707_v15 = vld [vmem:[#allocation2 + $0xf00] ss:$16 sps:$4 sm:$0xff]  }
 0x164   :  { %7274 = vmatprep.subr.bf16.mxu1 %v15625_v17  ;;  %7261 = vmatprep.mubr.bf16.mxu0 %v15712_v18  ;;  %v1339_v16 = vld [vmem:[#allocation4] sm:$0xf]  ;;  %v18027_v17 = vsub.s32 0, %v18024_v11  ;;  %v15718_v18 = vld [vmem:[#allocation2 + $0x10e4] ss:$16 sps:$4 sm:$0xff]  }
 0x165   :  { %7304 = vmatprep.mubr.bf16.mxu1 %v15715_v19  ;;  %v15721_v19 = vld [vmem:[#allocation2 + $0x12e4] ss:$16 sps:$4 sm:$0xff]  }
 0x166   :  { %7232 = vmatpush1.bf16.msra.mxu0 %v15620_v20  ;;  %v15710_v20 = vld [vmem:[%s19140_s2 + $0x30] ss:$136 sps:$4 sm:$0xff]  }
 0x167   :  { %7275 = vmatpush1.bf16.msra.mxu1 %v15623_v21  ;;  %7233 = vmatprep.subr.bf16.mxu0 %v15628_v22  ;;  %v15713_v21 = vld [vmem:[%s19140_s2 + $0x38] ss:$136 sps:$4 sm:$0xff]  }
 0x168   :  { %7276 = vmatprep.subr.bf16.mxu1 %v15631_v23  ;;  %v15716_v22 = vld [vmem:[#allocation2 + $0x10e0] ss:$16 sps:$4 sm:$0xff]   ;;  %v1344_v23 = vrot.slane %v1339_v16, %v18027_v17 }
 0x169   :  { %v15782_v16 = vld [vmem:[#allocation2 + $0x1180] ss:$16 sps:$4 sm:$0xff]  }
 0x16a   :  { %7234 = vmatpush1.bf16.msra.mxu0 %v15626_v24  ;;  %v15719_v24 = vld [vmem:[#allocation2 + $0x12e0] ss:$16 sps:$4 sm:$0xff]  }
 0x16b   :  { %7277 = vmatpush1.bf16.msra.mxu1 %v15629_v25  ;;  %7235 = vmatprep.subr.bf16.mxu0 %v15634_v26  ;;  %v15724_v25 = vld [vmem:[#allocation2 + $0x10c4] ss:$16 sps:$4 sm:$0xff]  }
 0x16c   :  { %7278 = vmatprep.subr.bf16.mxu1 %v15637_v27  ;;  %v15727_v26 = vld [vmem:[#allocation2 + $0x12c4] ss:$16 sps:$4 sm:$0xff]  }
 0x16d   :  { %v15814_v27 = vld [vmem:[%s19140_s2 + $0x44] ss:$136 sps:$4 sm:$0xff]  }
 0x16e   :  { %7236 = vmatpush1.bf16.msra.mxu0 %v15632_v28  ;;  %v15817_v28 = vld [vmem:[%s19140_s2 + $0x4c] ss:$136 sps:$4 sm:$0xff]  }
 0x16f   :  { %7279 = vmatpush1.bf16.msra.mxu1 %v15635_v29  ;;  %7237 = vmatprep.subr.bf16.mxu0 %v15640_v30 }
 0x170   :  { %7280 = vmatprep.subr.bf16.mxu1 %v15643_v31  ;;  %v15722_v31 = vld [vmem:[#allocation2 + $0x10c0] ss:$16 sps:$4 sm:$0xff]  }
 0x172   :  { %7238 = vmatpush1.bf16.msra.mxu0 %v15638_v32 }
 0x173   :  { %7281 = vmatpush1.bf16.msra.mxu1 %v15641_v33  ;;  %7239 = vmatprep.subr.bf16.mxu0 %v15646_v34  ;;  %v15725_v33 = vld [vmem:[#allocation2 + $0x12c0] ss:$16 sps:$4 sm:$0xff]  }
 0x174   :  { %7282 = vmatprep.subr.bf16.mxu1 %v15649_v35 }
 0x176   :  { %7240 = vmatpush1.bf16.msra.mxu0 %v15644_v36  ;;  %v15730_v36 = vld [vmem:[#allocation2 + $0x10a4] ss:$16 sps:$4 sm:$0xff]  }
 0x177   :  { %7283 = vmatpush1.bf16.msra.mxu1 %v15647_v37  ;;  %7241 = vmatprep.subr.bf16.mxu0 %v15652_v38  ;;  %v15733_v37 = vld [vmem:[#allocation2 + $0x12a4] ss:$16 sps:$4 sm:$0xff]  }
 0x178   :  { %7284 = vmatprep.subr.bf16.mxu1 %v15655_v39 }
 0x17a   :  { %7242 = vmatpush1.bf16.msra.mxu0 %v15650_v40  ;;  %v15728_v40 = vld [vmem:[#allocation2 + $0x10a0] ss:$16 sps:$4 sm:$0xff]  }
 0x17b   :  { %7285 = vmatpush1.bf16.msra.mxu1 %v15653_v41  ;;  %7243 = vmatprep.subr.bf16.mxu0 %v15658_v42  ;;  %v15731_v42 = vld [vmem:[#allocation2 + $0x12a0] ss:$16 sps:$4 sm:$0xff]  }
 0x17c   :  { %7286 = vmatprep.subr.bf16.mxu1 %v15661_v43 }
 0x17e   :  { %7244 = vmatpush1.bf16.msra.mxu0 %v15656_v44  ;;  %v15736_v44 = vld [vmem:[#allocation2 + $0x1084] ss:$16 sps:$4 sm:$0xff]  }
 0x17f   :  { %7287 = vmatpush1.bf16.msra.mxu1 %v15659_v45  ;;  %7245 = vmatprep.subr.bf16.mxu0 %v15664_v46  ;;  %v15739_v45 = vld [vmem:[#allocation2 + $0x1284] ss:$16 sps:$4 sm:$0xff]  }
 0x180   :  { %7288 = vmatprep.subr.bf16.mxu1 %v15667_v47  ;;  %v15734_v47 = vld [vmem:[#allocation2 + $0x1080] ss:$16 sps:$4 sm:$0xff]  }
 0x182   :  { %7246 = vmatpush2.bf16.msra.mxu0 %v15662_v48  ;;  %v15737_v48 = vld [vmem:[#allocation2 + $0x1280] ss:$16 sps:$4 sm:$0xff]  }
 0x183   :  { %7289 = vmatpush2.bf16.msra.mxu1 %v15665_v49  ;;  %7247 = vmatprep.subr.bf16.mxu0 %v15670_v50  ;;  %v15742_v49 = vld [vmem:[#allocation2 + $0x1064] ss:$16 sps:$4 sm:$0xff]  }
 0x184   :  { %7290 = vmatprep.subr.bf16.mxu1 %v15673_v51  ;;  %v15745_v50 = vld [vmem:[#allocation2 + $0x1264] ss:$16 sps:$4 sm:$0xff]   ;;  %v15740_v51 = vld [vmem:[#allocation2 + $0x1060] ss:$16 sps:$4 sm:$0xff]  }
 0x186   :  { %7248 = vmatpush2.bf16.msra.mxu0 %v15668_v52  ;;  %v15743_v52 = vld [vmem:[#allocation2 + $0x1260] ss:$16 sps:$4 sm:$0xff]  }
 0x187   :  { %7291 = vmatpush2.bf16.msra.mxu1 %v15671_v53  ;;  %7249 = vmatprep.subr.bf16.mxu0 %v15676_v54  ;;  %v15748_v53 = vld [vmem:[#allocation2 + $0x1044] ss:$16 sps:$4 sm:$0xff]  }
 0x188   :  { %7292 = vmatprep.subr.bf16.mxu1 %v15679_v55  ;;  %v15751_v54 = vld [vmem:[#allocation2 + $0x1244] ss:$16 sps:$4 sm:$0xff]   ;;  %v15746_v55 = vld [vmem:[#allocation2 + $0x1040] ss:$16 sps:$4 sm:$0xff]  }
 0x18a   :  { %7250 = vmatpush2.bf16.msra.mxu0 %v15674_v56  ;;  %v15749_v56 = vld [vmem:[#allocation2 + $0x1240] ss:$16 sps:$4 sm:$0xff]  }
 0x18b   :  { %7293 = vmatpush2.bf16.msra.mxu1 %v15677_v57  ;;  %7251 = vmatprep.subr.bf16.mxu0 %v15682_v58  ;;  %v15754_v57 = vld [vmem:[#allocation2 + $0x1024] ss:$16 sps:$4 sm:$0xff]  }
 0x18c   :  { %7294 = vmatprep.subr.bf16.mxu1 %v15685_v59  ;;  %v15757_v58 = vld [vmem:[#allocation2 + $0x1224] ss:$16 sps:$4 sm:$0xff]   ;;  %v15752_v59 = vld [vmem:[#allocation2 + $0x1020] ss:$16 sps:$4 sm:$0xff]  }
 0x18e   :  { %7252 = vmatpush2.bf16.msra.mxu0 %v15680_v60  ;;  %v15755_v60 = vld [vmem:[#allocation2 + $0x1220] ss:$16 sps:$4 sm:$0xff]  }
 0x18f   :  { %7295 = vmatpush2.bf16.msra.mxu1 %v15683_v61  ;;  %7253 = vmatprep.subr.bf16.mxu0 %v15688_v62  ;;  %v15760_v61 = vld [vmem:[#allocation2 + $0x1004] ss:$16 sps:$4 sm:$0xff]  }
 0x190   :  { %7296 = vmatprep.subr.bf16.mxu1 %v15691_v63  ;;  %v15763_v62 = vld [vmem:[#allocation2 + $0x1204] ss:$16 sps:$4 sm:$0xff]   ;;  %v15758_v63 = vld [vmem:[#allocation2 + $0x1000] ss:$16 sps:$4 sm:$0xff]  }
 0x192   :  { %7254 = vmatpush2.bf16.msra.mxu0 %v15686_v0  ;;  %v15761_v0 = vld [vmem:[#allocation2 + $0x1200] ss:$16 sps:$4 sm:$0xff]  }
 0x193   :  { %7297 = vmatpush2.bf16.msra.mxu1 %v15689_v1  ;;  %7255 = vmatprep.subr.bf16.mxu0 %v15694_v2  ;;  %v15766_v1 = vld [vmem:[#allocation2 + $0x11e4] ss:$16 sps:$4 sm:$0xff]  }
 0x194   :  { %7298 = vmatprep.subr.bf16.mxu1 %v15697_v3  ;;  %v15769_v2 = vld [vmem:[#allocation2 + $0x13e4] ss:$16 sps:$4 sm:$0xff]   ;;  %v15764_v3 = vld [vmem:[#allocation2 + $0x11e0] ss:$16 sps:$4 sm:$0xff]  }
 0x196   :  { %7256 = vmatpush2.bf16.msra.mxu0 %v15692_v4  ;;  %v15767_v4 = vld [vmem:[#allocation2 + $0x13e0] ss:$16 sps:$4 sm:$0xff]  }
 0x197   :  { %7299 = vmatpush2.bf16.msra.mxu1 %v15695_v5  ;;  %7257 = vmatprep.subr.bf16.mxu0 %v15700_v7  ;;  %v15772_v5 = vld [vmem:[#allocation2 + $0x11c4] ss:$16 sps:$4 sm:$0xff]   ;;  %v15770_v7 = vld [vmem:[#allocation2 + $0x11c0] ss:$16 sps:$4 sm:$0xff]  }
 0x198   :  { %7300 = vmatprep.subr.bf16.mxu1 %v15703_v8  ;;  %v15773_v8 = vld [vmem:[#allocation2 + $0x13c0] ss:$16 sps:$4 sm:$0xff]  }
 0x19a   :  { %7258 = vmatpush2.bf16.msra.mxu0 %v15698_v9  ;;  %v15778_v9 = vld [vmem:[#allocation2 + $0x11a4] ss:$16 sps:$4 sm:$0xff]  }
 0x19b   :  { %7301 = vmatpush2.bf16.msra.mxu1 %v15701_v10  ;;  %7259 = vmatprep.subr.bf16.mxu0 %v15706_v12  ;;  %v15781_v10 = vld [vmem:[#allocation2 + $0x13a4] ss:$16 sps:$4 sm:$0xff]   ;;  %v15776_v12 = vld [vmem:[#allocation2 + $0x11a0] ss:$16 sps:$4 sm:$0xff]  }
 0x19c   :  { %7302 = vmatprep.subr.bf16.mxu1 %v15709_v13  ;;  %v15779_v13 = vld [vmem:[#allocation2 + $0x13a0] ss:$16 sps:$4 sm:$0xff]  }
 0x19e   :  { %7260 = vmatpush2.bf16.msra.mxu0 %v15704_v14  ;;  %v15784_v14 = vld [vmem:[#allocation2 + $0x1184] ss:$16 sps:$4 sm:$0xff]  }
 0x19f   :  { %7303 = vmatpush2.bf16.msra.mxu1 %v15707_v15  ;;  %7315 = vmatprep.subr.bf16.mxu0 %v15718_v18  ;;  %v15787_v15 = vld [vmem:[#allocation2 + $0x1384] ss:$16 sps:$4 sm:$0xff]   ;;  %v15785_v18 = vld [vmem:[#allocation2 + $0x1380] ss:$16 sps:$4 sm:$0xff]  }
 0x1a0   :  { %7358 = vmatprep.subr.bf16.mxu1 %v15721_v19  ;;  %v15790_v19 = vld [vmem:[#allocation2 + $0x1164] ss:$16 sps:$4 sm:$0xff]  }
 0x1a1   :  { %v7005_v29 = vpop.f32.mrf.mxu0  ;;  %7262 = vmatmul.mubr.bf16.vlgmr.msra.gmra.mxu0 %v15710_v20  ;;  %v15793_v20 = vld [vmem:[#allocation2 + $0x1364] ss:$16 sps:$4 sm:$0xff]  }
 0x1a2   :  { %v7048_v30 = vpop.f32.mrf.mxu1  ;;  %7305 = vmatmul.mubr.bf16.vlgmr.msra.gmra.mxu1 %v15713_v21  ;;  %v7006_v32 = vadd.f32 %v7005_v29, %v1344_v23  ;;  %7316 = vmatpush1.bf16.msra.mxu0 %v15716_v22  ;;  %v15788_v21 = vld [vmem:[#allocation2 + $0x1160] ss:$16 sps:$4 sm:$0xff]  }
 0x1a3   :  { %7359 = vmatpush1.bf16.msra.mxu1 %v15719_v24  ;;  %v18042_v34 = vpop.f32.mrf.mxu0  ;;  %7317 = vmatprep.subr.bf16.mxu0 %v15724_v25  ;;  %v15791_v22 = vld [vmem:[#allocation2 + $0x1360] ss:$16 sps:$4 sm:$0xff]   ;;  %v15799_v24 = vld [vmem:[#allocation2 + $0x1344] ss:$16 sps:$4 sm:$0xff]  }
 0x1a4   :  { %v18044_v35 = vpop.f32.mrf.mxu1  ;;  %7360 = vmatprep.subr.bf16.mxu1 %v15727_v26  ;;  %v18046_v38 = vadd.f32 %v7048_v30, %v7006_v32  ;;  %7347 = vmatprep.mubr.bf16.mxu0 %v15814_v27  ;;  %v15794_v25 = vld [vmem:[#allocation2 + $0x1140] ss:$16 sps:$4 sm:$0xff]   ;;  %v15802_v27 = vld [vmem:[#allocation2 + $0x1124] ss:$16 sps:$4 sm:$0xff]  }
 0x1a5   :  { %7390 = vmatprep.mubr.bf16.mxu1 %v15817_v28  ;;  %v7009_v39 = vpop.f32.mrf.mxu0  ;;  %v15797_v26 = vld [vmem:[#allocation2 + $0x1340] ss:$16 sps:$4 sm:$0xff]   ;;  %v15805_v28 = vld [vmem:[#allocation2 + $0x1324] ss:$16 sps:$4 sm:$0xff]  }
 0x1a6   :  { %v7010_v41 = vadd.f32 %v7009_v39, %v1344_v23  ;;  %7318 = vmatpush1.bf16.msra.mxu0 %v15722_v31  ;;  %v7052_v43 = vpop.f32.mrf.mxu1  ;;  %v15796_v23 = vld [vmem:[#allocation2 + $0x1144] ss:$16 sps:$4 sm:$0xff]   ;;  %v15800_v29 = vld [vmem:[#allocation2 + $0x1120] ss:$16 sps:$4 sm:$0xff]  }
 0x1a7   :  { %7361 = vmatpush1.bf16.msra.mxu1 %v15725_v33  ;;  %7319 = vmatprep.subr.bf16.mxu0 %v15730_v36  ;;  %v15803_v30 = vld [vmem:[#allocation2 + $0x1320] ss:$16 sps:$4 sm:$0xff]   ;;  %v15808_v31 = vld [vmem:[#allocation2 + $0x1104] ss:$16 sps:$4 sm:$0xff]  }
 0x1a8   :  { %7362 = vmatprep.subr.bf16.mxu1 %v15733_v37  ;;  %v18048_v46 = vadd.f32 %v7052_v43, %v7010_v41  ;;  %v15811_v32 = vld [vmem:[#allocation2 + $0x1304] ss:$16 sps:$4 sm:$0xff]   ;;  %v15806_v33 = vld [vmem:[#allocation2 + $0x1100] ss:$16 sps:$4 sm:$0xff]  }
 0x1a9   :  { %v15809_v36 = vld [vmem:[#allocation2 + $0x1300] ss:$16 sps:$4 sm:$0xff]   ;;  %v15823_v41 = vld [vmem:[#allocation2 + $0x16e4] ss:$16 sps:$4 sm:$0xff]  }
 0x1aa   :  { %7320 = vmatpush1.bf16.msra.mxu0 %v15728_v40  ;;  %v15812_v37 = vld [vmem:[%s19140_s2 + $0x40] ss:$136 sps:$4 sm:$0xff]   ;;  %v15820_v40 = vld [vmem:[#allocation2 + $0x14e4] ss:$16 sps:$4 sm:$0xff]  }
 0x1ab   :  { %7363 = vmatpush1.bf16.msra.mxu1 %v15731_v42  ;;  %7321 = vmatprep.subr.bf16.mxu0 %v15736_v44  ;;  %v15815_v39 = vld [vmem:[%s19140_s2 + $0x48] ss:$136 sps:$4 sm:$0xff]   ;;  %v18056_v44 = vpop.f32.mrf.mxu0 }
 0x1ac   :  { %7364 = vmatprep.subr.bf16.mxu1 %v15739_v45  ;;  %v15818_v42 = vld [vmem:[#allocation2 + $0x14e0] ss:$16 sps:$4 sm:$0xff]   ;;  %v18058_v45 = vpop.f32.mrf.mxu1 }
 0x1ad   :  { %v15821_v43 = vld [vmem:[#allocation2 + $0x16e0] ss:$16 sps:$4 sm:$0xff]  }
 0x1ae   :  { %7322 = vmatpush1.bf16.msra.mxu0 %v15734_v47  ;;  %v15826_v47 = vld [vmem:[#allocation2 + $0x14c4] ss:$16 sps:$4 sm:$0xff]  }
 0x1af   :  { %7365 = vmatpush1.bf16.msra.mxu1 %v15737_v48  ;;  %7323 = vmatprep.subr.bf16.mxu0 %v15742_v49  ;;  %v15829_v48 = vld [vmem:[#allocation2 + $0x16c4] ss:$16 sps:$4 sm:$0xff]   ;;  %v15824_v49 = vld [vmem:[#allocation2 + $0x14c0] ss:$16 sps:$4 sm:$0xff]  }
 0x1b0   :  { %7366 = vmatprep.subr.bf16.mxu1 %v15745_v50  ;;  %v15827_v50 = vld [vmem:[#allocation2 + $0x16c0] ss:$16 sps:$4 sm:$0xff]  }
 0x1b2   :  { %7324 = vmatpush1.bf16.msra.mxu0 %v15740_v51  ;;  %v15916_v51 = vld [vmem:[%s19140_s2 + $0x54] ss:$136 sps:$4 sm:$0xff]  }
 0x1b3   :  { %7367 = vmatpush1.bf16.msra.mxu1 %v15743_v52  ;;  %7325 = vmatprep.subr.bf16.mxu0 %v15748_v53  ;;  %v15919_v52 = vld [vmem:[%s19140_s2 + $0x5c] ss:$136 sps:$4 sm:$0xff]  }
 0x1b4   :  { %7368 = vmatprep.subr.bf16.mxu1 %v15751_v54 }
 0x1b6   :  { %7326 = vmatpush1.bf16.msra.mxu0 %v15746_v55 }
 0x1b7   :  { %7369 = vmatpush1.bf16.msra.mxu1 %v15749_v56  ;;  %7327 = vmatprep.subr.bf16.mxu0 %v15754_v57 }
 0x1b8   :  { %7370 = vmatprep.subr.bf16.mxu1 %v15757_v58  ;;  %v15832_v58 = vld [vmem:[#allocation2 + $0x14a4] ss:$16 sps:$4 sm:$0xff]  }
 0x1ba   :  { %7328 = vmatpush1.bf16.msra.mxu0 %v15752_v59  ;;  %v15835_v59 = vld [vmem:[#allocation2 + $0x16a4] ss:$16 sps:$4 sm:$0xff]  }
 0x1bb   :  { %7371 = vmatpush1.bf16.msra.mxu1 %v15755_v60  ;;  %7329 = vmatprep.subr.bf16.mxu0 %v15760_v61  ;;  %v15830_v61 = vld [vmem:[#allocation2 + $0x14a0] ss:$16 sps:$4 sm:$0xff]  }
 0x1bc   :  { %7372 = vmatprep.subr.bf16.mxu1 %v15763_v62  ;;  %v15833_v62 = vld [vmem:[#allocation2 + $0x16a0] ss:$16 sps:$4 sm:$0xff]  }
 0x1be   :  { %7330 = vmatpush1.bf16.msra.mxu0 %v15758_v63 }
 0x1bf   :  { %7373 = vmatpush1.bf16.msra.mxu1 %v15761_v0  ;;  %7331 = vmatprep.subr.bf16.mxu0 %v15766_v1  ;;  %v15838_v1 = vld [vmem:[#allocation2 + $0x1484] ss:$16 sps:$4 sm:$0xff]  }
 0x1c0   :  { %7374 = vmatprep.subr.bf16.mxu1 %v15769_v2  ;;  %v15841_v2 = vld [vmem:[#allocation2 + $0x1684] ss:$16 sps:$4 sm:$0xff]  }
 0x1c2   :  { %7332 = vmatpush2.bf16.msra.mxu0 %v15764_v3 }
 0x1c3   :  { %7375 = vmatpush2.bf16.msra.mxu1 %v15767_v4  ;;  %7333 = vmatprep.subr.bf16.mxu0 %v15772_v5  ;;  %v15836_v4 = vld [vmem:[#allocation2 + $0x1480] ss:$16 sps:$4 sm:$0xff]  }
 0x1c4   :  { %7376 = vmatprep.subr.bf16.mxu1 %v15775_v6  ;;  %v15839_v5 = vld [vmem:[#allocation2 + $0x1680] ss:$16 sps:$4 sm:$0xff]   ;;  %v15844_v6 = vld [vmem:[#allocation2 + $0x1464] ss:$16 sps:$4 sm:$0xff]  }
 0x1c6   :  { %7334 = vmatpush2.bf16.msra.mxu0 %v15770_v7  ;;  %v15847_v7 = vld [vmem:[#allocation2 + $0x1664] ss:$16 sps:$4 sm:$0xff]  }
 0x1c7   :  { %7377 = vmatpush2.bf16.msra.mxu1 %v15773_v8  ;;  %7335 = vmatprep.subr.bf16.mxu0 %v15778_v9  ;;  %v15845_v8 = vld [vmem:[#allocation2 + $0x1660] ss:$16 sps:$4 sm:$0xff]   ;;  %v15850_v9 = vld [vmem:[#allocation2 + $0x1444] ss:$16 sps:$4 sm:$0xff]  }
 0x1c8   :  { %7378 = vmatprep.subr.bf16.mxu1 %v15781_v10  ;;  %v15853_v10 = vld [vmem:[#allocation2 + $0x1644] ss:$16 sps:$4 sm:$0xff]  }
 0x1ca   :  { %7336 = vmatpush2.bf16.msra.mxu0 %v15776_v12  ;;  %v15848_v12 = vld [vmem:[#allocation2 + $0x1440] ss:$16 sps:$4 sm:$0xff]  }
 0x1cb   :  { %7379 = vmatpush2.bf16.msra.mxu1 %v15779_v13  ;;  %7337 = vmatprep.subr.bf16.mxu0 %v15784_v14  ;;  %v15851_v13 = vld [vmem:[#allocation2 + $0x1640] ss:$16 sps:$4 sm:$0xff]   ;;  %v15856_v14 = vld [vmem:[#allocation2 + $0x1424] ss:$16 sps:$4 sm:$0xff]  }
 0x1cc   :  { %7380 = vmatprep.subr.bf16.mxu1 %v15787_v15  ;;  %v15859_v15 = vld [vmem:[#allocation2 + $0x1624] ss:$16 sps:$4 sm:$0xff]  }
 0x1ce   :  { %7338 = vmatpush2.bf16.msra.mxu0 %v15782_v16  ;;  %v15854_v16 = vld [vmem:[#allocation2 + $0x1420] ss:$16 sps:$4 sm:$0xff]  }
 0x1cf   :  { %7381 = vmatpush2.bf16.msra.mxu1 %v15785_v18  ;;  %7339 = vmatprep.subr.bf16.mxu0 %v15790_v19  ;;  %v15857_v18 = vld [vmem:[#allocation2 + $0x1620] ss:$16 sps:$4 sm:$0xff]   ;;  %v15862_v19 = vld [vmem:[#allocation2 + $0x1404] ss:$16 sps:$4 sm:$0xff]  }
 0x1d0   :  { %7382 = vmatprep.subr.bf16.mxu1 %v15793_v20  ;;  %v15865_v20 = vld [vmem:[#allocation2 + $0x1604] ss:$16 sps:$4 sm:$0xff]  }
 0x1d2   :  { %7340 = vmatpush2.bf16.msra.mxu0 %v15788_v21  ;;  %v15860_v21 = vld [vmem:[#allocation2 + $0x1400] ss:$16 sps:$4 sm:$0xff]  }
 0x1d3   :  { %7383 = vmatpush2.bf16.msra.mxu1 %v15791_v22  ;;  %7341 = vmatprep.subr.bf16.mxu0 %v15796_v23  ;;  %v15863_v22 = vld [vmem:[#allocation2 + $0x1600] ss:$16 sps:$4 sm:$0xff]   ;;  %v15868_v23 = vld [vmem:[#allocation2 + $0x15e4] ss:$16 sps:$4 sm:$0xff]  }
 0x1d4   :  { %7384 = vmatprep.subr.bf16.mxu1 %v15799_v24  ;;  %v15871_v24 = vld [vmem:[#allocation2 + $0x17e4] ss:$16 sps:$4 sm:$0xff]  }
 0x1d6   :  { %7342 = vmatpush2.bf16.msra.mxu0 %v15794_v25  ;;  %v15866_v25 = vld [vmem:[#allocation2 + $0x15e0] ss:$16 sps:$4 sm:$0xff]  }
 0x1d7   :  { %7385 = vmatpush2.bf16.msra.mxu1 %v15797_v26  ;;  %7343 = vmatprep.subr.bf16.mxu0 %v15802_v27  ;;  %v15869_v26 = vld [vmem:[#allocation2 + $0x17e0] ss:$16 sps:$4 sm:$0xff]   ;;  %v15874_v27 = vld [vmem:[#allocation2 + $0x15c4] ss:$16 sps:$4 sm:$0xff]  }
 0x1d8   :  { %7386 = vmatprep.subr.bf16.mxu1 %v15805_v28  ;;  %v15877_v28 = vld [vmem:[#allocation2 + $0x17c4] ss:$16 sps:$4 sm:$0xff]  }
 0x1da   :  { %7344 = vmatpush2.bf16.msra.mxu0 %v15800_v29  ;;  %v15872_v29 = vld [vmem:[#allocation2 + $0x15c0] ss:$16 sps:$4 sm:$0xff]  }
 0x1db   :  { %7387 = vmatpush2.bf16.msra.mxu1 %v15803_v30  ;;  %7345 = vmatprep.subr.bf16.mxu0 %v15808_v31  ;;  %v15875_v30 = vld [vmem:[#allocation2 + $0x17c0] ss:$16 sps:$4 sm:$0xff]   ;;  %v15880_v31 = vld [vmem:[#allocation2 + $0x15a4] ss:$16 sps:$4 sm:$0xff]  }
 0x1dc   :  { %7388 = vmatprep.subr.bf16.mxu1 %v15811_v32  ;;  %v15883_v32 = vld [vmem:[#allocation2 + $0x17a4] ss:$16 sps:$4 sm:$0xff]  }
 0x1de   :  { %7346 = vmatpush2.bf16.msra.mxu0 %v15806_v33  ;;  %v15878_v33 = vld [vmem:[#allocation2 + $0x15a0] ss:$16 sps:$4 sm:$0xff]  }
 0x1df   :  { %7389 = vmatpush2.bf16.msra.mxu1 %v15809_v36  ;;  %7401 = vmatprep.subr.bf16.mxu0 %v15820_v40  ;;  %v15881_v36 = vld [vmem:[#allocation2 + $0x17a0] ss:$16 sps:$4 sm:$0xff]  }
 0x1e0   :  { %7444 = vmatprep.subr.bf16.mxu1 %v15823_v41  ;;  %v15884_v40 = vld [vmem:[#allocation2 + $0x1580] ss:$16 sps:$4 sm:$0xff]  }
 0x1e1   :  { %v7091_v53 = vpop.f32.mrf.mxu0  ;;  %7348 = vmatmul.mubr.bf16.vlgmr.msra.gmra.mxu0 %v15812_v37  ;;  %v15886_v37 = vld [vmem:[#allocation2 + $0x1584] ss:$16 sps:$4 sm:$0xff]   ;;  %v15887_v41 = vld [vmem:[#allocation2 + $0x1780] ss:$16 sps:$4 sm:$0xff]  }
 0x1e2   :  { %v7134_v54 = vpop.f32.mrf.mxu1  ;;  %7391 = vmatmul.mubr.bf16.vlgmr.msra.gmra.mxu1 %v15815_v39  ;;  %v7092_v55 = vadd.f32 %v7091_v53, %v18046_v38  ;;  %7402 = vmatpush1.bf16.msra.mxu0 %v15818_v42  ;;  %v15889_v39 = vld [vmem:[#allocation2 + $0x1784] ss:$16 sps:$4 sm:$0xff]  }
 0x1e3   :  { %7445 = vmatpush1.bf16.msra.mxu1 %v15821_v43  ;;  %v18067_v56 = vpop.f32.mrf.mxu0  ;;  %7403 = vmatprep.subr.bf16.mxu0 %v15826_v47  ;;  %v15892_v42 = vld [vmem:[#allocation2 + $0x1564] ss:$16 sps:$4 sm:$0xff]   ;;  %v15890_v47 = vld [vmem:[#allocation2 + $0x1560] ss:$16 sps:$4 sm:$0xff]  }
 0x1e4   :  { %v18069_v57 = vpop.f32.mrf.mxu1  ;;  %7446 = vmatprep.subr.bf16.mxu1 %v15829_v48  ;;  %v18071_v60 = vadd.f32 %v7134_v54, %v7092_v55  ;;  %7433 = vmatprep.mubr.bf16.mxu0 %v15916_v51  ;;  %v15895_v43 = vld [vmem:[#allocation2 + $0x1764] ss:$16 sps:$4 sm:$0xff]   ;;  %v15893_v48 = vld [vmem:[#allocation2 + $0x1760] ss:$16 sps:$4 sm:$0xff]  }
 0x1e5   :  { %7476 = vmatprep.mubr.bf16.mxu1 %v15919_v52  ;;  %v7095_v63 = vpop.f32.mrf.mxu0  ;;  %v15896_v51 = vld [vmem:[#allocation2 + $0x1540] ss:$16 sps:$4 sm:$0xff]   ;;  %v15904_v53 = vld [vmem:[#allocation2 + $0x1524] ss:$16 sps:$4 sm:$0xff]  }
 0x1e6   :  { %v7096_v0 = vadd.f32 %v7095_v63, %v18048_v46  ;;  %7404 = vmatpush1.bf16.msra.mxu0 %v15824_v49  ;;  %v7138_v38 = vpop.f32.mrf.mxu1  ;;  %v15842_v46 = vld [vmem:[#allocation2 + $0x1460] ss:$16 sps:$4 sm:$0xff]   ;;  %v15898_v49 = vld [vmem:[#allocation2 + $0x1544] ss:$16 sps:$4 sm:$0xff]  }
 0x1e7   :  { %7447 = vmatpush1.bf16.msra.mxu1 %v15827_v50  ;;  %7405 = vmatprep.subr.bf16.mxu0 %v15832_v58  ;;  %v15901_v50 = vld [vmem:[#allocation2 + $0x1744] ss:$16 sps:$4 sm:$0xff]   ;;  %v15899_v52 = vld [vmem:[#allocation2 + $0x1740] ss:$16 sps:$4 sm:$0xff]  }
 0x1e8   :  { %7448 = vmatprep.subr.bf16.mxu1 %v15835_v59  ;;  %v18074_v3 = vadd.f32 %v7138_v38, %v7096_v0  ;;  %v15907_v54 = vld [vmem:[#allocation2 + $0x1724] ss:$16 sps:$4 sm:$0xff]   ;;  %v15902_v55 = vld [vmem:[#allocation2 + $0x1520] ss:$16 sps:$4 sm:$0xff]  }
 0x1e9   :  { %v15905_v58 = vld [vmem:[#allocation2 + $0x1720] ss:$16 sps:$4 sm:$0xff]   ;;  %v15910_v59 = vld [vmem:[#allocation2 + $0x1504] ss:$16 sps:$4 sm:$0xff]  }
 0x1ea   :  { %7406 = vmatpush1.bf16.msra.mxu0 %v15830_v61  ;;  %v15913_v61 = vld [vmem:[#allocation2 + $0x1704] ss:$16 sps:$4 sm:$0xff]   ;;  %v15911_v63 = vld [vmem:[#allocation2 + $0x1700] ss:$16 sps:$4 sm:$0xff]  }
 0x1eb   :  { %7449 = vmatpush1.bf16.msra.mxu1 %v15833_v62  ;;  %7407 = vmatprep.subr.bf16.mxu0 %v15838_v1  ;;  %v15908_v62 = vld [vmem:[#allocation2 + $0x1500] ss:$16 sps:$4 sm:$0xff]   ;;  %v15922_v1 = vld [vmem:[#allocation2 + $0x18e4] ss:$16 sps:$4 sm:$0xff]  }
 0x1ec   :  { %7450 = vmatprep.subr.bf16.mxu1 %v15841_v2  ;;  %v15914_v0 = vld [vmem:[%s19140_s2 + $0x50] ss:$136 sps:$4 sm:$0xff]   ;;  %v15925_v2 = vld [vmem:[#allocation2 + $0x1ae4] ss:$16 sps:$4 sm:$0xff]  }
 0x1ed   :  { %v15917_v38 = vld [vmem:[%s19140_s2 + $0x58] ss:$136 sps:$4 sm:$0xff]  }
 0x1ee   :  { %7408 = vmatpush1.bf16.msra.mxu0 %v15836_v4  ;;  %v15920_v4 = vld [vmem:[#allocation2 + $0x18e0] ss:$16 sps:$4 sm:$0xff]  }
 0x1ef   :  { %7451 = vmatpush1.bf16.msra.mxu1 %v15839_v5  ;;  %7409 = vmatprep.subr.bf16.mxu0 %v15844_v6  ;;  %v15923_v5 = vld [vmem:[#allocation2 + $0x1ae0] ss:$16 sps:$4 sm:$0xff]   ;;  %v18082_v6 = vpop.f32.mrf.mxu0 }
 0x1f0   :  { %7452 = vmatprep.subr.bf16.mxu1 %v15847_v7  ;;  %v18084_v7 = vpop.f32.mrf.mxu1 }
 0x1f2   :  { %7410 = vmatpush1.bf16.msra.mxu0 %v15842_v46  ;;  %v15928_v46 = vld [vmem:[#allocation2 + $0x18c4] ss:$16 sps:$4 sm:$0xff]  }
 0x1f3   :  { %7453 = vmatpush1.bf16.msra.mxu1 %v15845_v8  ;;  %7411 = vmatprep.subr.bf16.mxu0 %v15850_v9  ;;  %v15931_v8 = vld [vmem:[#allocation2 + $0x1ac4] ss:$16 sps:$4 sm:$0xff]   ;;  %v15926_v9 = vld [vmem:[#allocation2 + $0x18c0] ss:$16 sps:$4 sm:$0xff]  }
 0x1f4   :  { %7454 = vmatprep.subr.bf16.mxu1 %v15853_v10  ;;  %v15929_v10 = vld [vmem:[#allocation2 + $0x1ac0] ss:$16 sps:$4 sm:$0xff]  }
 0x1f6   :  { %7412 = vmatpush1.bf16.msra.mxu0 %v15848_v12  ;;  %v16018_v12 = vld [vmem:[%s19140_s2 + $0x64] ss:$136 sps:$4 sm:$0xff]  }
 0x1f7   :  { %7455 = vmatpush1.bf16.msra.mxu1 %v15851_v13  ;;  %7413 = vmatprep.subr.bf16.mxu0 %v15856_v14  ;;  %v16021_v13 = vld [vmem:[%s19140_s2 + $0x6c] ss:$136 sps:$4 sm:$0xff]  }
 0x1f8   :  { %7456 = vmatprep.subr.bf16.mxu1 %v15859_v15 }
 0x1fa   :  { %7414 = vmatpush1.bf16.msra.mxu0 %v15854_v16 }
 0x1fb   :  { %7457 = vmatpush1.bf16.msra.mxu1 %v15857_v18  ;;  %7415 = vmatprep.subr.bf16.mxu0 %v15862_v19 }
 0x1fc   :  { %7458 = vmatprep.subr.bf16.mxu1 %v15865_v20  ;;  %v15934_v20 = vld [vmem:[#allocation2 + $0x18a4] ss:$16 sps:$4 sm:$0xff]  }
 0x1fe   :  { %7416 = vmatpush1.bf16.msra.mxu0 %v15860_v21  ;;  %v15937_v21 = vld [vmem:[#allocation2 + $0x1aa4] ss:$16 sps:$4 sm:$0xff]  }
 0x1ff   :  { %7459 = vmatpush1.bf16.msra.mxu1 %v15863_v22  ;;  %7417 = vmatprep.subr.bf16.mxu0 %v15868_v23  ;;  %v15932_v23 = vld [vmem:[#allocation2 + $0x18a0] ss:$16 sps:$4 sm:$0xff]  }
 0x200   :  { %7460 = vmatprep.subr.bf16.mxu1 %v15871_v24  ;;  %v15935_v24 = vld [vmem:[#allocation2 + $0x1aa0] ss:$16 sps:$4 sm:$0xff]  }
 0x202   :  { %7418 = vmatpush2.bf16.msra.mxu0 %v15866_v25 }
 0x203   :  { %7461 = vmatpush2.bf16.msra.mxu1 %v15869_v26  ;;  %7419 = vmatprep.subr.bf16.mxu0 %v15874_v27  ;;  %v15940_v27 = vld [vmem:[#allocation2 + $0x1884] ss:$16 sps:$4 sm:$0xff]  }
 0x204   :  { %7462 = vmatprep.subr.bf16.mxu1 %v15877_v28  ;;  %v15943_v28 = vld [vmem:[#allocation2 + $0x1a84] ss:$16 sps:$4 sm:$0xff]  }
 0x206   :  { %7420 = vmatpush2.bf16.msra.mxu0 %v15872_v29 }
 0x207   :  { %7463 = vmatpush2.bf16.msra.mxu1 %v15875_v30  ;;  %7421 = vmatprep.subr.bf16.mxu0 %v15880_v31  ;;  %v15938_v30 = vld [vmem:[#allocation2 + $0x1880] ss:$16 sps:$4 sm:$0xff]  }
 0x208   :  { %7464 = vmatprep.subr.bf16.mxu1 %v15883_v32  ;;  %v15941_v31 = vld [vmem:[#allocation2 + $0x1a80] ss:$16 sps:$4 sm:$0xff]   ;;  %v15946_v32 = vld [vmem:[#allocation2 + $0x1864] ss:$16 sps:$4 sm:$0xff]  }
 0x20a   :  { %7422 = vmatpush2.bf16.msra.mxu0 %v15878_v33  ;;  %v15949_v33 = vld [vmem:[#allocation2 + $0x1a64] ss:$16 sps:$4 sm:$0xff]  }
 0x20b   :  { %7465 = vmatpush2.bf16.msra.mxu1 %v15881_v36  ;;  %7423 = vmatprep.subr.bf16.mxu0 %v15886_v37  ;;  %v15947_v36 = vld [vmem:[#allocation2 + $0x1a60] ss:$16 sps:$4 sm:$0xff]   ;;  %v15952_v37 = vld [vmem:[#allocation2 + $0x1844] ss:$16 sps:$4 sm:$0xff]  }
 0x20c   :  { %7466 = vmatprep.subr.bf16.mxu1 %v15889_v39  ;;  %v15955_v39 = vld [vmem:[#allocation2 + $0x1a44] ss:$16 sps:$4 sm:$0xff]  }
 0x20e   :  { %7424 = vmatpush2.bf16.msra.mxu0 %v15884_v40  ;;  %v15950_v40 = vld [vmem:[#allocation2 + $0x1840] ss:$16 sps:$4 sm:$0xff]  }
 0x20f   :  { %7467 = vmatpush2.bf16.msra.mxu1 %v15887_v41  ;;  %7425 = vmatprep.subr.bf16.mxu0 %v15892_v42  ;;  %v15953_v41 = vld [vmem:[#allocation2 + $0x1a40] ss:$16 sps:$4 sm:$0xff]   ;;  %v15958_v42 = vld [vmem:[#allocation2 + $0x1824] ss:$16 sps:$4 sm:$0xff]  }
 0x210   :  { %7468 = vmatprep.subr.bf16.mxu1 %v15895_v43  ;;  %v15961_v43 = vld [vmem:[#allocation2 + $0x1a24] ss:$16 sps:$4 sm:$0xff]  }
 0x212   :  { %7426 = vmatpush2.bf16.msra.mxu0 %v15890_v47  ;;  %v15956_v47 = vld [vmem:[#allocation2 + $0x1820] ss:$16 sps:$4 sm:$0xff]  }
 0x213   :  { %7469 = vmatpush2.bf16.msra.mxu1 %v15893_v48  ;;  %7427 = vmatprep.subr.bf16.mxu0 %v15898_v49  ;;  %v15959_v48 = vld [vmem:[#allocation2 + $0x1a20] ss:$16 sps:$4 sm:$0xff]   ;;  %v15964_v49 = vld [vmem:[#allocation2 + $0x1804] ss:$16 sps:$4 sm:$0xff]  }
 0x214   :  { %7470 = vmatprep.subr.bf16.mxu1 %v15901_v50  ;;  %v15967_v50 = vld [vmem:[#allocation2 + $0x1a04] ss:$16 sps:$4 sm:$0xff]  }
 0x216   :  { %7428 = vmatpush2.bf16.msra.mxu0 %v15896_v51  ;;  %v15962_v51 = vld [vmem:[#allocation2 + $0x1800] ss:$16 sps:$4 sm:$0xff]  }
 0x217   :  { %7471 = vmatpush2.bf16.msra.mxu1 %v15899_v52  ;;  %7429 = vmatprep.subr.bf16.mxu0 %v15904_v53  ;;  %v15965_v52 = vld [vmem:[#allocation2 + $0x1a00] ss:$16 sps:$4 sm:$0xff]   ;;  %v15970_v53 = vld [vmem:[#allocation2 + $0x19e4] ss:$16 sps:$4 sm:$0xff]  }
 0x218   :  { %7472 = vmatprep.subr.bf16.mxu1 %v15907_v54  ;;  %v15973_v54 = vld [vmem:[#allocation2 + $0x1be4] ss:$16 sps:$4 sm:$0xff]  }
 0x21a   :  { %7430 = vmatpush2.bf16.msra.mxu0 %v15902_v55  ;;  %v15968_v55 = vld [vmem:[#allocation2 + $0x19e0] ss:$16 sps:$4 sm:$0xff]  }
 0x21b   :  { %7473 = vmatpush2.bf16.msra.mxu1 %v15905_v58  ;;  %7431 = vmatprep.subr.bf16.mxu0 %v15910_v59  ;;  %v15971_v58 = vld [vmem:[#allocation2 + $0x1be0] ss:$16 sps:$4 sm:$0xff]   ;;  %v15976_v59 = vld [vmem:[#allocation2 + $0x19c4] ss:$16 sps:$4 sm:$0xff]  }
 0x21c   :  { %7474 = vmatprep.subr.bf16.mxu1 %v15913_v61  ;;  %v15979_v61 = vld [vmem:[#allocation2 + $0x1bc4] ss:$16 sps:$4 sm:$0xff]  }
 0x21e   :  { %7432 = vmatpush2.bf16.msra.mxu0 %v15908_v62  ;;  %v15974_v62 = vld [vmem:[#allocation2 + $0x19c0] ss:$16 sps:$4 sm:$0xff]  }
 0x21f   :  { %7475 = vmatpush2.bf16.msra.mxu1 %v15911_v63  ;;  %7487 = vmatprep.subr.bf16.mxu0 %v15922_v1  ;;  %v15977_v63 = vld [vmem:[#allocation2 + $0x1bc0] ss:$16 sps:$4 sm:$0xff]  }
 0x220   :  { %7530 = vmatprep.subr.bf16.mxu1 %v15925_v2  ;;  %v15980_v1 = vld [vmem:[#allocation2 + $0x19a0] ss:$16 sps:$4 sm:$0xff]  }
 0x221   :  { %v7177_v14 = vpop.f32.mrf.mxu0  ;;  %7434 = vmatmul.mubr.bf16.vlgmr.msra.gmra.mxu0 %v15914_v0  ;;  %v15982_v0 = vld [vmem:[#allocation2 + $0x19a4] ss:$16 sps:$4 sm:$0xff]   ;;  %v15983_v2 = vld [vmem:[#allocation2 + $0x1ba0] ss:$16 sps:$4 sm:$0xff]  }
 0x222   :  { %v7220_v15 = vpop.f32.mrf.mxu1  ;;  %7477 = vmatmul.mubr.bf16.vlgmr.msra.gmra.mxu1 %v15917_v38  ;;  %v7178_v16 = vadd.f32 %v7177_v14, %v18071_v60  ;;  %7488 = vmatpush1.bf16.msra.mxu0 %v15920_v4  ;;  %v15985_v38 = vld [vmem:[#allocation2 + $0x1ba4] ss:$16 sps:$4 sm:$0xff]  }
 0x223   :  { %7531 = vmatpush1.bf16.msra.mxu1 %v15923_v5  ;;  %v18093_v18 = vpop.f32.mrf.mxu0  ;;  %7489 = vmatprep.subr.bf16.mxu0 %v15928_v46  ;;  %v15988_v4 = vld [vmem:[#allocation2 + $0x1984] ss:$16 sps:$4 sm:$0xff]   ;;  %v15986_v46 = vld [vmem:[#allocation2 + $0x1980] ss:$16 sps:$4 sm:$0xff]  }
 0x224   :  { %v18095_v19 = vpop.f32.mrf.mxu1  ;;  %7532 = vmatprep.subr.bf16.mxu1 %v15931_v8  ;;  %v18097_v22 = vadd.f32 %v7220_v15, %v7178_v16  ;;  %7519 = vmatprep.mubr.bf16.mxu0 %v16018_v12  ;;  %v15991_v5 = vld [vmem:[#allocation2 + $0x1b84] ss:$16 sps:$4 sm:$0xff]   ;;  %v15989_v8 = vld [vmem:[#allocation2 + $0x1b80] ss:$16 sps:$4 sm:$0xff]  }
 0x225   :  { %7562 = vmatprep.mubr.bf16.mxu1 %v16021_v13  ;;  %v7181_v25 = vpop.f32.mrf.mxu0  ;;  %v15992_v12 = vld [vmem:[#allocation2 + $0x1960] ss:$16 sps:$4 sm:$0xff]   ;;  %v16000_v14 = vld [vmem:[#allocation2 + $0x1944] ss:$16 sps:$4 sm:$0xff]  }
 0x226   :  { %v7182_v26 = vadd.f32 %v7181_v25, %v18074_v3  ;;  %7490 = vmatpush1.bf16.msra.mxu0 %v15926_v9  ;;  %v7224_v60 = vpop.f32.mrf.mxu1  ;;  %v15944_v3 = vld [vmem:[#allocation2 + $0x1860] ss:$16 sps:$4 sm:$0xff]   ;;  %v15994_v9 = vld [vmem:[#allocation2 + $0x1964] ss:$16 sps:$4 sm:$0xff]  }
 0x227   :  { %7533 = vmatpush1.bf16.msra.mxu1 %v15929_v10  ;;  %7491 = vmatprep.subr.bf16.mxu0 %v15934_v20  ;;  %v15997_v10 = vld [vmem:[#allocation2 + $0x1b64] ss:$16 sps:$4 sm:$0xff]   ;;  %v15995_v13 = vld [vmem:[#allocation2 + $0x1b60] ss:$16 sps:$4 sm:$0xff]  }
 0x228   :  { %7534 = vmatprep.subr.bf16.mxu1 %v15937_v21  ;;  %v18100_v29 = vadd.f32 %v7224_v60, %v7182_v26  ;;  %v16003_v15 = vld [vmem:[#allocation2 + $0x1b44] ss:$16 sps:$4 sm:$0xff]   ;;  %v15998_v16 = vld [vmem:[#allocation2 + $0x1940] ss:$16 sps:$4 sm:$0xff]  }
 0x229   :  { %v16001_v20 = vld [vmem:[#allocation2 + $0x1b40] ss:$16 sps:$4 sm:$0xff]   ;;  %v16006_v21 = vld [vmem:[#allocation2 + $0x1924] ss:$16 sps:$4 sm:$0xff]  }
 0x22a   :  { %7492 = vmatpush1.bf16.msra.mxu0 %v15932_v23  ;;  %v16009_v23 = vld [vmem:[#allocation2 + $0x1b24] ss:$16 sps:$4 sm:$0xff]   ;;  %v16007_v25 = vld [vmem:[#allocation2 + $0x1b20] ss:$16 sps:$4 sm:$0xff]  }
 0x22b   :  { %7535 = vmatpush1.bf16.msra.mxu1 %v15935_v24  ;;  %7493 = vmatprep.subr.bf16.mxu0 %v15940_v27  ;;  %v16004_v24 = vld [vmem:[#allocation2 + $0x1920] ss:$16 sps:$4 sm:$0xff]   ;;  %v16012_v26 = vld [vmem:[#allocation2 + $0x1904] ss:$16 sps:$4 sm:$0xff]  }
 0x22c   :  { %7536 = vmatprep.subr.bf16.mxu1 %v15943_v28  ;;  %v16015_v60 = vld [vmem:[#allocation2 + $0x1b04] ss:$16 sps:$4 sm:$0xff]   ;;  %v16010_v27 = vld [vmem:[#allocation2 + $0x1900] ss:$16 sps:$4 sm:$0xff]  }
 0x22d   :  { %v16013_v28 = vld [vmem:[#allocation2 + $0x1b00] ss:$16 sps:$4 sm:$0xff]  }
 0x22e   :  { %7494 = vmatpush1.bf16.msra.mxu0 %v15938_v30  ;;  %v16016_v30 = vld [vmem:[%s19140_s2 + $0x60] ss:$136 sps:$4 sm:$0xff]  }
 0x22f   :  { %7537 = vmatpush1.bf16.msra.mxu1 %v15941_v31  ;;  %7495 = vmatprep.subr.bf16.mxu0 %v15946_v32  ;;  %v16019_v31 = vld [vmem:[%s19140_s2 + $0x68] ss:$136 sps:$4 sm:$0xff]   ;;  %v16024_v32 = vld [vmem:[#allocation2 + $0x1ce4] ss:$16 sps:$4 sm:$0xff]  }
 0x230   :  { %7538 = vmatprep.subr.bf16.mxu1 %v15949_v33  ;;  %v16027_v33 = vld [vmem:[#allocation2 + $0x1ee4] ss:$16 sps:$4 sm:$0xff]  }
 0x232   :  { %7496 = vmatpush1.bf16.msra.mxu0 %v15944_v3  ;;  %v16022_v3 = vld [vmem:[#allocation2 + $0x1ce0] ss:$16 sps:$4 sm:$0xff]  }
 0x233   :  { %7539 = vmatpush1.bf16.msra.mxu1 %v15947_v36  ;;  %7497 = vmatprep.subr.bf16.mxu0 %v15952_v37  ;;  %v16025_v36 = vld [vmem:[#allocation2 + $0x1ee0] ss:$16 sps:$4 sm:$0xff]   ;;  %v18108_v37 = vpop.f32.mrf.mxu0 }
 0x234   :  { %7540 = vmatprep.subr.bf16.mxu1 %v15955_v39  ;;  %v18110_v39 = vpop.f32.mrf.mxu1 }
 0x236   :  { %7498 = vmatpush1.bf16.msra.mxu0 %v15950_v40  ;;  %v16030_v40 = vld [vmem:[#allocation2 + $0x1cc4] ss:$16 sps:$4 sm:$0xff]  }
 0x237   :  { %7541 = vmatpush1.bf16.msra.mxu1 %v15953_v41  ;;  %7499 = vmatprep.subr.bf16.mxu0 %v15958_v42  ;;  %v16033_v41 = vld [vmem:[#allocation2 + $0x1ec4] ss:$16 sps:$4 sm:$0xff]   ;;  %v16028_v42 = vld [vmem:[#allocation2 + $0x1cc0] ss:$16 sps:$4 sm:$0xff]  }
 0x238   :  { %7542 = vmatprep.subr.bf16.mxu1 %v15961_v43  ;;  %v16031_v43 = vld [vmem:[#allocation2 + $0x1ec0] ss:$16 sps:$4 sm:$0xff]  }
 0x23a   :  { %7500 = vmatpush1.bf16.msra.mxu0 %v15956_v47  ;;  %v16120_v47 = vld [vmem:[%s19140_s2 + $0x74] ss:$136 sps:$4 sm:$0xff]  }
 0x23b   :  { %7543 = vmatpush1.bf16.msra.mxu1 %v15959_v48  ;;  %7501 = vmatprep.subr.bf16.mxu0 %v15964_v49  ;;  %v16123_v48 = vld [vmem:[%s19140_s2 + $0x7c] ss:$136 sps:$4 sm:$0xff]  }
 0x23c   :  { %7544 = vmatprep.subr.bf16.mxu1 %v15967_v50 }
 0x23e   :  { %7502 = vmatpush1.bf16.msra.mxu0 %v15962_v51 }
 0x23f   :  { %7545 = vmatpush1.bf16.msra.mxu1 %v15965_v52  ;;  %7503 = vmatprep.subr.bf16.mxu0 %v15970_v53 }
 0x240   :  { %7546 = vmatprep.subr.bf16.mxu1 %v15973_v54  ;;  %v16036_v54 = vld [vmem:[#allocation2 + $0x1ca4] ss:$16 sps:$4 sm:$0xff]  }
 0x242   :  { %7504 = vmatpush2.bf16.msra.mxu0 %v15968_v55  ;;  %v16039_v55 = vld [vmem:[#allocation2 + $0x1ea4] ss:$16 sps:$4 sm:$0xff]  }
 0x243   :  { %7547 = vmatpush2.bf16.msra.mxu1 %v15971_v58  ;;  %7505 = vmatprep.subr.bf16.mxu0 %v15976_v59  ;;  %v16034_v59 = vld [vmem:[#allocation2 + $0x1ca0] ss:$16 sps:$4 sm:$0xff]  }
 0x244   :  { %7548 = vmatprep.subr.bf16.mxu1 %v15979_v61  ;;  %v16037_v61 = vld [vmem:[#allocation2 + $0x1ea0] ss:$16 sps:$4 sm:$0xff]  }
 0x246   :  { %7506 = vmatpush2.bf16.msra.mxu0 %v15974_v62 }
 0x247   :  { %7549 = vmatpush2.bf16.msra.mxu1 %v15977_v63  ;;  %7507 = vmatprep.subr.bf16.mxu0 %v15982_v0  ;;  %v16042_v0 = vld [vmem:[#allocation2 + $0x1c84] ss:$16 sps:$4 sm:$0xff]  }
 0x248   :  { %7550 = vmatprep.subr.bf16.mxu1 %v15985_v38  ;;  %v16045_v38 = vld [vmem:[#allocation2 + $0x1e84] ss:$16 sps:$4 sm:$0xff]  }
 0x24a   :  { %7508 = vmatpush2.bf16.msra.mxu0 %v15980_v1 }
 0x24b   :  { %7551 = vmatpush2.bf16.msra.mxu1 %v15983_v2  ;;  %7509 = vmatprep.subr.bf16.mxu0 %v15988_v4  ;;  %v16040_v2 = vld [vmem:[#allocation2 + $0x1c80] ss:$16 sps:$4 sm:$0xff]  }
 0x24c   :  { %7552 = vmatprep.subr.bf16.mxu1 %v15991_v5  ;;  %v16043_v4 = vld [vmem:[#allocation2 + $0x1e80] ss:$16 sps:$4 sm:$0xff]   ;;  %v16048_v5 = vld [vmem:[#allocation2 + $0x1c64] ss:$16 sps:$4 sm:$0xff]  }
 0x24e   :  { %7510 = vmatpush2.bf16.msra.mxu0 %v15986_v46  ;;  %v16051_v46 = vld [vmem:[#allocation2 + $0x1e64] ss:$16 sps:$4 sm:$0xff]  }
 0x24f   :  { %7553 = vmatpush2.bf16.msra.mxu1 %v15989_v8  ;;  %7511 = vmatprep.subr.bf16.mxu0 %v15994_v9  ;;  %v16049_v8 = vld [vmem:[#allocation2 + $0x1e60] ss:$16 sps:$4 sm:$0xff]   ;;  %v16054_v9 = vld [vmem:[#allocation2 + $0x1c44] ss:$16 sps:$4 sm:$0xff]  }
 0x250   :  { %7554 = vmatprep.subr.bf16.mxu1 %v15997_v10  ;;  %v16057_v10 = vld [vmem:[#allocation2 + $0x1e44] ss:$16 sps:$4 sm:$0xff]  }
 0x252   :  { %7512 = vmatpush2.bf16.msra.mxu0 %v15992_v12  ;;  %v16052_v12 = vld [vmem:[#allocation2 + $0x1c40] ss:$16 sps:$4 sm:$0xff]  }
 0x253   :  { %7555 = vmatpush2.bf16.msra.mxu1 %v15995_v13  ;;  %7513 = vmatprep.subr.bf16.mxu0 %v16000_v14  ;;  %v16055_v13 = vld [vmem:[#allocation2 + $0x1e40] ss:$16 sps:$4 sm:$0xff]   ;;  %v16060_v14 = vld [vmem:[#allocation2 + $0x1c24] ss:$16 sps:$4 sm:$0xff]  }
 0x254   :  { %7556 = vmatprep.subr.bf16.mxu1 %v16003_v15  ;;  %v16063_v15 = vld [vmem:[#allocation2 + $0x1e24] ss:$16 sps:$4 sm:$0xff]  }
 0x256   :  { %7514 = vmatpush2.bf16.msra.mxu0 %v15998_v16  ;;  %v16058_v16 = vld [vmem:[#allocation2 + $0x1c20] ss:$16 sps:$4 sm:$0xff]  }
 0x257   :  { %7557 = vmatpush2.bf16.msra.mxu1 %v16001_v20  ;;  %7515 = vmatprep.subr.bf16.mxu0 %v16006_v21  ;;  %v16061_v20 = vld [vmem:[#allocation2 + $0x1e20] ss:$16 sps:$4 sm:$0xff]   ;;  %v16066_v21 = vld [vmem:[#allocation2 + $0x1c04] ss:$16 sps:$4 sm:$0xff]  }
 0x258   :  { %7558 = vmatprep.subr.bf16.mxu1 %v16009_v23  ;;  %v16069_v23 = vld [vmem:[#allocation2 + $0x1e04] ss:$16 sps:$4 sm:$0xff]  }
 0x25a   :  { %7516 = vmatpush2.bf16.msra.mxu0 %v16004_v24  ;;  %v16064_v24 = vld [vmem:[#allocation2 + $0x1c00] ss:$16 sps:$4 sm:$0xff]  }
 0x25b   :  { %7559 = vmatpush2.bf16.msra.mxu1 %v16007_v25  ;;  %7517 = vmatprep.subr.bf16.mxu0 %v16012_v26  ;;  %v16067_v25 = vld [vmem:[#allocation2 + $0x1e00] ss:$16 sps:$4 sm:$0xff]   ;;  %v16072_v26 = vld [vmem:[#allocation2 + $0x1de4] ss:$16 sps:$4 sm:$0xff]  }
 0x25c   :  { %7560 = vmatprep.subr.bf16.mxu1 %v16015_v60  ;;  %v16075_v60 = vld [vmem:[#allocation2 + $0x1fe4] ss:$16 sps:$4 sm:$0xff]  }
 0x25e   :  { %7518 = vmatpush2.bf16.msra.mxu0 %v16010_v27  ;;  %v16070_v27 = vld [vmem:[#allocation2 + $0x1de0] ss:$16 sps:$4 sm:$0xff]  }
 0x25f   :  { %7561 = vmatpush2.bf16.msra.mxu1 %v16013_v28  ;;  %7573 = vmatprep.subr.bf16.mxu0 %v16024_v32  ;;  %v16073_v28 = vld [vmem:[#allocation2 + $0x1fe0] ss:$16 sps:$4 sm:$0xff]  }
 0x260   :  { %7616 = vmatprep.subr.bf16.mxu1 %v16027_v33  ;;  %v16076_v32 = vld [vmem:[#allocation2 + $0x1dc0] ss:$16 sps:$4 sm:$0xff]  }
 0x261   :  { %v7263_v49 = vpop.f32.mrf.mxu0  ;;  %7520 = vmatmul.mubr.bf16.vlgmr.msra.gmra.mxu0 %v16016_v30  ;;  %v16078_v30 = vld [vmem:[#allocation2 + $0x1dc4] ss:$16 sps:$4 sm:$0xff]   ;;  %v16079_v33 = vld [vmem:[#allocation2 + $0x1fc0] ss:$16 sps:$4 sm:$0xff]  }
 0x262   :  { %v7306_v50 = vpop.f32.mrf.mxu1  ;;  %7563 = vmatmul.mubr.bf16.vlgmr.msra.gmra.mxu1 %v16019_v31  ;;  %v7264_v51 = vadd.f32 %v7263_v49, %v18097_v22  ;;  %7574 = vmatpush1.bf16.msra.mxu0 %v16022_v3  ;;  %v16081_v31 = vld [vmem:[#allocation2 + $0x1fc4] ss:$16 sps:$4 sm:$0xff]  }
 0x263   :  { %7617 = vmatpush1.bf16.msra.mxu1 %v16025_v36  ;;  %v18119_v52 = vpop.f32.mrf.mxu0  ;;  %7575 = vmatprep.subr.bf16.mxu0 %v16030_v40  ;;  %v16084_v3 = vld [vmem:[#allocation2 + $0x1da4] ss:$16 sps:$4 sm:$0xff]   ;;  %v16082_v40 = vld [vmem:[#allocation2 + $0x1da0] ss:$16 sps:$4 sm:$0xff]  }
 0x264   :  { %v18121_v53 = vpop.f32.mrf.mxu1  ;;  %7618 = vmatprep.subr.bf16.mxu1 %v16033_v41  ;;  %v18123_v58 = vadd.f32 %v7306_v50, %v7264_v51  ;;  %7605 = vmatprep.mubr.bf16.mxu0 %v16120_v47  ;;  %v16087_v36 = vld [vmem:[#allocation2 + $0x1fa4] ss:$16 sps:$4 sm:$0xff]   ;;  %v16085_v41 = vld [vmem:[#allocation2 + $0x1fa0] ss:$16 sps:$4 sm:$0xff]  }
 0x265   :  { %7648 = vmatprep.mubr.bf16.mxu1 %v16123_v48  ;;  %v7267_v62 = vpop.f32.mrf.mxu0  ;;  %v16088_v47 = vld [vmem:[#allocation2 + $0x1d80] ss:$16 sps:$4 sm:$0xff]   ;;  %v16096_v49 = vld [vmem:[#allocation2 + $0x1d64] ss:$16 sps:$4 sm:$0xff]  }
 0x266   :  { %v7268_v63 = vadd.f32 %v7267_v62, %v18100_v29  ;;  %7576 = vmatpush1.bf16.msra.mxu0 %v16028_v42  ;;  %v7310_v22 = vpop.f32.mrf.mxu1  ;;  %v16046_v29 = vld [vmem:[#allocation2 + $0x1c60] ss:$16 sps:$4 sm:$0xff]   ;;  %v16090_v42 = vld [vmem:[#allocation2 + $0x1d84] ss:$16 sps:$4 sm:$0xff]  }
 0x267   :  { %7619 = vmatpush1.bf16.msra.mxu1 %v16031_v43  ;;  %7577 = vmatprep.subr.bf16.mxu0 %v16036_v54  ;;  %v16093_v43 = vld [vmem:[#allocation2 + $0x1f84] ss:$16 sps:$4 sm:$0xff]   ;;  %v16091_v48 = vld [vmem:[#allocation2 + $0x1f80] ss:$16 sps:$4 sm:$0xff]  }
 0x268   :  { %7620 = vmatprep.subr.bf16.mxu1 %v16039_v55  ;;  %v18126_v1 = vadd.f32 %v7310_v22, %v7268_v63  ;;  %v16099_v50 = vld [vmem:[#allocation2 + $0x1f64] ss:$16 sps:$4 sm:$0xff]   ;;  %v16094_v51 = vld [vmem:[#allocation2 + $0x1d60] ss:$16 sps:$4 sm:$0xff]  }
 0x269   :  { %v16097_v54 = vld [vmem:[#allocation2 + $0x1f60] ss:$16 sps:$4 sm:$0xff]   ;;  %v16102_v55 = vld [vmem:[#allocation2 + $0x1d44] ss:$16 sps:$4 sm:$0xff]  }
 0x26a   :  { %7578 = vmatpush1.bf16.msra.mxu0 %v16034_v59  ;;  %v16105_v59 = vld [vmem:[#allocation2 + $0x1f44] ss:$16 sps:$4 sm:$0xff]   ;;  %v16103_v62 = vld [vmem:[#allocation2 + $0x1f40] ss:$16 sps:$4 sm:$0xff]  }
 0x26b   :  { %7621 = vmatpush1.bf16.msra.mxu1 %v16037_v61  ;;  %7579 = vmatprep.subr.bf16.mxu0 %v16042_v0  ;;  %v16100_v61 = vld [vmem:[#allocation2 + $0x1d40] ss:$16 sps:$4 sm:$0xff]   ;;  %v16108_v63 = vld [vmem:[#allocation2 + $0x1d24] ss:$16 sps:$4 sm:$0xff]  }
 0x26c   :  { %7622 = vmatprep.subr.bf16.mxu1 %v16045_v38  ;;  %v16111_v22 = vld [vmem:[#allocation2 + $0x1f24] ss:$16 sps:$4 sm:$0xff]   ;;  %v16106_v0 = vld [vmem:[#allocation2 + $0x1d20] ss:$16 sps:$4 sm:$0xff]  }
 0x26d   :  { %v16109_v38 = vld [vmem:[#allocation2 + $0x1f20] ss:$16 sps:$4 sm:$0xff]  }
 0x26e   :  { %7580 = vmatpush1.bf16.msra.mxu0 %v16040_v2  ;;  %v16114_v2 = vld [vmem:[#allocation2 + $0x1d04] ss:$16 sps:$4 sm:$0xff]  }
 0x26f   :  { %7623 = vmatpush1.bf16.msra.mxu1 %v16043_v4  ;;  %7581 = vmatprep.subr.bf16.mxu0 %v16048_v5  ;;  %v16117_v4 = vld [vmem:[#allocation2 + $0x1f04] ss:$16 sps:$4 sm:$0xff]   ;;  %v16112_v5 = vld [vmem:[#allocation2 + $0x1d00] ss:$16 sps:$4 sm:$0xff]  }
 0x270   :  { %7624 = vmatprep.subr.bf16.mxu1 %v16051_v46  ;;  %v16115_v46 = vld [vmem:[#allocation2 + $0x1f00] ss:$16 sps:$4 sm:$0xff]  }
 0x272   :  { %7582 = vmatpush1.bf16.msra.mxu0 %v16046_v29  ;;  %v16118_v29 = vld [vmem:[%s19140_s2 + $0x70] ss:$136 sps:$4 sm:$0xff]  }
 0x273   :  { %7625 = vmatpush1.bf16.msra.mxu1 %v16049_v8  ;;  %7583 = vmatprep.subr.bf16.mxu0 %v16054_v9  ;;  %v16121_v8 = vld [vmem:[%s19140_s2 + $0x78] ss:$136 sps:$4 sm:$0xff]   ;;  %v16126_v9 = vld [vmem:[#allocation2 + $0x20e4] ss:$16 sps:$4 sm:$0xff]  }
 0x274   :  { %7626 = vmatprep.subr.bf16.mxu1 %v16057_v10  ;;  %v16129_v10 = vld [vmem:[#allocation2 + $0xec] ss:$16 sps:$4 sm:$0xff]  }
 0x276   :  { %7584 = vmatpush1.bf16.msra.mxu0 %v16052_v12  ;;  %v16124_v12 = vld [vmem:[#allocation2 + $0x20e0] ss:$16 sps:$4 sm:$0xff]  }
 0x277   :  { %7627 = vmatpush1.bf16.msra.mxu1 %v16055_v13  ;;  %7585 = vmatprep.subr.bf16.mxu0 %v16060_v14  ;;  %v16127_v13 = vld [vmem:[#allocation2 + $0xe8] ss:$16 sps:$4 sm:$0xff]   ;;  %v18134_v14 = vpop.f32.mrf.mxu0 }
 0x278   :  { %7628 = vmatprep.subr.bf16.mxu1 %v16063_v15  ;;  %v18136_v15 = vpop.f32.mrf.mxu1 }
 0x27a   :  { %7586 = vmatpush1.bf16.msra.mxu0 %v16058_v16  ;;  %v16132_v16 = vld [vmem:[#allocation2 + $0x20c4] ss:$16 sps:$4 sm:$0xff]  }
 0x27b   :  { %7629 = vmatpush1.bf16.msra.mxu1 %v16061_v20  ;;  %7587 = vmatprep.subr.bf16.mxu0 %v16066_v21  ;;  %v16135_v20 = vld [vmem:[#allocation2 + $0xcc] ss:$16 sps:$4 sm:$0xff]   ;;  %v16130_v21 = vld [vmem:[#allocation2 + $0x20c0] ss:$16 sps:$4 sm:$0xff]  }
 0x27c   :  { %7630 = vmatprep.subr.bf16.mxu1 %v16069_v23  ;;  %v16133_v23 = vld [vmem:[#allocation2 + $0xc8] ss:$16 sps:$4 sm:$0xff]  }
 0x27e   :  { %7588 = vmatpush1.bf16.msra.mxu0 %v16064_v24  ;;  %v16222_v24 = vld [vmem:[%s19140_s2 + $0x84] ss:$136 sps:$4 sm:$0xff]  }
 0x27f   :  { %7631 = vmatpush1.bf16.msra.mxu1 %v16067_v25  ;;  %7589 = vmatprep.subr.bf16.mxu0 %v16072_v26 }
 0x280   :  { %7632 = vmatprep.subr.bf16.mxu1 %v16075_v60 }
 0x282   :  { %7590 = vmatpush2.bf16.msra.mxu0 %v16070_v27 }
 0x283   :  { %7633 = vmatpush2.bf16.msra.mxu1 %v16073_v28  ;;  %7591 = vmatprep.subr.bf16.mxu0 %v16078_v30  ;;  %v16138_v30 = vld [vmem:[#allocation2 + $0x20a4] ss:$16 sps:$4 sm:$0xff]  }
 0x284   :  { %7634 = vmatprep.subr.bf16.mxu1 %v16081_v31  ;;  %v16141_v31 = vld [vmem:[#allocation2 + $0xac] ss:$16 sps:$4 sm:$0xff]  }
 0x286   :  { %7592 = vmatpush2.bf16.msra.mxu0 %v16076_v32 }
 0x287   :  { %7635 = vmatpush2.bf16.msra.mxu1 %v16079_v33  ;;  %7593 = vmatprep.subr.bf16.mxu0 %v16084_v3  ;;  %v16136_v33 = vld [vmem:[#allocation2 + $0x20a0] ss:$16 sps:$4 sm:$0xff]   ;;  %v16139_v3 = vld [vmem:[#allocation2 + $0xa8] ss:$16 sps:$4 sm:$0xff]  }
 0x288   :  { %7636 = vmatprep.subr.bf16.mxu1 %v16087_v36  ;;  %v17511_v36 = vld [vmem:[%s19140_s2 + $0x4] ss:$136 sps:$4 sm:$0xff]  }
 0x28a   :  { %7594 = vmatpush2.bf16.msra.mxu0 %v16082_v40 }
 0x28b   :  { %7637 = vmatpush2.bf16.msra.mxu1 %v16085_v41  ;;  %7595 = vmatprep.subr.bf16.mxu0 %v16090_v42  ;;  %v16144_v42 = vld [vmem:[#allocation2 + $0x2084] ss:$16 sps:$4 sm:$0xff]  }
 0x28c   :  { %7638 = vmatprep.subr.bf16.mxu1 %v16093_v43  ;;  %v16147_v43 = vld [vmem:[#allocation2 + $0x8c] ss:$16 sps:$4 sm:$0xff]  }
 0x28e   :  { %7596 = vmatpush2.bf16.msra.mxu0 %v16088_v47 }
 0x28f   :  { %7639 = vmatpush2.bf16.msra.mxu1 %v16091_v48  ;;  %7597 = vmatprep.subr.bf16.mxu0 %v16096_v49  ;;  %v16142_v48 = vld [vmem:[#allocation2 + $0x2080] ss:$16 sps:$4 sm:$0xff]   ;;  %v16145_v49 = vld [vmem:[#allocation2 + $0x88] ss:$16 sps:$4 sm:$0xff]  }
 0x290   :  { %7640 = vmatprep.subr.bf16.mxu1 %v16099_v50  ;;  %v16150_v50 = vld [vmem:[#allocation2 + $0x2064] ss:$16 sps:$4 sm:$0xff]  }
 0x292   :  { %7598 = vmatpush2.bf16.msra.mxu0 %v16094_v51  ;;  %v16153_v51 = vld [vmem:[#allocation2 + $0x6c] ss:$16 sps:$4 sm:$0xff]  }
 0x293   :  { %7641 = vmatpush2.bf16.msra.mxu1 %v16097_v54  ;;  %7599 = vmatprep.subr.bf16.mxu0 %v16102_v55  ;;  %v16151_v54 = vld [vmem:[#allocation2 + $0x68] ss:$16 sps:$4 sm:$0xff]   ;;  %v16156_v55 = vld [vmem:[#allocation2 + $0x2044] ss:$16 sps:$4 sm:$0xff]  }
 0x294   :  { %7642 = vmatprep.subr.bf16.mxu1 %v16105_v59  ;;  %v16159_v59 = vld [vmem:[#allocation2 + $0x4c] ss:$16 sps:$4 sm:$0xff]  }
 0x296   :  { %7600 = vmatpush2.bf16.msra.mxu0 %v16100_v61  ;;  %v16154_v61 = vld [vmem:[#allocation2 + $0x2040] ss:$16 sps:$4 sm:$0xff]  }
 0x297   :  { %7643 = vmatpush2.bf16.msra.mxu1 %v16103_v62  ;;  %7601 = vmatprep.subr.bf16.mxu0 %v16108_v63  ;;  %v16157_v62 = vld [vmem:[#allocation2 + $0x48] ss:$16 sps:$4 sm:$0xff]   ;;  %v16162_v63 = vld [vmem:[#allocation2 + $0x2024] ss:$16 sps:$4 sm:$0xff]  }
 0x298   :  { %7644 = vmatprep.subr.bf16.mxu1 %v16111_v22  ;;  %v16165_v22 = vld [vmem:[#allocation2 + $0x2c] ss:$16 sps:$4 sm:$0xff]  }
 0x29a   :  { %7602 = vmatpush2.bf16.msra.mxu0 %v16106_v0  ;;  %v16160_v0 = vld [vmem:[#allocation2 + $0x2020] ss:$16 sps:$4 sm:$0xff]  }
 0x29b   :  { %7645 = vmatpush2.bf16.msra.mxu1 %v16109_v38  ;;  %7603 = vmatprep.subr.bf16.mxu0 %v16114_v2  ;;  %v16163_v38 = vld [vmem:[#allocation2 + $0x28] ss:$16 sps:$4 sm:$0xff]   ;;  %v16168_v2 = vld [vmem:[#allocation2 + $0x2004] ss:$16 sps:$4 sm:$0xff]  }
 0x29c   :  { %7646 = vmatprep.subr.bf16.mxu1 %v16117_v4  ;;  %v16171_v4 = vld [vmem:[#allocation2 + $0xc] ss:$16 sps:$4 sm:$0xff]  }
 0x29e   :  { %7604 = vmatpush2.bf16.msra.mxu0 %v16112_v5  ;;  %v16166_v5 = vld [vmem:[#allocation2 + $0x2000] ss:$16 sps:$4 sm:$0xff]  }
 0x29f   :  { %7647 = vmatpush2.bf16.msra.mxu1 %v16115_v46  ;;  %7659 = vmatprep.subr.bf16.mxu0 %v16126_v9  ;;  %v16169_v46 = vld [vmem:[#allocation2 + $0x8] ss:$16 sps:$4 sm:$0xff]   ;;  %v16172_v9 = vld [vmem:[#allocation2 + $0x21e0] ss:$16 sps:$4 sm:$0xff]  }
 0x2a0   :  { %7702 = vmatprep.subr.bf16.mxu1 %v16129_v10  ;;  %v16175_v10 = vld [vmem:[#allocation2 + $0x1e8] ss:$16 sps:$4 sm:$0xff]  }
 0x2a1   :  { %v7349_v25 = vpop.f32.mrf.mxu0  ;;  %7606 = vmatmul.mubr.bf16.vlgmr.msra.gmra.mxu0 %v16118_v29  ;;  %v16174_v29 = vld [vmem:[#allocation2 + $0x21e4] ss:$16 sps:$4 sm:$0xff]  }
 0x2a2   :  { %v7392_v26 = vpop.f32.mrf.mxu1  ;;  %7649 = vmatmul.mubr.bf16.vlgmr.msra.gmra.mxu1 %v16121_v8  ;;  %v7350_v60 = vadd.f32 %v7349_v25, %v18123_v58  ;;  %7660 = vmatpush1.bf16.msra.mxu0 %v16124_v12  ;;  %v16177_v8 = vld [vmem:[#allocation2 + $0x1ec] ss:$16 sps:$4 sm:$0xff]   ;;  %v16180_v12 = vld [vmem:[#allocation2 + $0x21c4] ss:$16 sps:$4 sm:$0xff]   ;;  %v16187_v25 = vld [vmem:[#allocation2 + $0x1a8] ss:$16 sps:$4 sm:$0xff]  }
 0x2a3   :  { %7703 = vmatpush1.bf16.msra.mxu1 %v16127_v13  ;;  %v18142_v27 = vpop.f32.mrf.mxu0  ;;  %7661 = vmatprep.subr.bf16.mxu0 %v16132_v16  ;;  %v16183_v13 = vld [vmem:[#allocation2 + $0x1cc] ss:$16 sps:$4 sm:$0xff]   ;;  %v16178_v16 = vld [vmem:[#allocation2 + $0x21c0] ss:$16 sps:$4 sm:$0xff]  }
 0x2a4   :  { %v18144_v28 = vpop.f32.mrf.mxu1  ;;  %7704 = vmatprep.subr.bf16.mxu1 %v16135_v20  ;;  %v18146_v32 = vadd.f32 %v7392_v26, %v7350_v60  ;;  %7691 = vmatprep.mubr.bf16.mxu0 %v16222_v24  ;;  %v16181_v20 = vld [vmem:[#allocation2 + $0x1c8] ss:$16 sps:$4 sm:$0xff]   ;;  %v16184_v24 = vld [vmem:[#allocation2 + $0x21a0] ss:$16 sps:$4 sm:$0xff]   ;;  %v16192_v26 = vld [vmem:[#allocation2 + $0x2184] ss:$16 sps:$4 sm:$0xff]  }
 0x2a5   :  { %7734 = vmatprep.mubr.bf16.mxu1 %v17511_v36  ;;  %v7353_v58 = vpop.f32.mrf.mxu0  ;;  %v16195_v60 = vld [vmem:[#allocation2 + $0x18c] ss:$16 sps:$4 sm:$0xff]   ;;  %v16196_v36 = vld [vmem:[#allocation2 + $0x2160] ss:$16 sps:$4 sm:$0xff]  }
 0x2a6   :  { %v7354_v40 = vadd.f32 %v7353_v58, %v18126_v1  ;;  %7662 = vmatpush1.bf16.msra.mxu0 %v16130_v21  ;;  %v7396_v41 = vpop.f32.mrf.mxu1  ;;  %v16148_v1 = vld [vmem:[#allocation2 + $0x2060] ss:$16 sps:$4 sm:$0xff]   ;;  %v16186_v21 = vld [vmem:[#allocation2 + $0x21a4] ss:$16 sps:$4 sm:$0xff]   ;;  %v16199_v58 = vld [vmem:[#allocation2 + $0x168] ss:$16 sps:$4 sm:$0xff]  }
 0x2a7   :  { %7705 = vmatpush1.bf16.msra.mxu1 %v16133_v23  ;;  %7663 = vmatprep.subr.bf16.mxu0 %v16138_v30  ;;  %v16189_v23 = vld [vmem:[#allocation2 + $0x1ac] ss:$16 sps:$4 sm:$0xff]   ;;  %v16190_v30 = vld [vmem:[#allocation2 + $0x2180] ss:$16 sps:$4 sm:$0xff]  }
 0x2a8   :  { %7706 = vmatprep.subr.bf16.mxu1 %v16141_v31  ;;  %v18152_v47 = vadd.f32 %v7396_v41, %v7354_v40  ;;  %v16193_v31 = vld [vmem:[#allocation2 + $0x188] ss:$16 sps:$4 sm:$0xff]   ;;  %v16204_v40 = vld [vmem:[#allocation2 + $0x2144] ss:$16 sps:$4 sm:$0xff]   ;;  %v16207_v41 = vld [vmem:[#allocation2 + $0x14c] ss:$16 sps:$4 sm:$0xff]  }
 0x2aa   :  { %7664 = vmatpush1.bf16.msra.mxu0 %v16136_v33  ;;  %v16198_v33 = vld [vmem:[#allocation2 + $0x2164] ss:$16 sps:$4 sm:$0xff]  }
 0x2ab   :  { %7707 = vmatpush1.bf16.msra.mxu1 %v16139_v3  ;;  %7665 = vmatprep.subr.bf16.mxu0 %v16144_v42  ;;  %v16201_v3 = vld [vmem:[#allocation2 + $0x16c] ss:$16 sps:$4 sm:$0xff]   ;;  %v16202_v42 = vld [vmem:[#allocation2 + $0x2140] ss:$16 sps:$4 sm:$0xff]  }
 0x2ac   :  { %7708 = vmatprep.subr.bf16.mxu1 %v16147_v43  ;;  %v16205_v43 = vld [vmem:[#allocation2 + $0x148] ss:$16 sps:$4 sm:$0xff]  }
 0x2ae   :  { %7666 = vmatpush1.bf16.msra.mxu0 %v16142_v48  ;;  %v16210_v48 = vld [vmem:[#allocation2 + $0x2124] ss:$16 sps:$4 sm:$0xff]  }
 0x2af   :  { %7709 = vmatpush1.bf16.msra.mxu1 %v16145_v49  ;;  %7667 = vmatprep.subr.bf16.mxu0 %v16150_v50  ;;  %v16213_v49 = vld [vmem:[#allocation2 + $0x12c] ss:$16 sps:$4 sm:$0xff]   ;;  %v16208_v50 = vld [vmem:[#allocation2 + $0x2120] ss:$16 sps:$4 sm:$0xff]  }
 0x2b0   :  { %7710 = vmatprep.subr.bf16.mxu1 %v16153_v51  ;;  %v16211_v51 = vld [vmem:[#allocation2 + $0x128] ss:$16 sps:$4 sm:$0xff]  }
 0x2b2   :  { %7668 = vmatpush1.bf16.msra.mxu0 %v16148_v1  ;;  %v16216_v1 = vld [vmem:[#allocation2 + $0x2104] ss:$16 sps:$4 sm:$0xff]  }
 0x2b3   :  { %7711 = vmatpush1.bf16.msra.mxu1 %v16151_v54  ;;  %7669 = vmatprep.subr.bf16.mxu0 %v16156_v55  ;;  %v16219_v54 = vld [vmem:[#allocation2 + $0x10c] ss:$16 sps:$4 sm:$0xff]   ;;  %v16214_v55 = vld [vmem:[#allocation2 + $0x2100] ss:$16 sps:$4 sm:$0xff]  }
 0x2b4   :  { %7712 = vmatprep.subr.bf16.mxu1 %v16159_v59  ;;  %v16217_v59 = vld [vmem:[#allocation2 + $0x108] ss:$16 sps:$4 sm:$0xff]  }
 0x2b6   :  { %7670 = vmatpush1.bf16.msra.mxu0 %v16154_v61  ;;  %v16220_v61 = vld [vmem:[%s19140_s2 + $0x80] ss:$136 sps:$4 sm:$0xff]  }
 0x2b7   :  { %7713 = vmatpush1.bf16.msra.mxu1 %v16157_v62  ;;  %7671 = vmatprep.subr.bf16.mxu0 %v16162_v63  ;;  %v16225_v62 = vld [vmem:[#allocation2 + $0x2ec] ss:$16 sps:$4 sm:$0xff]  }
 0x2b8   :  { %7714 = vmatprep.subr.bf16.mxu1 %v16165_v22  ;;  %v16228_v63 = vld [vmem:[#allocation2 + $0x4ec] ss:$16 sps:$4 sm:$0xff]   ;;  %v16223_v22 = vld [vmem:[#allocation2 + $0x2e8] ss:$16 sps:$4 sm:$0xff]  }
 0x2ba   :  { %7672 = vmatpush1.bf16.msra.mxu0 %v16160_v0  ;;  %v16226_v0 = vld [vmem:[#allocation2 + $0x4e8] ss:$16 sps:$4 sm:$0xff]  }
 0x2bb   :  { %7715 = vmatpush1.bf16.msra.mxu1 %v16163_v38  ;;  %7673 = vmatprep.subr.bf16.mxu0 %v16168_v2  ;;  %v18157_v38 = vpop.f32.mrf.mxu0  ;;  %v18159_v2 = vpop.f32.mrf.mxu1 }
 0x2bc   :  { %7716 = vmatprep.subr.bf16.mxu1 %v16171_v4  ;;  %v16231_v4 = vld [vmem:[#allocation2 + $0x2cc] ss:$16 sps:$4 sm:$0xff]  }
 0x2be   :  { %7674 = vmatpush1.bf16.msra.mxu0 %v16166_v5  ;;  %v16234_v5 = vld [vmem:[#allocation2 + $0x4cc] ss:$16 sps:$4 sm:$0xff]  }
 0x2bf   :  { %7717 = vmatpush1.bf16.msra.mxu1 %v16169_v46  ;;  %7675 = vmatprep.subr.bf16.mxu0 %v16174_v29  ;;  %v16229_v46 = vld [vmem:[#allocation2 + $0x2c8] ss:$16 sps:$4 sm:$0xff]  }
 0x2c0   :  { %7718 = vmatprep.subr.bf16.mxu1 %v16177_v8  ;;  %v16232_v29 = vld [vmem:[#allocation2 + $0x4c8] ss:$16 sps:$4 sm:$0xff]  }
 0x2c2   :  { %7676 = vmatpush2.bf16.msra.mxu0 %v16172_v9 }
 0x2c3   :  { %7719 = vmatpush2.bf16.msra.mxu1 %v16175_v10  ;;  %7677 = vmatprep.subr.bf16.mxu0 %v16180_v12  ;;  %v17512_v10 = vld [vmem:[%s19140_s2] ss:$136 sps:$4 sm:$0xff]  }
 0x2c4   :  { %7720 = vmatprep.subr.bf16.mxu1 %v16183_v13 }
 0x2c6   :  { %7678 = vmatpush2.bf16.msra.mxu0 %v16178_v16 }
 0x2c7   :  { %7721 = vmatpush2.bf16.msra.mxu1 %v16181_v20  ;;  %7679 = vmatprep.subr.bf16.mxu0 %v16186_v21  ;;  %v16237_v20 = vld [vmem:[#allocation2 + $0x2ac] ss:$16 sps:$4 sm:$0xff]  }
 0x2c8   :  { %7722 = vmatprep.subr.bf16.mxu1 %v16189_v23  ;;  %v16240_v21 = vld [vmem:[#allocation2 + $0x4ac] ss:$16 sps:$4 sm:$0xff]  }
 0x2ca   :  { %7680 = vmatpush2.bf16.msra.mxu0 %v16184_v24  ;;  %v16235_v24 = vld [vmem:[#allocation2 + $0x2a8] ss:$16 sps:$4 sm:$0xff]  }
 0x2cb   :  { %7723 = vmatpush2.bf16.msra.mxu1 %v16187_v25  ;;  %7681 = vmatprep.subr.bf16.mxu0 %v16192_v26  ;;  %v16238_v25 = vld [vmem:[#allocation2 + $0x4a8] ss:$16 sps:$4 sm:$0xff]   ;;  %v17513_v26 = vld [vmem:[%s19140_s2 + $0xc] ss:$136 sps:$4 sm:$0xff]  }
 0x2cc   :  { %7724 = vmatprep.subr.bf16.mxu1 %v16195_v60 }
 0x2ce   :  { %7682 = vmatpush2.bf16.msra.mxu0 %v16190_v30 }
 0x2cf   :  { %7725 = vmatpush2.bf16.msra.mxu1 %v16193_v31  ;;  %7683 = vmatprep.subr.bf16.mxu0 %v16198_v33  ;;  %v16243_v33 = vld [vmem:[#allocation2 + $0x28c] ss:$16 sps:$4 sm:$0xff]  }
 0x2d0   :  { %7726 = vmatprep.subr.bf16.mxu1 %v16201_v3  ;;  %v16246_v3 = vld [vmem:[#allocation2 + $0x48c] ss:$16 sps:$4 sm:$0xff]  }
 0x2d2   :  { %7684 = vmatpush2.bf16.msra.mxu0 %v16196_v36 }
 0x2d3   :  { %7727 = vmatpush2.bf16.msra.mxu1 %v16199_v58  ;;  %7685 = vmatprep.subr.bf16.mxu0 %v16204_v40  ;;  %v16241_v58 = vld [vmem:[#allocation2 + $0x288] ss:$16 sps:$4 sm:$0xff]  }
 0x2d4   :  { %7728 = vmatprep.subr.bf16.mxu1 %v16207_v41  ;;  %v16244_v40 = vld [vmem:[#allocation2 + $0x488] ss:$16 sps:$4 sm:$0xff]   ;;  %v16249_v41 = vld [vmem:[#allocation2 + $0x26c] ss:$16 sps:$4 sm:$0xff]  }
 0x2d6   :  { %7686 = vmatpush2.bf16.msra.mxu0 %v16202_v42  ;;  %v16252_v42 = vld [vmem:[#allocation2 + $0x46c] ss:$16 sps:$4 sm:$0xff]  }
 0x2d7   :  { %7729 = vmatpush2.bf16.msra.mxu1 %v16205_v43  ;;  %7687 = vmatprep.subr.bf16.mxu0 %v16210_v48  ;;  %v16250_v43 = vld [vmem:[#allocation2 + $0x468] ss:$16 sps:$4 sm:$0xff]   ;;  %v16255_v48 = vld [vmem:[#allocation2 + $0x24c] ss:$16 sps:$4 sm:$0xff]  }
 0x2d8   :  { %7730 = vmatprep.subr.bf16.mxu1 %v16213_v49  ;;  %v16258_v49 = vld [vmem:[#allocation2 + $0x44c] ss:$16 sps:$4 sm:$0xff]  }
 0x2da   :  { %7688 = vmatpush2.bf16.msra.mxu0 %v16208_v50  ;;  %v16253_v50 = vld [vmem:[#allocation2 + $0x248] ss:$16 sps:$4 sm:$0xff]  }
 0x2db   :  { %7731 = vmatpush2.bf16.msra.mxu1 %v16211_v51  ;;  %7689 = vmatprep.subr.bf16.mxu0 %v16216_v1  ;;  %v16256_v51 = vld [vmem:[#allocation2 + $0x448] ss:$16 sps:$4 sm:$0xff]   ;;  %v16261_v1 = vld [vmem:[#allocation2 + $0x22c] ss:$16 sps:$4 sm:$0xff]  }
 0x2dc   :  { %7732 = vmatprep.subr.bf16.mxu1 %v16219_v54  ;;  %v16264_v54 = vld [vmem:[#allocation2 + $0x42c] ss:$16 sps:$4 sm:$0xff]  }
 0x2de   :  { %7690 = vmatpush2.bf16.msra.mxu0 %v16214_v55  ;;  %v16259_v55 = vld [vmem:[#allocation2 + $0x228] ss:$16 sps:$4 sm:$0xff]  }
 0x2df   :  { %7733 = vmatpush2.bf16.msra.mxu1 %v16217_v59  ;;  %7745 = vmatprep.subr.bf16.mxu0 %v16225_v62  ;;  %v16262_v59 = vld [vmem:[#allocation2 + $0x428] ss:$16 sps:$4 sm:$0xff]   ;;  %v16270_v62 = vld [vmem:[#allocation2 + $0x40c] ss:$16 sps:$4 sm:$0xff]  }
 0x2e0   :  { %7788 = vmatprep.subr.bf16.mxu1 %v16228_v63  ;;  %v16265_v63 = vld [vmem:[#allocation2 + $0x208] ss:$16 sps:$4 sm:$0xff]  }
 0x2e1   :  { %v7435_v8 = vpop.f32.mrf.mxu0  ;;  %7692 = vmatmul.mubr.bf16.vlgmr.msra.gmra.mxu0 %v16220_v61  ;;  %v16267_v61 = vld [vmem:[#allocation2 + $0x20c] ss:$16 sps:$4 sm:$0xff]  }
 0x2e2   :  { %v7478_v9 = vpop.f32.mrf.mxu1  ;;  %7735 = vmatmul.mubr.bf16.vlgmr.msra.gmra.mxu1 %v17512_v10  ;;  %v7436_v12 = vadd.f32 %v7435_v8, %v18146_v32  ;;  %7746 = vmatpush1.bf16.msra.mxu0 %v16223_v22  ;;  %v17514_v32 = vld [vmem:[%s19140_s2 + $0x14] ss:$136 sps:$4 sm:$0xff]   ;;  %v16268_v22 = vld [vmem:[#allocation2 + $0x408] ss:$16 sps:$4 sm:$0xff]  }
 0x2e3   :  { %7789 = vmatpush1.bf16.msra.mxu1 %v16226_v0  ;;  %v18165_v13 = vpop.f32.mrf.mxu0  ;;  %7747 = vmatprep.subr.bf16.mxu0 %v16231_v4  ;;  %v16273_v0 = vld [vmem:[#allocation2 + $0x3ec] ss:$16 sps:$4 sm:$0xff]   ;;  %v16280_v10 = vld [vmem:[#allocation2 + $0x5c8] ss:$16 sps:$4 sm:$0xff]  }
 0x2e4   :  { %v18167_v16 = vpop.f32.mrf.mxu1  ;;  %7790 = vmatprep.subr.bf16.mxu1 %v16234_v5  ;;  %v18169_v23 = vadd.f32 %v7478_v9, %v7436_v12  ;;  %7777 = vmatprep.mubr.bf16.mxu0 %v17513_v26  ;;  %v16276_v4 = vld [vmem:[#allocation2 + $0x5ec] ss:$16 sps:$4 sm:$0xff]   ;;  %v16271_v5 = vld [vmem:[#allocation2 + $0x3e8] ss:$16 sps:$4 sm:$0xff]  }
 0x2e5   :  { %7820 = vmatprep.mubr.bf16.mxu1 %v17514_v32  ;;  %v7439_v60 = vpop.f32.mrf.mxu0  ;;  %v16282_v8 = vld [vmem:[#allocation2 + $0x5cc] ss:$16 sps:$4 sm:$0xff]   ;;  %v16277_v9 = vld [vmem:[#allocation2 + $0x3c8] ss:$16 sps:$4 sm:$0xff]  }
 0x2e6   :  { %v7440_v30 = vadd.f32 %v7439_v60, %v18152_v47  ;;  %7748 = vmatpush1.bf16.msra.mxu0 %v16229_v46  ;;  %v7482_v31 = vpop.f32.mrf.mxu1  ;;  %v16247_v47 = vld [vmem:[#allocation2 + $0x268] ss:$16 sps:$4 sm:$0xff]   ;;  %v16285_v12 = vld [vmem:[#allocation2 + $0x3ac] ss:$16 sps:$4 sm:$0xff]  }
 0x2e7   :  { %7791 = vmatpush1.bf16.msra.mxu1 %v16232_v29  ;;  %7749 = vmatprep.subr.bf16.mxu0 %v16237_v20  ;;  %v16274_v46 = vld [vmem:[#allocation2 + $0x5e8] ss:$16 sps:$4 sm:$0xff]   ;;  %v16279_v29 = vld [vmem:[#allocation2 + $0x3cc] ss:$16 sps:$4 sm:$0xff]  }
 0x2e8   :  { %7792 = vmatprep.subr.bf16.mxu1 %v16240_v21  ;;  %v18178_v36 = vadd.f32 %v7482_v31, %v7440_v30  ;;  %v16288_v20 = vld [vmem:[#allocation2 + $0x5ac] ss:$16 sps:$4 sm:$0xff]   ;;  %v16283_v21 = vld [vmem:[#allocation2 + $0x3a8] ss:$16 sps:$4 sm:$0xff]  }
 0x2e9   :  { %v16294_v26 = vld [vmem:[#allocation2 + $0x58c] ss:$16 sps:$4 sm:$0xff]   ;;  %v16289_v32 = vld [vmem:[#allocation2 + $0x388] ss:$16 sps:$4 sm:$0xff]  }
 0x2ea   :  { %7750 = vmatpush1.bf16.msra.mxu0 %v16235_v24  ;;  %v16286_v24 = vld [vmem:[#allocation2 + $0x5a8] ss:$16 sps:$4 sm:$0xff]   ;;  %v16297_v30 = vld [vmem:[#allocation2 + $0x36c] ss:$16 sps:$4 sm:$0xff]  }
 0x2eb   :  { %7793 = vmatpush1.bf16.msra.mxu1 %v16238_v25  ;;  %7751 = vmatprep.subr.bf16.mxu0 %v16243_v33  ;;  %v16291_v25 = vld [vmem:[#allocation2 + $0x38c] ss:$16 sps:$4 sm:$0xff]   ;;  %v16292_v60 = vld [vmem:[#allocation2 + $0x588] ss:$16 sps:$4 sm:$0xff]  }
 0x2ec   :  { %7794 = vmatprep.subr.bf16.mxu1 %v16246_v3  ;;  %v16300_v31 = vld [vmem:[#allocation2 + $0x56c] ss:$16 sps:$4 sm:$0xff]   ;;  %v16295_v33 = vld [vmem:[#allocation2 + $0x368] ss:$16 sps:$4 sm:$0xff]  }
 0x2ed   :  { %v16298_v3 = vld [vmem:[#allocation2 + $0x568] ss:$16 sps:$4 sm:$0xff]  }
 0x2ee   :  { %7752 = vmatpush1.bf16.msra.mxu0 %v16241_v58  ;;  %v16303_v58 = vld [vmem:[#allocation2 + $0x34c] ss:$16 sps:$4 sm:$0xff]  }
 0x2ef   :  { %7795 = vmatpush1.bf16.msra.mxu1 %v16244_v40  ;;  %7753 = vmatprep.subr.bf16.mxu0 %v16249_v41  ;;  %v16306_v40 = vld [vmem:[#allocation2 + $0x54c] ss:$16 sps:$4 sm:$0xff]   ;;  %v16301_v41 = vld [vmem:[#allocation2 + $0x348] ss:$16 sps:$4 sm:$0xff]  }
 0x2f0   :  { %7796 = vmatprep.subr.bf16.mxu1 %v16252_v42  ;;  %v16304_v42 = vld [vmem:[#allocation2 + $0x548] ss:$16 sps:$4 sm:$0xff]  }
 0x2f2   :  { %7754 = vmatpush1.bf16.msra.mxu0 %v16247_v47  ;;  %v16309_v47 = vld [vmem:[#allocation2 + $0x32c] ss:$16 sps:$4 sm:$0xff]  }
 0x2f3   :  { %7797 = vmatpush1.bf16.msra.mxu1 %v16250_v43  ;;  %7755 = vmatprep.subr.bf16.mxu0 %v16255_v48  ;;  %v16312_v43 = vld [vmem:[#allocation2 + $0x52c] ss:$16 sps:$4 sm:$0xff]   ;;  %v16307_v48 = vld [vmem:[#allocation2 + $0x328] ss:$16 sps:$4 sm:$0xff]  }
 0x2f4   :  { %7798 = vmatprep.subr.bf16.mxu1 %v16258_v49  ;;  %v16310_v49 = vld [vmem:[#allocation2 + $0x528] ss:$16 sps:$4 sm:$0xff]  }
 0x2f6   :  { %7756 = vmatpush1.bf16.msra.mxu0 %v16253_v50  ;;  %v16315_v50 = vld [vmem:[#allocation2 + $0x30c] ss:$16 sps:$4 sm:$0xff]  }
 0x2f7   :  { %7799 = vmatpush1.bf16.msra.mxu1 %v16256_v51  ;;  %7757 = vmatprep.subr.bf16.mxu0 %v16261_v1  ;;  %v16318_v51 = vld [vmem:[#allocation2 + $0x50c] ss:$16 sps:$4 sm:$0xff]   ;;  %v16313_v1 = vld [vmem:[#allocation2 + $0x308] ss:$16 sps:$4 sm:$0xff]  }
 0x2f8   :  { %7800 = vmatprep.subr.bf16.mxu1 %v16264_v54  ;;  %v16316_v54 = vld [vmem:[#allocation2 + $0x508] ss:$16 sps:$4 sm:$0xff]  }
 0x2fa   :  { %7758 = vmatpush1.bf16.msra.mxu0 %v16259_v55  ;;  %v16321_v55 = vld [vmem:[#allocation2 + $0x6ec] ss:$16 sps:$4 sm:$0xff]  }
 0x2fb   :  { %7801 = vmatpush1.bf16.msra.mxu1 %v16262_v59  ;;  %7759 = vmatprep.subr.bf16.mxu0 %v16267_v61  ;;  %v16324_v59 = vld [vmem:[#allocation2 + $0x8ec] ss:$16 sps:$4 sm:$0xff]   ;;  %v16319_v61 = vld [vmem:[#allocation2 + $0x6e8] ss:$16 sps:$4 sm:$0xff]  }
 0x2fc   :  { %7802 = vmatprep.subr.bf16.mxu1 %v16270_v62  ;;  %v16322_v62 = vld [vmem:[#allocation2 + $0x8e8] ss:$16 sps:$4 sm:$0xff]  }
 0x2fe   :  { %7760 = vmatpush1.bf16.msra.mxu0 %v16265_v63  ;;  %v18180_v63 = vpop.f32.mrf.mxu0 }
 0x2ff   :  { %7803 = vmatpush1.bf16.msra.mxu1 %v16268_v22  ;;  %7761 = vmatprep.subr.bf16.mxu0 %v16273_v0  ;;  %v18182_v22 = vpop.f32.mrf.mxu1  ;;  %v16327_v0 = vld [vmem:[#allocation2 + $0x6cc] ss:$16 sps:$4 sm:$0xff]  }
 0x300   :  { %7804 = vmatprep.subr.bf16.mxu1 %v16276_v4  ;;  %v16330_v4 = vld [vmem:[#allocation2 + $0x8cc] ss:$16 sps:$4 sm:$0xff]  }
 0x302   :  { %7762 = vmatpush2.bf16.msra.mxu0 %v16271_v5  ;;  %v16325_v5 = vld [vmem:[#allocation2 + $0x6c8] ss:$16 sps:$4 sm:$0xff]  }
 0x303   :  { %7805 = vmatpush2.bf16.msra.mxu1 %v16274_v46  ;;  %7763 = vmatprep.subr.bf16.mxu0 %v16279_v29  ;;  %v16328_v46 = vld [vmem:[#allocation2 + $0x8c8] ss:$16 sps:$4 sm:$0xff]  }
 0x304   :  { %7806 = vmatprep.subr.bf16.mxu1 %v16282_v8 }
 0x306   :  { %7764 = vmatpush2.bf16.msra.mxu0 %v16277_v9  ;;  %v17515_v9 = vld [vmem:[%s19140_s2 + $0x8] ss:$136 sps:$4 sm:$0xff]  }
 0x307   :  { %7807 = vmatpush2.bf16.msra.mxu1 %v16280_v10  ;;  %7765 = vmatprep.subr.bf16.mxu0 %v16285_v12  ;;  %v17516_v10 = vld [vmem:[%s19140_s2 + $0x10] ss:$136 sps:$4 sm:$0xff]  }
 0x308   :  { %7808 = vmatprep.subr.bf16.mxu1 %v16288_v20 }
 0x30a   :  { %7766 = vmatpush2.bf16.msra.mxu0 %v16283_v21 }
 0x30b   :  { %7809 = vmatpush2.bf16.msra.mxu1 %v16286_v24  ;;  %7767 = vmatprep.subr.bf16.mxu0 %v16291_v25  ;;  %v16333_v24 = vld [vmem:[#allocation2 + $0x6ac] ss:$16 sps:$4 sm:$0xff]  }
 0x30c   :  { %7810 = vmatprep.subr.bf16.mxu1 %v16294_v26  ;;  %v16336_v25 = vld [vmem:[#allocation2 + $0x8ac] ss:$16 sps:$4 sm:$0xff]  }
 0x30e   :  { %7768 = vmatpush2.bf16.msra.mxu0 %v16289_v32  ;;  %v16331_v32 = vld [vmem:[#allocation2 + $0x6a8] ss:$16 sps:$4 sm:$0xff]  }
 0x30f   :  { %7811 = vmatpush2.bf16.msra.mxu1 %v16292_v60  ;;  %7769 = vmatprep.subr.bf16.mxu0 %v16297_v30  ;;  %v16334_v60 = vld [vmem:[#allocation2 + $0x8a8] ss:$16 sps:$4 sm:$0xff]   ;;  %v17517_v30 = vld [vmem:[%s19140_s2 + $0x1c] ss:$136 sps:$4 sm:$0xff]  }
 0x310   :  { %7812 = vmatprep.subr.bf16.mxu1 %v16300_v31 }
 0x312   :  { %7770 = vmatpush2.bf16.msra.mxu0 %v16295_v33 }
 0x313   :  { %7813 = vmatpush2.bf16.msra.mxu1 %v16298_v3  ;;  %7771 = vmatprep.subr.bf16.mxu0 %v16303_v58  ;;  %v16339_v58 = vld [vmem:[#allocation2 + $0x68c] ss:$16 sps:$4 sm:$0xff]  }
 0x314   :  { %7814 = vmatprep.subr.bf16.mxu1 %v16306_v40  ;;  %v16342_v40 = vld [vmem:[#allocation2 + $0x88c] ss:$16 sps:$4 sm:$0xff]  }
 0x316   :  { %7772 = vmatpush2.bf16.msra.mxu0 %v16301_v41 }
 0x317   :  { %7815 = vmatpush2.bf16.msra.mxu1 %v16304_v42  ;;  %7773 = vmatprep.subr.bf16.mxu0 %v16309_v47  ;;  %v16337_v42 = vld [vmem:[#allocation2 + $0x688] ss:$16 sps:$4 sm:$0xff]  }
 0x318   :  { %7816 = vmatprep.subr.bf16.mxu1 %v16312_v43  ;;  %v16340_v47 = vld [vmem:[#allocation2 + $0x888] ss:$16 sps:$4 sm:$0xff]   ;;  %v16345_v43 = vld [vmem:[#allocation2 + $0x66c] ss:$16 sps:$4 sm:$0xff]  }
 0x31a   :  { %7774 = vmatpush2.bf16.msra.mxu0 %v16307_v48  ;;  %v16348_v48 = vld [vmem:[#allocation2 + $0x86c] ss:$16 sps:$4 sm:$0xff]  }
 0x31b   :  { %7817 = vmatpush2.bf16.msra.mxu1 %v16310_v49  ;;  %7775 = vmatprep.subr.bf16.mxu0 %v16315_v50  ;;  %v16346_v49 = vld [vmem:[#allocation2 + $0x868] ss:$16 sps:$4 sm:$0xff]   ;;  %v16351_v50 = vld [vmem:[#allocation2 + $0x64c] ss:$16 sps:$4 sm:$0xff]  }
 0x31c   :  { %7818 = vmatprep.subr.bf16.mxu1 %v16318_v51  ;;  %v16354_v51 = vld [vmem:[#allocation2 + $0x84c] ss:$16 sps:$4 sm:$0xff]  }
 0x31e   :  { %7776 = vmatpush2.bf16.msra.mxu0 %v16313_v1  ;;  %v16349_v1 = vld [vmem:[#allocation2 + $0x648] ss:$16 sps:$4 sm:$0xff]  }
 0x31f   :  { %7819 = vmatpush2.bf16.msra.mxu1 %v16316_v54  ;;  %7831 = vmatprep.subr.bf16.mxu0 %v16321_v55  ;;  %v16352_v54 = vld [vmem:[#allocation2 + $0x848] ss:$16 sps:$4 sm:$0xff]   ;;  %v16357_v55 = vld [vmem:[#allocation2 + $0x62c] ss:$16 sps:$4 sm:$0xff]  }
 0x320   :  { %7874 = vmatprep.subr.bf16.mxu1 %v16324_v59  ;;  %v16360_v59 = vld [vmem:[#allocation2 + $0x82c] ss:$16 sps:$4 sm:$0xff]  }
 0x321   :  { %v7521_v29 = vpop.f32.mrf.mxu0  ;;  %7778 = vmatmul.mubr.bf16.vlgmr.msra.gmra.mxu0 %v17515_v9  ;;  %v16367_v9 = vld [vmem:[#allocation2 + $0x7e8] ss:$16 sps:$4 sm:$0xff]  }
 0x322   :  { %v7564_v8 = vpop.f32.mrf.mxu1  ;;  %7821 = vmatmul.mubr.bf16.vlgmr.msra.gmra.mxu1 %v17516_v10  ;;  %v7522_v12 = vadd.f32 %v7521_v29, %v18169_v23  ;;  %7832 = vmatpush1.bf16.msra.mxu0 %v16319_v61  ;;  %v17518_v23 = vld [vmem:[%s19140_s2 + $0x24] ss:$136 sps:$4 sm:$0xff]   ;;  %v16355_v61 = vld [vmem:[#allocation2 + $0x628] ss:$16 sps:$4 sm:$0xff]  }
 0x323   :  { %7875 = vmatpush1.bf16.msra.mxu1 %v16322_v62  ;;  %v18191_v20 = vpop.f32.mrf.mxu0  ;;  %7833 = vmatprep.subr.bf16.mxu0 %v16327_v0  ;;  %v16358_v62 = vld [vmem:[#allocation2 + $0x828] ss:$16 sps:$4 sm:$0xff]   ;;  %v16363_v0 = vld [vmem:[#allocation2 + $0x60c] ss:$16 sps:$4 sm:$0xff]  }
 0x324   :  { %v18193_v21 = vpop.f32.mrf.mxu1  ;;  %7876 = vmatprep.subr.bf16.mxu1 %v16330_v4  ;;  %v18195_v26 = vadd.f32 %v7564_v8, %v7522_v12  ;;  %7863 = vmatprep.mubr.bf16.mxu0 %v17517_v30  ;;  %v16366_v4 = vld [vmem:[#allocation2 + $0x80c] ss:$16 sps:$4 sm:$0xff]   ;;  %v16370_v10 = vld [vmem:[#allocation2 + $0x9e8] ss:$16 sps:$4 sm:$0xff]  }
 0x325   :  { %7906 = vmatprep.mubr.bf16.mxu1 %v17518_v23  ;;  %v7525_v31 = vpop.f32.mrf.mxu0  ;;  %v16369_v29 = vld [vmem:[#allocation2 + $0x7ec] ss:$16 sps:$4 sm:$0xff]   ;;  %v16379_v23 = vld [vmem:[#allocation2 + $0x7a8] ss:$16 sps:$4 sm:$0xff]  }
 0x326   :  { %v7526_v33 = vadd.f32 %v7525_v31, %v18178_v36  ;;  %7834 = vmatpush1.bf16.msra.mxu0 %v16325_v5  ;;  %v7568_v3 = vpop.f32.mrf.mxu1  ;;  %v16343_v36 = vld [vmem:[#allocation2 + $0x668] ss:$16 sps:$4 sm:$0xff]   ;;  %v16372_v8 = vld [vmem:[#allocation2 + $0x9ec] ss:$16 sps:$4 sm:$0xff]  }
 0x327   :  { %7877 = vmatpush1.bf16.msra.mxu1 %v16328_v46  ;;  %7835 = vmatprep.subr.bf16.mxu0 %v16333_v24  ;;  %v16361_v5 = vld [vmem:[#allocation2 + $0x608] ss:$16 sps:$4 sm:$0xff]   ;;  %v16375_v12 = vld [vmem:[#allocation2 + $0x7cc] ss:$16 sps:$4 sm:$0xff]  }
 0x328   :  { %7878 = vmatprep.subr.bf16.mxu1 %v16336_v25  ;;  %v18204_v41 = vadd.f32 %v7568_v3, %v7526_v33  ;;  %v16364_v46 = vld [vmem:[#allocation2 + $0x808] ss:$16 sps:$4 sm:$0xff]   ;;  %v16378_v24 = vld [vmem:[#allocation2 + $0x9cc] ss:$16 sps:$4 sm:$0xff]  }
 0x329   :  { %v16373_v25 = vld [vmem:[#allocation2 + $0x7c8] ss:$16 sps:$4 sm:$0xff]   ;;  %v16384_v30 = vld [vmem:[#allocation2 + $0x9ac] ss:$16 sps:$4 sm:$0xff]  }
 0x32a   :  { %7836 = vmatpush1.bf16.msra.mxu0 %v16331_v32  ;;  %v16376_v32 = vld [vmem:[#allocation2 + $0x9c8] ss:$16 sps:$4 sm:$0xff]   ;;  %v16387_v33 = vld [vmem:[#allocation2 + $0x78c] ss:$16 sps:$4 sm:$0xff]  }
 0x32b   :  { %7879 = vmatpush1.bf16.msra.mxu1 %v16334_v60  ;;  %7837 = vmatprep.subr.bf16.mxu0 %v16339_v58  ;;  %v16381_v60 = vld [vmem:[#allocation2 + $0x7ac] ss:$16 sps:$4 sm:$0xff]   ;;  %v16382_v31 = vld [vmem:[#allocation2 + $0x9a8] ss:$16 sps:$4 sm:$0xff]  }
 0x32c   :  { %7880 = vmatprep.subr.bf16.mxu1 %v16342_v40  ;;  %v16390_v3 = vld [vmem:[#allocation2 + $0x98c] ss:$16 sps:$4 sm:$0xff]   ;;  %v16385_v58 = vld [vmem:[#allocation2 + $0x788] ss:$16 sps:$4 sm:$0xff]  }
 0x32d   :  { %v16388_v40 = vld [vmem:[#allocation2 + $0x988] ss:$16 sps:$4 sm:$0xff]  }
 0x32e   :  { %7838 = vmatpush1.bf16.msra.mxu0 %v16337_v42  ;;  %v16393_v42 = vld [vmem:[#allocation2 + $0x76c] ss:$16 sps:$4 sm:$0xff]  }
 0x32f   :  { %7881 = vmatpush1.bf16.msra.mxu1 %v16340_v47  ;;  %7839 = vmatprep.subr.bf16.mxu0 %v16345_v43  ;;  %v16396_v47 = vld [vmem:[#allocation2 + $0x96c] ss:$16 sps:$4 sm:$0xff]   ;;  %v16391_v43 = vld [vmem:[#allocation2 + $0x768] ss:$16 sps:$4 sm:$0xff]  }
 0x330   :  { %7882 = vmatprep.subr.bf16.mxu1 %v16348_v48  ;;  %v16394_v48 = vld [vmem:[#allocation2 + $0x968] ss:$16 sps:$4 sm:$0xff]  }
 0x332   :  { %7840 = vmatpush1.bf16.msra.mxu0 %v16343_v36  ;;  %v16399_v36 = vld [vmem:[#allocation2 + $0x74c] ss:$16 sps:$4 sm:$0xff]  }
 0x333   :  { %7883 = vmatpush1.bf16.msra.mxu1 %v16346_v49  ;;  %7841 = vmatprep.subr.bf16.mxu0 %v16351_v50  ;;  %v16402_v49 = vld [vmem:[#allocation2 + $0x94c] ss:$16 sps:$4 sm:$0xff]   ;;  %v16397_v50 = vld [vmem:[#allocation2 + $0x748] ss:$16 sps:$4 sm:$0xff]  }
 0x334   :  { %7884 = vmatprep.subr.bf16.mxu1 %v16354_v51  ;;  %v16400_v51 = vld [vmem:[#allocation2 + $0x948] ss:$16 sps:$4 sm:$0xff]  }
 0x336   :  { %7842 = vmatpush1.bf16.msra.mxu0 %v16349_v1  ;;  %v16405_v1 = vld [vmem:[#allocation2 + $0x72c] ss:$16 sps:$4 sm:$0xff]  }
 0x337   :  { %7885 = vmatpush1.bf16.msra.mxu1 %v16352_v54  ;;  %7843 = vmatprep.subr.bf16.mxu0 %v16357_v55  ;;  %v16408_v54 = vld [vmem:[#allocation2 + $0x92c] ss:$16 sps:$4 sm:$0xff]   ;;  %v16403_v55 = vld [vmem:[#allocation2 + $0x728] ss:$16 sps:$4 sm:$0xff]  }
 0x338   :  { %7886 = vmatprep.subr.bf16.mxu1 %v16360_v59  ;;  %v16406_v59 = vld [vmem:[#allocation2 + $0x928] ss:$16 sps:$4 sm:$0xff]  }
 0x33a   :  { %7844 = vmatpush1.bf16.msra.mxu0 %v16355_v61  ;;  %v16411_v61 = vld [vmem:[#allocation2 + $0x70c] ss:$16 sps:$4 sm:$0xff]  }
 0x33b   :  { %7887 = vmatpush1.bf16.msra.mxu1 %v16358_v62  ;;  %7845 = vmatprep.subr.bf16.mxu0 %v16363_v0  ;;  %v16414_v62 = vld [vmem:[#allocation2 + $0x90c] ss:$16 sps:$4 sm:$0xff]   ;;  %v16409_v0 = vld [vmem:[#allocation2 + $0x708] ss:$16 sps:$4 sm:$0xff]  }
 0x33c   :  { %7888 = vmatprep.subr.bf16.mxu1 %v16366_v4  ;;  %v16412_v4 = vld [vmem:[#allocation2 + $0x908] ss:$16 sps:$4 sm:$0xff]  }
 0x33e   :  { %7846 = vmatpush1.bf16.msra.mxu0 %v16361_v5  ;;  %v16417_v5 = vld [vmem:[#allocation2 + $0xaec] ss:$16 sps:$4 sm:$0xff]  }
 0x33f   :  { %7889 = vmatpush1.bf16.msra.mxu1 %v16364_v46  ;;  %7847 = vmatprep.subr.bf16.mxu0 %v16369_v29  ;;  %v16420_v46 = vld [vmem:[#allocation2 + $0xcec] ss:$16 sps:$4 sm:$0xff]   ;;  %v16415_v29 = vld [vmem:[#allocation2 + $0xae8] ss:$16 sps:$4 sm:$0xff]  }
 0x340   :  { %7890 = vmatprep.subr.bf16.mxu1 %v16372_v8  ;;  %v16418_v8 = vld [vmem:[#allocation2 + $0xce8] ss:$16 sps:$4 sm:$0xff]  }
 0x342   :  { %7848 = vmatpush2.bf16.msra.mxu0 %v16367_v9  ;;  %v18206_v9 = vpop.f32.mrf.mxu0 }
 0x343   :  { %7891 = vmatpush2.bf16.msra.mxu1 %v16370_v10  ;;  %7849 = vmatprep.subr.bf16.mxu0 %v16375_v12  ;;  %v18208_v10 = vpop.f32.mrf.mxu1  ;;  %v16423_v12 = vld [vmem:[#allocation2 + $0xacc] ss:$16 sps:$4 sm:$0xff]  }
 0x344   :  { %7892 = vmatprep.subr.bf16.mxu1 %v16378_v24  ;;  %v16426_v24 = vld [vmem:[#allocation2 + $0xccc] ss:$16 sps:$4 sm:$0xff]  }
 0x346   :  { %7850 = vmatpush2.bf16.msra.mxu0 %v16373_v25  ;;  %v16421_v25 = vld [vmem:[#allocation2 + $0xac8] ss:$16 sps:$4 sm:$0xff]  }
 0x347   :  { %7893 = vmatpush2.bf16.msra.mxu1 %v16376_v32  ;;  %7851 = vmatprep.subr.bf16.mxu0 %v16381_v60  ;;  %v16424_v32 = vld [vmem:[#allocation2 + $0xcc8] ss:$16 sps:$4 sm:$0xff]  }
 0x348   :  { %7894 = vmatprep.subr.bf16.mxu1 %v16384_v30 }
 0x34a   :  { %7852 = vmatpush2.bf16.msra.mxu0 %v16379_v23  ;;  %v17519_v23 = vld [vmem:[%s19140_s2 + $0x18] ss:$136 sps:$4 sm:$0xff]  }
 0x34b   :  { %7895 = vmatpush2.bf16.msra.mxu1 %v16382_v31  ;;  %7853 = vmatprep.subr.bf16.mxu0 %v16387_v33  ;;  %v17520_v31 = vld [vmem:[%s19140_s2 + $0x20] ss:$136 sps:$4 sm:$0xff]  }
 0x34c   :  { %7896 = vmatprep.subr.bf16.mxu1 %v16390_v3 }
 0x34e   :  { %7854 = vmatpush2.bf16.msra.mxu0 %v16385_v58 }
 0x34f   :  { %7897 = vmatpush2.bf16.msra.mxu1 %v16388_v40  ;;  %7855 = vmatprep.subr.bf16.mxu0 %v16393_v42  ;;  %v16429_v40 = vld [vmem:[#allocation2 + $0xaac] ss:$16 sps:$4 sm:$0xff]  }
 0x350   :  { %7898 = vmatprep.subr.bf16.mxu1 %v16396_v47  ;;  %v16432_v42 = vld [vmem:[#allocation2 + $0xcac] ss:$16 sps:$4 sm:$0xff]  }
 0x352   :  { %7856 = vmatpush2.bf16.msra.mxu0 %v16391_v43  ;;  %v16427_v43 = vld [vmem:[#allocation2 + $0xaa8] ss:$16 sps:$4 sm:$0xff]  }
 0x353   :  { %7899 = vmatpush2.bf16.msra.mxu1 %v16394_v48  ;;  %7857 = vmatprep.subr.bf16.mxu0 %v16399_v36  ;;  %v16430_v48 = vld [vmem:[#allocation2 + $0xca8] ss:$16 sps:$4 sm:$0xff]   ;;  %v17521_v36 = vld [vmem:[%s19140_s2 + $0x2c] ss:$136 sps:$4 sm:$0xff]  }
 0x354   :  { %7900 = vmatprep.subr.bf16.mxu1 %v16402_v49 }
 0x356   :  { %7858 = vmatpush2.bf16.msra.mxu0 %v16397_v50 }
 0x357   :  { %7901 = vmatpush2.bf16.msra.mxu1 %v16400_v51  ;;  %7859 = vmatprep.subr.bf16.mxu0 %v16405_v1  ;;  %v16435_v1 = vld [vmem:[#allocation2 + $0xa8c] ss:$16 sps:$4 sm:$0xff]  }
 0x358   :  { %7902 = vmatprep.subr.bf16.mxu1 %v16408_v54  ;;  %v16438_v54 = vld [vmem:[#allocation2 + $0xc8c] ss:$16 sps:$4 sm:$0xff]  }
 0x35a   :  { %7860 = vmatpush2.bf16.msra.mxu0 %v16403_v55 }
 0x35b   :  { %7903 = vmatpush2.bf16.msra.mxu1 %v16406_v59  ;;  %7861 = vmatprep.subr.bf16.mxu0 %v16411_v61  ;;  %v16433_v59 = vld [vmem:[#allocation2 + $0xa88] ss:$16 sps:$4 sm:$0xff]  }
 0x35c   :  { %7904 = vmatprep.subr.bf16.mxu1 %v16414_v62  ;;  %v16436_v61 = vld [vmem:[#allocation2 + $0xc88] ss:$16 sps:$4 sm:$0xff]   ;;  %v16441_v62 = vld [vmem:[#allocation2 + $0xa6c] ss:$16 sps:$4 sm:$0xff]  }
 0x35e   :  { %7862 = vmatpush2.bf16.msra.mxu0 %v16409_v0  ;;  %v16444_v0 = vld [vmem:[#allocation2 + $0xc6c] ss:$16 sps:$4 sm:$0xff]  }
 0x35f   :  { %7905 = vmatpush2.bf16.msra.mxu1 %v16412_v4  ;;  %7917 = vmatprep.subr.bf16.mxu0 %v16417_v5  ;;  %v16442_v4 = vld [vmem:[#allocation2 + $0xc68] ss:$16 sps:$4 sm:$0xff]   ;;  %v16447_v5 = vld [vmem:[#allocation2 + $0xa4c] ss:$16 sps:$4 sm:$0xff]  }
 0x360   :  { %7960 = vmatprep.subr.bf16.mxu1 %v16420_v46  ;;  %v16450_v46 = vld [vmem:[#allocation2 + $0xc4c] ss:$16 sps:$4 sm:$0xff]  }
 0x361   :  { %v7607_v60 = vpop.f32.mrf.mxu0  ;;  %7864 = vmatmul.mubr.bf16.vlgmr.msra.gmra.mxu0 %v17519_v23  ;;  %v16457_v23 = vld [vmem:[#allocation2 + $0xa08] ss:$16 sps:$4 sm:$0xff]  }
 0x362   :  { %v7650_v30 = vpop.f32.mrf.mxu1  ;;  %7907 = vmatmul.mubr.bf16.vlgmr.msra.gmra.mxu1 %v17520_v31  ;;  %v7608_v33 = vadd.f32 %v7607_v60, %v18195_v26  ;;  %7918 = vmatpush1.bf16.msra.mxu0 %v16415_v29  ;;  %v17522_v26 = vld [vmem:[%s19140_s2 + $0x34] ss:$136 sps:$4 sm:$0xff]   ;;  %v16445_v29 = vld [vmem:[#allocation2 + $0xa48] ss:$16 sps:$4 sm:$0xff]  }
 0x363   :  { %7961 = vmatpush1.bf16.msra.mxu1 %v16418_v8  ;;  %v18217_v3 = vpop.f32.mrf.mxu0  ;;  %7919 = vmatprep.subr.bf16.mxu0 %v16423_v12  ;;  %v16448_v8 = vld [vmem:[#allocation2 + $0xc48] ss:$16 sps:$4 sm:$0xff]   ;;  %v16453_v12 = vld [vmem:[#allocation2 + $0xa2c] ss:$16 sps:$4 sm:$0xff]  }
 0x364   :  { %v18219_v58 = vpop.f32.mrf.mxu1  ;;  %7962 = vmatprep.subr.bf16.mxu1 %v16426_v24  ;;  %v18221_v47 = vadd.f32 %v7650_v30, %v7608_v33  ;;  %7949 = vmatprep.mubr.bf16.mxu0 %v17521_v36  ;;  %v16456_v24 = vld [vmem:[#allocation2 + $0xc2c] ss:$16 sps:$4 sm:$0xff]   ;;  %v16460_v31 = vld [vmem:[#allocation2 + $0xc08] ss:$16 sps:$4 sm:$0xff]  }
 0x365   :  { %7992 = vmatprep.mubr.bf16.mxu1 %v17522_v26  ;;  %v7611_v49 = vpop.f32.mrf.mxu0  ;;  %v16459_v60 = vld [vmem:[#allocation2 + $0xa0c] ss:$16 sps:$4 sm:$0xff]   ;;  %v16469_v26 = vld [vmem:[#allocation2 + $0xbc8] ss:$16 sps:$4 sm:$0xff]  }
 0x366   :  { %v7612_v50 = vadd.f32 %v7611_v49, %v18204_v41  ;;  %7920 = vmatpush1.bf16.msra.mxu0 %v16421_v25  ;;  %v7654_v51 = vpop.f32.mrf.mxu1  ;;  %v16439_v41 = vld [vmem:[#allocation2 + $0xa68] ss:$16 sps:$4 sm:$0xff]   ;;  %v16462_v30 = vld [vmem:[#allocation2 + $0xc0c] ss:$16 sps:$4 sm:$0xff]  }
 0x367   :  { %7963 = vmatpush1.bf16.msra.mxu1 %v16424_v32  ;;  %7921 = vmatprep.subr.bf16.mxu0 %v16429_v40  ;;  %v16451_v25 = vld [vmem:[#allocation2 + $0xa28] ss:$16 sps:$4 sm:$0xff]   ;;  %v16465_v33 = vld [vmem:[#allocation2 + $0xbec] ss:$16 sps:$4 sm:$0xff]  }
 0x368   :  { %7964 = vmatprep.subr.bf16.mxu1 %v16432_v42  ;;  %v18230_v55 = vadd.f32 %v7654_v51, %v7612_v50  ;;  %v16454_v32 = vld [vmem:[#allocation2 + $0xc28] ss:$16 sps:$4 sm:$0xff]   ;;  %v16468_v40 = vld [vmem:[#allocation2 + $0xdec] ss:$16 sps:$4 sm:$0xff]  }
 0x369   :  { %v16463_v42 = vld [vmem:[#allocation2 + $0xbe8] ss:$16 sps:$4 sm:$0xff]   ;;  %v16474_v36 = vld [vmem:[#allocation2 + $0xdcc] ss:$16 sps:$4 sm:$0xff]  }
 0x36a   :  { %7922 = vmatpush1.bf16.msra.mxu0 %v16427_v43  ;;  %v16466_v43 = vld [vmem:[#allocation2 + $0xde8] ss:$16 sps:$4 sm:$0xff]   ;;  %v16477_v50 = vld [vmem:[#allocation2 + $0xbac] ss:$16 sps:$4 sm:$0xff]  }
 0x36b   :  { %7965 = vmatpush1.bf16.msra.mxu1 %v16430_v48  ;;  %7923 = vmatprep.subr.bf16.mxu0 %v16435_v1  ;;  %v16471_v48 = vld [vmem:[#allocation2 + $0xbcc] ss:$16 sps:$4 sm:$0xff]   ;;  %v16472_v49 = vld [vmem:[#allocation2 + $0xdc8] ss:$16 sps:$4 sm:$0xff]  }
 0x36c   :  { %7966 = vmatprep.subr.bf16.mxu1 %v16438_v54  ;;  %v16480_v51 = vld [vmem:[#allocation2 + $0xdac] ss:$16 sps:$4 sm:$0xff]   ;;  %v16475_v1 = vld [vmem:[#allocation2 + $0xba8] ss:$16 sps:$4 sm:$0xff]  }
 0x36d   :  { %v16478_v54 = vld [vmem:[#allocation2 + $0xda8] ss:$16 sps:$4 sm:$0xff]  }
 0x36e   :  { %7924 = vmatpush1.bf16.msra.mxu0 %v16433_v59  ;;  %v16483_v59 = vld [vmem:[#allocation2 + $0xb8c] ss:$16 sps:$4 sm:$0xff]  }
 0x36f   :  { %7967 = vmatpush1.bf16.msra.mxu1 %v16436_v61  ;;  %7925 = vmatprep.subr.bf16.mxu0 %v16441_v62  ;;  %v16486_v61 = vld [vmem:[#allocation2 + $0xd8c] ss:$16 sps:$4 sm:$0xff]   ;;  %v16481_v62 = vld [vmem:[#allocation2 + $0xb88] ss:$16 sps:$4 sm:$0xff]  }
 0x370   :  { %7968 = vmatprep.subr.bf16.mxu1 %v16444_v0  ;;  %v16484_v0 = vld [vmem:[#allocation2 + $0xd88] ss:$16 sps:$4 sm:$0xff]  }
 0x372   :  { %7926 = vmatpush1.bf16.msra.mxu0 %v16439_v41  ;;  %v16489_v41 = vld [vmem:[#allocation2 + $0xb6c] ss:$16 sps:$4 sm:$0xff]  }
 0x373   :  { %7969 = vmatpush1.bf16.msra.mxu1 %v16442_v4  ;;  %7927 = vmatprep.subr.bf16.mxu0 %v16447_v5  ;;  %v16492_v4 = vld [vmem:[#allocation2 + $0xd6c] ss:$16 sps:$4 sm:$0xff]   ;;  %v16487_v5 = vld [vmem:[#allocation2 + $0xb68] ss:$16 sps:$4 sm:$0xff]  }
 0x374   :  { %7970 = vmatprep.subr.bf16.mxu1 %v16450_v46  ;;  %v16490_v46 = vld [vmem:[#allocation2 + $0xd68] ss:$16 sps:$4 sm:$0xff]  }
 0x376   :  { %7928 = vmatpush1.bf16.msra.mxu0 %v16445_v29  ;;  %v16495_v29 = vld [vmem:[#allocation2 + $0xb4c] ss:$16 sps:$4 sm:$0xff]  }
 0x377   :  { %7971 = vmatpush1.bf16.msra.mxu1 %v16448_v8  ;;  %7929 = vmatprep.subr.bf16.mxu0 %v16453_v12  ;;  %v16498_v8 = vld [vmem:[#allocation2 + $0xd4c] ss:$16 sps:$4 sm:$0xff]   ;;  %v16493_v12 = vld [vmem:[#allocation2 + $0xb48] ss:$16 sps:$4 sm:$0xff]  }
 0x378   :  { %7972 = vmatprep.subr.bf16.mxu1 %v16456_v24  ;;  %v16496_v24 = vld [vmem:[#allocation2 + $0xd48] ss:$16 sps:$4 sm:$0xff]  }
 0x37a   :  { %7930 = vmatpush1.bf16.msra.mxu0 %v16451_v25  ;;  %v16501_v25 = vld [vmem:[#allocation2 + $0xb2c] ss:$16 sps:$4 sm:$0xff]  }
 0x37b   :  { %7973 = vmatpush1.bf16.msra.mxu1 %v16454_v32  ;;  %7931 = vmatprep.subr.bf16.mxu0 %v16459_v60  ;;  %v16504_v32 = vld [vmem:[#allocation2 + $0xd2c] ss:$16 sps:$4 sm:$0xff]   ;;  %v16499_v60 = vld [vmem:[#allocation2 + $0xb28] ss:$16 sps:$4 sm:$0xff]  }
 0x37c   :  { %7974 = vmatprep.subr.bf16.mxu1 %v16462_v30  ;;  %v16502_v30 = vld [vmem:[#allocation2 + $0xd28] ss:$16 sps:$4 sm:$0xff]  }
 0x37e   :  { %7932 = vmatpush1.bf16.msra.mxu0 %v16457_v23  ;;  %v16507_v23 = vld [vmem:[#allocation2 + $0xb0c] ss:$16 sps:$4 sm:$0xff]  }
 0x37f   :  { %7975 = vmatpush1.bf16.msra.mxu1 %v16460_v31  ;;  %7933 = vmatprep.subr.bf16.mxu0 %v16465_v33  ;;  %v16510_v31 = vld [vmem:[#allocation2 + $0xd0c] ss:$16 sps:$4 sm:$0xff]   ;;  %v16505_v33 = vld [vmem:[#allocation2 + $0xb08] ss:$16 sps:$4 sm:$0xff]  }
 0x380   :  { %7976 = vmatprep.subr.bf16.mxu1 %v16468_v40  ;;  %v16508_v40 = vld [vmem:[#allocation2 + $0xd08] ss:$16 sps:$4 sm:$0xff]  }
 0x382   :  { %7934 = vmatpush2.bf16.msra.mxu0 %v16463_v42  ;;  %v16513_v42 = vld [vmem:[#allocation2 + $0xeec] ss:$16 sps:$4 sm:$0xff]  }
 0x383   :  { %7977 = vmatpush2.bf16.msra.mxu1 %v16466_v43  ;;  %7935 = vmatprep.subr.bf16.mxu0 %v16471_v48  ;;  %v16516_v43 = vld [vmem:[#allocation2 + $0x10ec] ss:$16 sps:$4 sm:$0xff]   ;;  %v16511_v48 = vld [vmem:[#allocation2 + $0xee8] ss:$16 sps:$4 sm:$0xff]  }
 0x384   :  { %7978 = vmatprep.subr.bf16.mxu1 %v16474_v36  ;;  %v16514_v36 = vld [vmem:[#allocation2 + $0x10e8] ss:$16 sps:$4 sm:$0xff]  }
 0x386   :  { %7936 = vmatpush2.bf16.msra.mxu0 %v16469_v26  ;;  %v18232_v26 = vpop.f32.mrf.mxu0 }
 0x387   :  { %7979 = vmatpush2.bf16.msra.mxu1 %v16472_v49  ;;  %7937 = vmatprep.subr.bf16.mxu0 %v16477_v50  ;;  %v16519_v49 = vld [vmem:[#allocation2 + $0xecc] ss:$16 sps:$4 sm:$0xff]  }
 0x388   :  { %7980 = vmatprep.subr.bf16.mxu1 %v16480_v51  ;;  %v16522_v50 = vld [vmem:[#allocation2 + $0x10cc] ss:$16 sps:$4 sm:$0xff]   ;;  %v16517_v51 = vld [vmem:[#allocation2 + $0xec8] ss:$16 sps:$4 sm:$0xff]  }
 0x38a   :  { %7938 = vmatpush2.bf16.msra.mxu0 %v16475_v1  ;;  %v16520_v1 = vld [vmem:[#allocation2 + $0x10c8] ss:$16 sps:$4 sm:$0xff]  }
 0x38b   :  { %7981 = vmatpush2.bf16.msra.mxu1 %v16478_v54  ;;  %7939 = vmatprep.subr.bf16.mxu0 %v16483_v59  ;;  %v17523_v59 = vld [vmem:[%s19140_s2 + $0x28] ss:$136 sps:$4 sm:$0xff]  }
 0x38c   :  { %7982 = vmatprep.subr.bf16.mxu1 %v16486_v61  ;;  %v17524_v61 = vld [vmem:[%s19140_s2 + $0x30] ss:$136 sps:$4 sm:$0xff]  }
 0x38e   :  { %7940 = vmatpush2.bf16.msra.mxu0 %v16481_v62 }
 0x38f   :  { %7983 = vmatpush2.bf16.msra.mxu1 %v16484_v0  ;;  %7941 = vmatprep.subr.bf16.mxu0 %v16489_v41  ;;  %v16525_v41 = vld [vmem:[#allocation2 + $0xeac] ss:$16 sps:$4 sm:$0xff]  }
 0x390   :  { %7984 = vmatprep.subr.bf16.mxu1 %v16492_v4  ;;  %v16528_v4 = vld [vmem:[#allocation2 + $0x10ac] ss:$16 sps:$4 sm:$0xff]  }
 0x392   :  { %7942 = vmatpush2.bf16.msra.mxu0 %v16487_v5  ;;  %v16523_v5 = vld [vmem:[#allocation2 + $0xea8] ss:$16 sps:$4 sm:$0xff]  }
 0x393   :  { %7985 = vmatpush2.bf16.msra.mxu1 %v16490_v46  ;;  %7943 = vmatprep.subr.bf16.mxu0 %v16495_v29  ;;  %v17525_v46 = vld [vmem:[%s19140_s2 + $0x3c] ss:$136 sps:$4 sm:$0xff]  }
 0x394   :  { %7986 = vmatprep.subr.bf16.mxu1 %v16498_v8  ;;  %v17526_v29 = vld [vmem:[%s19140_s2 + $0x44] ss:$136 sps:$4 sm:$0xff]  }
 0x396   :  { %7944 = vmatpush2.bf16.msra.mxu0 %v16493_v12  ;;  %v16526_v12 = vld [vmem:[#allocation2 + $0x10a8] ss:$16 sps:$4 sm:$0xff]  }
 0x397   :  { %7987 = vmatpush2.bf16.msra.mxu1 %v16496_v24  ;;  %7945 = vmatprep.subr.bf16.mxu0 %v16501_v25  ;;  %v16531_v24 = vld [vmem:[#allocation2 + $0xe8c] ss:$16 sps:$4 sm:$0xff]  }
 0x398   :  { %7988 = vmatprep.subr.bf16.mxu1 %v16504_v32  ;;  %v16534_v25 = vld [vmem:[#allocation2 + $0x108c] ss:$16 sps:$4 sm:$0xff]  }
 0x39a   :  { %7946 = vmatpush2.bf16.msra.mxu0 %v16499_v60 }
 0x39b   :  { %7989 = vmatpush2.bf16.msra.mxu1 %v16502_v30  ;;  %7947 = vmatprep.subr.bf16.mxu0 %v16507_v23  ;;  %v16529_v23 = vld [vmem:[#allocation2 + $0xe88] ss:$16 sps:$4 sm:$0xff]  }
 0x39c   :  { %7990 = vmatprep.subr.bf16.mxu1 %v16510_v31  ;;  %v16532_v31 = vld [vmem:[#allocation2 + $0x1088] ss:$16 sps:$4 sm:$0xff]  }
 0x39e   :  { %7948 = vmatpush2.bf16.msra.mxu0 %v16505_v33  ;;  %v16537_v33 = vld [vmem:[#allocation2 + $0xe6c] ss:$16 sps:$4 sm:$0xff]  }
 0x39f   :  { %7991 = vmatpush2.bf16.msra.mxu1 %v16508_v40  ;;  %8003 = vmatprep.subr.bf16.mxu0 %v16513_v42  ;;  %v16540_v40 = vld [vmem:[#allocation2 + $0x106c] ss:$16 sps:$4 sm:$0xff]   ;;  %v16538_v42 = vld [vmem:[#allocation2 + $0x1068] ss:$16 sps:$4 sm:$0xff]  }
 0x3a0   :  { %8046 = vmatprep.subr.bf16.mxu1 %v16516_v43  ;;  %v16543_v43 = vld [vmem:[#allocation2 + $0xe4c] ss:$16 sps:$4 sm:$0xff]  }
 0x3a1   :  { %v7693_v54 = vpop.f32.mrf.mxu0  ;;  %7950 = vmatmul.mubr.bf16.vlgmr.msra.gmra.mxu0 %v17523_v59  ;;  %v16555_v59 = vld [vmem:[#allocation2 + $0xe0c] ss:$16 sps:$4 sm:$0xff]  }
 0x3a2   :  { %7993 = vmatmul.mubr.bf16.vlgmr.msra.gmra.mxu1 %v17524_v61  ;;  %v7694_v62 = vadd.f32 %v7693_v54, %v18221_v47  ;;  %8004 = vmatpush1.bf16.msra.mxu0 %v16511_v48  ;;  %v16546_v48 = vld [vmem:[#allocation2 + $0x104c] ss:$16 sps:$4 sm:$0xff]   ;;  %v16550_v54 = vld [vmem:[#allocation2 + $0x1028] ss:$16 sps:$4 sm:$0xff]  }
 0x3a3   :  { %8047 = vmatpush1.bf16.msra.mxu1 %v16514_v36  ;;  %v18241_v0 = vpop.f32.mrf.mxu0  ;;  %8005 = vmatprep.subr.bf16.mxu0 %v16519_v49  ;;  %v16541_v36 = vld [vmem:[#allocation2 + $0xe48] ss:$16 sps:$4 sm:$0xff]   ;;  %v16558_v61 = vld [vmem:[#allocation2 + $0x100c] ss:$16 sps:$4 sm:$0xff]  }
 0x3a4   :  { %8048 = vmatprep.subr.bf16.mxu1 %v16522_v50  ;;  %8035 = vmatprep.mubr.bf16.mxu0 %v17525_v46  ;;  %v8433_v32 = vmax.f32 %v7694_v62, 0.0  ;;  %v16544_v49 = vld [vmem:[#allocation2 + $0x1048] ss:$16 sps:$4 sm:$0xff]   ;;  %v16549_v50 = vld [vmem:[#allocation2 + $0xe2c] ss:$16 sps:$4 sm:$0xff]  }
 0x3a5   :  { %8078 = vmatprep.mubr.bf16.mxu1 %v17526_v29  ;;  %v7697_v47 = vpop.f32.mrf.mxu0  ;;  %v16553_v62 = vld [vmem:[#allocation2 + $0xe08] ss:$16 sps:$4 sm:$0xff]  }
 0x3a6   :  { %v7698_v8 = vadd.f32 %v7697_v47, %v18230_v55  ;;  %8006 = vmatpush1.bf16.msra.mxu0 %v16517_v51  ;;  %v16535_v55 = vld [vmem:[#allocation2 + $0xe68] ss:$16 sps:$4 sm:$0xff]   ;;  %v16552_v51 = vld [vmem:[#allocation2 + $0x102c] ss:$16 sps:$4 sm:$0xff]  }
 0x3a7   :  { %8049 = vmatpush1.bf16.msra.mxu1 %v16520_v1  ;;  %8007 = vmatprep.subr.bf16.mxu0 %v16525_v41  ;;  %v16547_v1 = vld [vmem:[#allocation2 + $0xe28] ss:$16 sps:$4 sm:$0xff]   ;;  %v16567_v47 = vld [vmem:[#allocation2 + $0xfcc] ss:$16 sps:$4 sm:$0xff]  }
 0x3a8   :  { %8050 = vmatprep.subr.bf16.mxu1 %v16528_v4  ;;  %v8437_v60 = vmax.f32 %v7698_v8, 0.0  ;;  %v16556_v41 = vld [vmem:[#allocation2 + $0x1008] ss:$16 sps:$4 sm:$0xff]   ;;  %v16561_v4 = vld [vmem:[#allocation2 + $0xfec] ss:$16 sps:$4 sm:$0xff]  }
 0x3a9   :  { %v16559_v46 = vld [vmem:[#allocation2 + $0xfe8] ss:$16 sps:$4 sm:$0xff]   ;;  %v16570_v8 = vld [vmem:[#allocation2 + $0x11cc] ss:$16 sps:$4 sm:$0xff]  }
 0x3aa   :  { %v18250_v30 = vpack.c.bf16 %v8437_v60, %v8433_v32  ;;  %8008 = vmatpush1.bf16.msra.mxu0 %v16523_v5  ;;  %v16564_v5 = vld [vmem:[#allocation2 + $0x11ec] ss:$16 sps:$4 sm:$0xff]   ;;  %v16562_v29 = vld [vmem:[#allocation2 + $0x11e8] ss:$16 sps:$4 sm:$0xff]  }
 0x3ab   :  { %8051 = vmatpush1.bf16.msra.mxu1 %v16526_v12  ;;  %8009 = vmatprep.subr.bf16.mxu0 %v16531_v24  ;;  %v16565_v12 = vld [vmem:[#allocation2 + $0xfc8] ss:$16 sps:$4 sm:$0xff]   ;;  %v16576_v32 = vld [vmem:[#allocation2 + $0x11ac] ss:$16 sps:$4 sm:$0xff]  }
 0x3ac   :  { %8052 = vmatprep.subr.bf16.mxu1 %v16534_v25  ;;  %v16568_v24 = vld [vmem:[#allocation2 + $0x11c8] ss:$16 sps:$4 sm:$0xff]   ;;  %v16573_v25 = vld [vmem:[#allocation2 + $0xfac] ss:$16 sps:$4 sm:$0xff]  }
 0x3ad   :  { %v16571_v60 = vld [vmem:[#allocation2 + $0xfa8] ss:$16 sps:$4 sm:$0xff]  }
 0x3ae   :  { %8010 = vmatpush1.bf16.msra.mxu0 %v16529_v23  ;;  %v16574_v23 = vld [vmem:[#allocation2 + $0x11a8] ss:$16 sps:$4 sm:$0xff]  }
 0x3af   :  { %8053 = vmatpush1.bf16.msra.mxu1 %v16532_v31  ;;  %8011 = vmatprep.subr.bf16.mxu0 %v16537_v33  ;;  %v16579_v31 = vld [vmem:[#allocation2 + $0xf8c] ss:$16 sps:$4 sm:$0xff]  }
 0x3b0   :  { %8054 = vmatprep.subr.bf16.mxu1 %v16540_v40  ;;  %v16582_v33 = vld [vmem:[#allocation2 + $0x118c] ss:$16 sps:$4 sm:$0xff]   ;;  %v16577_v40 = vld [vmem:[#allocation2 + $0xf88] ss:$16 sps:$4 sm:$0xff]  }
 0x3b2   :  { %8012 = vmatpush1.bf16.msra.mxu0 %v16535_v55  ;;  %v16580_v55 = vld [vmem:[#allocation2 + $0x1188] ss:$16 sps:$4 sm:$0xff]  }
 0x3b3   :  { %8055 = vmatpush1.bf16.msra.mxu1 %v16538_v42  ;;  %8013 = vmatprep.subr.bf16.mxu0 %v16543_v43  ;;  %v16585_v42 = vld [vmem:[#allocation2 + $0xf6c] ss:$16 sps:$4 sm:$0xff]  }
 0x3b4   :  { %8056 = vmatprep.subr.bf16.mxu1 %v16546_v48  ;;  %v16588_v43 = vld [vmem:[#allocation2 + $0x116c] ss:$16 sps:$4 sm:$0xff]   ;;  %v16583_v48 = vld [vmem:[#allocation2 + $0xf68] ss:$16 sps:$4 sm:$0xff]  }
 0x3b6   :  { %8014 = vmatpush1.bf16.msra.mxu0 %v16541_v36  ;;  %v16586_v36 = vld [vmem:[#allocation2 + $0x1168] ss:$16 sps:$4 sm:$0xff]  }
 0x3b7   :  { %8057 = vmatpush1.bf16.msra.mxu1 %v16544_v49  ;;  %8015 = vmatprep.subr.bf16.mxu0 %v16549_v50  ;;  %v16591_v49 = vld [vmem:[#allocation2 + $0xf4c] ss:$16 sps:$4 sm:$0xff]  }
 0x3b8   :  { %8058 = vmatprep.subr.bf16.mxu1 %v16552_v51  ;;  %v16594_v50 = vld [vmem:[#allocation2 + $0x114c] ss:$16 sps:$4 sm:$0xff]   ;;  %v16589_v51 = vld [vmem:[#allocation2 + $0xf48] ss:$16 sps:$4 sm:$0xff]  }
 0x3ba   :  { %8016 = vmatpush1.bf16.msra.mxu0 %v16547_v1  ;;  %v16592_v1 = vld [vmem:[#allocation2 + $0x1148] ss:$16 sps:$4 sm:$0xff]  }
 0x3bb   :  { %8059 = vmatpush1.bf16.msra.mxu1 %v16550_v54  ;;  %8017 = vmatprep.subr.bf16.mxu0 %v16555_v59  ;;  %v16597_v54 = vld [vmem:[#allocation2 + $0xf2c] ss:$16 sps:$4 sm:$0xff]  }
 0x3bc   :  { %8060 = vmatprep.subr.bf16.mxu1 %v16558_v61  ;;  %v16600_v59 = vld [vmem:[#allocation2 + $0x112c] ss:$16 sps:$4 sm:$0xff]   ;;  %v16595_v61 = vld [vmem:[#allocation2 + $0xf28] ss:$16 sps:$4 sm:$0xff]  }
 0x3be   :  { %8018 = vmatpush1.bf16.msra.mxu0 %v16553_v62  ;;  %v16598_v62 = vld [vmem:[#allocation2 + $0x1128] ss:$16 sps:$4 sm:$0xff]  }
 0x3bf   :  { %8061 = vmatpush1.bf16.msra.mxu1 %v16556_v41  ;;  %8019 = vmatprep.subr.bf16.mxu0 %v16561_v4  ;;  %v16603_v41 = vld [vmem:[#allocation2 + $0xf0c] ss:$16 sps:$4 sm:$0xff]  }
 0x3c0   :  { %8062 = vmatprep.subr.bf16.mxu1 %v16564_v5  ;;  %v16606_v4 = vld [vmem:[#allocation2 + $0x110c] ss:$16 sps:$4 sm:$0xff]   ;;  %v16601_v5 = vld [vmem:[#allocation2 + $0xf08] ss:$16 sps:$4 sm:$0xff]  }
 0x3c2   :  { %8020 = vmatpush2.bf16.msra.mxu0 %v16559_v46  ;;  %v16604_v46 = vld [vmem:[#allocation2 + $0x1108] ss:$16 sps:$4 sm:$0xff]  }
 0x3c3   :  { %8063 = vmatpush2.bf16.msra.mxu1 %v16562_v29  ;;  %8021 = vmatprep.subr.bf16.mxu0 %v16567_v47  ;;  %v16609_v29 = vld [vmem:[#allocation2 + $0x12ec] ss:$16 sps:$4 sm:$0xff]  }
 0x3c4   :  { %8064 = vmatprep.subr.bf16.mxu1 %v16570_v8  ;;  %v16612_v47 = vld [vmem:[#allocation2 + $0x14ec] ss:$16 sps:$4 sm:$0xff]   ;;  %v16607_v8 = vld [vmem:[#allocation2 + $0x12e8] ss:$16 sps:$4 sm:$0xff]  }
 0x3c6   :  { %8022 = vmatpush2.bf16.msra.mxu0 %v16565_v12  ;;  %v16610_v12 = vld [vmem:[#allocation2 + $0x14e8] ss:$16 sps:$4 sm:$0xff]  }
 0x3c7   :  { %8065 = vmatpush2.bf16.msra.mxu1 %v16568_v24  ;;  %8023 = vmatprep.subr.bf16.mxu0 %v16573_v25  ;;  %v16615_v24 = vld [vmem:[#allocation2 + $0x12cc] ss:$16 sps:$4 sm:$0xff]  }
 0x3c8   :  { %8066 = vmatprep.subr.bf16.mxu1 %v16576_v32  ;;  %v16618_v25 = vld [vmem:[#allocation2 + $0x14cc] ss:$16 sps:$4 sm:$0xff]   ;;  %v16613_v32 = vld [vmem:[#allocation2 + $0x12c8] ss:$16 sps:$4 sm:$0xff]  }
 0x3ca   :  { %8024 = vmatpush2.bf16.msra.mxu0 %v16571_v60  ;;  %v16616_v60 = vld [vmem:[#allocation2 + $0x14c8] ss:$16 sps:$4 sm:$0xff]  }
 0x3cb   :  { %8067 = vmatpush2.bf16.msra.mxu1 %v16574_v23  ;;  %8025 = vmatprep.subr.bf16.mxu0 %v16579_v31  ;;  %v17527_v23 = vld [vmem:[%s19140_s2 + $0x38] ss:$136 sps:$4 sm:$0xff]  }
 0x3cc   :  { %8068 = vmatprep.subr.bf16.mxu1 %v16582_v33  ;;  %v17528_v31 = vld [vmem:[%s19140_s2 + $0x40] ss:$136 sps:$4 sm:$0xff]   ;;  %v16621_v33 = vld [vmem:[#allocation2 + $0x12ac] ss:$16 sps:$4 sm:$0xff]  }
 0x3ce   :  { %8026 = vmatpush2.bf16.msra.mxu0 %v16577_v40  ;;  %v16624_v40 = vld [vmem:[#allocation2 + $0x14ac] ss:$16 sps:$4 sm:$0xff]  }
 0x3cf   :  { %8069 = vmatpush2.bf16.msra.mxu1 %v16580_v55  ;;  %8027 = vmatprep.subr.bf16.mxu0 %v16585_v42  ;;  %v16619_v55 = vld [vmem:[#allocation2 + $0x12a8] ss:$16 sps:$4 sm:$0xff]  }
 0x3d0   :  { %8070 = vmatprep.subr.bf16.mxu1 %v16588_v43  ;;  %v16622_v42 = vld [vmem:[#allocation2 + $0x14a8] ss:$16 sps:$4 sm:$0xff]   ;;  %v17529_v43 = vld [vmem:[%s19140_s2 + $0x4c] ss:$136 sps:$4 sm:$0xff]  }
 0x3d2   :  { %8028 = vmatpush2.bf16.msra.mxu0 %v16583_v48  ;;  %v17530_v48 = vld [vmem:[%s19140_s2 + $0x54] ss:$136 sps:$4 sm:$0xff]  }
 0x3d3   :  { %8071 = vmatpush2.bf16.msra.mxu1 %v16586_v36  ;;  %8029 = vmatprep.subr.bf16.mxu0 %v16591_v49  ;;  %v16627_v36 = vld [vmem:[#allocation2 + $0x128c] ss:$16 sps:$4 sm:$0xff]  }
 0x3d4   :  { %8072 = vmatprep.subr.bf16.mxu1 %v16594_v50  ;;  %v16630_v49 = vld [vmem:[#allocation2 + $0x148c] ss:$16 sps:$4 sm:$0xff]   ;;  %v16625_v50 = vld [vmem:[#allocation2 + $0x1288] ss:$16 sps:$4 sm:$0xff]  }
 0x3d6   :  { %8030 = vmatpush2.bf16.msra.mxu0 %v16589_v51  ;;  %v16628_v51 = vld [vmem:[#allocation2 + $0x1488] ss:$16 sps:$4 sm:$0xff]  }
 0x3d7   :  { %8073 = vmatpush2.bf16.msra.mxu1 %v16592_v1  ;;  %8031 = vmatprep.subr.bf16.mxu0 %v16597_v54  ;;  %v16633_v1 = vld [vmem:[#allocation2 + $0x126c] ss:$16 sps:$4 sm:$0xff]  }
 0x3d8   :  { %8074 = vmatprep.subr.bf16.mxu1 %v16600_v59  ;;  %v16636_v54 = vld [vmem:[#allocation2 + $0x146c] ss:$16 sps:$4 sm:$0xff]   ;;  %v16631_v59 = vld [vmem:[#allocation2 + $0x1268] ss:$16 sps:$4 sm:$0xff]  }
 0x3da   :  { %8032 = vmatpush2.bf16.msra.mxu0 %v16595_v61  ;;  %v16634_v61 = vld [vmem:[#allocation2 + $0x1468] ss:$16 sps:$4 sm:$0xff]  }
 0x3db   :  { %8075 = vmatpush2.bf16.msra.mxu1 %v16598_v62  ;;  %8033 = vmatprep.subr.bf16.mxu0 %v16603_v41  ;;  %v16639_v62 = vld [vmem:[#allocation2 + $0x124c] ss:$16 sps:$4 sm:$0xff]  }
 0x3dc   :  { %8076 = vmatprep.subr.bf16.mxu1 %v16606_v4  ;;  %v16642_v41 = vld [vmem:[#allocation2 + $0x144c] ss:$16 sps:$4 sm:$0xff]   ;;  %v16637_v4 = vld [vmem:[#allocation2 + $0x1248] ss:$16 sps:$4 sm:$0xff]  }
 0x3de   :  { %8034 = vmatpush2.bf16.msra.mxu0 %v16601_v5  ;;  %v16640_v5 = vld [vmem:[#allocation2 + $0x1448] ss:$16 sps:$4 sm:$0xff]  }
 0x3df   :  { %8077 = vmatpush2.bf16.msra.mxu1 %v16604_v46  ;;  %8089 = vmatprep.subr.bf16.mxu0 %v16609_v29  ;;  %v16645_v46 = vld [vmem:[#allocation2 + $0x122c] ss:$16 sps:$4 sm:$0xff]  }
 0x3e0   :  { %8132 = vmatprep.subr.bf16.mxu1 %v16612_v47  ;;  %v16648_v29 = vld [vmem:[#allocation2 + $0x142c] ss:$16 sps:$4 sm:$0xff]   ;;  %v16643_v47 = vld [vmem:[#allocation2 + $0x1228] ss:$16 sps:$4 sm:$0xff]  }
 0x3e1   :  { %8036 = vmatmul.mubr.bf16.vlgmr.msra.gmra.mxu0 %v17527_v23  ;;  %v16660_v23 = vld [vmem:[#allocation2 + $0x15ec] ss:$16 sps:$4 sm:$0xff]  }
 0x3e2   :  { %8079 = vmatmul.mubr.bf16.vlgmr.msra.gmra.mxu1 %v17528_v31  ;;  %8090 = vmatpush1.bf16.msra.mxu0 %v16607_v8  ;;  %v16646_v8 = vld [vmem:[#allocation2 + $0x1428] ss:$16 sps:$4 sm:$0xff]  }
 0x3e3   :  { %8133 = vmatpush1.bf16.msra.mxu1 %v16610_v12  ;;  %8091 = vmatprep.subr.bf16.mxu0 %v16615_v24  ;;  %v16651_v12 = vld [vmem:[#allocation2 + $0x120c] ss:$16 sps:$4 sm:$0xff]   ;;  %v16655_v31 = vld [vmem:[#allocation2 + $0x13e8] ss:$16 sps:$4 sm:$0xff]  }
 0x3e4   :  { %8134 = vmatprep.subr.bf16.mxu1 %v16618_v25  ;;  %8121 = vmatprep.mubr.bf16.mxu0 %v17529_v43  ;;  %v16654_v24 = vld [vmem:[#allocation2 + $0x140c] ss:$16 sps:$4 sm:$0xff]   ;;  %v16649_v25 = vld [vmem:[#allocation2 + $0x1208] ss:$16 sps:$4 sm:$0xff]  }
 0x3e5   :  { %8164 = vmatprep.mubr.bf16.mxu1 %v17530_v48  ;;  %v16664_v43 = vld [vmem:[#allocation2 + $0x15c8] ss:$16 sps:$4 sm:$0xff]   ;;  %v16669_v48 = vld [vmem:[#allocation2 + $0x13ac] ss:$16 sps:$4 sm:$0xff]  }
 0x3e6   :  { %8092 = vmatpush1.bf16.msra.mxu0 %v16613_v32  ;;  %v16652_v32 = vld [vmem:[#allocation2 + $0x1408] ss:$16 sps:$4 sm:$0xff]  }
 0x3e7   :  { %8135 = vmatpush1.bf16.msra.mxu1 %v16616_v60  ;;  %8093 = vmatprep.subr.bf16.mxu0 %v16621_v33  ;;  %v16657_v60 = vld [vmem:[#allocation2 + $0x13ec] ss:$16 sps:$4 sm:$0xff]   ;;  %v16658_v33 = vld [vmem:[#allocation2 + $0x15e8] ss:$16 sps:$4 sm:$0xff]  }
 0x3e8   :  { %8136 = vmatprep.subr.bf16.mxu1 %v16624_v40  ;;  %v16663_v40 = vld [vmem:[#allocation2 + $0x13cc] ss:$16 sps:$4 sm:$0xff]  }
 0x3ea   :  { %8094 = vmatpush1.bf16.msra.mxu0 %v16619_v55  ;;  %v16666_v55 = vld [vmem:[#allocation2 + $0x15cc] ss:$16 sps:$4 sm:$0xff]  }
 0x3eb   :  { %8137 = vmatpush1.bf16.msra.mxu1 %v16622_v42  ;;  %8095 = vmatprep.subr.bf16.mxu0 %v16627_v36  ;;  %v16661_v42 = vld [vmem:[#allocation2 + $0x13c8] ss:$16 sps:$4 sm:$0xff]   ;;  %v16672_v36 = vld [vmem:[#allocation2 + $0x15ac] ss:$16 sps:$4 sm:$0xff]  }
 0x3ec   :  { %8138 = vmatprep.subr.bf16.mxu1 %v16630_v49  ;;  %v16667_v49 = vld [vmem:[#allocation2 + $0x13a8] ss:$16 sps:$4 sm:$0xff]  }
 0x3ee   :  { %8096 = vmatpush1.bf16.msra.mxu0 %v16625_v50  ;;  %v16670_v50 = vld [vmem:[#allocation2 + $0x15a8] ss:$16 sps:$4 sm:$0xff]  }
 0x3ef   :  { %8139 = vmatpush1.bf16.msra.mxu1 %v16628_v51  ;;  %8097 = vmatprep.subr.bf16.mxu0 %v16633_v1  ;;  %v16675_v51 = vld [vmem:[#allocation2 + $0x138c] ss:$16 sps:$4 sm:$0xff]  }
 0x3f0   :  { %8140 = vmatprep.subr.bf16.mxu1 %v16636_v54  ;;  %v16678_v1 = vld [vmem:[#allocation2 + $0x158c] ss:$16 sps:$4 sm:$0xff]   ;;  %v16673_v54 = vld [vmem:[#allocation2 + $0x1388] ss:$16 sps:$4 sm:$0xff]  }
 0x3f2   :  { %8098 = vmatpush1.bf16.msra.mxu0 %v16631_v59  ;;  %v16676_v59 = vld [vmem:[#allocation2 + $0x1588] ss:$16 sps:$4 sm:$0xff]  }
 0x3f3   :  { %8141 = vmatpush1.bf16.msra.mxu1 %v16634_v61  ;;  %8099 = vmatprep.subr.bf16.mxu0 %v16639_v62  ;;  %v16681_v61 = vld [vmem:[#allocation2 + $0x136c] ss:$16 sps:$4 sm:$0xff]  }
 0x3f4   :  { %8142 = vmatprep.subr.bf16.mxu1 %v16642_v41  ;;  %v16684_v62 = vld [vmem:[#allocation2 + $0x156c] ss:$16 sps:$4 sm:$0xff]   ;;  %v16679_v41 = vld [vmem:[#allocation2 + $0x1368] ss:$16 sps:$4 sm:$0xff]  }
 0x3f6   :  { %8100 = vmatpush1.bf16.msra.mxu0 %v16637_v4  ;;  %v16682_v4 = vld [vmem:[#allocation2 + $0x1568] ss:$16 sps:$4 sm:$0xff]  }
 0x3f7   :  { %8143 = vmatpush1.bf16.msra.mxu1 %v16640_v5  ;;  %8101 = vmatprep.subr.bf16.mxu0 %v16645_v46  ;;  %v16687_v5 = vld [vmem:[#allocation2 + $0x134c] ss:$16 sps:$4 sm:$0xff]  }
 0x3f8   :  { %8144 = vmatprep.subr.bf16.mxu1 %v16648_v29  ;;  %v16690_v46 = vld [vmem:[#allocation2 + $0x154c] ss:$16 sps:$4 sm:$0xff]   ;;  %v16685_v29 = vld [vmem:[#allocation2 + $0x1348] ss:$16 sps:$4 sm:$0xff]  }
 0x3fa   :  { %8102 = vmatpush1.bf16.msra.mxu0 %v16643_v47  ;;  %v16688_v47 = vld [vmem:[#allocation2 + $0x1548] ss:$16 sps:$4 sm:$0xff]  }
 0x3fb   :  { %8145 = vmatpush1.bf16.msra.mxu1 %v16646_v8  ;;  %8103 = vmatprep.subr.bf16.mxu0 %v16651_v12  ;;  %v16693_v8 = vld [vmem:[#allocation2 + $0x132c] ss:$16 sps:$4 sm:$0xff]  }
 0x3fc   :  { %8146 = vmatprep.subr.bf16.mxu1 %v16654_v24  ;;  %v16696_v12 = vld [vmem:[#allocation2 + $0x152c] ss:$16 sps:$4 sm:$0xff]   ;;  %v16691_v24 = vld [vmem:[#allocation2 + $0x1328] ss:$16 sps:$4 sm:$0xff]  }
 0x3fe   :  { %8104 = vmatpush1.bf16.msra.mxu0 %v16649_v25  ;;  %v16694_v25 = vld [vmem:[#allocation2 + $0x1528] ss:$16 sps:$4 sm:$0xff]  }
 0x3ff   :  { %8147 = vmatpush1.bf16.msra.mxu1 %v16652_v32  ;;  %8105 = vmatprep.subr.bf16.mxu0 %v16657_v60  ;;  %v16699_v32 = vld [vmem:[#allocation2 + $0x130c] ss:$16 sps:$4 sm:$0xff]  }
 0x400   :  { %8148 = vmatprep.subr.bf16.mxu1 %v16660_v23  ;;  %v16702_v60 = vld [vmem:[#allocation2 + $0x150c] ss:$16 sps:$4 sm:$0xff]   ;;  %v16697_v23 = vld [vmem:[#allocation2 + $0x1308] ss:$16 sps:$4 sm:$0xff]  }
 0x402   :  { %8106 = vmatpush2.bf16.msra.mxu0 %v16655_v31  ;;  %v16700_v31 = vld [vmem:[#allocation2 + $0x1508] ss:$16 sps:$4 sm:$0xff]  }
 0x403   :  { %8149 = vmatpush2.bf16.msra.mxu1 %v16658_v33  ;;  %8107 = vmatprep.subr.bf16.mxu0 %v16663_v40  ;;  %v16705_v33 = vld [vmem:[#allocation2 + $0x16ec] ss:$16 sps:$4 sm:$0xff]  }
 0x404   :  { %8150 = vmatprep.subr.bf16.mxu1 %v16666_v55  ;;  %v16708_v40 = vld [vmem:[#allocation2 + $0x18ec] ss:$16 sps:$4 sm:$0xff]   ;;  %v16703_v55 = vld [vmem:[#allocation2 + $0x16e8] ss:$16 sps:$4 sm:$0xff]  }
 0x406   :  { %8108 = vmatpush2.bf16.msra.mxu0 %v16661_v42  ;;  %v16706_v42 = vld [vmem:[#allocation2 + $0x18e8] ss:$16 sps:$4 sm:$0xff]  }
 0x407   :  { %8151 = vmatpush2.bf16.msra.mxu1 %v16664_v43  ;;  %8109 = vmatprep.subr.bf16.mxu0 %v16669_v48  ;;  %v16711_v43 = vld [vmem:[#allocation2 + $0x16cc] ss:$16 sps:$4 sm:$0xff]  }
 0x408   :  { %8152 = vmatprep.subr.bf16.mxu1 %v16672_v36  ;;  %v16714_v48 = vld [vmem:[#allocation2 + $0x18cc] ss:$16 sps:$4 sm:$0xff]   ;;  %v16709_v36 = vld [vmem:[#allocation2 + $0x16c8] ss:$16 sps:$4 sm:$0xff]  }
 0x40a   :  { %8110 = vmatpush2.bf16.msra.mxu0 %v16667_v49  ;;  %v16712_v49 = vld [vmem:[#allocation2 + $0x18c8] ss:$16 sps:$4 sm:$0xff]  }
 0x40b   :  { %8153 = vmatpush2.bf16.msra.mxu1 %v16670_v50  ;;  %8111 = vmatprep.subr.bf16.mxu0 %v16675_v51  ;;  %v17531_v50 = vld [vmem:[%s19140_s2 + $0x48] ss:$136 sps:$4 sm:$0xff]  }
 0x40c   :  { %8154 = vmatprep.subr.bf16.mxu1 %v16678_v1  ;;  %v17532_v51 = vld [vmem:[%s19140_s2 + $0x50] ss:$136 sps:$4 sm:$0xff]   ;;  %v16717_v1 = vld [vmem:[#allocation2 + $0x16ac] ss:$16 sps:$4 sm:$0xff]  }
 0x40e   :  { %8112 = vmatpush2.bf16.msra.mxu0 %v16673_v54  ;;  %v16720_v54 = vld [vmem:[#allocation2 + $0x18ac] ss:$16 sps:$4 sm:$0xff]  }
 0x40f   :  { %8155 = vmatpush2.bf16.msra.mxu1 %v16676_v59  ;;  %8113 = vmatprep.subr.bf16.mxu0 %v16681_v61  ;;  %v16715_v59 = vld [vmem:[#allocation2 + $0x16a8] ss:$16 sps:$4 sm:$0xff]  }
 0x410   :  { %8156 = vmatprep.subr.bf16.mxu1 %v16684_v62  ;;  %v16718_v61 = vld [vmem:[#allocation2 + $0x18a8] ss:$16 sps:$4 sm:$0xff]   ;;  %v17533_v62 = vld [vmem:[%s19140_s2 + $0x5c] ss:$136 sps:$4 sm:$0xff]  }
 0x412   :  { %8114 = vmatpush2.bf16.msra.mxu0 %v16679_v41  ;;  %v17534_v41 = vld [vmem:[%s19140_s2 + $0x64] ss:$136 sps:$4 sm:$0xff]  }
 0x413   :  { %8157 = vmatpush2.bf16.msra.mxu1 %v16682_v4  ;;  %8115 = vmatprep.subr.bf16.mxu0 %v16687_v5  ;;  %v16723_v4 = vld [vmem:[#allocation2 + $0x168c] ss:$16 sps:$4 sm:$0xff]  }
 0x414   :  { %8158 = vmatprep.subr.bf16.mxu1 %v16690_v46  ;;  %v16726_v5 = vld [vmem:[#allocation2 + $0x188c] ss:$16 sps:$4 sm:$0xff]   ;;  %v16721_v46 = vld [vmem:[#allocation2 + $0x1688] ss:$16 sps:$4 sm:$0xff]  }
 0x416   :  { %8116 = vmatpush2.bf16.msra.mxu0 %v16685_v29  ;;  %v16724_v29 = vld [vmem:[#allocation2 + $0x1888] ss:$16 sps:$4 sm:$0xff]  }
 0x417   :  { %8159 = vmatpush2.bf16.msra.mxu1 %v16688_v47  ;;  %8117 = vmatprep.subr.bf16.mxu0 %v16693_v8  ;;  %v16729_v47 = vld [vmem:[#allocation2 + $0x166c] ss:$16 sps:$4 sm:$0xff]  }
 0x418   :  { %8160 = vmatprep.subr.bf16.mxu1 %v16696_v12  ;;  %v16732_v8 = vld [vmem:[#allocation2 + $0x186c] ss:$16 sps:$4 sm:$0xff]   ;;  %v16727_v12 = vld [vmem:[#allocation2 + $0x1668] ss:$16 sps:$4 sm:$0xff]  }
 0x41a   :  { %8118 = vmatpush2.bf16.msra.mxu0 %v16691_v24  ;;  %v16730_v24 = vld [vmem:[#allocation2 + $0x1868] ss:$16 sps:$4 sm:$0xff]  }
 0x41b   :  { %8161 = vmatpush2.bf16.msra.mxu1 %v16694_v25  ;;  %8119 = vmatprep.subr.bf16.mxu0 %v16699_v32  ;;  %v16735_v25 = vld [vmem:[#allocation2 + $0x164c] ss:$16 sps:$4 sm:$0xff]  }
 0x41c   :  { %8162 = vmatprep.subr.bf16.mxu1 %v16702_v60  ;;  %v16738_v32 = vld [vmem:[#allocation2 + $0x184c] ss:$16 sps:$4 sm:$0xff]   ;;  %v16733_v60 = vld [vmem:[#allocation2 + $0x1648] ss:$16 sps:$4 sm:$0xff]  }
 0x41e   :  { %8120 = vmatpush2.bf16.msra.mxu0 %v16697_v23  ;;  %v16736_v23 = vld [vmem:[#allocation2 + $0x1848] ss:$16 sps:$4 sm:$0xff]  }
 0x41f   :  { %8163 = vmatpush2.bf16.msra.mxu1 %v16700_v31  ;;  %8175 = vmatprep.subr.bf16.mxu0 %v16705_v33  ;;  %v16741_v31 = vld [vmem:[#allocation2 + $0x162c] ss:$16 sps:$4 sm:$0xff]  }
 0x420   :  { %8218 = vmatprep.subr.bf16.mxu1 %v16708_v40  ;;  %v16744_v33 = vld [vmem:[#allocation2 + $0x182c] ss:$16 sps:$4 sm:$0xff]   ;;  %v16739_v40 = vld [vmem:[#allocation2 + $0x1628] ss:$16 sps:$4 sm:$0xff]  }
 0x421   :  { %8122 = vmatmul.mubr.bf16.vlgmr.msra.gmra.mxu0 %v17531_v50  ;;  %v16756_v50 = vld [vmem:[#allocation2 + $0x19ec] ss:$16 sps:$4 sm:$0xff]  }
 0x422   :  { %8165 = vmatmul.mubr.bf16.vlgmr.msra.gmra.mxu1 %v17532_v51  ;;  %8176 = vmatpush1.bf16.msra.mxu0 %v16703_v55  ;;  %v16742_v55 = vld [vmem:[#allocation2 + $0x1828] ss:$16 sps:$4 sm:$0xff]  }
 0x423   :  { %8219 = vmatpush1.bf16.msra.mxu1 %v16706_v42  ;;  %8177 = vmatprep.subr.bf16.mxu0 %v16711_v43  ;;  %v16747_v42 = vld [vmem:[#allocation2 + $0x160c] ss:$16 sps:$4 sm:$0xff]   ;;  %v16751_v51 = vld [vmem:[#allocation2 + $0x17e8] ss:$16 sps:$4 sm:$0xff]  }
 0x424   :  { %8220 = vmatprep.subr.bf16.mxu1 %v16714_v48  ;;  %8207 = vmatprep.mubr.bf16.mxu0 %v17533_v62  ;;  %v16750_v43 = vld [vmem:[#allocation2 + $0x180c] ss:$16 sps:$4 sm:$0xff]   ;;  %v16745_v48 = vld [vmem:[#allocation2 + $0x1608] ss:$16 sps:$4 sm:$0xff]  }
 0x425   :  { %8250 = vmatprep.mubr.bf16.mxu1 %v17534_v41  ;;  %v16760_v62 = vld [vmem:[#allocation2 + $0x19c8] ss:$16 sps:$4 sm:$0xff]   ;;  %v16765_v41 = vld [vmem:[#allocation2 + $0x17ac] ss:$16 sps:$4 sm:$0xff]  }
 0x426   :  { %8178 = vmatpush1.bf16.msra.mxu0 %v16709_v36  ;;  %v16748_v36 = vld [vmem:[#allocation2 + $0x1808] ss:$16 sps:$4 sm:$0xff]  }
 0x427   :  { %8221 = vmatpush1.bf16.msra.mxu1 %v16712_v49  ;;  %8179 = vmatprep.subr.bf16.mxu0 %v16717_v1  ;;  %v16753_v49 = vld [vmem:[#allocation2 + $0x17ec] ss:$16 sps:$4 sm:$0xff]   ;;  %v16754_v1 = vld [vmem:[#allocation2 + $0x19e8] ss:$16 sps:$4 sm:$0xff]  }
 0x428   :  { %8222 = vmatprep.subr.bf16.mxu1 %v16720_v54  ;;  %v16759_v54 = vld [vmem:[#allocation2 + $0x17cc] ss:$16 sps:$4 sm:$0xff]  }
 0x42a   :  { %8180 = vmatpush1.bf16.msra.mxu0 %v16715_v59  ;;  %v16762_v59 = vld [vmem:[#allocation2 + $0x19cc] ss:$16 sps:$4 sm:$0xff]  }
 0x42b   :  { %8223 = vmatpush1.bf16.msra.mxu1 %v16718_v61  ;;  %8181 = vmatprep.subr.bf16.mxu0 %v16723_v4  ;;  %v16757_v61 = vld [vmem:[#allocation2 + $0x17c8] ss:$16 sps:$4 sm:$0xff]   ;;  %v16768_v4 = vld [vmem:[#allocation2 + $0x19ac] ss:$16 sps:$4 sm:$0xff]  }
 0x42c   :  { %8224 = vmatprep.subr.bf16.mxu1 %v16726_v5  ;;  %v16763_v5 = vld [vmem:[#allocation2 + $0x17a8] ss:$16 sps:$4 sm:$0xff]  }
 0x42e   :  { %8182 = vmatpush1.bf16.msra.mxu0 %v16721_v46  ;;  %v16766_v46 = vld [vmem:[#allocation2 + $0x19a8] ss:$16 sps:$4 sm:$0xff]  }
 0x42f   :  { %8225 = vmatpush1.bf16.msra.mxu1 %v16724_v29  ;;  %8183 = vmatprep.subr.bf16.mxu0 %v16729_v47  ;;  %v16771_v29 = vld [vmem:[#allocation2 + $0x178c] ss:$16 sps:$4 sm:$0xff]  }
 0x430   :  { %8226 = vmatprep.subr.bf16.mxu1 %v16732_v8  ;;  %v16774_v47 = vld [vmem:[#allocation2 + $0x198c] ss:$16 sps:$4 sm:$0xff]   ;;  %v16769_v8 = vld [vmem:[#allocation2 + $0x1788] ss:$16 sps:$4 sm:$0xff]  }
 0x432   :  { %8184 = vmatpush1.bf16.msra.mxu0 %v16727_v12  ;;  %v16772_v12 = vld [vmem:[#allocation2 + $0x1988] ss:$16 sps:$4 sm:$0xff]  }
 0x433   :  { %8227 = vmatpush1.bf16.msra.mxu1 %v16730_v24  ;;  %8185 = vmatprep.subr.bf16.mxu0 %v16735_v25  ;;  %v16777_v24 = vld [vmem:[#allocation2 + $0x176c] ss:$16 sps:$4 sm:$0xff]  }
 0x434   :  { %8228 = vmatprep.subr.bf16.mxu1 %v16738_v32  ;;  %v16780_v25 = vld [vmem:[#allocation2 + $0x196c] ss:$16 sps:$4 sm:$0xff]   ;;  %v16775_v32 = vld [vmem:[#allocation2 + $0x1768] ss:$16 sps:$4 sm:$0xff]  }
 0x436   :  { %8186 = vmatpush1.bf16.msra.mxu0 %v16733_v60  ;;  %v16778_v60 = vld [vmem:[#allocation2 + $0x1968] ss:$16 sps:$4 sm:$0xff]  }
 0x437   :  { %8229 = vmatpush1.bf16.msra.mxu1 %v16736_v23  ;;  %8187 = vmatprep.subr.bf16.mxu0 %v16741_v31  ;;  %v16783_v23 = vld [vmem:[#allocation2 + $0x174c] ss:$16 sps:$4 sm:$0xff]  }
 0x438   :  { %8230 = vmatprep.subr.bf16.mxu1 %v16744_v33  ;;  %v16786_v31 = vld [vmem:[#allocation2 + $0x194c] ss:$16 sps:$4 sm:$0xff]   ;;  %v16781_v33 = vld [vmem:[#allocation2 + $0x1748] ss:$16 sps:$4 sm:$0xff]  }
 0x43a   :  { %8188 = vmatpush1.bf16.msra.mxu0 %v16739_v40  ;;  %v16784_v40 = vld [vmem:[#allocation2 + $0x1948] ss:$16 sps:$4 sm:$0xff]  }
 0x43b   :  { %8231 = vmatpush1.bf16.msra.mxu1 %v16742_v55  ;;  %8189 = vmatprep.subr.bf16.mxu0 %v16747_v42  ;;  %v16789_v55 = vld [vmem:[#allocation2 + $0x172c] ss:$16 sps:$4 sm:$0xff]  }
 0x43c   :  { %8232 = vmatprep.subr.bf16.mxu1 %v16750_v43  ;;  %v16792_v42 = vld [vmem:[#allocation2 + $0x192c] ss:$16 sps:$4 sm:$0xff]   ;;  %v16787_v43 = vld [vmem:[#allocation2 + $0x1728] ss:$16 sps:$4 sm:$0xff]  }
 0x43e   :  { %8190 = vmatpush1.bf16.msra.mxu0 %v16745_v48  ;;  %v16790_v48 = vld [vmem:[#allocation2 + $0x1928] ss:$16 sps:$4 sm:$0xff]  }
 0x43f   :  { %8233 = vmatpush1.bf16.msra.mxu1 %v16748_v36  ;;  %8191 = vmatprep.subr.bf16.mxu0 %v16753_v49  ;;  %v16795_v36 = vld [vmem:[#allocation2 + $0x170c] ss:$16 sps:$4 sm:$0xff]  }
 0x440   :  { %8234 = vmatprep.subr.bf16.mxu1 %v16756_v50  ;;  %v16798_v49 = vld [vmem:[#allocation2 + $0x190c] ss:$16 sps:$4 sm:$0xff]   ;;  %v16793_v50 = vld [vmem:[#allocation2 + $0x1708] ss:$16 sps:$4 sm:$0xff]  }
 0x442   :  { %8192 = vmatpush2.bf16.msra.mxu0 %v16751_v51  ;;  %v16796_v51 = vld [vmem:[#allocation2 + $0x1908] ss:$16 sps:$4 sm:$0xff]  }
 0x443   :  { %8235 = vmatpush2.bf16.msra.mxu1 %v16754_v1  ;;  %8193 = vmatprep.subr.bf16.mxu0 %v16759_v54  ;;  %v16801_v1 = vld [vmem:[#allocation2 + $0x1aec] ss:$16 sps:$4 sm:$0xff]  }
 0x444   :  { %8236 = vmatprep.subr.bf16.mxu1 %v16762_v59  ;;  %v16804_v54 = vld [vmem:[#allocation2 + $0x1cec] ss:$16 sps:$4 sm:$0xff]   ;;  %v16799_v59 = vld [vmem:[#allocation2 + $0x1ae8] ss:$16 sps:$4 sm:$0xff]  }
 0x446   :  { %8194 = vmatpush2.bf16.msra.mxu0 %v16757_v61  ;;  %v16802_v61 = vld [vmem:[#allocation2 + $0x1ce8] ss:$16 sps:$4 sm:$0xff]  }
 0x447   :  { %8237 = vmatpush2.bf16.msra.mxu1 %v16760_v62  ;;  %8195 = vmatprep.subr.bf16.mxu0 %v16765_v41  ;;  %v16807_v62 = vld [vmem:[#allocation2 + $0x1acc] ss:$16 sps:$4 sm:$0xff]  }
 0x448   :  { %8238 = vmatprep.subr.bf16.mxu1 %v16768_v4  ;;  %v16810_v41 = vld [vmem:[#allocation2 + $0x1ccc] ss:$16 sps:$4 sm:$0xff]   ;;  %v16805_v4 = vld [vmem:[#allocation2 + $0x1ac8] ss:$16 sps:$4 sm:$0xff]  }
 0x44a   :  { %8196 = vmatpush2.bf16.msra.mxu0 %v16763_v5  ;;  %v16808_v5 = vld [vmem:[#allocation2 + $0x1cc8] ss:$16 sps:$4 sm:$0xff]  }
 0x44b   :  { %8239 = vmatpush2.bf16.msra.mxu1 %v16766_v46  ;;  %8197 = vmatprep.subr.bf16.mxu0 %v16771_v29  ;;  %v17535_v46 = vld [vmem:[%s19140_s2 + $0x58] ss:$136 sps:$4 sm:$0xff]  }
 0x44c   :  { %8240 = vmatprep.subr.bf16.mxu1 %v16774_v47  ;;  %v17536_v29 = vld [vmem:[%s19140_s2 + $0x60] ss:$136 sps:$4 sm:$0xff]   ;;  %v16813_v47 = vld [vmem:[#allocation2 + $0x1aac] ss:$16 sps:$4 sm:$0xff]  }
 0x44e   :  { %8198 = vmatpush2.bf16.msra.mxu0 %v16769_v8  ;;  %v16816_v8 = vld [vmem:[#allocation2 + $0x1cac] ss:$16 sps:$4 sm:$0xff]  }
 0x44f   :  { %8241 = vmatpush2.bf16.msra.mxu1 %v16772_v12  ;;  %8199 = vmatprep.subr.bf16.mxu0 %v16777_v24  ;;  %v16811_v12 = vld [vmem:[#allocation2 + $0x1aa8] ss:$16 sps:$4 sm:$0xff]  }
 0x450   :  { %8242 = vmatprep.subr.bf16.mxu1 %v16780_v25  ;;  %v16814_v24 = vld [vmem:[#allocation2 + $0x1ca8] ss:$16 sps:$4 sm:$0xff]   ;;  %v17537_v25 = vld [vmem:[%s19140_s2 + $0x6c] ss:$136 sps:$4 sm:$0xff]  }
 0x452   :  { %8200 = vmatpush2.bf16.msra.mxu0 %v16775_v32  ;;  %v17538_v32 = vld [vmem:[%s19140_s2 + $0x74] ss:$136 sps:$4 sm:$0xff]  }
 0x453   :  { %8243 = vmatpush2.bf16.msra.mxu1 %v16778_v60  ;;  %8201 = vmatprep.subr.bf16.mxu0 %v16783_v23  ;;  %v16819_v60 = vld [vmem:[#allocation2 + $0x1a8c] ss:$16 sps:$4 sm:$0xff]  }
 0x454   :  { %8244 = vmatprep.subr.bf16.mxu1 %v16786_v31  ;;  %v16822_v23 = vld [vmem:[#allocation2 + $0x1c8c] ss:$16 sps:$4 sm:$0xff]   ;;  %v16817_v31 = vld [vmem:[#allocation2 + $0x1a88] ss:$16 sps:$4 sm:$0xff]  }
 0x456   :  { %8202 = vmatpush2.bf16.msra.mxu0 %v16781_v33  ;;  %v16820_v33 = vld [vmem:[#allocation2 + $0x1c88] ss:$16 sps:$4 sm:$0xff]  }
 0x457   :  { %8245 = vmatpush2.bf16.msra.mxu1 %v16784_v40  ;;  %8203 = vmatprep.subr.bf16.mxu0 %v16789_v55  ;;  %v16825_v40 = vld [vmem:[#allocation2 + $0x1a6c] ss:$16 sps:$4 sm:$0xff]  }
 0x458   :  { %8246 = vmatprep.subr.bf16.mxu1 %v16792_v42  ;;  %v16828_v55 = vld [vmem:[#allocation2 + $0x1c6c] ss:$16 sps:$4 sm:$0xff]   ;;  %v16823_v42 = vld [vmem:[#allocation2 + $0x1a68] ss:$16 sps:$4 sm:$0xff]  }
 0x45a   :  { %8204 = vmatpush2.bf16.msra.mxu0 %v16787_v43  ;;  %v16826_v43 = vld [vmem:[#allocation2 + $0x1c68] ss:$16 sps:$4 sm:$0xff]  }
 0x45b   :  { %8247 = vmatpush2.bf16.msra.mxu1 %v16790_v48  ;;  %8205 = vmatprep.subr.bf16.mxu0 %v16795_v36  ;;  %v16831_v48 = vld [vmem:[#allocation2 + $0x1a4c] ss:$16 sps:$4 sm:$0xff]  }
 0x45c   :  { %8248 = vmatprep.subr.bf16.mxu1 %v16798_v49  ;;  %v16834_v36 = vld [vmem:[#allocation2 + $0x1c4c] ss:$16 sps:$4 sm:$0xff]   ;;  %v16829_v49 = vld [vmem:[#allocation2 + $0x1a48] ss:$16 sps:$4 sm:$0xff]  }
 0x45e   :  { %8206 = vmatpush2.bf16.msra.mxu0 %v16793_v50  ;;  %v16832_v50 = vld [vmem:[#allocation2 + $0x1c48] ss:$16 sps:$4 sm:$0xff]  }
 0x45f   :  { %8249 = vmatpush2.bf16.msra.mxu1 %v16796_v51  ;;  %8261 = vmatprep.subr.bf16.mxu0 %v16801_v1  ;;  %v16837_v51 = vld [vmem:[#allocation2 + $0x1a2c] ss:$16 sps:$4 sm:$0xff]  }
 0x460   :  { %8304 = vmatprep.subr.bf16.mxu1 %v16804_v54  ;;  %v16840_v1 = vld [vmem:[#allocation2 + $0x1c2c] ss:$16 sps:$4 sm:$0xff]   ;;  %v16835_v54 = vld [vmem:[#allocation2 + $0x1a28] ss:$16 sps:$4 sm:$0xff]  }
 0x461   :  { %8208 = vmatmul.mubr.bf16.vlgmr.msra.gmra.mxu0 %v17535_v46  ;;  %v16852_v46 = vld [vmem:[#allocation2 + $0x1dec] ss:$16 sps:$4 sm:$0xff]  }
 0x462   :  { %8251 = vmatmul.mubr.bf16.vlgmr.msra.gmra.mxu1 %v17536_v29  ;;  %8262 = vmatpush1.bf16.msra.mxu0 %v16799_v59  ;;  %v16838_v59 = vld [vmem:[#allocation2 + $0x1c28] ss:$16 sps:$4 sm:$0xff]  }
 0x463   :  { %8305 = vmatpush1.bf16.msra.mxu1 %v16802_v61  ;;  %8263 = vmatprep.subr.bf16.mxu0 %v16807_v62  ;;  %v16843_v61 = vld [vmem:[#allocation2 + $0x1a0c] ss:$16 sps:$4 sm:$0xff]   ;;  %v16847_v29 = vld [vmem:[#allocation2 + $0x1be8] ss:$16 sps:$4 sm:$0xff]  }
 0x464   :  { %8306 = vmatprep.subr.bf16.mxu1 %v16810_v41  ;;  %8293 = vmatprep.mubr.bf16.mxu0 %v17537_v25  ;;  %v16846_v62 = vld [vmem:[#allocation2 + $0x1c0c] ss:$16 sps:$4 sm:$0xff]   ;;  %v16841_v41 = vld [vmem:[#allocation2 + $0x1a08] ss:$16 sps:$4 sm:$0xff]  }
 0x465   :  { %8336 = vmatprep.mubr.bf16.mxu1 %v17538_v32  ;;  %v16856_v25 = vld [vmem:[#allocation2 + $0x1dc8] ss:$16 sps:$4 sm:$0xff]   ;;  %v16861_v32 = vld [vmem:[#allocation2 + $0x1bac] ss:$16 sps:$4 sm:$0xff]  }
 0x466   :  { %8264 = vmatpush1.bf16.msra.mxu0 %v16805_v4  ;;  %v16844_v4 = vld [vmem:[#allocation2 + $0x1c08] ss:$16 sps:$4 sm:$0xff]  }
 0x467   :  { %8307 = vmatpush1.bf16.msra.mxu1 %v16808_v5  ;;  %8265 = vmatprep.subr.bf16.mxu0 %v16813_v47  ;;  %v16849_v5 = vld [vmem:[#allocation2 + $0x1bec] ss:$16 sps:$4 sm:$0xff]   ;;  %v16850_v47 = vld [vmem:[#allocation2 + $0x1de8] ss:$16 sps:$4 sm:$0xff]  }
 0x468   :  { %8308 = vmatprep.subr.bf16.mxu1 %v16816_v8  ;;  %v16855_v8 = vld [vmem:[#allocation2 + $0x1bcc] ss:$16 sps:$4 sm:$0xff]  }
 0x46a   :  { %8266 = vmatpush1.bf16.msra.mxu0 %v16811_v12  ;;  %v16858_v12 = vld [vmem:[#allocation2 + $0x1dcc] ss:$16 sps:$4 sm:$0xff]  }
 0x46b   :  { %8309 = vmatpush1.bf16.msra.mxu1 %v16814_v24  ;;  %8267 = vmatprep.subr.bf16.mxu0 %v16819_v60  ;;  %v16853_v24 = vld [vmem:[#allocation2 + $0x1bc8] ss:$16 sps:$4 sm:$0xff]   ;;  %v16864_v60 = vld [vmem:[#allocation2 + $0x1dac] ss:$16 sps:$4 sm:$0xff]  }
 0x46c   :  { %8310 = vmatprep.subr.bf16.mxu1 %v16822_v23  ;;  %v16859_v23 = vld [vmem:[#allocation2 + $0x1ba8] ss:$16 sps:$4 sm:$0xff]  }
 0x46e   :  { %8268 = vmatpush1.bf16.msra.mxu0 %v16817_v31  ;;  %v16862_v31 = vld [vmem:[#allocation2 + $0x1da8] ss:$16 sps:$4 sm:$0xff]  }
 0x46f   :  { %8311 = vmatpush1.bf16.msra.mxu1 %v16820_v33  ;;  %8269 = vmatprep.subr.bf16.mxu0 %v16825_v40  ;;  %v16867_v33 = vld [vmem:[#allocation2 + $0x1b8c] ss:$16 sps:$4 sm:$0xff]  }
 0x470   :  { %8312 = vmatprep.subr.bf16.mxu1 %v16828_v55  ;;  %v16870_v40 = vld [vmem:[#allocation2 + $0x1d8c] ss:$16 sps:$4 sm:$0xff]   ;;  %v16865_v55 = vld [vmem:[#allocation2 + $0x1b88] ss:$16 sps:$4 sm:$0xff]  }
 0x472   :  { %8270 = vmatpush1.bf16.msra.mxu0 %v16823_v42  ;;  %v16868_v42 = vld [vmem:[#allocation2 + $0x1d88] ss:$16 sps:$4 sm:$0xff]  }
 0x473   :  { %8313 = vmatpush1.bf16.msra.mxu1 %v16826_v43  ;;  %8271 = vmatprep.subr.bf16.mxu0 %v16831_v48  ;;  %v16873_v43 = vld [vmem:[#allocation2 + $0x1b6c] ss:$16 sps:$4 sm:$0xff]  }
 0x474   :  { %8314 = vmatprep.subr.bf16.mxu1 %v16834_v36  ;;  %v16876_v48 = vld [vmem:[#allocation2 + $0x1d6c] ss:$16 sps:$4 sm:$0xff]   ;;  %v16871_v36 = vld [vmem:[#allocation2 + $0x1b68] ss:$16 sps:$4 sm:$0xff]  }
 0x476   :  { %8272 = vmatpush1.bf16.msra.mxu0 %v16829_v49  ;;  %v16874_v49 = vld [vmem:[#allocation2 + $0x1d68] ss:$16 sps:$4 sm:$0xff]  }
 0x477   :  { %8315 = vmatpush1.bf16.msra.mxu1 %v16832_v50  ;;  %8273 = vmatprep.subr.bf16.mxu0 %v16837_v51  ;;  %v16879_v50 = vld [vmem:[#allocation2 + $0x1b4c] ss:$16 sps:$4 sm:$0xff]  }
 0x478   :  { %8316 = vmatprep.subr.bf16.mxu1 %v16840_v1  ;;  %v16882_v51 = vld [vmem:[#allocation2 + $0x1d4c] ss:$16 sps:$4 sm:$0xff]   ;;  %v16877_v1 = vld [vmem:[#allocation2 + $0x1b48] ss:$16 sps:$4 sm:$0xff]  }
 0x47a   :  { %8274 = vmatpush1.bf16.msra.mxu0 %v16835_v54  ;;  %v16880_v54 = vld [vmem:[#allocation2 + $0x1d48] ss:$16 sps:$4 sm:$0xff]  }
 0x47b   :  { %8317 = vmatpush1.bf16.msra.mxu1 %v16838_v59  ;;  %8275 = vmatprep.subr.bf16.mxu0 %v16843_v61  ;;  %v16885_v59 = vld [vmem:[#allocation2 + $0x1b2c] ss:$16 sps:$4 sm:$0xff]  }
 0x47c   :  { %8318 = vmatprep.subr.bf16.mxu1 %v16846_v62  ;;  %v16888_v61 = vld [vmem:[#allocation2 + $0x1d2c] ss:$16 sps:$4 sm:$0xff]   ;;  %v16883_v62 = vld [vmem:[#allocation2 + $0x1b28] ss:$16 sps:$4 sm:$0xff]  }
 0x47e   :  { %8276 = vmatpush1.bf16.msra.mxu0 %v16841_v41  ;;  %v16886_v41 = vld [vmem:[#allocation2 + $0x1d28] ss:$16 sps:$4 sm:$0xff]  }
 0x47f   :  { %8319 = vmatpush1.bf16.msra.mxu1 %v16844_v4  ;;  %8277 = vmatprep.subr.bf16.mxu0 %v16849_v5  ;;  %v16891_v4 = vld [vmem:[#allocation2 + $0x1b0c] ss:$16 sps:$4 sm:$0xff]  }
 0x480   :  { %8320 = vmatprep.subr.bf16.mxu1 %v16852_v46  ;;  %v16894_v5 = vld [vmem:[#allocation2 + $0x1d0c] ss:$16 sps:$4 sm:$0xff]   ;;  %v16889_v46 = vld [vmem:[#allocation2 + $0x1b08] ss:$16 sps:$4 sm:$0xff]  }
 0x482   :  { %8278 = vmatpush2.bf16.msra.mxu0 %v16847_v29  ;;  %v16892_v29 = vld [vmem:[#allocation2 + $0x1d08] ss:$16 sps:$4 sm:$0xff]  }
 0x483   :  { %8321 = vmatpush2.bf16.msra.mxu1 %v16850_v47  ;;  %8279 = vmatprep.subr.bf16.mxu0 %v16855_v8  ;;  %v16897_v47 = vld [vmem:[#allocation2 + $0x1eec] ss:$16 sps:$4 sm:$0xff]  }
 0x484   :  { %8322 = vmatprep.subr.bf16.mxu1 %v16858_v12  ;;  %v16900_v8 = vld [vmem:[#allocation2 + $0x20ec] ss:$16 sps:$4 sm:$0xff]   ;;  %v16895_v12 = vld [vmem:[#allocation2 + $0x1ee8] ss:$16 sps:$4 sm:$0xff]  }
 0x486   :  { %8280 = vmatpush2.bf16.msra.mxu0 %v16853_v24  ;;  %v16898_v24 = vld [vmem:[#allocation2 + $0x20e8] ss:$16 sps:$4 sm:$0xff]  }
 0x487   :  { %8323 = vmatpush2.bf16.msra.mxu1 %v16856_v25  ;;  %8281 = vmatprep.subr.bf16.mxu0 %v16861_v32  ;;  %v16903_v25 = vld [vmem:[#allocation2 + $0x1ecc] ss:$16 sps:$4 sm:$0xff]  }
 0x488   :  { %8324 = vmatprep.subr.bf16.mxu1 %v16864_v60  ;;  %v16906_v32 = vld [vmem:[#allocation2 + $0x20cc] ss:$16 sps:$4 sm:$0xff]   ;;  %v17539_v60 = vld [vmem:[%s19140_s2 + $0x68] ss:$136 sps:$4 sm:$0xff]  }
 0x48a   :  { %8282 = vmatpush2.bf16.msra.mxu0 %v16859_v23  ;;  %v17540_v23 = vld [vmem:[%s19140_s2 + $0x70] ss:$136 sps:$4 sm:$0xff]  }
 0x48b   :  { %8325 = vmatpush2.bf16.msra.mxu1 %v16862_v31  ;;  %8283 = vmatprep.subr.bf16.mxu0 %v16867_v33  ;;  %v18295_v31 = vsub.s32 1, %v18024_v11  ;;  %v16901_v33 = vld [vmem:[#allocation2 + $0x1ec8] ss:$16 sps:$4 sm:$0xff]  }
 0x48c   :  { %8326 = vmatprep.subr.bf16.mxu1 %v16870_v40  ;;  %v16904_v40 = vld [vmem:[#allocation2 + $0x20c8] ss:$16 sps:$4 sm:$0xff]  }
 0x48e   :  { %8284 = vmatpush2.bf16.msra.mxu0 %v16865_v55  ;;  %v16909_v55 = vld [vmem:[#allocation2 + $0x1eac] ss:$16 sps:$4 sm:$0xff]  }
 0x48f   :  { %8327 = vmatpush2.bf16.msra.mxu1 %v16868_v42  ;;  %8285 = vmatprep.subr.bf16.mxu0 %v16873_v43  ;;  %v16912_v42 = vld [vmem:[#allocation2 + $0x20ac] ss:$16 sps:$4 sm:$0xff]  }
 0x490   :  { %8328 = vmatprep.subr.bf16.mxu1 %v16876_v48  ;;  %v17541_v43 = vld [vmem:[%s19140_s2 + $0x7c] ss:$136 sps:$4 sm:$0xff]  }
 0x491   :  { %v17542_v48 = vld [vmem:[%s19140_s2 + $0x84] ss:$136 sps:$4 sm:$0xff]  }
 0x492   :  { %8286 = vmatpush2.bf16.msra.mxu0 %v16871_v36  ;;  %v18303_v36 = vld [vmem:[#allocation4] sm:$0xf] }
 0x493   :  { %8329 = vmatpush2.bf16.msra.mxu1 %v16874_v49  ;;  %8287 = vmatprep.subr.bf16.mxu0 %v16879_v50  ;;  %v1348_v49 = vrot.slane %v18303_v36, %v18295_v31  ;;  %v16907_v50 = vld [vmem:[#allocation2 + $0x1ea8] ss:$16 sps:$4 sm:$0xff]  }
 0x494   :  { %8330 = vmatprep.subr.bf16.mxu1 %v16882_v51  ;;  %v16910_v51 = vld [vmem:[#allocation2 + $0x20a8] ss:$16 sps:$4 sm:$0xff]  }
 0x496   :  { %8288 = vmatpush2.bf16.msra.mxu0 %v16877_v1  ;;  %v16915_v1 = vld [vmem:[#allocation2 + $0x1e8c] ss:$16 sps:$4 sm:$0xff]  }
 0x497   :  { %8331 = vmatpush2.bf16.msra.mxu1 %v16880_v54  ;;  %8289 = vmatprep.subr.bf16.mxu0 %v16885_v59  ;;  %v16918_v54 = vld [vmem:[#allocation2 + $0x208c] ss:$16 sps:$4 sm:$0xff]   ;;  %v7012_v59 = vadd.f32 %v18056_v44, %v1348_v49  ;;  %v16922_v44 = vld [vmem:[#allocation2 + $0x2068] ss:$16 sps:$4 sm:$0xff]  }
 0x498   :  { %8332 = vmatprep.subr.bf16.mxu1 %v16888_v61  ;;  %v7008_v61 = vadd.f32 %v18042_v34, %v1348_v49  ;;  %v16927_v34 = vld [vmem:[#allocation2 + $0x1e4c] ss:$16 sps:$4 sm:$0xff]  }
 0x499   :  { %v16948_v49 = vld [vmem:[#allocation2 + $0x21ec] ss:$16 sps:$4 sm:$0xff]  }
 0x49a   :  { %8290 = vmatpush2.bf16.msra.mxu0 %v16883_v62  ;;  %v16913_v62 = vld [vmem:[#allocation2 + $0x1e88] ss:$16 sps:$4 sm:$0xff]  }
 0x49b   :  { %8333 = vmatpush2.bf16.msra.mxu1 %v16886_v41  ;;  %8291 = vmatprep.subr.bf16.mxu0 %v16891_v4  ;;  %v16916_v41 = vld [vmem:[#allocation2 + $0x2088] ss:$16 sps:$4 sm:$0xff]   ;;  %v16921_v4 = vld [vmem:[#allocation2 + $0x1e6c] ss:$16 sps:$4 sm:$0xff]  }
 0x49c   :  { %8334 = vmatprep.subr.bf16.mxu1 %v16894_v5  ;;  %v16924_v5 = vld [vmem:[#allocation2 + $0x206c] ss:$16 sps:$4 sm:$0xff]  }
 0x49e   :  { %8292 = vmatpush2.bf16.msra.mxu0 %v16889_v46  ;;  %v7055_v46 = vadd.f32 %v18058_v45, %v7012_v59  ;;  %v16928_v45 = vld [vmem:[#allocation2 + $0x2048] ss:$16 sps:$4 sm:$0xff]  }
 0x49f   :  { %8335 = vmatpush2.bf16.msra.mxu1 %v16892_v29  ;;  %8347 = vmatprep.subr.bf16.mxu0 %v16897_v47  ;;  %v7051_v29 = vadd.f32 %v18044_v35, %v7008_v61  ;;  %v16933_v35 = vld [vmem:[#allocation2 + $0x1e2c] ss:$16 sps:$4 sm:$0xff]  }
 0x4a0   :  { %8390 = vmatprep.subr.bf16.mxu1 %v16900_v8  ;;  %v7098_v47 = vadd.f32 %v18082_v6, %v7055_v46  ;;  %v16919_v8 = vld [vmem:[#allocation2 + $0x1e68] ss:$16 sps:$4 sm:$0xff]   ;;  %v16936_v6 = vld [vmem:[#allocation2 + $0x202c] ss:$16 sps:$4 sm:$0xff]  }
 0x4a1   :  { %8294 = vmatmul.mubr.bf16.vlgmr.msra.gmra.mxu0 %v17539_v60 }
 0x4a2   :  { %8337 = vmatmul.mubr.bf16.vlgmr.msra.gmra.mxu1 %v17540_v23  ;;  %8348 = vmatpush1.bf16.msra.mxu0 %v16895_v12  ;;  %v16930_v12 = vld [vmem:[#allocation2 + $0x204c] ss:$16 sps:$4 sm:$0xff]  }
 0x4a3   :  { %8391 = vmatpush1.bf16.msra.mxu1 %v16898_v24  ;;  %8349 = vmatprep.subr.bf16.mxu0 %v16903_v25  ;;  %v7094_v24 = vadd.f32 %v18067_v56, %v7051_v29  ;;  %v7141_v25 = vadd.f32 %v18084_v7, %v7098_v47  ;;  %v16934_v56 = vld [vmem:[#allocation2 + $0x2028] ss:$16 sps:$4 sm:$0xff]   ;;  %v16939_v7 = vld [vmem:[#allocation2 + $0x1e0c] ss:$16 sps:$4 sm:$0xff]  }
 0x4a4   :  { %8392 = vmatprep.subr.bf16.mxu1 %v16906_v32  ;;  %8379 = vmatprep.mubr.bf16.mxu0 %v17541_v43  ;;  %v16925_v32 = vld [vmem:[#allocation2 + $0x1e48] ss:$16 sps:$4 sm:$0xff]   ;;  %v16966_v29 = vld [vmem:[#allocation2 + $0x218c] ss:$16 sps:$4 sm:$0xff]  }
 0x4a5   :  { %8422 = vmatprep.mubr.bf16.mxu1 %v17542_v48  ;;  %v7137_v60 = vadd.f32 %v18069_v57, %v7094_v24  ;;  %v7184_v23 = vadd.f32 %v18108_v37, %v7141_v25  ;;  %v16937_v57 = vld [vmem:[#allocation2 + $0x1e08] ss:$16 sps:$4 sm:$0xff]  }
 0x4a6   :  { %8350 = vmatpush1.bf16.msra.mxu0 %v16901_v33  ;;  %v16940_v37 = vld [vmem:[#allocation2 + $0x2008] ss:$16 sps:$4 sm:$0xff]  }
 0x4a7   :  { %8393 = vmatpush1.bf16.msra.mxu1 %v16904_v40  ;;  %8351 = vmatprep.subr.bf16.mxu0 %v16909_v55  ;;  %v7180_v33 = vadd.f32 %v18093_v18, %v7137_v60  ;;  %v16931_v40 = vld [vmem:[#allocation2 + $0x1e28] ss:$16 sps:$4 sm:$0xff]   ;;  %v16942_v55 = vld [vmem:[#allocation2 + $0x200c] ss:$16 sps:$4 sm:$0xff]  }
 0x4a8   :  { %8394 = vmatprep.subr.bf16.mxu1 %v16912_v42  ;;  %v7227_v42 = vadd.f32 %v18110_v39, %v7184_v23  ;;  %v16945_v18 = vld [vmem:[#allocation2 + $0x1fec] ss:$16 sps:$4 sm:$0xff]   ;;  %v16946_v39 = vld [vmem:[#allocation2 + $0x21e8] ss:$16 sps:$4 sm:$0xff]  }
 0x4a9   :  { %v7223_v43 = vadd.f32 %v18095_v19, %v7180_v33  ;;  %v16951_v19 = vld [vmem:[#allocation2 + $0x1fcc] ss:$16 sps:$4 sm:$0xff]   ;;  %v16967_v25 = vld [vmem:[#allocation2 + $0x1f68] ss:$16 sps:$4 sm:$0xff]   ;;  %v7656_v33 = vpop.f32.mrf.mxu1 }
 0x4aa   :  { %8352 = vmatpush1.bf16.msra.mxu0 %v16907_v50  ;;  %v7270_v48 = vadd.f32 %v18134_v14, %v7227_v42  ;;  %v16954_v14 = vld [vmem:[#allocation2 + $0x21cc] ss:$16 sps:$4 sm:$0xff]  }
 0x4ab   :  { %8395 = vmatpush1.bf16.msra.mxu1 %v16910_v51  ;;  %8353 = vmatprep.subr.bf16.mxu0 %v16915_v1  ;;  %v7266_v50 = vadd.f32 %v18119_v52, %v7223_v43  ;;  %v16943_v1 = vld [vmem:[#allocation2 + $0x1fe8] ss:$16 sps:$4 sm:$0xff]   ;;  %v16984_v60 = vld [vmem:[#allocation2 + $0x212c] ss:$16 sps:$4 sm:$0xff]  }
 0x4ac   :  { %8396 = vmatprep.subr.bf16.mxu1 %v16918_v54  ;;  %v7313_v51 = vadd.f32 %v18136_v15, %v7270_v48  ;;  %v16952_v52 = vld [vmem:[#allocation2 + $0x21c8] ss:$16 sps:$4 sm:$0xff]   ;;  %v16957_v15 = vld [vmem:[#allocation2 + $0x1fac] ss:$16 sps:$4 sm:$0xff]  }
 0x4ad   :  { %v7309_v54 = vadd.f32 %v18121_v53, %v7266_v50  ;;  %v16955_v53 = vld [vmem:[#allocation2 + $0x1fa8] ss:$16 sps:$4 sm:$0xff]  }
 0x4ae   :  { %8354 = vmatpush1.bf16.msra.mxu0 %v16913_v62  ;;  %v7356_v59 = vadd.f32 %v18157_v38, %v7313_v51  ;;  %v16949_v62 = vld [vmem:[#allocation2 + $0x1fc8] ss:$16 sps:$4 sm:$0xff]  }
 0x4af   :  { %8397 = vmatpush1.bf16.msra.mxu1 %v16916_v41  ;;  %8355 = vmatprep.subr.bf16.mxu0 %v16921_v4  ;;  %v7352_v61 = vadd.f32 %v18142_v27, %v7309_v54  ;;  %v16960_v41 = vld [vmem:[#allocation2 + $0x21ac] ss:$16 sps:$4 sm:$0xff]   ;;  %v16958_v38 = vld [vmem:[#allocation2 + $0x21a8] ss:$16 sps:$4 sm:$0xff]   ;;  %v17000_v54 = vld [vmem:[#allocation6 + $0x80] ss:$16 sps:$4 sm:$0xff]  }
 0x4b0   :  { %8398 = vmatprep.subr.bf16.mxu1 %v16924_v5  ;;  %v7399_v4 = vadd.f32 %v18159_v2, %v7356_v59  ;;  %v16963_v27 = vld [vmem:[#allocation2 + $0x1f8c] ss:$16 sps:$4 sm:$0xff]   ;;  %v16964_v2 = vld [vmem:[#allocation2 + $0x2188] ss:$16 sps:$4 sm:$0xff]   ;;  %v17087_v59 = vld [vmem:[#allocation6 + $0x2e0] ss:$16 sps:$4 sm:$0xff]  }
 0x4b1   :  { %v7395_v5 = vadd.f32 %v18144_v28, %v7352_v61  ;;  %v16969_v28 = vld [vmem:[#allocation2 + $0x1f6c] ss:$16 sps:$4 sm:$0xff]   ;;  %v16985_v48 = vld [vmem:[#allocation2 + $0x1f08] ss:$16 sps:$4 sm:$0xff]  }
 0x4b2   :  { %8356 = vmatpush1.bf16.msra.mxu0 %v16919_v8  ;;  %v7442_v46 = vadd.f32 %v18180_v63, %v7399_v4  ;;  %v16972_v63 = vld [vmem:[#allocation2 + $0x216c] ss:$16 sps:$4 sm:$0xff]   ;;  %v16996_v50 = vld [vmem:[#allocation6 + $0xc4] ss:$16 sps:$4 sm:$0xff]  }
 0x4b3   :  { %8399 = vmatpush1.bf16.msra.mxu1 %v16922_v44  ;;  %8357 = vmatprep.subr.bf16.mxu0 %v16927_v34  ;;  %v7438_v47 = vadd.f32 %v18165_v13, %v7395_v5  ;;  %v16961_v44 = vld [vmem:[#allocation2 + $0x1f88] ss:$16 sps:$4 sm:$0xff]  }
 0x4b4   :  { %8400 = vmatprep.subr.bf16.mxu1 %v16930_v12  ;;  %v7485_v8 = vadd.f32 %v18182_v22, %v7442_v46  ;;  %v16970_v13 = vld [vmem:[#allocation2 + $0x2168] ss:$16 sps:$4 sm:$0xff]   ;;  %v16975_v22 = vld [vmem:[#allocation2 + $0x1f4c] ss:$16 sps:$4 sm:$0xff]   ;;  %v17093_v46 = vld [vmem:[#allocation6 + $0x2a0] ss:$16 sps:$4 sm:$0xff]  }
 0x4b5   :  { %v7481_v34 = vadd.f32 %v18167_v16, %v7438_v47  ;;  %v16973_v16 = vld [vmem:[#allocation2 + $0x1f48] ss:$16 sps:$4 sm:$0xff]   ;;  %v17009_v47 = vld [vmem:[#allocation6 + $0x20] ss:$16 sps:$4 sm:$0xff]  }
 0x4b6   :  { %8358 = vmatpush1.bf16.msra.mxu0 %v16925_v32  ;;  %v7528_v12 = vadd.f32 %v18206_v9, %v7485_v8  ;;  %v16978_v32 = vld [vmem:[#allocation2 + $0x214c] ss:$16 sps:$4 sm:$0xff]   ;;  %v16976_v9 = vld [vmem:[#allocation2 + $0x2148] ss:$16 sps:$4 sm:$0xff]  }
 0x4b7   :  { %8401 = vmatpush1.bf16.msra.mxu1 %v16928_v45  ;;  %8359 = vmatprep.subr.bf16.mxu0 %v16933_v35  ;;  %v7524_v24 = vadd.f32 %v18191_v20, %v7481_v34  ;;  %v16981_v20 = vld [vmem:[#allocation2 + $0x1f2c] ss:$16 sps:$4 sm:$0xff]   ;;  %v17089_v61 = vld [vmem:[#allocation6 + $0x2e4] ss:$16 sps:$4 sm:$0xff]  }
 0x4b8   :  { %8402 = vmatprep.subr.bf16.mxu1 %v16936_v6  ;;  %v7571_v45 = vadd.f32 %v18208_v10, %v7528_v12  ;;  %v16979_v10 = vld [vmem:[#allocation2 + $0x1f28] ss:$16 sps:$4 sm:$0xff]   ;;  %v17102_v12 = vld [vmem:[#allocation6 + $0x240] ss:$16 sps:$4 sm:$0xff]  }
 0x4b9   :  { %v7567_v35 = vadd.f32 %v18193_v21, %v7524_v24  ;;  %v16987_v21 = vld [vmem:[#allocation2 + $0x1f0c] ss:$16 sps:$4 sm:$0xff]   ;;  %v17095_v4 = vld [vmem:[#allocation6 + $0x2a4] ss:$16 sps:$4 sm:$0xff]   ;;  %v17015_v24 = vld [vmem:[#allocation6 + $0x1e0] ss:$16 sps:$4 sm:$0xff]  }
 0x4ba   :  { %8360 = vmatpush1.bf16.msra.mxu0 %v16931_v40  ;;  %v7614_v6 = vadd.f32 %v18232_v26, %v7571_v45  ;;  %v7699_v40 = vpop.f32.mrf.mxu0  ;;  %v16990_v26 = vld [vmem:[#allocation2 + $0x210c] ss:$16 sps:$4 sm:$0xff]   ;;  %v17008_v5 = vld [vmem:[#allocation6 + $0x44] ss:$16 sps:$4 sm:$0xff]  }
 0x4bb   :  { %8403 = vmatpush1.bf16.msra.mxu1 %v16934_v56  ;;  %8361 = vmatprep.subr.bf16.mxu0 %v16939_v7  ;;  %v7610_v23 = vadd.f32 %v18217_v3, %v7567_v35  ;;  %v16982_v7 = vld [vmem:[#allocation2 + $0x2128] ss:$16 sps:$4 sm:$0xff]  }
 0x4bc   :  { %8404 = vmatprep.subr.bf16.mxu1 %v16942_v55  ;;  %v7657_v56 = vadd.f32 %v7656_v33, %v7614_v6  ;;  %v16988_v3 = vld [vmem:[#allocation2 + $0x2108] ss:$16 sps:$4 sm:$0xff]   ;;  %v17108_v6 = vld [vmem:[#allocation6 + $0x200] ss:$16 sps:$4 sm:$0xff]  }
 0x4bd   :  { %v7653_v55 = vadd.f32 %v18219_v58, %v7610_v23  ;;  %v17544_v58 = vld [vmem:[%s19140_s2 + $0x78] ss:$136 sps:$4 sm:$0xff]   ;;  %v17024_v23 = vld [vmem:[#allocation6 + $0x180] ss:$16 sps:$4 sm:$0xff]  }
 0x4be   :  { %8362 = vmatpush1.bf16.msra.mxu0 %v16937_v57  ;;  %v7700_v42 = vadd.f32 %v7699_v40, %v7657_v56  ;;  %v16993_v57 = vld [vmem:[#allocation6 + $0xe4] ss:$16 sps:$4 sm:$0xff]   ;;  %v17114_v56 = vld [vmem:[#allocation6 + $0x3c0] ss:$16 sps:$4 sm:$0xff]  }
 0x4bf   :  { %8405 = vmatpush1.bf16.msra.mxu1 %v16940_v37  ;;  %8363 = vmatprep.subr.bf16.mxu0 %v16945_v18  ;;  %v7696_v43 = vadd.f32 %v18241_v0, %v7653_v55  ;;  %v17545_v0 = vld [vmem:[%s19140_s2 + $0x80] ss:$136 sps:$4 sm:$0xff]   ;;  %v17030_v55 = vld [vmem:[#allocation6 + $0x140] ss:$16 sps:$4 sm:$0xff]  }
 0x4c0   :  { %8406 = vmatprep.subr.bf16.mxu1 %v16948_v49  ;;  %v8438_v37 = vmax.f32 %v7700_v42, 0.0  ;;  %v16991_v49 = vld [vmem:[#allocation6 + $0xe0] ss:$16 sps:$4 sm:$0xff]   ;;  %v17101_v8 = vld [vmem:[#allocation6 + $0x264] ss:$16 sps:$4 sm:$0xff]  }
 0x4c1   :  { %v8434_v18 = vmax.f32 %v7696_v43, 0.0  ;;  %v17017_v34 = vld [vmem:[#allocation6 + $0x1e4] ss:$16 sps:$4 sm:$0xff]  }
 0x4c2   :  { %8364 = vmatpush2.bf16.msra.mxu0 %v16943_v1  ;;  %v16994_v1 = vld [vmem:[#allocation6 + $0xc0] ss:$16 sps:$4 sm:$0xff]   ;;  %v17110_v45 = vld [vmem:[#allocation6 + $0x204] ss:$16 sps:$4 sm:$0xff]  }
 0x4c3   :  { %8407 = vmatpush2.bf16.msra.mxu1 %v16946_v39  ;;  %8365 = vmatprep.subr.bf16.mxu0 %v16951_v19  ;;  %v18339_v51 = vpack.c.bf16 %v8438_v37, %v8434_v18  ;;  %v16999_v39 = vld [vmem:[#allocation6 + $0xa4] ss:$16 sps:$4 sm:$0xff]   ;;  %v16997_v19 = vld [vmem:[#allocation6 + $0xa0] ss:$16 sps:$4 sm:$0xff]  }
 0x4c4   :  { %8408 = vmatprep.subr.bf16.mxu1 %v16954_v14  ;;  %v17002_v14 = vld [vmem:[#allocation6 + $0x84] ss:$16 sps:$4 sm:$0xff]   ;;  %v17123_v18 = vld [vmem:[#allocation6 + $0x360] ss:$16 sps:$4 sm:$0xff]  }
 0x4c5   :  { %v17023_v35 = vld [vmem:[#allocation6 + $0x1a4] ss:$16 sps:$4 sm:$0xff]  }
 0x4c6   :  { %8366 = vmatpush2.bf16.msra.mxu0 %v16949_v62  ;;  %v17005_v62 = vld [vmem:[#allocation6 + $0x64] ss:$16 sps:$4 sm:$0xff]  }
 0x4c7   :  { %8409 = vmatpush2.bf16.msra.mxu1 %v16952_v52  ;;  %8367 = vmatprep.subr.bf16.mxu0 %v16957_v15  ;;  %v17092_v52 = vld [vmem:[#allocation6 + $0x2c4] ss:$16 sps:$4 sm:$0xff]   ;;  %v17090_v15 = vld [vmem:[#allocation6 + $0x2c0] ss:$16 sps:$4 sm:$0xff]  }
 0x4c8   :  { %8410 = vmatprep.subr.bf16.mxu1 %v16960_v41  ;;  %v17003_v41 = vld [vmem:[#allocation6 + $0x60] ss:$16 sps:$4 sm:$0xff]   ;;  %v17116_v33 = vld [vmem:[#allocation6 + $0x3c4] ss:$16 sps:$4 sm:$0xff]  }
 0x4c9   :  { %v17029_v40 = vld [vmem:[#allocation6 + $0x164] ss:$16 sps:$4 sm:$0xff]  }
 0x4ca   :  { %8368 = vmatpush2.bf16.msra.mxu0 %v16955_v53  ;;  %v17006_v53 = vld [vmem:[#allocation6 + $0x40] ss:$16 sps:$4 sm:$0xff]   ;;  %v17122_v42 = vld [vmem:[#allocation6 + $0x384] ss:$16 sps:$4 sm:$0xff]  }
 0x4cb   :  { %8411 = vmatpush2.bf16.msra.mxu1 %v16958_v38  ;;  %8369 = vmatprep.subr.bf16.mxu0 %v16963_v27  ;;  %v17098_v38 = vld [vmem:[#allocation6 + $0x284] ss:$16 sps:$4 sm:$0xff]  }
 0x4cc   :  { %8412 = vmatprep.subr.bf16.mxu1 %v16966_v29  ;;  %v17011_v27 = vld [vmem:[#allocation6 + $0x24] ss:$16 sps:$4 sm:$0xff]   ;;  %v17096_v29 = vld [vmem:[#allocation6 + $0x280] ss:$16 sps:$4 sm:$0xff]  }
 0x4cd   :  { %v17035_v43 = vld [vmem:[#allocation6 + $0x124] ss:$16 sps:$4 sm:$0xff]  }
 0x4ce   :  { %8370 = vmatpush2.bf16.msra.mxu0 %v16961_v44  ;;  %v17014_v44 = vld [vmem:[#allocation6 + $0x4] ss:$16 sps:$4 sm:$0xff]  }
 0x4cf   :  { %8413 = vmatpush2.bf16.msra.mxu1 %v16964_v2  ;;  %8371 = vmatprep.subr.bf16.mxu0 %v16969_v28  ;;  %v17099_v2 = vld [vmem:[#allocation6 + $0x260] ss:$16 sps:$4 sm:$0xff]   ;;  %v17038_v37 = vld [vmem:[#allocation6 + $0x104] ss:$16 sps:$4 sm:$0xff]  }
 0x4d0   :  { %8414 = vmatprep.subr.bf16.mxu1 %v16972_v63  ;;  %v17012_v28 = vld [vmem:[#allocation6] ss:$16 sps:$4 sm:$0xff]   ;;  %v17104_v63 = vld [vmem:[#allocation6 + $0x244] ss:$16 sps:$4 sm:$0xff]  }
 0x4d2   :  { %8372 = vmatpush2.bf16.msra.mxu0 %v16967_v25  ;;  %v17107_v25 = vld [vmem:[#allocation6 + $0x224] ss:$16 sps:$4 sm:$0xff]  }
 0x4d3   :  { %8415 = vmatpush2.bf16.msra.mxu1 %v16970_v13  ;;  %8373 = vmatprep.subr.bf16.mxu0 %v16975_v22  ;;  %v17020_v13 = vld [vmem:[#allocation6 + $0x1c4] ss:$16 sps:$4 sm:$0xff]   ;;  %v17105_v22 = vld [vmem:[#allocation6 + $0x220] ss:$16 sps:$4 sm:$0xff]  }
 0x4d4   :  { %8416 = vmatprep.subr.bf16.mxu1 %v16978_v32  ;;  %v17018_v32 = vld [vmem:[#allocation6 + $0x1c0] ss:$16 sps:$4 sm:$0xff]  }
 0x4d6   :  { %8374 = vmatpush2.bf16.msra.mxu0 %v16973_v16  ;;  %v17021_v16 = vld [vmem:[#allocation6 + $0x1a0] ss:$16 sps:$4 sm:$0xff]  }
 0x4d7   :  { %8417 = vmatpush2.bf16.msra.mxu1 %v16976_v9  ;;  %8375 = vmatprep.subr.bf16.mxu0 %v16981_v20  ;;  %v17113_v9 = vld [vmem:[#allocation6 + $0x3e4] ss:$16 sps:$4 sm:$0xff]  }
 0x4d8   :  { %8418 = vmatprep.subr.bf16.mxu1 %v16984_v60  ;;  %v17026_v20 = vld [vmem:[#allocation6 + $0x184] ss:$16 sps:$4 sm:$0xff]   ;;  %v17111_v60 = vld [vmem:[#allocation6 + $0x3e0] ss:$16 sps:$4 sm:$0xff]  }
 0x4da   :  { %8376 = vmatpush2.bf16.msra.mxu0 %v16979_v10  ;;  %v17027_v10 = vld [vmem:[#allocation6 + $0x160] ss:$16 sps:$4 sm:$0xff]  }
 0x4db   :  { %8419 = vmatpush2.bf16.msra.mxu1 %v16982_v7  ;;  %8377 = vmatprep.subr.bf16.mxu0 %v16987_v21  ;;  %v17119_v7 = vld [vmem:[#allocation6 + $0x3a4] ss:$16 sps:$4 sm:$0xff]  }
 0x4dc   :  { %8420 = vmatprep.subr.bf16.mxu1 %v16990_v26  ;;  %v17032_v21 = vld [vmem:[#allocation6 + $0x144] ss:$16 sps:$4 sm:$0xff]   ;;  %v17117_v26 = vld [vmem:[#allocation6 + $0x3a0] ss:$16 sps:$4 sm:$0xff]  }
 0x4de   :  { %8378 = vmatpush2.bf16.msra.mxu0 %v16985_v48  ;;  %v17120_v48 = vld [vmem:[#allocation6 + $0x380] ss:$16 sps:$4 sm:$0xff]  }
 0x4df   :  { %8421 = vmatpush2.bf16.msra.mxu1 %v16988_v3  ;;  %9235 = vmatprep.subr.bf16.mxu0 %v16993_v57  ;;  %v17033_v3 = vld [vmem:[#allocation6 + $0x120] ss:$16 sps:$4 sm:$0xff]   ;;  %v17125_v57 = vld [vmem:[#allocation6 + $0x364] ss:$16 sps:$4 sm:$0xff]  }
 0x4e0   :  { %9278 = vmatprep.subr.bf16.mxu1 %v17089_v61  ;;  %v17050_v61 = vld [vmem:[#allocation6 + $0x8c] ss:$16 sps:$4 sm:$0xff]  }
 0x4e1   :  { %8380 = vmatmul.mubr.bf16.vlgmr.msra.gmra.mxu0 %v17544_v58  ;;  %v17039_v58 = vld [vmem:[#allocation6 + $0xe8] ss:$16 sps:$4 sm:$0xff]  }
 0x4e2   :  { %8423 = vmatmul.mubr.bf16.vlgmr.msra.gmra.mxu1 %v17545_v0  ;;  %9236 = vmatpush1.bf16.msra.mxu0 %v16991_v49  ;;  %v17036_v49 = vld [vmem:[#allocation6 + $0x100] ss:$16 sps:$4 sm:$0xff]   ;;  %v17044_v0 = vld [vmem:[#allocation6 + $0xcc] ss:$16 sps:$4 sm:$0xff]  }
 0x4e3   :  { %9267 = vmatprep.mubr.bf16.mxu0 %v18339_v51  ;;  %9237 = vmatprep.subr.bf16.mxu0 %v16996_v50  ;;  %v17041_v50 = vld [vmem:[#allocation6 + $0xec] ss:$16 sps:$4 sm:$0xff]  }
 0x4e4   :  { %9279 = vmatpush1.bf16.msra.mxu1 %v17087_v59  ;;  %v17131_v59 = vld [vmem:[#allocation6 + $0x324] ss:$16 sps:$4 sm:$0xff]  }
 0x4e5   :  { %9280 = vmatprep.subr.bf16.mxu1 %v17092_v52  ;;  %v17048_v52 = vld [vmem:[#allocation6 + $0x88] ss:$16 sps:$4 sm:$0xff]  }
 0x4e6   :  { %9238 = vmatpush1.bf16.msra.mxu0 %v16994_v1  ;;  %v17042_v1 = vld [vmem:[#allocation6 + $0xc8] ss:$16 sps:$4 sm:$0xff]  }
 0x4e7   :  { %9239 = vmatprep.subr.bf16.mxu0 %v16999_v39  ;;  %v17128_v39 = vld [vmem:[#allocation6 + $0x344] ss:$16 sps:$4 sm:$0xff]  }
 0x4e8   :  { %9281 = vmatpush1.bf16.msra.mxu1 %v17090_v15  ;;  %v17134_v15 = vld [vmem:[#allocation6 + $0x304] ss:$16 sps:$4 sm:$0xff]  }
 0x4e9   :  { %9282 = vmatprep.subr.bf16.mxu1 %v17095_v4  ;;  %v17051_v4 = vld [vmem:[#allocation6 + $0x68] ss:$16 sps:$4 sm:$0xff]  }
 0x4ea   :  { %9240 = vmatpush1.bf16.msra.mxu0 %v16997_v19  ;;  %v17047_v19 = vld [vmem:[#allocation6 + $0xac] ss:$16 sps:$4 sm:$0xff]  }
 0x4eb   :  { %9241 = vmatprep.subr.bf16.mxu0 %v17002_v14  ;;  %v17126_v14 = vld [vmem:[#allocation6 + $0x340] ss:$16 sps:$4 sm:$0xff]  }
 0x4ec   :  { %9283 = vmatpush1.bf16.msra.mxu1 %v17093_v46  ;;  %v17056_v46 = vld [vmem:[#allocation6 + $0x4c] ss:$16 sps:$4 sm:$0xff]  }
 0x4ed   :  { %9284 = vmatprep.subr.bf16.mxu1 %v17098_v38  ;;  %v17054_v38 = vld [vmem:[#allocation6 + $0x48] ss:$16 sps:$4 sm:$0xff]  }
 0x4ee   :  { %9242 = vmatpush1.bf16.msra.mxu0 %v17000_v54  ;;  %v17045_v54 = vld [vmem:[#allocation6 + $0xa8] ss:$16 sps:$4 sm:$0xff]  }
 0x4ef   :  { %9243 = vmatprep.subr.bf16.mxu0 %v17005_v62  ;;  %v17129_v62 = vld [vmem:[#allocation6 + $0x320] ss:$16 sps:$4 sm:$0xff]  }
 0x4f0   :  { %9285 = vmatpush1.bf16.msra.mxu1 %v17096_v29 }
 0x4f1   :  { %9286 = vmatprep.subr.bf16.mxu1 %v17101_v8  ;;  %v17062_v8 = vld [vmem:[#allocation6 + $0xc] ss:$16 sps:$4 sm:$0xff]  }
 0x4f2   :  { %9244 = vmatpush1.bf16.msra.mxu0 %v17003_v41  ;;  %v17132_v41 = vld [vmem:[#allocation6 + $0x300] ss:$16 sps:$4 sm:$0xff]  }
 0x4f3   :  { %9245 = vmatprep.subr.bf16.mxu0 %v17008_v5  ;;  %v17137_v5 = vld [vmem:[#allocation6 + $0x2ec] ss:$16 sps:$4 sm:$0xff]  }
 0x4f4   :  { %9287 = vmatpush1.bf16.msra.mxu1 %v17099_v2  ;;  %v17060_v2 = vld [vmem:[#allocation6 + $0x8] ss:$16 sps:$4 sm:$0xff]  }
 0x4f5   :  { %9288 = vmatprep.subr.bf16.mxu1 %v17104_v63 }
 0x4f6   :  { %9246 = vmatpush1.bf16.msra.mxu0 %v17006_v53  ;;  %v18350_v53 = vpop.f32.mrf.mxu1 }
 0x4f7   :  { %9247 = vmatprep.subr.bf16.mxu0 %v17011_v27  ;;  %v17059_v27 = vld [vmem:[#allocation6 + $0x2c] ss:$16 sps:$4 sm:$0xff]  }
 0x4f8   :  { %9289 = vmatpush1.bf16.msra.mxu1 %v17102_v12  ;;  %v18352_v29 = vpop.f32.mrf.mxu1  ;;  %v18358_v12 = vpop.f32.mrf.mxu0 }
 0x4f9   :  { %9290 = vmatprep.subr.bf16.mxu1 %v17107_v25  ;;  %v17068_v25 = vld [vmem:[#allocation6 + $0x1cc] ss:$16 sps:$4 sm:$0xff]  }
 0x4fa   :  { %9248 = vmatpush1.bf16.msra.mxu0 %v17009_v47  ;;  %v17057_v47 = vld [vmem:[#allocation6 + $0x28] ss:$16 sps:$4 sm:$0xff]  }
 0x4fb   :  { %9249 = vmatprep.subr.bf16.mxu0 %v17014_v44  ;;  %v18354_v44 = vpop.f32.mrf.mxu1 }
 0x4fc   :  { %9291 = vmatpush1.bf16.msra.mxu1 %v17105_v22  ;;  %v18362_v22 = vpop.f32.mrf.mxu0 }
 0x4fd   :  { %9292 = vmatprep.subr.bf16.mxu1 %v17110_v45  ;;  %v18356_v63 = vpop.f32.mrf.mxu1  ;;  %v17071_v45 = vld [vmem:[#allocation6 + $0x1ac] ss:$16 sps:$4 sm:$0xff]  }
 0x4fe   :  { %9250 = vmatpush1.bf16.msra.mxu0 %v17012_v28  ;;  %v17065_v28 = vld [vmem:[#allocation6 + $0x1ec] ss:$16 sps:$4 sm:$0xff]  }
 0x4ff   :  { %9251 = vmatprep.subr.bf16.mxu0 %v17017_v34  ;;  %v17063_v34 = vld [vmem:[#allocation6 + $0x1e8] ss:$16 sps:$4 sm:$0xff]  }
 0x500   :  { %9293 = vmatpush1.bf16.msra.mxu1 %v17108_v6  ;;  %v18366_v6 = vpop.f32.mrf.mxu0 }
 0x501   :  { %9294 = vmatprep.subr.bf16.mxu1 %v17113_v9  ;;  %v17074_v9 = vld [vmem:[#allocation6 + $0x18c] ss:$16 sps:$4 sm:$0xff]  }
 0x502   :  { %9252 = vmatpush2.bf16.msra.mxu0 %v17015_v24  ;;  %v18360_v24 = vpop.f32.mrf.mxu1 }
 0x503   :  { %9253 = vmatprep.subr.bf16.mxu0 %v17020_v13  ;;  %v17066_v13 = vld [vmem:[#allocation6 + $0x1c8] ss:$16 sps:$4 sm:$0xff]  }
 0x504   :  { %9295 = vmatpush2.bf16.msra.mxu1 %v17111_v60  ;;  %v7785_v60 = vpop.f32.mrf.mxu0 }
 0x505   :  { %9296 = vmatprep.subr.bf16.mxu1 %v17116_v33  ;;  %v17077_v33 = vld [vmem:[#allocation6 + $0x16c] ss:$16 sps:$4 sm:$0xff]  }
 0x506   :  { %9254 = vmatpush2.bf16.msra.mxu0 %v17018_v32  ;;  %v18364_v32 = vpop.f32.mrf.mxu1 }
 0x507   :  { %9255 = vmatprep.subr.bf16.mxu0 %v17023_v35  ;;  %v17069_v35 = vld [vmem:[#allocation6 + $0x1a8] ss:$16 sps:$4 sm:$0xff]  }
 0x508   :  { %9297 = vmatpush2.bf16.msra.mxu1 %v17114_v56 }
 0x509   :  { %9298 = vmatprep.subr.bf16.mxu1 %v17119_v7  ;;  %v17080_v7 = vld [vmem:[#allocation6 + $0x14c] ss:$16 sps:$4 sm:$0xff]  }
 0x50a   :  { %9256 = vmatpush2.bf16.msra.mxu0 %v17021_v16  ;;  %v18368_v16 = vpop.f32.mrf.mxu1 }
 0x50b   :  { %9257 = vmatprep.subr.bf16.mxu0 %v17026_v20  ;;  %v17072_v20 = vld [vmem:[#allocation6 + $0x188] ss:$16 sps:$4 sm:$0xff]  }
 0x50c   :  { %9299 = vmatpush2.bf16.msra.mxu1 %v17117_v26 }
 0x50d   :  { %9300 = vmatprep.subr.bf16.mxu1 %v17122_v42  ;;  %v17083_v42 = vld [vmem:[#allocation6 + $0x12c] ss:$16 sps:$4 sm:$0xff]  }
 0x50e   :  { %9258 = vmatpush2.bf16.msra.mxu0 %v17024_v23  ;;  %v18370_v23 = vpop.f32.mrf.mxu1 }
 0x50f   :  { %9259 = vmatprep.subr.bf16.mxu0 %v17029_v40  ;;  %v18372_v40 = vpop.f32.mrf.mxu0 }
 0x510   :  { %9301 = vmatpush2.bf16.msra.mxu1 %v17120_v48  ;;  %v18374_v56 = vpop.f32.mrf.mxu1 }
 0x511   :  { %9302 = vmatprep.subr.bf16.mxu1 %v17125_v57  ;;  %v17086_v57 = vld [vmem:[#allocation6 + $0x10c] ss:$16 sps:$4 sm:$0xff]  }
 0x512   :  { %9260 = vmatpush2.bf16.msra.mxu0 %v17027_v10  ;;  %v17075_v10 = vld [vmem:[#allocation6 + $0x168] ss:$16 sps:$4 sm:$0xff]   ;;  %v7910_v26 = vpop.f32.mrf.mxu1 }
 0x513   :  { %9261 = vmatprep.subr.bf16.mxu0 %v17032_v21  ;;  %v7867_v21 = vpop.f32.mrf.mxu0 }
 0x514   :  { %9303 = vmatpush2.bf16.msra.mxu1 %v17123_v18  ;;  %v7912_v48 = vpop.f32.mrf.mxu1 }
 0x515   :  { %9304 = vmatprep.subr.bf16.mxu1 %v17128_v39 }
 0x516   :  { %9262 = vmatpush2.bf16.msra.mxu0 %v17030_v55  ;;  %v17078_v55 = vld [vmem:[#allocation6 + $0x148] ss:$16 sps:$4 sm:$0xff]   ;;  %v7914_v18 = vpop.f32.mrf.mxu1 }
 0x517   :  { %9263 = vmatprep.subr.bf16.mxu0 %v17035_v43  ;;  %v7869_v43 = vpop.f32.mrf.mxu0 }
 0x518   :  { %9305 = vmatpush2.bf16.msra.mxu1 %v17126_v14 }
 0x519   :  { %9306 = vmatprep.subr.bf16.mxu1 %v17131_v59 }
 0x51a   :  { %9264 = vmatpush2.bf16.msra.mxu0 %v17033_v3  ;;  %v17081_v3 = vld [vmem:[#allocation6 + $0x128] ss:$16 sps:$4 sm:$0xff]  }
 0x51b   :  { %9265 = vmatprep.subr.bf16.mxu0 %v17038_v37  ;;  %v7871_v37 = vpop.f32.mrf.mxu0 }
 0x51c   :  { %9307 = vmatpush2.bf16.msra.mxu1 %v17129_v62 }
 0x51d   :  { %9308 = vmatprep.subr.bf16.mxu1 %v17134_v15  ;;  %v18378_v15 = vsub.s32 3, %v18024_v11 }
 0x51e   :  { %9266 = vmatpush2.bf16.msra.mxu0 %v17036_v49  ;;  %v17084_v49 = vld [vmem:[#allocation6 + $0x108] ss:$16 sps:$4 sm:$0xff]  }
 0x51f   :  { %9321 = vmatprep.subr.bf16.mxu0 %v17041_v50  ;;  %v7951_v50 = vpop.f32.mrf.mxu0 }
 0x520   :  { %9309 = vmatpush2.bf16.msra.mxu1 %v17132_v41 }
 0x521   :  { %9268 = vmatmul.mubr.bf16.vlgmr.msra.gmra.mxu0 %v18250_v30  ;;  %9364 = vmatprep.subr.bf16.mxu1 %v17137_v5  ;;  %v1356_v5 = vrot.slane %v18303_v36, %v18378_v15 }
 0x522   :  { %9322 = vmatpush1.bf16.msra.mxu0 %v17039_v58  ;;  %9353 = vmatprep.mubr.bf16.mxu0 %v18339_v51  ;;  %v17053_v51 = vld [vmem:[#allocation6 + $0x6c] ss:$16 sps:$4 sm:$0xff]   ;;  %v7994_v58 = vpop.f32.mrf.mxu1 }
 0x523   :  { %9323 = vmatprep.subr.bf16.mxu0 %v17044_v0  ;;  %v7953_v0 = vpop.f32.mrf.mxu0 }
 0x525   :  { %v7955_v39 = vpop.f32.mrf.mxu0 }
 0x526   :  { %9324 = vmatpush1.bf16.msra.mxu0 %v17042_v1  ;;  %v7996_v1 = vpop.f32.mrf.mxu1 }
 0x527   :  { %9325 = vmatprep.subr.bf16.mxu0 %v17047_v19  ;;  %v7957_v14 = vpop.f32.mrf.mxu0 }
 0x528   :  { %v7998_v19 = vpop.f32.mrf.mxu1 }
 0x529   :  { %v8037_v59 = vpop.f32.mrf.mxu0 }
 0x52a   :  { %9326 = vmatpush1.bf16.msra.mxu0 %v17045_v54  ;;  %v8000_v54 = vpop.f32.mrf.mxu1 }
 0x52b   :  { %9327 = vmatprep.subr.bf16.mxu0 %v17050_v61  ;;  %v8039_v62 = vpop.f32.mrf.mxu0 }
 0x52c   :  { %v8080_v61 = vpop.f32.mrf.mxu1 }
 0x52d   :  { %v8041_v41 = vpop.f32.mrf.mxu0 }
 0x52e   :  { %9328 = vmatpush1.bf16.msra.mxu0 %v17048_v52  ;;  %v8082_v52 = vpop.f32.mrf.mxu1 }
 0x52f   :  { %9329 = vmatprep.subr.bf16.mxu0 %v17053_v51  ;;  %v18381_v51 = vsub.s32 2, %v18024_v11 }
 0x532   :  { %9330 = vmatpush1.bf16.msra.mxu0 %v17051_v4  ;;  %v8084_v4 = vpop.f32.mrf.mxu1 }
 0x533   :  { %9331 = vmatprep.subr.bf16.mxu0 %v17056_v46  ;;  %v8043_v46 = vpop.f32.mrf.mxu0 }
 0x536   :  { %9332 = vmatpush1.bf16.msra.mxu0 %v17054_v38  ;;  %v8086_v38 = vpop.f32.mrf.mxu1 }
 0x537   :  { %9333 = vmatprep.subr.bf16.mxu0 %v17059_v27  ;;  %v8123_v27 = vpop.f32.mrf.mxu0 }
 0x53a   :  { %9334 = vmatpush1.bf16.msra.mxu0 %v17057_v47  ;;  %v8166_v47 = vpop.f32.mrf.mxu1 }
 0x53b   :  { %9335 = vmatprep.subr.bf16.mxu0 %v17062_v8  ;;  %v7739_v8 = vadd.f32 %v18352_v29, %v1356_v5 }
 0x53d   :  { %v7782_v11 = vadd.f32 %v18362_v22, %v7739_v8 }
 0x53e   :  { %9336 = vmatpush1.bf16.msra.mxu0 %v17060_v2 }
 0x53f   :  { %9337 = vmatprep.subr.bf16.mxu0 %v17065_v28 }
 0x542   :  { %9338 = vmatpush2.bf16.msra.mxu0 %v17063_v34 }
 0x543   :  { %9339 = vmatprep.subr.bf16.mxu0 %v17068_v25  ;;  %v8125_v25 = vpop.f32.mrf.mxu0 }
 0x545   :  { %v8127_v29 = vpop.f32.mrf.mxu0 }
 0x546   :  { %9340 = vmatpush2.bf16.msra.mxu0 %v17066_v13  ;;  %v8168_v13 = vpop.f32.mrf.mxu1 }
 0x547   :  { %9341 = vmatprep.subr.bf16.mxu0 %v17071_v45  ;;  %v7743_v45 = vadd.f32 %v18356_v63, %v1356_v5 }
 0x54a   :  { %9342 = vmatpush2.bf16.msra.mxu0 %v17069_v35  ;;  %v7825_v35 = vadd.f32 %v18364_v32, %v7782_v11 }
 0x54b   :  { %9343 = vmatprep.subr.bf16.mxu0 %v17074_v9  ;;  %v7786_v9 = vadd.f32 %v7785_v60, %v7743_v45 }
 0x54e   :  { %9344 = vmatpush2.bf16.msra.mxu0 %v17072_v20 }
 0x54f   :  { %9345 = vmatprep.subr.bf16.mxu0 %v17077_v33  ;;  %v8170_v33 = vpop.f32.mrf.mxu1 }
 0x552   :  { %9346 = vmatpush2.bf16.msra.mxu0 %v17075_v10 }
 0x553   :  { %9347 = vmatprep.subr.bf16.mxu0 %v17080_v7  ;;  %v8129_v7 = vpop.f32.mrf.mxu0 }
 0x555   :  { %v8209_v32 = vpop.f32.mrf.mxu0 }
 0x556   :  { %9348 = vmatpush2.bf16.msra.mxu0 %v17078_v55  ;;  %v8172_v55 = vpop.f32.mrf.mxu1 }
 0x557   :  { %9349 = vmatprep.subr.bf16.mxu0 %v17083_v42 }
 0x558   :  { %v8252_v60 = vpop.f32.mrf.mxu1 }
 0x55a   :  { %9350 = vmatpush2.bf16.msra.mxu0 %v17081_v3 }
 0x55b   :  { %9351 = vmatprep.subr.bf16.mxu0 %v17086_v57 }
 0x55e   :  { %9352 = vmatpush2.bf16.msra.mxu0 %v17084_v49 }
 0x561   :  { %9354 = vmatmul.mubr.bf16.vlgmr.msra.gmra.mxu0 %v18250_v30  ;;  %v1352_v30 = vrot.slane %v18303_v36, %v18381_v51 }
 0x563   :  { %v7737_v2 = vadd.f32 %v18350_v53, %v1352_v30  ;;  %v7741_v28 = vadd.f32 %v18354_v44, %v1352_v30  ;;  %v7868_v44 = vadd.f32 %v7867_v21, %v7825_v35  ;;  %v8254_v21 = vpop.f32.mrf.mxu1 }
 0x565   :  { %v7780_v34 = vadd.f32 %v18358_v12, %v7737_v2  ;;  %v7784_v36 = vadd.f32 %v18366_v6, %v7741_v28  ;;  %v7829_v12 = vadd.f32 %v18370_v23, %v7786_v9  ;;  %v7911_v63 = vadd.f32 %v7910_v26, %v7868_v44  ;;  %v8256_v26 = vpop.f32.mrf.mxu1 }
 0x567   :  { %v7823_v20 = vadd.f32 %v18360_v24, %v7780_v34  ;;  %v7827_v53 = vadd.f32 %v18368_v16, %v7784_v36  ;;  %v7872_v42 = vadd.f32 %v7871_v37, %v7829_v12  ;;  %v7954_v24 = vadd.f32 %v7953_v0, %v7911_v63  ;;  %v8211_v16 = vpop.f32.mrf.mxu0  ;;  %v8258_v0 = vpop.f32.mrf.mxu1 }
 0x569   :  { %v7866_v22 = vadd.f32 %v18372_v40, %v7823_v20  ;;  %v7870_v10 = vadd.f32 %v7869_v43, %v7827_v53  ;;  %v7915_v49 = vadd.f32 %v7914_v18, %v7872_v42  ;;  %v7997_v30 = vadd.f32 %v7996_v1, %v7954_v24  ;;  %v8213_v28 = vpop.f32.mrf.mxu0  ;;  %v8338_v35 = vpop.f32.mrf.mxu1 }
 0x56b   :  { %v7909_v6 = vadd.f32 %v18374_v56, %v7866_v22  ;;  %v7913_v3 = vadd.f32 %v7912_v48, %v7870_v10  ;;  %v7958_v40 = vadd.f32 %v7957_v14, %v7915_v49  ;;  %v8040_v43 = vadd.f32 %v8039_v62, %v7997_v30  ;;  %v8215_v48 = vpop.f32.mrf.mxu0  ;;  %v8340_v9 = vpop.f32.mrf.mxu1 }
 0x56d   :  { %v7952_v57 = vadd.f32 %v7951_v50, %v7909_v6  ;;  %v7956_v5 = vadd.f32 %v7955_v39, %v7913_v3  ;;  %v8001_v37 = vadd.f32 %v8000_v54, %v7958_v40  ;;  %v8083_v56 = vadd.f32 %v8082_v52, %v8040_v43  ;;  %v8295_v36 = vpop.f32.mrf.mxu0  ;;  %v8342_v53 = vpop.f32.mrf.mxu1  ;;  %v17185_v43 = vld [vmem:[#allocation12 + $0x70] sm:$0xff]  }
 0x56f   :  { %v7995_v8 = vadd.f32 %v7994_v58, %v7952_v57  ;;  %v7999_v23 = vadd.f32 %v7998_v19, %v7956_v5  ;;  %v8044_v34 = vadd.f32 %v8043_v46, %v8001_v37  ;;  %v8126_v18 = vadd.f32 %v8125_v25, %v8083_v56 }
 0x571   :  { %v8038_v2 = vadd.f32 %v8037_v59, %v7995_v8  ;;  %v8042_v11 = vadd.f32 %v8041_v41, %v7999_v23  ;;  %v8087_v1 = vadd.f32 %v8086_v38, %v8044_v34  ;;  %v8169_v58 = vadd.f32 %v8168_v13, %v8126_v18  ;;  %v8297_v59 = vpop.f32.mrf.mxu0  ;;  %v17183_v8 = vld [vmem:[#allocation12 + $0x78] sm:$0xff]  }
 0x572   :  { %v17184_v23 = vld [vmem:[#allocation12 + $0x38] sm:$0xff]   ;;  %14747 = vmatprep.subr.bf16.mxu0 %v17183_v8  ;;  %v17203_v8 = vld [vmem:[#allocation12 + $0xe8] sm:$0xff]  }
 0x573   :  { %v8081_v45 = vadd.f32 %v8080_v61, %v8038_v2  ;;  %v8085_v50 = vadd.f32 %v8084_v4, %v8042_v11  ;;  %v8130_v19 = vadd.f32 %v8129_v7, %v8087_v1  ;;  %v8212_v54 = vadd.f32 %v8211_v16, %v8169_v58  ;;  %v8299_v61 = vpop.f32.mrf.mxu0  ;;  %14748 = vmatpush3.bf16.msra.mxu0 %v17184_v23  ;;  %v17186_v11 = vld [vmem:[#allocation12 + $0x30] sm:$0xff]   ;;  %v17204_v23 = vld [vmem:[#allocation12 + $0xa8] sm:$0xff]  }
 0x574   :  { %14749 = vmatprep.subr.bf16.mxu0 %v17185_v43  ;;  %v17143_v1 = vld [vmem:[#allocation6 + $0x2ac] ss:$16 sps:$4 sm:$0xff]  }
 0x575   :  { %v8124_v39 = vadd.f32 %v8123_v27, %v8081_v45  ;;  %v8128_v14 = vadd.f32 %v8127_v29, %v8085_v50  ;;  %v8173_v52 = vadd.f32 %v8172_v55, %v8130_v19  ;;  %v8255_v44 = vadd.f32 %v8254_v21, %v8212_v54  ;;  %v8301_v38 = vpop.f32.mrf.mxu0  ;;  %v8344_v29 = vpop.f32.mrf.mxu1  ;;  %v17187_v45 = vld [vmem:[#allocation12 + $0x68] sm:$0xff]   ;;  %v17146_v58 = vld [vmem:[#allocation6 + $0x28c] ss:$16 sps:$4 sm:$0xff]  }
 0x576   :  { %v17135_v50 = vld [vmem:[#allocation6 + $0x2e8] ss:$16 sps:$4 sm:$0xff]   ;;  %v17155_v54 = vld [vmem:[#allocation6 + $0x22c] ss:$16 sps:$4 sm:$0xff]  }
 0x577   :  { %v8167_v62 = vadd.f32 %v8166_v47, %v8124_v39  ;;  %v8171_v20 = vadd.f32 %v8170_v33, %v8128_v14  ;;  %v8216_v4 = vadd.f32 %v8215_v48, %v8173_v52  ;;  %v8298_v22 = vadd.f32 %v8297_v59, %v8255_v44  ;;  %v17140_v39 = vld [vmem:[#allocation6 + $0x2cc] ss:$16 sps:$4 sm:$0xff]   ;;  %14750 = vmatpush3.bf16.msra.mxu0 %v17186_v11  ;;  %v17141_v14 = vld [vmem:[#allocation6 + $0x2a8] ss:$16 sps:$4 sm:$0xff]  }
 0x578   :  { %14751 = vmatprep.subr.bf16.mxu0 %v17187_v45  ;;  %v17144_v19 = vld [vmem:[#allocation6 + $0x288] ss:$16 sps:$4 sm:$0xff]   ;;  %v17158_v52 = vld [vmem:[#allocation6 + $0x20c] ss:$16 sps:$4 sm:$0xff]  }
 0x579   :  { %v8210_v41 = vadd.f32 %v8209_v32, %v8167_v62  ;;  %v8214_v46 = vadd.f32 %v8213_v28, %v8171_v20  ;;  %v8259_v13 = vadd.f32 %v8258_v0, %v8216_v4  ;;  %v8341_v63 = vadd.f32 %v8340_v9, %v8298_v22  ;;  %v17149_v62 = vld [vmem:[#allocation6 + $0x26c] ss:$16 sps:$4 sm:$0xff]   ;;  %v17147_v59 = vld [vmem:[#allocation6 + $0x268] ss:$16 sps:$4 sm:$0xff]  }
 0x57a   :  { %v17152_v9 = vld [vmem:[#allocation6 + $0x24c] ss:$16 sps:$4 sm:$0xff]   ;;  %v17150_v20 = vld [vmem:[#allocation6 + $0x248] ss:$16 sps:$4 sm:$0xff]  }
 0x57b   :  { %v8253_v25 = vadd.f32 %v8252_v60, %v8210_v41  ;;  %v8257_v27 = vadd.f32 %v8256_v26, %v8214_v46  ;;  %v8302_v33 = vadd.f32 %v8301_v38, %v8259_v13  ;;  %v17153_v41 = vld [vmem:[#allocation6 + $0x228] ss:$16 sps:$4 sm:$0xff]   ;;  %v17164_v44 = vld [vmem:[#allocation6 + $0x3cc] ss:$16 sps:$4 sm:$0xff]  }
 0x57c   :  { %v17156_v46 = vld [vmem:[#allocation6 + $0x208] ss:$16 sps:$4 sm:$0xff]   ;;  %v17170_v22 = vld [vmem:[#allocation6 + $0x38c] ss:$16 sps:$4 sm:$0xff]  }
 0x57d   :  { %v8296_v12 = vadd.f32 %v8295_v36, %v8253_v25  ;;  %v8300_v10 = vadd.f32 %v8299_v61, %v8257_v27  ;;  %v8345_v60 = vadd.f32 %v8344_v29, %v8302_v33  ;;  %v17188_v36 = vld [vmem:[#allocation12 + $0x28] sm:$0xff]   ;;  %v17161_v61 = vld [vmem:[#allocation6 + $0x3ec] ss:$16 sps:$4 sm:$0xff]  }
 0x57e   :  { %14752 = vmatpush3.bf16.msra.mxu0 %v17188_v36  ;;  %v17162_v4 = vld [vmem:[#allocation6 + $0x3c8] ss:$16 sps:$4 sm:$0xff]   ;;  %v17167_v25 = vld [vmem:[#allocation6 + $0x3ac] ss:$16 sps:$4 sm:$0xff]  }
 0x57f   :  { %v8339_v42 = vadd.f32 %v8338_v35, %v8296_v12  ;;  %v8343_v32 = vadd.f32 %v8342_v53, %v8300_v10  ;;  %v17138_v35 = vld [vmem:[#allocation6 + $0x2c8] ss:$16 sps:$4 sm:$0xff]   ;;  %v17173_v38 = vld [vmem:[#allocation6 + $0x36c] ss:$16 sps:$4 sm:$0xff]  }
 0x580   :  { %v17159_v53 = vld [vmem:[#allocation6 + $0x3e8] ss:$16 sps:$4 sm:$0xff]   ;;  %v17176_v13 = vld [vmem:[#allocation6 + $0x34c] ss:$16 sps:$4 sm:$0xff]  }
 0x581   :  { %v17165_v27 = vld [vmem:[#allocation6 + $0x3a8] ss:$16 sps:$4 sm:$0xff]   ;;  %v17205_v43 = vld [vmem:[#allocation12 + $0xe0] sm:$0xff]   ;;  %v17210_v11 = vld [vmem:[#allocation12 + $0x90] sm:$0xff]  }
 0x582   :  { %v17168_v12 = vld [vmem:[#allocation6 + $0x388] ss:$16 sps:$4 sm:$0xff]   ;;  %v17213_v45 = vld [vmem:[#allocation12 + $0xc0] sm:$0xff]  }
 0x583   :  { %v17171_v29 = vld [vmem:[#allocation6 + $0x368] ss:$16 sps:$4 sm:$0xff]  }
 0x584   :  { %v17174_v10 = vld [vmem:[#allocation6 + $0x348] ss:$16 sps:$4 sm:$0xff]  }
 0x585   :  { %v17180_v33 = vld [vmem:[#allocation6 + $0x308] ss:$16 sps:$4 sm:$0xff]  }
 0x5a1   :  { %v8381_v47 = vpop.f32.mrf.mxu0 }
 0x5a2   :  { %v8424_v7 = vpop.f32.mrf.mxu1  ;;  %v8382_v24 = vadd.f32 %v8381_v47, %v8339_v42  ;;  %v17179_v47 = vld [vmem:[#allocation6 + $0x32c] ss:$16 sps:$4 sm:$0xff]  }
 0x5a3   :  { %v8383_v6 = vpop.f32.mrf.mxu0  ;;  %v17189_v42 = vld [vmem:[#allocation12 + $0x60] sm:$0xff]  }
 0x5a4   :  { %v8426_v55 = vpop.f32.mrf.mxu1  ;;  %v8384_v3 = vadd.f32 %v8383_v6, %v8341_v63  ;;  %v8425_v2 = vadd.f32 %v8424_v7, %v8382_v24  ;;  %v17177_v7 = vld [vmem:[#allocation6 + $0x328] ss:$16 sps:$4 sm:$0xff]   ;;  %v17182_v63 = vld [vmem:[#allocation6 + $0x30c] ss:$16 sps:$4 sm:$0xff]   ;;  %14753 = vmatprep.subr.bf16.mxu0 %v17189_v42 }
 0x5a5   :  { %v8385_v57 = vpop.f32.mrf.mxu0  ;;  %v17190_v6 = vld [vmem:[#allocation12 + $0x20] sm:$0xff]   ;;  %v17194_v24 = vld [vmem:[#allocation12 + $0x10] sm:$0xff]  }
 0x5a6   :  { %v8428_v49 = vpop.f32.mrf.mxu1  ;;  %v8386_v5 = vadd.f32 %v8385_v57, %v8343_v32  ;;  %v8427_v21 = vadd.f32 %v8426_v55, %v8384_v3  ;;  %v8435_v48 = vmax.f32 %v8425_v2, 0.0  ;;  %14754 = vmatpush3.bf16.msra.mxu0 %v17190_v6  ;;  %v17191_v55 = vld [vmem:[#allocation12 + $0x58] sm:$0xff]   ;;  %v17193_v3 = vld [vmem:[#allocation12 + $0x50] sm:$0xff]   ;;  %v17195_v57 = vld [vmem:[#allocation12 + $0x48] sm:$0xff]  }
 0x5a7   :  { %v8387_v16 = vpop.f32.mrf.mxu0  ;;  %v17192_v32 = vld [vmem:[#allocation12 + $0x18] sm:$0xff]   ;;  %14755 = vmatprep.subr.bf16.mxu0 %v17191_v55  ;;  %v17206_v2 = vld [vmem:[#allocation12 + $0xa0] sm:$0xff]  }
 0x5a8   :  { %v8429_v30 = vadd.f32 %v8428_v49, %v8386_v5  ;;  %v8388_v40 = vadd.f32 %v8387_v16, %v8345_v60  ;;  %v8430_v28 = vpop.f32.mrf.mxu1  ;;  %v8436_v56 = vmax.f32 %v8427_v21, 0.0  ;;  %v17196_v49 = vld [vmem:[#allocation12 + $0x8] sm:$0xff]   ;;  %v17197_v60 = vld [vmem:[#allocation12 + $0x40] sm:$0xff]   ;;  %v17199_v16 = vld [vmem:[#allocation12 + $0xf8] sm:$0xff]  }
 0x5a9   :  { %v17198_v5 = vld [vmem:[#allocation12] sm:$0xff]   ;;  %v17200_v21 = vld [vmem:[#allocation12 + $0xb8] sm:$0xff]  }
 0x5aa   :  { %v8431_v26 = vadd.f32 %v8430_v28, %v8388_v40  ;;  %v8439_v37 = vmax.f32 %v8429_v30, 0.0  ;;  %14756 = vmatpush3.bf16.msra.mxu0 %v17192_v32  ;;  %v17201_v30 = vld [vmem:[#allocation12 + $0xf0] sm:$0xff]   ;;  %v17207_v28 = vld [vmem:[#allocation12 + $0xd8] sm:$0xff]  }
 0x5ab   :  { %14757 = vmatprep.subr.bf16.mxu0 %v17193_v3  ;;  %v17202_v40 = vld [vmem:[#allocation12 + $0xb0] sm:$0xff]  }
 0x5ac   :  { %v8440_v34 = vmax.f32 %v8431_v26, 0.0  ;;  %v18400_v18 = vpack.c.bf16 %v8439_v37, %v8435_v48  ;;  %v17208_v26 = vld [vmem:[#allocation12 + $0x98] sm:$0xff]   ;;  %v17209_v37 = vld [vmem:[#allocation12 + $0xd0] sm:$0xff]   ;;  %v17214_v48 = vld [vmem:[#allocation12 + $0x80] sm:$0xff]  }
 0x5ae   :  { %v8444_v0 = vpack.c.bf16 %v8440_v34, %v8436_v56  ;;  %14758 = vmatpush3.bf16.msra.mxu0 %v17194_v24  ;;  %v17211_v56 = vld [vmem:[#allocation12 + $0xc8] sm:$0xff]  }
 0x5af   :  { %14759 = vmatprep.subr.bf16.mxu0 %v17195_v57  ;;  %v17212_v34 = vld [vmem:[#allocation12 + $0x88] sm:$0xff]  }
 0x5b0   :  { %9310 = vmatprep.mubr.bf16.mxu1 %v8444_v0 }
 0x5b1   :  { %9311 = vmatmul.mubr.bf16.vlgmr.msra.gmra.mxu1 %v18400_v18 }
 0x5b2   :  { %9365 = vmatpush1.bf16.msra.mxu1 %v17135_v50  ;;  %9396 = vmatprep.mubr.bf16.mxu1 %v8444_v0  ;;  %v17215_v0 = vld [vmem:[#allocation12 + $0x178] sm:$0xff]  }
 0x5b3   :  { %9366 = vmatprep.subr.bf16.mxu1 %v17140_v39  ;;  %14760 = vmatpush3.bf16.msra.mxu0 %v17196_v49 }
 0x5b4   :  { %14761 = vmatprep.subr.bf16.mxu0 %v17197_v60 }
 0x5b6   :  { %9367 = vmatpush1.bf16.msra.mxu1 %v17138_v35 }
 0x5b7   :  { %9368 = vmatprep.subr.bf16.mxu1 %v17143_v1  ;;  %14762 = vmatpush3.bf16.msra.mxu0 %v17198_v5 }
 0x5ba   :  { %9369 = vmatpush1.bf16.msra.mxu1 %v17141_v14 }
 0x5bb   :  { %9370 = vmatprep.subr.bf16.mxu1 %v17146_v58 }
 0x5be   :  { %9371 = vmatpush1.bf16.msra.mxu1 %v17144_v19 }
 0x5bf   :  { %9372 = vmatprep.subr.bf16.mxu1 %v17149_v62 }
 0x5c2   :  { %9373 = vmatpush1.bf16.msra.mxu1 %v17147_v59  ;;  %v9415_v59 = vld [vmem:[#allocation9] sm:$0xf] }
 0x5c3   :  { %9374 = vmatprep.subr.bf16.mxu1 %v17152_v9 }
 0x5c6   :  { %9375 = vmatpush1.bf16.msra.mxu1 %v17150_v20 }
 0x5c7   :  { %9376 = vmatprep.subr.bf16.mxu1 %v17155_v54 }
 0x5ca   :  { %9377 = vmatpush1.bf16.msra.mxu1 %v17153_v41 }
 0x5cb   :  { %9378 = vmatprep.subr.bf16.mxu1 %v17158_v52  ;;  %v9424_v52 = vrot.slane %v9415_v59, %v18295_v31 }
 0x5ce   :  { %9379 = vmatpush1.bf16.msra.mxu1 %v17156_v46 }
 0x5cf   :  { %9380 = vmatprep.subr.bf16.mxu1 %v17161_v61  ;;  %v9420_v61 = vrot.slane %v9415_v59, %v18027_v17 }
 0x5d2   :  { %9381 = vmatpush2.bf16.msra.mxu1 %v17159_v53 }
 0x5d3   :  { %9382 = vmatprep.subr.bf16.mxu1 %v17164_v44 }
 0x5d6   :  { %9383 = vmatpush2.bf16.msra.mxu1 %v17162_v4  ;;  %v9445_v4 = vld [vmem:[#allocation10] sm:$0xf] }
 0x5d7   :  { %9384 = vmatprep.subr.bf16.mxu1 %v17167_v25 }
 0x5da   :  { %9385 = vmatpush2.bf16.msra.mxu1 %v17165_v27 }
 0x5db   :  { %9386 = vmatprep.subr.bf16.mxu1 %v17170_v22 }
 0x5de   :  { %9387 = vmatpush2.bf16.msra.mxu1 %v17168_v12 }
 0x5df   :  { %9388 = vmatprep.subr.bf16.mxu1 %v17173_v38  ;;  %v9454_v38 = vrot.slane %v9445_v4, %v18295_v31 }
 0x5e1   :  { %v9269_v50 = vpop.f32.mrf.mxu0 }
 0x5e2   :  { %9389 = vmatpush2.bf16.msra.mxu1 %v17171_v29 }
 0x5e3   :  { %9390 = vmatprep.subr.bf16.mxu1 %v17176_v13  ;;  %v9271_v39 = vpop.f32.mrf.mxu0 }
 0x5e5   :  { %v9273_v1 = vpop.f32.mrf.mxu0 }
 0x5e6   :  { %9391 = vmatpush2.bf16.msra.mxu1 %v17174_v10 }
 0x5e7   :  { %9392 = vmatprep.subr.bf16.mxu1 %v17179_v47  ;;  %v9275_v9 = vpop.f32.mrf.mxu0  ;;  %v9450_v47 = vrot.slane %v9445_v4, %v18027_v17 }
 0x5ea   :  { %9393 = vmatpush2.bf16.msra.mxu1 %v17177_v7 }
 0x5eb   :  { %9394 = vmatprep.subr.bf16.mxu1 %v17182_v63 }
 0x5ee   :  { %9395 = vmatpush2.bf16.msra.mxu1 %v17180_v33 }
 0x5ef   :  { %14769 = vmatprep.subr.bf16.mxu1 %v17199_v16 }
 0x5f1   :  { %9397 = vmatmul.mubr.bf16.vlgmr.msra.gmra.mxu1 %v18400_v18  ;;  %v8573_v18 = vld [vmem:[#allocation7] sm:$0xf] }
 0x5f2   :  { %14770 = vmatpush3.bf16.msra.mxu1 %v17200_v21  ;;  %v8578_v36 = vrot.slane %v8573_v18, %v18027_v17  ;;  %v8582_v35 = vrot.slane %v8573_v18, %v18295_v31 }
 0x5f3   :  { %14771 = vmatprep.subr.bf16.mxu1 %v17201_v30  ;;  %v8586_v30 = vrot.slane %v8573_v18, %v18381_v51 }
 0x5f4   :  { %v9270_v14 = vadd.f32 %v9269_v50, %v8578_v36  ;;  %v9272_v19 = vadd.f32 %v9271_v39, %v8582_v35  ;;  %v9274_v54 = vadd.f32 %v9273_v1, %v8578_v36  ;;  %v9276_v44 = vadd.f32 %v9275_v9, %v8582_v35 }
 0x5f5   :  { %v9462_v1 = vrot.slane %v9445_v4, %v18378_v15 }
 0x5f6   :  { %14772 = vmatpush3.bf16.msra.mxu1 %v17202_v40  ;;  %v8590_v40 = vrot.slane %v8573_v18, %v18378_v15 }
 0x5f7   :  { %14773 = vmatprep.subr.bf16.mxu1 %v17203_v8 }
 0x5fa   :  { %14774 = vmatpush3.bf16.msra.mxu1 %v17204_v23 }
 0x5fb   :  { %14775 = vmatprep.subr.bf16.mxu1 %v17205_v43 }
 0x5fe   :  { %14776 = vmatpush3.bf16.msra.mxu1 %v17206_v2 }
 0x5ff   :  { %14777 = vmatprep.subr.bf16.mxu1 %v17207_v28 }
 0x602   :  { %14778 = vmatpush3.bf16.msra.mxu1 %v17208_v26 }
 0x603   :  { %14779 = vmatprep.subr.bf16.mxu1 %v17209_v37 }
 0x606   :  { %14780 = vmatpush3.bf16.msra.mxu1 %v17210_v11 }
 0x607   :  { %14781 = vmatprep.subr.bf16.mxu1 %v17211_v56 }
 0x60a   :  { %14782 = vmatpush3.bf16.msra.mxu1 %v17212_v34  ;;  %v9432_v34 = vrot.slane %v9415_v59, %v18378_v15 }
 0x60b   :  { %14783 = vmatprep.subr.bf16.mxu1 %v17213_v45 }
 0x60e   :  { %14784 = vmatpush3.bf16.msra.mxu1 %v17214_v48  ;;  %v9428_v48 = vrot.slane %v9415_v59, %v18381_v51 }
 0x60f   :  { %14800 = vmatprep.subr.bf16.mxu1 %v17215_v0 }
 0x621   :  { %v9355_v16 = vpop.f32.mrf.mxu0 }
 0x622   :  { %v9356_v23 = vadd.f32 %v9355_v16, %v8586_v30  ;;  %v17229_v16 = vld [vmem:[#allocation12 + $0x140] sm:$0xff]  }
 0x623   :  { %v9357_v21 = vpop.f32.mrf.mxu0 }
 0x624   :  { %v9358_v2 = vadd.f32 %v9357_v21, %v8590_v40  ;;  %v17235_v21 = vld [vmem:[#allocation15 + $0x18] sm:$0xff]  }
 0x625   :  { %v9359_v8 = vpop.f32.mrf.mxu0 }
 0x626   :  { %v9360_v11 = vadd.f32 %v9359_v8, %v8586_v30  ;;  %v17230_v30 = vld [vmem:[#allocation12 + $0x100] sm:$0xff]   ;;  %v17237_v8 = vld [vmem:[#allocation15 + $0x8] sm:$0xff]  }
 0x627   :  { %v9361_v26 = vpop.f32.mrf.mxu0 }
 0x628   :  { %v9362_v50 = vadd.f32 %v9361_v26, %v8590_v40  ;;  %v17236_v40 = vld [vmem:[#allocation15 + $0x10] sm:$0xff]  }
 0x671   :  { %v9312_v58 = vpop.f32.mrf.mxu1 }
 0x672   :  { %v9313_v62 = vadd.f32 %v9312_v58, %v9270_v14 }
 0x673   :  { %v9314_v20 = vpop.f32.mrf.mxu1 }
 0x674   :  { %v9315_v41 = vadd.f32 %v9314_v20, %v9272_v19  ;;  %v9407_v46 = vmax.f32 %v9313_v62, 0.0  ;;  %v9458_v62 = vrot.slane %v9445_v4, %v18381_v51  ;;  %v17218_v4 = vld [vmem:[#allocation12 + $0x130] sm:$0xff]  }
 0x675   :  { %v9316_v53 = vpop.f32.mrf.mxu1 }
 0x676   :  { %v9408_v25 = vmax.f32 %v9315_v41, 0.0  ;;  %v9317_v27 = vadd.f32 %v9316_v53, %v9274_v54  ;;  %v9437_v10 = vmul.f32 %v9420_v61, %v9407_v46 }
 0x677   :  { %v9318_v22 = vpop.f32.mrf.mxu1 }
 0x678   :  { %v9438_v12 = vmul.f32 %v9424_v52, %v9408_v25  ;;  %v9411_v29 = vmax.f32 %v9317_v27, 0.0  ;;  %v9319_v13 = vadd.f32 %v9318_v22, %v9276_v44  ;;  %v9467_v55 = vadd.f32 %v9450_v47, %v9437_v10  ;;  %v17216_v22 = vld [vmem:[#allocation12 + $0x138] sm:$0xff]   ;;  %v17221_v10 = vld [vmem:[#allocation12 + $0x160] sm:$0xff]  }
 0x67a   :  { %v9441_v7 = vmul.f32 %v9420_v61, %v9411_v29  ;;  %v9412_v63 = vmax.f32 %v9319_v13, 0.0  ;;  %v9468_v33 = vadd.f32 %v9454_v38, %v9438_v12  ;;  %v9475_v49 = vmax.f32 %v9467_v55, 0.0  ;;  %v17219_v29 = vld [vmem:[#allocation12 + $0x168] sm:$0xff]   ;;  %v17225_v55 = vld [vmem:[#allocation12 + $0x150] sm:$0xff]  }
 0x67b   :  { %v17220_v13 = vld [vmem:[#allocation12 + $0x128] sm:$0xff]  }
 0x67c   :  { %v9471_v42 = vadd.f32 %v9450_v47, %v9441_v7  ;;  %v9442_v6 = vmul.f32 %v9424_v52, %v9412_v63  ;;  %v9476_v24 = vmax.f32 %v9468_v33, 0.0  ;;  %v17222_v47 = vld [vmem:[#allocation12 + $0x120] sm:$0xff]   ;;  %v17223_v63 = vld [vmem:[#allocation12 + $0x158] sm:$0xff]   ;;  %v17837_v33 = vmov 0.0  }
 0x67d   :  { %v17231_v7 = vld [vmem:[#allocation15 + $0x38] sm:$0xff]   ;;  %15118 = vmatprep.subr.bf16.mxu0 %v17837_v33 }
 0x67e   :  { %v9472_v32 = vadd.f32 %v9454_v38, %v9442_v6  ;;  %v9479_v3 = vmax.f32 %v9471_v42, 0.0  ;;  %v17217_v38 = vld [vmem:[#allocation12 + $0x170] sm:$0xff]   ;;  %v17224_v6 = vld [vmem:[#allocation12 + $0x118] sm:$0xff]  }
 0x67f   :  { %v17232_v42 = vld [vmem:[#allocation15 + $0x30] sm:$0xff]  }
 0x680   :  { %v9480_v57 = vmax.f32 %v9472_v32, 0.0  ;;  %v18412_v5 = vpack.c.bf16 %v9479_v3, %v9475_v49  ;;  %v17233_v32 = vld [vmem:[#allocation15 + $0x28] sm:$0xff]  }
 0x681   :  { %v17226_v3 = vld [vmem:[#allocation12 + $0x110] sm:$0xff]   ;;  %v17228_v49 = vld [vmem:[#allocation12 + $0x108] sm:$0xff]  }
 0x682   :  { %v18410_v60 = vpack.c.bf16 %v9480_v57, %v9476_v24  ;;  %v17227_v24 = vld [vmem:[#allocation12 + $0x148] sm:$0xff]  }
 0x683   :  { %v17234_v57 = vld [vmem:[#allocation15 + $0x20] sm:$0xff]  }
 0x684   :  { %9785 = vmatprep.mubr.bf16.mxu0 %v18410_v60 }
 0x685   :  { %9786 = vmatmul.mubr.bf16.vlgmr.msra.gmra.mxu0 %v18412_v5 }
 0x686   :  { %15119 = vmatpush3.bf16.msra.mxu0 %v17231_v7  ;;  %15134 = vmatprep.mubr.msk.bf16.mxu0 %vm17838_vm0, %v17837_v33  ;;  %v17257_v7 = vld [vmem:[#allocation12 + $0x270] sm:$0xff]  }
 0x687   :  { %15120 = vmatprep.subr.bf16.mxu0 %v17837_v33 }
 0x68a   :  { %15121 = vmatpush3.bf16.msra.mxu0 %v17232_v42  ;;  %v17259_v42 = vld [vmem:[#allocation12 + $0x268] sm:$0xff]  }
 0x68b   :  { %15122 = vmatprep.subr.bf16.mxu0 %v17837_v33 }
 0x68e   :  { %15123 = vmatpush3.bf16.msra.mxu0 %v17233_v32  ;;  %v17262_v32 = vld [vmem:[#allocation12 + $0x220] sm:$0xff]  }
 0x68f   :  { %15124 = vmatprep.subr.bf16.mxu0 %v17837_v33 }
 0x692   :  { %15125 = vmatpush3.bf16.msra.mxu0 %v17234_v57  ;;  %v17265_v57 = vld [vmem:[#allocation12 + $0x250] sm:$0xff]  }
 0x693   :  { %15126 = vmatprep.subr.bf16.mxu0 %v17837_v33 }
 0x696   :  { %15127 = vmatpush3.bf16.msra.mxu0 %v17235_v21  ;;  %v17268_v21 = vld [vmem:[#allocation12 + $0x208] sm:$0xff]  }
 0x697   :  { %15128 = vmatprep.subr.bf16.mxu0 %v17837_v33 }
 0x69a   :  { %15129 = vmatpush3.bf16.msra.mxu0 %v17236_v40  ;;  %v17270_v40 = vld [vmem:[#allocation12 + $0x200] sm:$0xff]  }
 0x69b   :  { %15130 = vmatprep.subr.bf16.mxu0 %v17837_v33 }
 0x69e   :  { %15131 = vmatpush3.bf16.msra.mxu0 %v17237_v8  ;;  %v17271_v8 = vld [vmem:[#allocation15 + $0x78] sm:$0xff]  }
 0x69f   :  { %15132 = vmatprep.subr.bf16.mxu0 %v17837_v33 }
 0x6b1   :  { %v9398_v43 = vpop.f32.mrf.mxu1 }
 0x6b2   :  { %v9399_v28 = vadd.f32 %v9398_v43, %v9356_v23  ;;  %v17238_v23 = vld [vmem:[#allocation15] sm:$0xff]   ;;  %v17239_v43 = vld [vmem:[#allocation12 + $0x1f8] sm:$0xff]  }
 0x6b3   :  { %v9400_v37 = vpop.f32.mrf.mxu1  ;;  %15133 = vmatpush3.bf16.msra.mxu0 %v17238_v23  ;;  %v17272_v23 = vld [vmem:[#allocation15 + $0x70] sm:$0xff]  }
 0x6b4   :  { %v9401_v56 = vadd.f32 %v9400_v37, %v9358_v2  ;;  %v9409_v45 = vmax.f32 %v9399_v28, 0.0  ;;  %14822 = vmatprep.subr.bf16.mxu0 %v17239_v43  ;;  %v18443_v37 = vld [vmem:[#allocation13] sm:$0xf]  ;;  %v17273_v43 = vld [vmem:[#allocation15 + $0x68] sm:$0xff]  }
 0x6b5   :  { %v9402_v0 = vpop.f32.mrf.mxu1 }
 0x6b6   :  { %v9410_v39 = vmax.f32 %v9401_v56, 0.0  ;;  %v9403_v36 = vadd.f32 %v9402_v0, %v9360_v11  ;;  %v9439_v19 = vmul.f32 %v9428_v48, %v9409_v45 }
 0x6b7   :  { %v9404_v35 = vpop.f32.mrf.mxu1 }
 0x6b8   :  { %v9440_v18 = vmul.f32 %v9432_v34, %v9410_v39  ;;  %v9413_v14 = vmax.f32 %v9403_v36, 0.0  ;;  %v9405_v58 = vadd.f32 %v9404_v35, %v9362_v50  ;;  %v9469_v46 = vadd.f32 %v9458_v62, %v9439_v19 }
 0x6ba   :  { %v9443_v9 = vmul.f32 %v9428_v48, %v9413_v14  ;;  %v9414_v20 = vmax.f32 %v9405_v58, 0.0  ;;  %v9470_v54 = vadd.f32 %v9462_v1, %v9440_v18  ;;  %v9477_v25 = vmax.f32 %v9469_v46, 0.0  ;;  %v17244_v46 = vld [vmem:[#allocation12 + $0x1a8] sm:$0xff]  }
 0x6bc   :  { %v9473_v41 = vadd.f32 %v9458_v62, %v9443_v9  ;;  %v9444_v52 = vmul.f32 %v9432_v34, %v9414_v20  ;;  %v9478_v53 = vmax.f32 %v9470_v54, 0.0  ;;  %v9560_v34 = vrot.slane %v18443_v37, %v18027_v17  ;;  %v17240_v9 = vld [vmem:[#allocation12 + $0x1b8] sm:$0xff]   ;;  %v17241_v54 = vld [vmem:[#allocation12 + $0x1f0] sm:$0xff]  }
 0x6be   :  { %v9474_v59 = vadd.f32 %v9462_v1, %v9444_v52  ;;  %v9481_v61 = vmax.f32 %v9473_v41, 0.0  ;;  %v17242_v41 = vld [vmem:[#allocation12 + $0x1b0] sm:$0xff]   ;;  %v17243_v52 = vld [vmem:[#allocation12 + $0x1e8] sm:$0xff]  }
 0x6c0   :  { %v9482_v44 = vmax.f32 %v9474_v59, 0.0  ;;  %v18424_v12 = vpack.c.bf16 %v9481_v61, %v9477_v25  ;;  %v17245_v59 = vld [vmem:[#allocation12 + $0x1e0] sm:$0xff]   ;;  %v17249_v25 = vld [vmem:[#allocation12 + $0x1d0] sm:$0xff]  }
 0x6c1   :  { %v17246_v61 = vld [vmem:[#allocation12 + $0x1a0] sm:$0xff]  }
 0x6c2   :  { %v18422_v27 = vpack.c.bf16 %v9482_v44, %v9478_v53  ;;  %v17247_v53 = vld [vmem:[#allocation12 + $0x1d8] sm:$0xff]  }
 0x6c3   :  { %v17248_v44 = vld [vmem:[#allocation12 + $0x198] sm:$0xff]  }
 0x6c4   :  { %9826 = vmatprep.mubr.bf16.mxu1 %v18422_v27 }
 0x6c5   :  { %9827 = vmatmul.mubr.bf16.vlgmr.msra.gmra.mxu1 %v18424_v12 }
 0x6c6   :  { %14801 = vmatpush3.bf16.msra.mxu1 %v17216_v22  ;;  %10242 = vmatprep.mubr.bf16.mxu1 %v18410_v60  ;;  %v17250_v22 = vld [vmem:[#allocation12 + $0x190] sm:$0xff]  }
 0x6c7   :  { %14802 = vmatprep.subr.bf16.mxu1 %v17217_v38  ;;  %v17251_v38 = vld [vmem:[#allocation12 + $0x1c8] sm:$0xff]  }
 0x6ca   :  { %14803 = vmatpush3.bf16.msra.mxu1 %v17218_v4  ;;  %v17252_v4 = vld [vmem:[#allocation12 + $0x188] sm:$0xff]  }
 0x6cb   :  { %14804 = vmatprep.subr.bf16.mxu1 %v17219_v29  ;;  %v17253_v29 = vld [vmem:[#allocation12 + $0x1c0] sm:$0xff]  }
 0x6ce   :  { %14805 = vmatpush3.bf16.msra.mxu1 %v17220_v13  ;;  %v17254_v13 = vld [vmem:[#allocation12 + $0x180] sm:$0xff]  }
 0x6cf   :  { %14806 = vmatprep.subr.bf16.mxu1 %v17221_v10  ;;  %v17255_v10 = vld [vmem:[#allocation12 + $0x278] sm:$0xff]  }
 0x6d2   :  { %14807 = vmatpush3.bf16.msra.mxu1 %v17222_v47  ;;  %v17256_v47 = vld [vmem:[#allocation12 + $0x238] sm:$0xff]  }
 0x6d3   :  { %14808 = vmatprep.subr.bf16.mxu1 %v17223_v63  ;;  %v17258_v63 = vld [vmem:[#allocation12 + $0x230] sm:$0xff]  }
 0x6d6   :  { %14809 = vmatpush3.bf16.msra.mxu1 %v17224_v6  ;;  %v17260_v6 = vld [vmem:[#allocation12 + $0x228] sm:$0xff]  }
 0x6d7   :  { %14810 = vmatprep.subr.bf16.mxu1 %v17225_v55  ;;  %v17261_v55 = vld [vmem:[#allocation12 + $0x260] sm:$0xff]  }
 0x6da   :  { %14811 = vmatpush3.bf16.msra.mxu1 %v17226_v3  ;;  %v17263_v3 = vld [vmem:[#allocation12 + $0x258] sm:$0xff]  }
 0x6db   :  { %14812 = vmatprep.subr.bf16.mxu1 %v17227_v24  ;;  %v17264_v24 = vld [vmem:[#allocation12 + $0x218] sm:$0xff]  }
 0x6de   :  { %14813 = vmatpush3.bf16.msra.mxu1 %v17228_v49  ;;  %v17266_v49 = vld [vmem:[#allocation12 + $0x210] sm:$0xff]  }
 0x6df   :  { %14814 = vmatprep.subr.bf16.mxu1 %v17229_v16  ;;  %v17267_v16 = vld [vmem:[#allocation12 + $0x248] sm:$0xff]  }
 0x6e2   :  { %14815 = vmatpush3.bf16.msra.mxu1 %v17230_v30  ;;  %v17269_v30 = vld [vmem:[#allocation12 + $0x240] sm:$0xff]  }
 0x6e3   :  { %15138 = vmatprep.subr.bf16.mxu1 %v17837_v33 }
 0x6e5   :  { %10243 = vmatmul.mubr.bf16.vlgmr.msra.gmra.mxu1 %v18412_v5 }
 0x6e6   :  { %15154 = vmatprep.mubr.msk.bf16.mxu1 %vm17838_vm0, %v17837_v33  ;;  %15139 = vmatpush3.bf16.msra.mxu1 %v17271_v8  ;;  %v17301_v8 = vld [vmem:[#allocation12 + $0x360] sm:$0xff]  }
 0x6e7   :  { %15140 = vmatprep.subr.bf16.mxu1 %v17837_v33 }
 0x6ea   :  { %15141 = vmatpush3.bf16.msra.mxu1 %v17272_v23  ;;  %v17302_v23 = vld [vmem:[#allocation12 + $0x320] sm:$0xff]  }
 0x6eb   :  { %15142 = vmatprep.subr.bf16.mxu1 %v17837_v33 }
 0x6ee   :  { %15143 = vmatpush3.bf16.msra.mxu1 %v17273_v43  ;;  %v17303_v43 = vld [vmem:[#allocation12 + $0x358] sm:$0xff]  }
 0x6ef   :  { %15144 = vmatprep.subr.bf16.mxu1 %v17837_v33 }
 0x745   :  { %v14763_v2 = vpop.f32.mrf.mxu0 }
 0x747   :  { %v14764_v28 = vpop.f32.mrf.mxu0 }
 0x748   :  { %v14765_v45 = vadd.f32 %v14764_v28, %v14763_v2  ;;  %v17274_v2 = vld [vmem:[#allocation15 + $0x60] sm:$0xff]   ;;  %v17275_v28 = vld [vmem:[#allocation15 + $0x58] sm:$0xff]  }
 0x749   :  { %v14766_v26 = vpop.f32.mrf.mxu0  ;;  %15145 = vmatpush3.bf16.msra.mxu1 %v17274_v2  ;;  %v17304_v2 = vld [vmem:[#allocation12 + $0x318] sm:$0xff]  }
 0x74a   :  { %v9788_v36 = vadd.f32 %v14765_v45, %v9560_v34  ;;  %15146 = vmatprep.subr.bf16.mxu1 %v17837_v33 }
 0x74b   :  { %v14767_v11 = vpop.f32.mrf.mxu0 }
 0x74c   :  { %v14768_v0 = vadd.f32 %v14767_v11, %v14766_v26  ;;  %v17276_v26 = vld [vmem:[#allocation15 + $0x50] sm:$0xff]   ;;  %v17277_v11 = vld [vmem:[#allocation15 + $0x48] sm:$0xff]  }
 0x74d   :  { %15147 = vmatpush3.bf16.msra.mxu1 %v17275_v28  ;;  %v17305_v28 = vld [vmem:[#allocation12 + $0x350] sm:$0xff]  }
 0x74e   :  { %v9791_v18 = vadd.f32 %v14768_v0, %v9560_v34  ;;  %15148 = vmatprep.subr.bf16.mxu1 %v17837_v33  ;;  %v17279_v34 = vld [vmem:[#allocation12 + $0x2f8] sm:$0xff]  }
 0x751   :  { %15149 = vmatpush3.bf16.msra.mxu1 %v17276_v26  ;;  %v17306_v26 = vld [vmem:[#allocation12 + $0x310] sm:$0xff]  }
 0x752   :  { %15150 = vmatprep.subr.bf16.mxu1 %v17837_v33 }
 0x755   :  { %15151 = vmatpush3.bf16.msra.mxu1 %v17277_v11  ;;  %v17307_v11 = vld [vmem:[#allocation12 + $0x348] sm:$0xff]  }
 0x756   :  { %15152 = vmatprep.subr.bf16.mxu1 %v17837_v33 }
 0x785   :  { %v14785_v56 = vpop.f32.mrf.mxu1 }
 0x787   :  { %v14786_v48 = vpop.f32.mrf.mxu1 }
 0x788   :  { %v14787_v50 = vadd.f32 %v14786_v48, %v14785_v56  ;;  %v17278_v56 = vld [vmem:[#allocation15 + $0x40] sm:$0xff]  }
 0x789   :  { %v14788_v39 = vpop.f32.mrf.mxu1  ;;  %15153 = vmatpush3.bf16.msra.mxu1 %v17278_v56  ;;  %v17308_v56 = vld [vmem:[#allocation12 + $0x308] sm:$0xff]  }
 0x78a   :  { %v9829_v1 = vadd.f32 %v14787_v50, %v9788_v36  ;;  %14875 = vmatprep.subr.bf16.mxu1 %v17279_v34  ;;  %v17309_v34 = vld [vmem:[#allocation12 + $0x340] sm:$0xff]  }
 0x78b   :  { %v14789_v35 = vpop.f32.mrf.mxu1 }
 0x78c   :  { %v14790_v14 = vadd.f32 %v14789_v35, %v14788_v39  ;;  %v9835_v19 = vmax.f32 %v9829_v1, 0.0 }
 0x78e   :  { %v9832_v58 = vadd.f32 %v14790_v14, %v9791_v18  ;;  %v10017_v14 = vrot.slane %v18443_v37, %v18295_v31 }
 0x790   :  { %v9836_v62 = vmax.f32 %v9832_v58, 0.0 }
 0x792   :  { %v9837_v20 = vpack.c.bf16 %v9836_v62, %v9835_v19 }
 0x794   :  { %15135 = vmatmul.mubr.bf16.vlgmr.msra.gmra.mxu0 %v9837_v20 }
 0x795   :  { %14823 = vmatpush3.bf16.msra.mxu0 %v17240_v9  ;;  %10283 = vmatprep.mubr.bf16.mxu0 %v18422_v27 }
 0x796   :  { %14824 = vmatprep.subr.bf16.mxu0 %v17241_v54 }
 0x799   :  { %14825 = vmatpush3.bf16.msra.mxu0 %v17242_v41 }
 0x79a   :  { %14826 = vmatprep.subr.bf16.mxu0 %v17243_v52 }
 0x79d   :  { %14827 = vmatpush3.bf16.msra.mxu0 %v17244_v46 }
 0x79e   :  { %14828 = vmatprep.subr.bf16.mxu0 %v17245_v59 }
 0x7a1   :  { %14829 = vmatpush3.bf16.msra.mxu0 %v17246_v61 }
 0x7a2   :  { %14830 = vmatprep.subr.bf16.mxu0 %v17247_v53 }
 0x7a5   :  { %14831 = vmatpush3.bf16.msra.mxu0 %v17248_v44  ;;  %v14816_v39 = vpop.f32.mrf.mxu1 }
 0x7a6   :  { %14832 = vmatprep.subr.bf16.mxu0 %v17249_v25  ;;  %v17280_v25 = vld [vmem:[#allocation12 + $0x2b8] sm:$0xff]  }
 0x7a7   :  { %v14817_v36 = vpop.f32.mrf.mxu1 }
 0x7a8   :  { %v14818_v58 = vadd.f32 %v14817_v36, %v14816_v39  ;;  %v17312_v39 = vld [vmem:[#allocation15 + $0xb0] sm:$0xff]   ;;  %v17313_v36 = vld [vmem:[#allocation15 + $0xa8] sm:$0xff]  }
 0x7a9   :  { %14833 = vmatpush3.bf16.msra.mxu0 %v17250_v22  ;;  %v14819_v35 = vpop.f32.mrf.mxu1 }
 0x7aa   :  { %14834 = vmatprep.subr.bf16.mxu0 %v17251_v38  ;;  %v10245_v54 = vadd.f32 %v14818_v58, %v10017_v14  ;;  %v17281_v38 = vld [vmem:[#allocation12 + $0x2f0] sm:$0xff]   ;;  %v17318_v58 = vld [vmem:[#allocation15 + $0x80] sm:$0xff]  }
 0x7ab   :  { %v14820_v18 = vpop.f32.mrf.mxu1 }
 0x7ac   :  { %v14821_v62 = vadd.f32 %v14820_v18, %v14819_v35  ;;  %v17314_v35 = vld [vmem:[#allocation15 + $0xa0] sm:$0xff]   ;;  %v17315_v18 = vld [vmem:[#allocation15 + $0x98] sm:$0xff]  }
 0x7ad   :  { %14835 = vmatpush3.bf16.msra.mxu0 %v17252_v4  ;;  %v17282_v4 = vld [vmem:[#allocation12 + $0x2b0] sm:$0xff]  }
 0x7ae   :  { %14836 = vmatprep.subr.bf16.mxu0 %v17253_v29  ;;  %v10248_v52 = vadd.f32 %v14821_v62, %v10017_v14  ;;  %v17283_v29 = vld [vmem:[#allocation12 + $0x2e8] sm:$0xff]  }
 0x7af   :  { %v17317_v14 = vld [vmem:[#allocation15 + $0x88] sm:$0xff]  }
 0x7b1   :  { %14837 = vmatpush3.bf16.msra.mxu0 %v17254_v13  ;;  %v17284_v13 = vld [vmem:[#allocation12 + $0x2a8] sm:$0xff]  }
 0x7b2   :  { %14853 = vmatprep.subr.bf16.mxu0 %v17255_v10  ;;  %v17285_v10 = vld [vmem:[#allocation12 + $0x2e0] sm:$0xff]  }
 0x7b4   :  { %10284 = vmatmul.mubr.bf16.vlgmr.msra.gmra.mxu0 %v18424_v12 }
 0x7b5   :  { %14854 = vmatpush3.bf16.msra.mxu0 %v17256_v47  ;;  %10700 = vmatprep.mubr.bf16.mxu0 %v18410_v60  ;;  %v17286_v47 = vld [vmem:[#allocation12 + $0x2a0] sm:$0xff]  }
 0x7b6   :  { %14855 = vmatprep.subr.bf16.mxu0 %v17257_v7  ;;  %v17287_v7 = vld [vmem:[#allocation12 + $0x2d8] sm:$0xff]  }
 0x7b9   :  { %14856 = vmatpush3.bf16.msra.mxu0 %v17258_v63  ;;  %v17288_v63 = vld [vmem:[#allocation12 + $0x298] sm:$0xff]  }
 0x7ba   :  { %14857 = vmatprep.subr.bf16.mxu0 %v17259_v42  ;;  %v17289_v42 = vld [vmem:[#allocation12 + $0x2d0] sm:$0xff]  }
 0x7bd   :  { %14858 = vmatpush3.bf16.msra.mxu0 %v17260_v6  ;;  %v17290_v6 = vld [vmem:[#allocation12 + $0x290] sm:$0xff]  }
 0x7be   :  { %14859 = vmatprep.subr.bf16.mxu0 %v17261_v55  ;;  %v17291_v55 = vld [vmem:[#allocation12 + $0x2c8] sm:$0xff]  }
 0x7c1   :  { %14860 = vmatpush3.bf16.msra.mxu0 %v17262_v32  ;;  %v17292_v32 = vld [vmem:[#allocation12 + $0x288] sm:$0xff]  }
 0x7c2   :  { %14861 = vmatprep.subr.bf16.mxu0 %v17263_v3  ;;  %v17293_v3 = vld [vmem:[#allocation12 + $0x2c0] sm:$0xff]  }
 0x7c5   :  { %14862 = vmatpush3.bf16.msra.mxu0 %v17264_v24  ;;  %v17294_v24 = vld [vmem:[#allocation12 + $0x280] sm:$0xff]  }
 0x7c6   :  { %14863 = vmatprep.subr.bf16.mxu0 %v17265_v57  ;;  %v17295_v57 = vld [vmem:[#allocation12 + $0x378] sm:$0xff]  }
 0x7c9   :  { %14864 = vmatpush3.bf16.msra.mxu0 %v17266_v49  ;;  %v17296_v49 = vld [vmem:[#allocation12 + $0x338] sm:$0xff]  }
 0x7ca   :  { %14865 = vmatprep.subr.bf16.mxu0 %v17267_v16  ;;  %v17297_v16 = vld [vmem:[#allocation12 + $0x370] sm:$0xff]  }
 0x7cd   :  { %14866 = vmatpush3.bf16.msra.mxu0 %v17268_v21  ;;  %v17298_v21 = vld [vmem:[#allocation12 + $0x330] sm:$0xff]  }
 0x7ce   :  { %14867 = vmatprep.subr.bf16.mxu0 %v17269_v30  ;;  %v17299_v30 = vld [vmem:[#allocation12 + $0x368] sm:$0xff]  }
 0x7d1   :  { %14868 = vmatpush3.bf16.msra.mxu0 %v17270_v40  ;;  %v17300_v40 = vld [vmem:[#allocation12 + $0x328] sm:$0xff]  }
 0x7d2   :  { %15158 = vmatprep.subr.bf16.mxu0 %v17837_v33 }
 0x7d4   :  { %10701 = vmatmul.mubr.bf16.vlgmr.msra.gmra.mxu0 %v18412_v5 }
 0x7d5   :  { %15174 = vmatprep.mubr.msk.bf16.mxu0 %vm17838_vm0, %v17837_v33 }
 0x854   :  { %v18461_v45 = vpop.f32.mrf.mxu0 }
 0x856   :  { %v15136_v48 = vpop.f32.mrf.mxu0 }
 0x857   :  { %v17310_v48 = vld [vmem:[#allocation12 + $0x300] sm:$0xff]  }
 0x858   :  { %v18463_v0 = vpop.f32.mrf.mxu0 }
 0x85a   :  { %v15137_v50 = vpop.f32.mrf.mxu0 }
 0x85b   :  { %v17311_v50 = vld [vmem:[#allocation15 + $0xb8] sm:$0xff]  }
 0x85c   :  { %15159 = vmatpush3.bf16.msra.mxu0 %v17311_v50  ;;  %v17339_v50 = vld [vmem:[%s19126_s11 + $0x68] sm:$0xff]  }
 0x85d   :  { %15160 = vmatprep.subr.bf16.mxu0 %v17837_v33 }
 0x860   :  { %15161 = vmatpush3.bf16.msra.mxu0 %v17312_v39  ;;  %v17340_v39 = vld [vmem:[%s19126_s11 + $0x28] sm:$0xff]  }
 0x861   :  { %15162 = vmatprep.subr.bf16.mxu0 %v17837_v33 }
 0x864   :  { %15163 = vmatpush3.bf16.msra.mxu0 %v17313_v36  ;;  %v17341_v36 = vld [vmem:[%s19126_s11 + $0x60] sm:$0xff]  }
 0x865   :  { %15164 = vmatprep.subr.bf16.mxu0 %v17837_v33 }
 0x868   :  { %15165 = vmatpush3.bf16.msra.mxu0 %v17314_v35  ;;  %v17342_v35 = vld [vmem:[%s19126_s11 + $0x20] sm:$0xff]  }
 0x869   :  { %15166 = vmatprep.subr.bf16.mxu0 %v17837_v33 }
 0x86c   :  { %15167 = vmatpush3.bf16.msra.mxu0 %v17315_v18  ;;  %v17343_v18 = vld [vmem:[%s19126_s11 + $0x58] sm:$0xff]  }
 0x86d   :  { %15168 = vmatprep.subr.bf16.mxu0 %v17837_v33 }
 0x874   :  { %v14838_v1 = vpop.f32.mrf.mxu0 }
 0x876   :  { %v14839_v19 = vpop.f32.mrf.mxu0 }
 0x877   :  { %v14840_v9 = vadd.f32 %v14839_v19, %v14838_v1  ;;  %v17316_v1 = vld [vmem:[#allocation15 + $0x90] sm:$0xff]  }
 0x878   :  { %v14841_v20 = vpop.f32.mrf.mxu0  ;;  %15169 = vmatpush3.bf16.msra.mxu0 %v17316_v1  ;;  %v17319_v19 = vld [vmem:[#allocation12 + $0x3f8] sm:$0xff]   ;;  %v17344_v1 = vld [vmem:[%s19126_s11 + $0x18] sm:$0xff]  }
 0x879   :  { %v10286_v46 = vadd.f32 %v14840_v9, %v10245_v54  ;;  %15170 = vmatprep.subr.bf16.mxu0 %v17837_v33 }
 0x87a   :  { %v14842_v41 = vpop.f32.mrf.mxu0 }
 0x87b   :  { %v14843_v59 = vadd.f32 %v14842_v41, %v14841_v20  ;;  %v10292_v53 = vmax.f32 %v10286_v46, 0.0 }
 0x87c   :  { %15171 = vmatpush3.bf16.msra.mxu0 %v17317_v14  ;;  %v17345_v14 = vld [vmem:[%s19126_s11 + $0x50] sm:$0xff]  }
 0x87d   :  { %v10289_v61 = vadd.f32 %v14843_v59, %v10248_v52  ;;  %15172 = vmatprep.subr.bf16.mxu0 %v17837_v33 }
 0x87f   :  { %v10293_v44 = vmax.f32 %v10289_v61, 0.0 }
 0x880   :  { %15173 = vmatpush3.bf16.msra.mxu0 %v17318_v58  ;;  %v17346_v58 = vld [vmem:[%s19126_s11 + $0x10] sm:$0xff]  }
 0x881   :  { %v10294_v22 = vpack.c.bf16 %v10293_v44, %v10292_v53  ;;  %14928 = vmatprep.subr.bf16.mxu0 %v17319_v19  ;;  %v10475_v53 = vrot.slane %v18443_v37, %v18381_v51  ;;  %v17347_v19 = vld [vmem:[%s19126_s11 + $0x48] sm:$0xff]  }
 0x883   :  { %15155 = vmatmul.mubr.bf16.vlgmr.msra.gmra.mxu1 %v10294_v22 }
 0x884   :  { %14876 = vmatpush3.bf16.msra.mxu1 %v17280_v25  ;;  %10741 = vmatprep.mubr.bf16.mxu1 %v18422_v27 }
 0x885   :  { %14877 = vmatprep.subr.bf16.mxu1 %v17281_v38 }
 0x888   :  { %14878 = vmatpush3.bf16.msra.mxu1 %v17282_v4 }
 0x889   :  { %14879 = vmatprep.subr.bf16.mxu1 %v17283_v29 }
 0x88c   :  { %14880 = vmatpush3.bf16.msra.mxu1 %v17284_v13 }
 0x88d   :  { %14881 = vmatprep.subr.bf16.mxu1 %v17285_v10 }
 0x890   :  { %14882 = vmatpush3.bf16.msra.mxu1 %v17286_v47 }
 0x891   :  { %14883 = vmatprep.subr.bf16.mxu1 %v17287_v7 }
 0x894   :  { %14884 = vmatpush3.bf16.msra.mxu1 %v17288_v63  ;;  %v14869_v41 = vpop.f32.mrf.mxu0 }
 0x895   :  { %14885 = vmatprep.subr.bf16.mxu1 %v17289_v42 }
 0x896   :  { %v14870_v52 = vpop.f32.mrf.mxu0 }
 0x897   :  { %v14871_v44 = vadd.f32 %v14870_v52, %v14869_v41  ;;  %v17350_v41 = vld [vmem:[%s19126_s11] sm:$0xff]   ;;  %v17351_v52 = vld [vmem:[#allocation15 + $0xf8] sm:$0xff]  }
 0x898   :  { %14886 = vmatpush3.bf16.msra.mxu1 %v17290_v6  ;;  %v14872_v46 = vpop.f32.mrf.mxu0 }
 0x899   :  { %14887 = vmatprep.subr.bf16.mxu1 %v17291_v55  ;;  %v10703_v29 = vadd.f32 %v14871_v44, %v10475_v53  ;;  %v17320_v55 = vld [vmem:[#allocation12 + $0x3b8] sm:$0xff]  }
 0x89a   :  { %v14873_v59 = vpop.f32.mrf.mxu0  ;;  %v17356_v44 = vld [vmem:[#allocation15 + $0xd0] sm:$0xff]  }
 0x89b   :  { %v14874_v22 = vadd.f32 %v14873_v59, %v14872_v46  ;;  %v17352_v46 = vld [vmem:[#allocation15 + $0xf0] sm:$0xff]   ;;  %v17353_v59 = vld [vmem:[#allocation15 + $0xe8] sm:$0xff]  }
 0x89c   :  { %14888 = vmatpush3.bf16.msra.mxu1 %v17292_v32 }
 0x89d   :  { %14889 = vmatprep.subr.bf16.mxu1 %v17293_v3  ;;  %v10706_v10 = vadd.f32 %v14874_v22, %v10475_v53  ;;  %v17321_v3 = vld [vmem:[#allocation12 + $0x3f0] sm:$0xff]   ;;  %v17355_v53 = vld [vmem:[#allocation15 + $0xd8] sm:$0xff]   ;;  %v17358_v22 = vld [vmem:[#allocation15 + $0xc0] sm:$0xff]  }
 0x8a0   :  { %14890 = vmatpush3.bf16.msra.mxu1 %v17294_v24  ;;  %v17322_v24 = vld [vmem:[#allocation12 + $0x3b0] sm:$0xff]  }
 0x8a1   :  { %14906 = vmatprep.subr.bf16.mxu1 %v17295_v57  ;;  %v17323_v57 = vld [vmem:[#allocation12 + $0x3e8] sm:$0xff]  }
 0x8a3   :  { %10742 = vmatmul.mubr.bf16.vlgmr.msra.gmra.mxu1 %v18424_v12 }
 0x8a4   :  { %14907 = vmatpush3.bf16.msra.mxu1 %v17296_v49  ;;  %11158 = vmatprep.mubr.bf16.mxu1 %v18410_v60  ;;  %v17324_v49 = vld [vmem:[#allocation12 + $0x3a8] sm:$0xff]  }
 0x8a5   :  { %14908 = vmatprep.subr.bf16.mxu1 %v17297_v16  ;;  %v17325_v16 = vld [vmem:[#allocation12 + $0x3e0] sm:$0xff]  }
 0x8a8   :  { %14909 = vmatpush3.bf16.msra.mxu1 %v17298_v21  ;;  %v17326_v21 = vld [vmem:[#allocation12 + $0x3a0] sm:$0xff]  }
 0x8a9   :  { %14910 = vmatprep.subr.bf16.mxu1 %v17299_v30  ;;  %v17327_v30 = vld [vmem:[#allocation12 + $0x3d8] sm:$0xff]  }
 0x8ac   :  { %14911 = vmatpush3.bf16.msra.mxu1 %v17300_v40  ;;  %v17328_v40 = vld [vmem:[#allocation12 + $0x398] sm:$0xff]  }
 0x8ad   :  { %14912 = vmatprep.subr.bf16.mxu1 %v17301_v8  ;;  %v17329_v8 = vld [vmem:[#allocation12 + $0x3d0] sm:$0xff]  }
 0x8b0   :  { %14913 = vmatpush3.bf16.msra.mxu1 %v17302_v23  ;;  %v17330_v23 = vld [vmem:[#allocation12 + $0x390] sm:$0xff]  }
 0x8b1   :  { %14914 = vmatprep.subr.bf16.mxu1 %v17303_v43  ;;  %v17331_v43 = vld [vmem:[#allocation12 + $0x3c8] sm:$0xff]  }
 0x8b4   :  { %14915 = vmatpush3.bf16.msra.mxu1 %v17304_v2  ;;  %v17332_v2 = vld [vmem:[#allocation12 + $0x388] sm:$0xff]  }
 0x8b5   :  { %14916 = vmatprep.subr.bf16.mxu1 %v17305_v28  ;;  %v17333_v28 = vld [vmem:[#allocation12 + $0x3c0] sm:$0xff]  }
 0x8b8   :  { %14917 = vmatpush3.bf16.msra.mxu1 %v17306_v26  ;;  %v17334_v26 = vld [vmem:[#allocation12 + $0x380] sm:$0xff]  }
 0x8b9   :  { %14918 = vmatprep.subr.bf16.mxu1 %v17307_v11  ;;  %v17335_v11 = vld [vmem:[%s19126_s11 + $0x78] sm:$0xff]  }
 0x8bc   :  { %14919 = vmatpush3.bf16.msra.mxu1 %v17308_v56  ;;  %v17336_v56 = vld [vmem:[%s19126_s11 + $0x38] sm:$0xff]  }
 0x8bd   :  { %14920 = vmatprep.subr.bf16.mxu1 %v17309_v34  ;;  %v17337_v34 = vld [vmem:[%s19126_s11 + $0x70] sm:$0xff]  }
 0x8c0   :  { %14921 = vmatpush3.bf16.msra.mxu1 %v17310_v48  ;;  %v17338_v48 = vld [vmem:[%s19126_s11 + $0x30] sm:$0xff]  }
 0x8c1   :  { %15178 = vmatprep.subr.bf16.mxu1 %v17837_v33 }
 0x8c3   :  { %11159 = vmatmul.mubr.bf16.vlgmr.msra.gmra.mxu1 %v18412_v5 }
 0x8c4   :  { %15194 = vmatprep.mubr.msk.bf16.mxu1 %vm17838_vm0, %v17837_v33  ;;  %15179 = vmatpush3.bf16.msra.mxu1 %v17351_v52  ;;  %v17378_v52 = vld [vmem:[%s19126_s11 + $0x130] sm:$0xff]  }
 0x8c5   :  { %15180 = vmatprep.subr.bf16.mxu1 %v17837_v33 }
 0x8c8   :  { %15181 = vmatpush3.bf16.msra.mxu1 %v17352_v46  ;;  %v17379_v46 = vld [vmem:[%s19126_s11 + $0x168] sm:$0xff]  }
 0x8c9   :  { %15182 = vmatprep.subr.bf16.mxu1 %v17837_v33 }
 0x8cc   :  { %15183 = vmatpush3.bf16.msra.mxu1 %v17353_v59  ;;  %v17380_v59 = vld [vmem:[%s19126_s11 + $0x128] sm:$0xff]  }
 0x8cd   :  { %15184 = vmatprep.subr.bf16.mxu1 %v17837_v33 }
 0x943   :  { %v18481_v62 = vpop.f32.mrf.mxu1 }
 0x945   :  { %v15156_v9 = vpop.f32.mrf.mxu1 }
 0x946   :  { %v17348_v9 = vld [vmem:[%s19126_s11 + $0x8] sm:$0xff]  }
 0x947   :  { %v18483_v20 = vpop.f32.mrf.mxu1 }
 0x949   :  { %v15157_v54 = vpop.f32.mrf.mxu1 }
 0x94a   :  { %v17349_v54 = vld [vmem:[%s19126_s11 + $0x40] sm:$0xff]  }
 0x963   :  { %v14891_v61 = vpop.f32.mrf.mxu1 }
 0x965   :  { %v14892_v25 = vpop.f32.mrf.mxu1 }
 0x966   :  { %v14893_v38 = vadd.f32 %v14892_v25, %v14891_v61  ;;  %v17354_v61 = vld [vmem:[#allocation15 + $0xe0] sm:$0xff]   ;;  %v17357_v25 = vld [vmem:[#allocation15 + $0xc8] sm:$0xff]  }
 0x967   :  { %v14894_v4 = vpop.f32.mrf.mxu1  ;;  %15185 = vmatpush3.bf16.msra.mxu1 %v17354_v61  ;;  %v17381_v61 = vld [vmem:[%s19126_s11 + $0x160] sm:$0xff]  }
 0x968   :  { %v10744_v47 = vadd.f32 %v14893_v38, %v10703_v29  ;;  %15186 = vmatprep.subr.bf16.mxu1 %v17837_v33  ;;  %v17359_v38 = vld [vmem:[%s19126_s11 + $0xf8] sm:$0xff]  }
 0x969   :  { %v14895_v13 = vpop.f32.mrf.mxu1 }
 0x96a   :  { %v14896_v7 = vadd.f32 %v14895_v13, %v14894_v4  ;;  %v10750_v42 = vmax.f32 %v10744_v47, 0.0 }
 0x96b   :  { %15187 = vmatpush3.bf16.msra.mxu1 %v17355_v53  ;;  %v17382_v53 = vld [vmem:[%s19126_s11 + $0x120] sm:$0xff]  }
 0x96c   :  { %v10747_v63 = vadd.f32 %v14896_v7, %v10706_v10  ;;  %15188 = vmatprep.subr.bf16.mxu1 %v17837_v33 }
 0x96e   :  { %v10751_v6 = vmax.f32 %v10747_v63, 0.0 }
 0x96f   :  { %15189 = vmatpush3.bf16.msra.mxu1 %v17356_v44  ;;  %v17383_v44 = vld [vmem:[%s19126_s11 + $0x158] sm:$0xff]  }
 0x970   :  { %v10752_v32 = vpack.c.bf16 %v10751_v6, %v10750_v42  ;;  %15190 = vmatprep.subr.bf16.mxu1 %v17837_v33 }
 0x972   :  { %15175 = vmatmul.mubr.bf16.vlgmr.msra.gmra.mxu0 %v10752_v32 }
 0x973   :  { %14929 = vmatpush3.bf16.msra.mxu0 %v17320_v55  ;;  %11199 = vmatprep.mubr.bf16.mxu0 %v18422_v27  ;;  %v10933_v55 = vrot.slane %v18443_v37, %v18378_v15  ;;  %v17361_v37 = vld [vmem:[%s19126_s11 + $0xf0] sm:$0xff]  }
 0x974   :  { %14930 = vmatprep.subr.bf16.mxu0 %v17321_v3  ;;  %15191 = vmatpush3.bf16.msra.mxu1 %v17357_v25  ;;  %v17384_v25 = vld [vmem:[%s19126_s11 + $0x118] sm:$0xff]  }
 0x975   :  { %15192 = vmatprep.subr.bf16.mxu1 %v17837_v33 }
 0x977   :  { %14931 = vmatpush3.bf16.msra.mxu0 %v17322_v24 }
 0x978   :  { %14932 = vmatprep.subr.bf16.mxu0 %v17323_v57  ;;  %15193 = vmatpush3.bf16.msra.mxu1 %v17358_v22  ;;  %v17385_v22 = vld [vmem:[%s19126_s11 + $0x150] sm:$0xff]  }
 0x979   :  { %14981 = vmatprep.subr.bf16.mxu1 %v17359_v38  ;;  %v17386_v38 = vld [vmem:[%s19126_s11 + $0x110] sm:$0xff]  }
 0x97b   :  { %14933 = vmatpush3.bf16.msra.mxu0 %v17324_v49 }
 0x97c   :  { %14934 = vmatprep.subr.bf16.mxu0 %v17325_v16 }
 0x97f   :  { %14935 = vmatpush3.bf16.msra.mxu0 %v17326_v21 }
 0x980   :  { %14936 = vmatprep.subr.bf16.mxu0 %v17327_v30 }
 0x983   :  { %14937 = vmatpush3.bf16.msra.mxu0 %v17328_v40  ;;  %v14922_v47 = vpop.f32.mrf.mxu1 }
 0x984   :  { %14938 = vmatprep.subr.bf16.mxu0 %v17329_v8 }
 0x985   :  { %v14923_v7 = vpop.f32.mrf.mxu1 }
 0x986   :  { %v14924_v32 = vadd.f32 %v14923_v7, %v14922_v47  ;;  %v17389_v47 = vld [vmem:[%s19126_s11 + $0x140] sm:$0xff]  }
 0x987   :  { %14939 = vmatpush3.bf16.msra.mxu0 %v17330_v23  ;;  %v14925_v63 = vpop.f32.mrf.mxu1  ;;  %v17390_v7 = vld [vmem:[%s19126_s11 + $0x100] sm:$0xff]  }
 0x988   :  { %14940 = vmatprep.subr.bf16.mxu0 %v17331_v43  ;;  %v11161_v16 = vadd.f32 %v14924_v32, %v10933_v55 }
 0x989   :  { %v14926_v42 = vpop.f32.mrf.mxu1 }
 0x98a   :  { %v14927_v24 = vadd.f32 %v14926_v42, %v14925_v63 }
 0x98b   :  { %14941 = vmatpush3.bf16.msra.mxu0 %v17332_v2 }
 0x98c   :  { %14942 = vmatprep.subr.bf16.mxu0 %v17333_v28  ;;  %v11164_v30 = vadd.f32 %v14927_v24, %v10933_v55  ;;  %v17360_v28 = vld [vmem:[%s19126_s11 + $0xb8] sm:$0xff]  }
 0x98d   :  { %v18662_v24 = vld [vmem:[#allocation18] sm:$0x7] }
 0x98f   :  { %14943 = vmatpush3.bf16.msra.mxu0 %v17334_v26 }
 0x990   :  { %14959 = vmatprep.subr.bf16.mxu0 %v17335_v11  ;;  %v17362_v11 = vld [vmem:[%s19126_s11 + $0xb0] sm:$0xff]  }
 0x992   :  { %11200 = vmatmul.mubr.bf16.vlgmr.msra.gmra.mxu0 %v18424_v12 }
 0x993   :  { %14960 = vmatpush3.bf16.msra.mxu0 %v17336_v56  ;;  %11615 = vmatprep.mubr.bf16.mxu0 %v18410_v60  ;;  %v17363_v56 = vld [vmem:[%s19126_s11 + $0xe8] sm:$0xff]  }
 0x994   :  { %14961 = vmatprep.subr.bf16.mxu0 %v17337_v34  ;;  %v17364_v34 = vld [vmem:[%s19126_s11 + $0xa8] sm:$0xff]  }
 0x997   :  { %14962 = vmatpush3.bf16.msra.mxu0 %v17338_v48  ;;  %v17365_v48 = vld [vmem:[%s19126_s11 + $0xe0] sm:$0xff]  }
 0x998   :  { %14963 = vmatprep.subr.bf16.mxu0 %v17339_v50  ;;  %v17366_v50 = vld [vmem:[%s19126_s11 + $0xa0] sm:$0xff]  }
 0x99b   :  { %14964 = vmatpush3.bf16.msra.mxu0 %v17340_v39  ;;  %v17367_v39 = vld [vmem:[%s19126_s11 + $0xd8] sm:$0xff]  }
 0x99c   :  { %14965 = vmatprep.subr.bf16.mxu0 %v17341_v36  ;;  %v17368_v36 = vld [vmem:[%s19126_s11 + $0x98] sm:$0xff]  }
 0x99f   :  { %14966 = vmatpush3.bf16.msra.mxu0 %v17342_v35  ;;  %v17369_v35 = vld [vmem:[%s19126_s11 + $0xd0] sm:$0xff]  }
 0x9a0   :  { %14967 = vmatprep.subr.bf16.mxu0 %v17343_v18  ;;  %v17370_v18 = vld [vmem:[%s19126_s11 + $0x90] sm:$0xff]  }
 0x9a3   :  { %14968 = vmatpush3.bf16.msra.mxu0 %v17344_v1  ;;  %v17371_v1 = vld [vmem:[%s19126_s11 + $0xc8] sm:$0xff]  }
 0x9a4   :  { %14969 = vmatprep.subr.bf16.mxu0 %v17345_v14  ;;  %v17372_v14 = vld [vmem:[%s19126_s11 + $0x88] sm:$0xff]  }
 0x9a7   :  { %14970 = vmatpush3.bf16.msra.mxu0 %v17346_v58  ;;  %v17373_v58 = vld [vmem:[%s19126_s11 + $0xc0] sm:$0xff]  }
 0x9a8   :  { %14971 = vmatprep.subr.bf16.mxu0 %v17347_v19  ;;  %v17374_v19 = vld [vmem:[%s19126_s11 + $0x80] sm:$0xff]  }
 0x9ab   :  { %14972 = vmatpush3.bf16.msra.mxu0 %v17348_v9  ;;  %v17375_v9 = vld [vmem:[%s19126_s11 + $0x178] sm:$0xff]  }
 0x9ac   :  { %14973 = vmatprep.subr.bf16.mxu0 %v17349_v54  ;;  %v17376_v54 = vld [vmem:[%s19126_s11 + $0x138] sm:$0xff]  }
 0x9af   :  { %14974 = vmatpush3.bf16.msra.mxu0 %v17350_v41  ;;  %v17377_v41 = vld [vmem:[%s19126_s11 + $0x170] sm:$0xff]  }
 0x9b0   :  { %15198 = vmatprep.subr.bf16.mxu0 %v17837_v33 }
 0x9b2   :  { %11616 = vmatmul.mubr.bf16.vlgmr.msra.gmra.mxu0 %v18412_v5 }
 0x9b3   :  { %15214 = vmatprep.mubr.msk.bf16.mxu0 %vm17838_vm0, %v17837_v33 }
 0xa32   :  { %v18552_v4 = vpop.f32.mrf.mxu0 }
 0xa34   :  { %v15176_v29 = vpop.f32.mrf.mxu0 }
 0xa35   :  { %v17387_v29 = vld [vmem:[%s19126_s11 + $0x148] sm:$0xff]  }
 0xa36   :  { %v18554_v13 = vpop.f32.mrf.mxu0 }
 0xa38   :  { %v15177_v10 = vpop.f32.mrf.mxu0 }
 0xa39   :  { %v17388_v10 = vld [vmem:[%s19126_s11 + $0x108] sm:$0xff]  }
 0xa52   :  { %v14944_v6 = vpop.f32.mrf.mxu0 }
 0xa54   :  { %v14945_v3 = vpop.f32.mrf.mxu0 }
 0xa55   :  { %v14946_v57 = vadd.f32 %v14945_v3, %v14944_v6 }
 0xa56   :  { %v14947_v49 = vpop.f32.mrf.mxu0 }
 0xa57   :  { %v11202_v40 = vadd.f32 %v14946_v57, %v11161_v16 }
 0xa58   :  { %v14948_v21 = vpop.f32.mrf.mxu0 }
 0xa59   :  { %v14949_v8 = vadd.f32 %v14948_v21, %v14947_v49  ;;  %v11208_v43 = vmax.f32 %v11202_v40, 0.0  ;;  %v11390_v49 = vrot.slane %v18662_v24, %v18027_v17 }
 0xa5b   :  { %v11205_v23 = vadd.f32 %v14949_v8, %v11164_v30 }
 0xa5d   :  { %v11209_v2 = vmax.f32 %v11205_v23, 0.0 }
 0xa5f   :  { %v11210_v26 = vpack.c.bf16 %v11209_v2, %v11208_v43 }
 0xa61   :  { %15195 = vmatmul.mubr.bf16.vlgmr.msra.gmra.mxu1 %v11210_v26 }
 0xa62   :  { %14982 = vmatpush3.bf16.msra.mxu1 %v17360_v28  ;;  %11656 = vmatprep.mubr.bf16.mxu1 %v18422_v27 }
 0xa63   :  { %14983 = vmatprep.subr.bf16.mxu1 %v17361_v37 }
 0xa66   :  { %14984 = vmatpush3.bf16.msra.mxu1 %v17362_v11 }
 0xa67   :  { %14985 = vmatprep.subr.bf16.mxu1 %v17363_v56 }
 0xa6a   :  { %14986 = vmatpush3.bf16.msra.mxu1 %v17364_v34 }
 0xa6b   :  { %14987 = vmatprep.subr.bf16.mxu1 %v17365_v48 }
 0xa6e   :  { %14988 = vmatpush3.bf16.msra.mxu1 %v17366_v50 }
 0xa6f   :  { %14989 = vmatprep.subr.bf16.mxu1 %v17367_v39 }
 0xa72   :  { %14990 = vmatpush3.bf16.msra.mxu1 %v17368_v36  ;;  %v14975_v32 = vpop.f32.mrf.mxu0 }
 0xa73   :  { %14991 = vmatprep.subr.bf16.mxu1 %v17369_v35 }
 0xa74   :  { %v14976_v3 = vpop.f32.mrf.mxu0 }
 0xa75   :  { %v14977_v16 = vadd.f32 %v14976_v3, %v14975_v32  ;;  %v17398_v32 = vld [vmem:[%s19128_s13] sm:$0xff]   ;;  %v17399_v3 = vld [vmem:[%s19126_s11 + $0x1f8] sm:$0xff]  }
 0xa76   :  { %14992 = vmatpush3.bf16.msra.mxu1 %v17370_v18  ;;  %v14978_v57 = vpop.f32.mrf.mxu0 }
 0xa77   :  { %14993 = vmatprep.subr.bf16.mxu1 %v17371_v1  ;;  %v11618_v8 = vadd.f32 %v14977_v16, %v11390_v49 }
 0xa78   :  { %v14979_v21 = vpop.f32.mrf.mxu0 }
 0xa79   :  { %v14980_v23 = vadd.f32 %v14979_v21, %v14978_v57  ;;  %v9488_v21 = vld [vmem:[#allocation16] sm:$0xf] }
 0xa7a   :  { %14994 = vmatpush3.bf16.msra.mxu1 %v17372_v14 }
 0xa7b   :  { %14995 = vmatprep.subr.bf16.mxu1 %v17373_v58  ;;  %v11621_v37 = vadd.f32 %v14980_v23, %v11390_v49  ;;  %v10773_v23 = vrot.slane %v9488_v21, %v18381_v51 }
 0xa7e   :  { %14996 = vmatpush3.bf16.msra.mxu1 %v17374_v19 }
 0xa7f   :  { %15012 = vmatprep.subr.bf16.mxu1 %v17375_v9 }
 0xa81   :  { %11657 = vmatmul.mubr.bf16.vlgmr.msra.gmra.mxu1 %v18424_v12 }
 0xa82   :  { %15013 = vmatpush3.bf16.msra.mxu1 %v17376_v54  ;;  %12172 = vmatprep.mubr.bf16.mxu1 %v18410_v60  ;;  %v17839_v54 = vmov 1  }
 0xa83   :  { %15014 = vmatprep.subr.bf16.mxu1 %v17377_v41  ;;  %15285 = vset.pattern.permute.xlu1 %v17839_v54  ;;  %v17840_v41 = vmov 0  }
 0xa84   :  { %15284 = vset.pattern.permute.xlu0 %v17840_v41 }
 0xa86   :  { %15015 = vmatpush3.bf16.msra.mxu1 %v17378_v52 }
 0xa87   :  { %15016 = vmatprep.subr.bf16.mxu1 %v17379_v46 }
 0xa8a   :  { %15017 = vmatpush3.bf16.msra.mxu1 %v17380_v59 }
 0xa8b   :  { %15018 = vmatprep.subr.bf16.mxu1 %v17381_v61 }
 0xa8e   :  { %15019 = vmatpush3.bf16.msra.mxu1 %v17382_v53  ;;  %v17391_v53 = vld [vmem:[%s19128_s13 + $0x38] sm:$0xff]  }
 0xa8f   :  { %15020 = vmatprep.subr.bf16.mxu1 %v17383_v44  ;;  %15199 = vmatpush3.bf16.msra.mxu0 %v17391_v53  ;;  %v17392_v44 = vld [vmem:[%s19128_s13 + $0x30] sm:$0xff]  }
 0xa90   :  { %15200 = vmatprep.subr.bf16.mxu0 %v17837_v33 }
 0xa92   :  { %15021 = vmatpush3.bf16.msra.mxu1 %v17384_v25  ;;  %v17841_v25 = vmov 2  }
 0xa93   :  { %15022 = vmatprep.subr.bf16.mxu1 %v17385_v22  ;;  %15201 = vmatpush3.bf16.msra.mxu0 %v17392_v44  ;;  %v17393_v22 = vld [vmem:[%s19128_s13 + $0x28] sm:$0xff]  }
 0xa94   :  { %15202 = vmatprep.subr.bf16.mxu0 %v17837_v33 }
 0xa96   :  { %15023 = vmatpush3.bf16.msra.mxu1 %v17386_v38  ;;  %v17842_v38 = vmov 3  }
 0xa97   :  { %15024 = vmatprep.subr.bf16.mxu1 %v17387_v29  ;;  %15203 = vmatpush3.bf16.msra.mxu0 %v17393_v22 }
 0xa98   :  { %15204 = vmatprep.subr.bf16.mxu0 %v17837_v33 }
 0xa9a   :  { %15025 = vmatpush3.bf16.msra.mxu1 %v17388_v10  ;;  %v17394_v10 = vld [vmem:[%s19128_s13 + $0x20] sm:$0xff]  }
 0xa9b   :  { %15026 = vmatprep.subr.bf16.mxu1 %v17389_v47  ;;  %15205 = vmatpush3.bf16.msra.mxu0 %v17394_v10  ;;  %v17400_v10 = vld [vmem:[%s19126_s11 + $0x1b8] sm:$0xff]  }
 0xa9c   :  { %15206 = vmatprep.subr.bf16.mxu0 %v17837_v33 }
 0xa9e   :  { %15027 = vmatpush3.bf16.msra.mxu1 %v17390_v7  ;;  %v17395_v7 = vld [vmem:[%s19128_s13 + $0x18] sm:$0xff]  }
 0xa9f   :  { %15218 = vmatprep.subr.bf16.mxu1 %v17837_v33  ;;  %15207 = vmatpush3.bf16.msra.mxu0 %v17395_v7 }
 0xaa0   :  { %15208 = vmatprep.subr.bf16.mxu0 %v17837_v33 }
 0xaa1   :  { %12173 = vmatmul.mubr.bf16.vlgmr.msra.gmra.mxu1 %v18412_v5 }
 0xaa2   :  { %15234 = vmatprep.mubr.msk.bf16.mxu1 %vm17838_vm0, %v17837_v33 }
 0xb21   :  { %v18658_v63 = vpop.f32.mrf.mxu1 }
 0xb23   :  { %v15196_v42 = vpop.f32.mrf.mxu1 }
 0xb24   :  { %v17396_v42 = vld [vmem:[%s19128_s13 + $0x10] sm:$0xff]  }
 0xb25   :  { %v18660_v6 = vpop.f32.mrf.mxu1  ;;  %15209 = vmatpush3.bf16.msra.mxu0 %v17396_v42  ;;  %v17401_v42 = vld [vmem:[%s19126_s11 + $0x1f0] sm:$0xff]  }
 0xb26   :  { %15210 = vmatprep.subr.bf16.mxu0 %v17837_v33 }
 0xb27   :  { %v15197_v55 = vpop.f32.mrf.mxu1 }
 0xb28   :  { %v17397_v55 = vld [vmem:[%s19128_s13 + $0x8] sm:$0xff]  }
 0xb29   :  { %15211 = vmatpush3.bf16.msra.mxu0 %v17397_v55  ;;  %v17402_v55 = vld [vmem:[%s19126_s11 + $0x1b0] sm:$0xff]  }
 0xb2a   :  { %15212 = vmatprep.subr.bf16.mxu0 %v17837_v33 }
 0xb2d   :  { %15213 = vmatpush3.bf16.msra.mxu0 %v17398_v32  ;;  %v17403_v32 = vld [vmem:[%s19126_s11 + $0x1e8] sm:$0xff]  }
 0xb2e   :  { %15034 = vmatprep.subr.bf16.mxu0 %v17399_v3  ;;  %v17404_v3 = vld [vmem:[%s19126_s11 + $0x1a8] sm:$0xff]  }
 0xb41   :  { %v14997_v30 = vpop.f32.mrf.mxu1 }
 0xb43   :  { %v14998_v40 = vpop.f32.mrf.mxu1 }
 0xb44   :  { %v14999_v43 = vadd.f32 %v14998_v40, %v14997_v30  ;;  %v9857_v30 = vrot.slane %v9488_v21, %v18027_v17  ;;  %v10315_v40 = vrot.slane %v9488_v21, %v18295_v31 }
 0xb45   :  { %v15000_v2 = vpop.f32.mrf.mxu1 }
 0xb46   :  { %v11659_v28 = vadd.f32 %v14999_v43, %v11618_v8  ;;  %v9941_v43 = vadd.f32 %v18461_v45, %v9857_v30 }
 0xb47   :  { %v15001_v26 = vpop.f32.mrf.mxu1 }
 0xb48   :  { %v15002_v11 = vadd.f32 %v15001_v26, %v15000_v2  ;;  %v11666_v56 = vsel %vm11665_vm1, %v11659_v28, -inf  ;;  %v10399_v2 = vadd.f32 %v18481_v62, %v10315_v40  ;;  %v11231_v26 = vrot.slane %v9488_v21, %v18378_v15  ;;  %v17408_v21 = vld [vmem:[%s19126_s11 + $0x198] sm:$0xff]  }
 0xb49   :  { %11667 = vmax.xlane.f32.xlu0 %v11666_v56  ;;  %v10860_v56 = vadd.f32 %v18554_v13, %v10773_v23 }
 0xb4a   :  { %v11662_v34 = vadd.f32 %v15002_v11, %v11621_v37  ;;  %v9944_v37 = vadd.f32 %v18463_v0, %v9857_v30  ;;  %v10857_v11 = vadd.f32 %v18552_v4, %v10773_v23  ;;  %v11315_v45 = vadd.f32 %v18658_v63, %v11231_v26  ;;  %v17409_v30 = vld [vmem:[%s19126_s11 + $0x1d0] sm:$0xff]   ;;  %v17412_v23 = vld [vmem:[%s19126_s11 + $0x188] sm:$0xff]  }
 0xb4b   :  { %v18746_v15 = vmax.f32 %v10860_v56, 0.0  ;;  %v11318_v0 = vadd.f32 %v18660_v6, %v11231_v26  ;;  %v17416_v26 = vld [vmem:[%s19126_s11 + $0x238] sm:$0xff]   ;;  %v17419_v56 = vld [vmem:[%s19126_s11 + $0x268] sm:$0xff]  }
 0xb4c   :  { %v11669_v48 = vsel %vm11665_vm1, %v11662_v34, -inf  ;;  %v18742_v62 = vmax.f32 %v9944_v37, 0.0  ;;  %v17417_v37 = vld [vmem:[%s19126_s11 + $0x270] sm:$0xff]  }
 0xb4d   :  { %11670 = vmax.xlane.f32.xlu0 %v11669_v48 }
 0xbd2   :  { %v11668_v50 = vpop.xlane.xlu0 %11667 }
 0xbd3   :  { %v11672_v39 = vsub.f32 %v11659_v28, %v11668_v50  ;;  %v10402_v28 = vadd.f32 %v18483_v20, %v10315_v40  ;;  %v18735_v50 = vmax.f32 %v9941_v43, 0.0  ;;  %v18744_v20 = vmax.f32 %v10857_v11, 0.0  ;;  %v17410_v40 = vld [vmem:[%s19126_s11 + $0x190] sm:$0xff]   ;;  %v17413_v43 = vld [vmem:[%s19126_s11 + $0x1c0] sm:$0xff]  }
 0xbd4   :  { %v17418_v11 = vld [vmem:[%s19126_s11 + $0x230] sm:$0xff]  }
 0xbd5   :  { %v11674_v36 = vmul.f32 1.442695, %v11672_v39  ;;  %v18737_v39 = vmax.f32 %v10399_v2, 0.0  ;;  %v17414_v2 = vld [vmem:[%s19126_s11 + $0x180] sm:$0xff]  }
 0xbd6   :  { %v11671_v35 = vpop.xlane.xlu0 %11670 }
 0xbd7   :  { %17463 = vpow2.f32 %v11674_v36  ;;  %v11673_v18 = vsub.f32 %v11662_v34, %v11671_v35  ;;  %v18739_v36 = vmax.f32 %v10402_v28, 0.0  ;;  %v17415_v28 = vld [vmem:[%s19126_s11 + $0x278] sm:$0xff]  }
 0xbd9   :  { %v11676_v1 = vmul.f32 1.442695, %v11673_v18 }
 0xbdb   :  { %17465 = vpow2.f32 %v11676_v1  ;;  %v18752_v1 = vmax.f32 %v11315_v45, 0.0  ;;  %v17423_v45 = vld [vmem:[%s19126_s11 + $0x258] sm:$0xff]  }
 0xbe4   :  { %v17464_v14 = vpop.eup %17463 }
 0xbe5   :  { %v11678_v58 = vsel %vm11665_vm1, %v17464_v14, 0.0 }
 0xbe6   :  { %11679 = vadd.xlane.f32.xlu1 %v11678_v58 }
 0xbe8   :  { %v17466_v19 = vpop.eup %17465 }
 0xbe9   :  { %v11681_v9 = vsel %vm11665_vm1, %v17466_v19, 0.0 }
 0xbea   :  { %11682 = vadd.xlane.f32.xlu1 %v11681_v9 }
 0xc6f   :  { %v11680_v52 = vpop.xlane.xlu1 %11679 }
 0xc70   :  { %17467 = vrcp.f32 %v11680_v52 }
 0xc73   :  { %v11683_v46 = vpop.xlane.xlu1 %11682 }
 0xc74   :  { %17469 = vrcp.f32 %v11683_v46 }
 0xc7d   :  { %v17468_v59 = vpop.eup %17467 }
 0xc7e   :  { %v18672_v61 = vmul.f32 %v17468_v59, %v17464_v14 }
 0xc80   :  { %11690 = vperm.xlu0 %15284, %v18672_v61   ;;  %11701 = vperm.xlu1 %15285, %v18672_v61  }
 0xc81   :  { %v17470_v29 = vpop.eup %17469 }
 0xc82   :  { %v18695_v47 = vmul.f32 %v17470_v29, %v17466_v19  ;;  %v18757_v19 = vmax.f32 %v11318_v0, 0.0  ;;  %v17424_v0 = vld [vmem:[%s19126_s11 + $0x218] sm:$0xff]  }
 0xc84   :  { %15286 = vset.pattern.permute.xlu1 %v17841_v25 }
 0xc85   :  { %11713 = vperm.xlu1 %15286, %v18672_v61  }
 0xc89   :  { %15287 = vset.pattern.permute.xlu1 %v17842_v38 }
 0xc8a   :  { %11725 = vperm.xlu1 %15287, %v18672_v61  }
 0xc8e   :  { %15288 = vset.pattern.permute.xlu1 %v17840_v41 }
 0xc8f   :  { %11695 = vperm.xlu1 %15288, %v18695_v47  }
 0xc93   :  { %15289 = vset.pattern.permute.xlu1 %v17839_v54 }
 0xc94   :  { %11705 = vperm.xlu1 %15289, %v18695_v47  }
 0xc98   :  { %15290 = vset.pattern.permute.xlu1 %v17841_v25 }
 0xc99   :  { %11717 = vperm.xlu1 %15290, %v18695_v47  }
 0xc9d   :  { %15291 = vset.pattern.permute.xlu1 %v17842_v38 }
 0xc9e   :  { %11729 = vperm.xlu1 %15291, %v18695_v47  }
 0xca2   :  { %15292 = vset.pattern.permute.xlu1 %v17839_v54 }
 0xcfb   :  { %v11702_v57 = vpop.permute.xlu1 %11701  ;;  %v11691_v48 = vpop.permute.xlu0 %11690 }
 0xcfc   :  { %v11708_v4 = vmul.f32 %v11702_v57, %v18737_v39  ;;  %v11698_v13 = vmul.f32 %v11691_v48, %v18735_v50  ;;  %v17405_v57 = vld [vmem:[%s19126_s11 + $0x1e0] sm:$0xff]  }
 0xcfd   :  { %v17421_v48 = vld [vmem:[%s19126_s11 + $0x260] sm:$0xff]  }
 0xcfe   :  { %v11710_v9 = vadd.f32 %v11708_v4, %v11698_v13  ;;  %v17425_v4 = vld [vmem:[%s19126_s11 + $0x250] sm:$0xff]  }
 0xcff   :  { %v17426_v13 = vld [vmem:[%s19126_s11 + $0x210] sm:$0xff]  }
 0xd00   :  { %v11714_v49 = vpop.permute.xlu1 %11713 }
 0xd01   :  { %v11720_v14 = vmul.f32 %v11714_v49, %v18744_v20  ;;  %v17406_v49 = vld [vmem:[%s19126_s11 + $0x1a0] sm:$0xff]  }
 0xd03   :  { %v11722_v59 = vadd.f32 %v11720_v14, %v11710_v9  ;;  %v17429_v14 = vld [vmem:[%s19126_s11 + $0x240] sm:$0xff]  }
 0xd05   :  { %v11726_v16 = vpop.permute.xlu1 %11725 }
 0xd06   :  { %v11732_v6 = vmul.f32 %v11726_v16, %v18752_v1  ;;  %v17407_v16 = vld [vmem:[%s19126_s11 + $0x1d8] sm:$0xff]  }
 0xd08   :  { %v11734_v22 = vadd.f32 %v11732_v6, %v11722_v59  ;;  %v18869_v59 = vld [vmem:[#allocation21] sm:$0x7] }
 0xd0a   :  { %v11696_v8 = vpop.permute.xlu1 %11695 }
 0xd0b   :  { %v11699_v63 = vmul.f32 %v11696_v8, %v18742_v62  ;;  %v17411_v8 = vld [vmem:[%s19126_s11 + $0x1c8] sm:$0xff]  }
 0xd0f   :  { %v11706_v34 = vpop.permute.xlu1 %11705 }
 0xd10   :  { %v11709_v35 = vmul.f32 %v11706_v34, %v18739_v36  ;;  %v17420_v34 = vld [vmem:[%s19126_s11 + $0x228] sm:$0xff]  }
 0xd12   :  { %v11711_v52 = vadd.f32 %v11709_v35, %v11699_v63  ;;  %v17427_v35 = vld [vmem:[%s19126_s11 + $0x248] sm:$0xff]   ;;  %v17430_v63 = vld [vmem:[%s19126_s11 + $0x200] sm:$0xff]  }
 0xd14   :  { %v11718_v18 = vpop.permute.xlu1 %11717 }
 0xd15   :  { %v11721_v58 = vmul.f32 %v11718_v18, %v18746_v15  ;;  %v17428_v18 = vld [vmem:[%s19126_s11 + $0x208] sm:$0xff]  }
 0xd17   :  { %v11723_v53 = vadd.f32 %v11721_v58, %v11711_v52  ;;  %v18861_v58 = vld [vmem:[#allocation19] sm:$0x7] }
 0xd18   :  { %v18867_v52 = vrot.slane %v18861_v58, %v18027_v17 }
 0xd19   :  { %v11730_v46 = vpop.permute.xlu1 %11729 }
 0xd1a   :  { %v11733_v44 = vmul.f32 %v11730_v46, %v18757_v19 }
 0xd1c   :  { %v11735_v29 = vadd.f32 %v11733_v44, %v11723_v53 }
 0xd1e   :  { %v11736_v7 = vpack.c.bf16 %v11735_v29, %v11734_v22 }
 0xd20   :  { %15215 = vmatmul.mubr.bf16.vlgmr.msra.gmra.mxu0 %v11736_v7 }
 0xd21   :  { %15035 = vmatpush3.bf16.msra.mxu0 %v17400_v10  ;;  %12213 = vmatprep.mubr.bf16.mxu0 %v18422_v27  ;;  %v15028_v10 = vpop.f32.mrf.mxu1 }
 0xd22   :  { %15036 = vmatprep.subr.bf16.mxu0 %v17401_v42 }
 0xd23   :  { %v15029_v7 = vpop.f32.mrf.mxu1 }
 0xd25   :  { %15037 = vmatpush3.bf16.msra.mxu0 %v17402_v55  ;;  %v15031_v42 = vpop.f32.mrf.mxu1  ;;  %v11947_v55 = vrot.slane %v18662_v24, %v18295_v31 }
 0xd26   :  { %15038 = vmatprep.subr.bf16.mxu0 %v17403_v32  ;;  %v15030_v32 = vadd.f32 %v15029_v7, %v15028_v10 }
 0xd29   :  { %15039 = vmatpush3.bf16.msra.mxu0 %v17404_v3  ;;  %v15032_v3 = vpop.f32.mrf.mxu1 }
 0xd2a   :  { %15040 = vmatprep.subr.bf16.mxu0 %v17405_v57 }
 0xd2d   :  { %15041 = vmatpush3.bf16.msra.mxu0 %v17406_v49 }
 0xd2e   :  { %15042 = vmatprep.subr.bf16.mxu0 %v17407_v16  ;;  %v12175_v16 = vadd.f32 %v15030_v32, %v11947_v55  ;;  %v17437_v32 = vld [vmem:[%s19128_s13 + $0x48] sm:$0xff]  }
 0xd31   :  { %15043 = vmatpush3.bf16.msra.mxu0 %v17408_v21  ;;  %v15033_v21 = vadd.f32 %v15032_v3, %v15031_v42  ;;  %v17435_v42 = vld [vmem:[%s19128_s13 + $0x58] sm:$0xff]   ;;  %v17438_v3 = vld [vmem:[%s19128_s13 + $0x40] sm:$0xff]  }
 0xd32   :  { %15044 = vmatprep.subr.bf16.mxu0 %v17409_v30 }
 0xd35   :  { %15045 = vmatpush3.bf16.msra.mxu0 %v17410_v40 }
 0xd36   :  { %15046 = vmatprep.subr.bf16.mxu0 %v17411_v8 }
 0xd39   :  { %15047 = vmatpush3.bf16.msra.mxu0 %v17412_v23 }
 0xd3a   :  { %15048 = vmatprep.subr.bf16.mxu0 %v17413_v43  ;;  %v12178_v43 = vadd.f32 %v15033_v21, %v11947_v55  ;;  %v17436_v55 = vld [vmem:[%s19128_s13 + $0x50] sm:$0xff]  }
 0xd3d   :  { %15049 = vmatpush3.bf16.msra.mxu0 %v17414_v2 }
 0xd3e   :  { %15065 = vmatprep.subr.bf16.mxu0 %v17415_v28 }
 0xd40   :  { %12214 = vmatmul.mubr.bf16.vlgmr.msra.gmra.mxu0 %v18424_v12 }
 0xd41   :  { %15066 = vmatpush3.bf16.msra.mxu0 %v17416_v26  ;;  %12728 = vmatprep.mubr.bf16.mxu0 %v18410_v60  ;;  %v17422_v60 = vld [vmem:[%s19126_s11 + $0x220] sm:$0xff]  }
 0xd42   :  { %15067 = vmatprep.subr.bf16.mxu0 %v17417_v37 }
 0xd45   :  { %15068 = vmatpush3.bf16.msra.mxu0 %v17418_v11 }
 0xd46   :  { %15069 = vmatprep.subr.bf16.mxu0 %v17419_v56 }
 0xd49   :  { %15070 = vmatpush3.bf16.msra.mxu0 %v17420_v34 }
 0xd4a   :  { %15071 = vmatprep.subr.bf16.mxu0 %v17421_v48 }
 0xd4d   :  { %15072 = vmatpush3.bf16.msra.mxu0 %v17422_v60 }
 0xd4e   :  { %15073 = vmatprep.subr.bf16.mxu0 %v17423_v45 }
 0xd51   :  { %15074 = vmatpush3.bf16.msra.mxu0 %v17424_v0 }
 0xd52   :  { %15075 = vmatprep.subr.bf16.mxu0 %v17425_v4 }
 0xd55   :  { %15076 = vmatpush3.bf16.msra.mxu0 %v17426_v13 }
 0xd56   :  { %15077 = vmatprep.subr.bf16.mxu0 %v17427_v35 }
 0xd59   :  { %15078 = vmatpush3.bf16.msra.mxu0 %v17428_v18  ;;  %v17431_v18 = vld [vmem:[%s19128_s13 + $0x78] sm:$0xff]  }
 0xd5a   :  { %15079 = vmatprep.subr.bf16.mxu0 %v17429_v14  ;;  %15219 = vmatpush3.bf16.msra.mxu1 %v17431_v18  ;;  %v17432_v14 = vld [vmem:[%s19128_s13 + $0x70] sm:$0xff]   ;;  %v17440_v18 = vld [vmem:[%s19126_s11 + $0x2b8] sm:$0xff]  }
 0xd5b   :  { %15220 = vmatprep.subr.bf16.mxu1 %v17837_v33 }
 0xd5d   :  { %15080 = vmatpush3.bf16.msra.mxu0 %v17430_v63 }
 0xd5e   :  { %15238 = vmatprep.subr.bf16.mxu0 %v17837_v33  ;;  %15221 = vmatpush3.bf16.msra.mxu1 %v17432_v14 }
 0xd5f   :  { %15222 = vmatprep.subr.bf16.mxu1 %v17837_v33 }
 0xd60   :  { %12729 = vmatmul.mubr.bf16.vlgmr.msra.gmra.mxu0 %v18412_v5  ;;  %v18874_v5 = vrot.slane %v18869_v59, %v18027_v17 }
 0xd61   :  { %15254 = vmatprep.mubr.msk.bf16.mxu0 %vm17838_vm0, %v17837_v33 }
 0xde0   :  { %v18863_v9 = vpop.f32.mrf.mxu0 }
 0xde2   :  { %v15216_v6 = vpop.f32.mrf.mxu0 }
 0xde4   :  { %v11842_v46 = vpop.f32.mrf.mxu0 }
 0xde5   :  { %v11843_v53 = vadd.f32 %v11842_v46, %v18867_v52  ;;  %v17433_v46 = vld [vmem:[%s19128_s13 + $0x68] sm:$0xff]  }
 0xde6   :  { %v15217_v44 = vpop.f32.mrf.mxu0  ;;  %15223 = vmatpush3.bf16.msra.mxu1 %v17433_v46  ;;  %v17443_v46 = vld [vmem:[%s19126_s11 + $0x2e8] sm:$0xff]  }
 0xde7   :  { %v11847_v22 = vmax.f32 %v11843_v53, 0.0  ;;  %15224 = vmatprep.subr.bf16.mxu1 %v17837_v33 }
 0xde9   :  { %v18877_v29 = vmul.f32 %v18874_v5, %v11847_v22  ;;  %v17434_v22 = vld [vmem:[%s19128_s13 + $0x60] sm:$0xff]  }
 0xdea   :  { %15225 = vmatpush3.bf16.msra.mxu1 %v17434_v22  ;;  %v17445_v22 = vld [vmem:[%s19126_s11 + $0x2e0] sm:$0xff]  }
 0xdeb   :  { %15226 = vmatprep.subr.bf16.mxu1 %v17837_v33 }
 0xdee   :  { %15227 = vmatpush3.bf16.msra.mxu1 %v17435_v42  ;;  %v17448_v42 = vld [vmem:[%s19126_s11 + $0x298] sm:$0xff]  }
 0xdef   :  { %15228 = vmatprep.subr.bf16.mxu1 %v17837_v33 }
 0xdf2   :  { %15229 = vmatpush3.bf16.msra.mxu1 %v17436_v55  ;;  %v17449_v55 = vld [vmem:[%s19126_s11 + $0x2d0] sm:$0xff]  }
 0xdf3   :  { %15230 = vmatprep.subr.bf16.mxu1 %v17837_v33 }
 0xdf6   :  { %15231 = vmatpush3.bf16.msra.mxu1 %v17437_v32  ;;  %v17450_v32 = vld [vmem:[%s19126_s11 + $0x290] sm:$0xff]  }
 0xdf7   :  { %15232 = vmatprep.subr.bf16.mxu1 %v17837_v33 }
 0xdfa   :  { %15233 = vmatpush3.bf16.msra.mxu1 %v17438_v3  ;;  %v17451_v3 = vld [vmem:[%s19126_s11 + $0x2c8] sm:$0xff]  }
 0xe00   :  { %v15050_v57 = vpop.f32.mrf.mxu0 }
 0xe02   :  { %v15051_v49 = vpop.f32.mrf.mxu0 }
 0xe03   :  { %v15052_v30 = vadd.f32 %v15051_v49, %v15050_v57  ;;  %v17439_v57 = vld [vmem:[%s19126_s11 + $0x2f8] sm:$0xff]  }
 0xe04   :  { %v15053_v40 = vpop.f32.mrf.mxu0  ;;  %15087 = vmatprep.subr.bf16.mxu1 %v17439_v57  ;;  %v17452_v57 = vld [vmem:[%s19126_s11 + $0x288] sm:$0xff]  }
 0xe05   :  { %v12216_v8 = vadd.f32 %v15052_v30, %v12175_v16 }
 0xe06   :  { %v15054_v23 = vpop.f32.mrf.mxu0 }
 0xe07   :  { %v15055_v2 = vadd.f32 %v15054_v23, %v15053_v40  ;;  %v12222_v28 = vsel %vm11665_vm1, %v12216_v8, -inf }
 0xe08   :  { %12223 = vmax.xlane.f32.xlu1 %v12222_v28 }
 0xe09   :  { %v12219_v26 = vadd.f32 %v15055_v2, %v12178_v43 }
 0xe0b   :  { %v12225_v37 = vsel %vm11665_vm1, %v12219_v26, -inf }
 0xe0c   :  { %12226 = vmax.xlane.f32.xlu0 %v12225_v37 }
 0xe91   :  { %v12224_v11 = vpop.xlane.xlu1 %12223 }
 0xe92   :  { %v12228_v56 = vsub.f32 %v12216_v8, %v12224_v11 }
 0xe94   :  { %v12230_v34 = vmul.f32 1.442695, %v12228_v56 }
 0xe95   :  { %v12227_v48 = vpop.xlane.xlu0 %12226 }
 0xe96   :  { %17471 = vpow2.f32 %v12230_v34  ;;  %v12229_v60 = vsub.f32 %v12219_v26, %v12227_v48 }
 0xe98   :  { %v12232_v45 = vmul.f32 1.442695, %v12229_v60 }
 0xe9a   :  { %17473 = vpow2.f32 %v12232_v45 }
 0xea3   :  { %v17472_v0 = vpop.eup %17471 }
 0xea4   :  { %v12234_v4 = vsel %vm11665_vm1, %v17472_v0, 0.0 }
 0xea5   :  { %12235 = vadd.xlane.f32.xlu0 %v12234_v4 }
 0xea7   :  { %v17474_v13 = vpop.eup %17473 }
 0xea8   :  { %v12237_v35 = vsel %vm11665_vm1, %v17474_v13, 0.0 }
 0xea9   :  { %12238 = vadd.xlane.f32.xlu1 %v12237_v35 }
 0xf2e   :  { %v12236_v63 = vpop.xlane.xlu0 %12235 }
 0xf2f   :  { %17475 = vrcp.f32 %v12236_v63  ;;  %v17441_v63 = vld [vmem:[%s19126_s11 + $0x2f0] sm:$0xff]  }
 0xf32   :  { %v12239_v6 = vpop.xlane.xlu1 %12238 }
 0xf33   :  { %17477 = vrcp.f32 %v12239_v6  ;;  %v17442_v6 = vld [vmem:[%s19126_s11 + $0x2b0] sm:$0xff]  }
 0xf3c   :  { %v17476_v53 = vpop.eup %17475 }
 0xf3d   :  { %v18896_v44 = vmul.f32 %v17476_v53, %v17472_v0  ;;  %v17444_v53 = vld [vmem:[%s19126_s11 + $0x2a8] sm:$0xff]  }
 0xf3f   :  { %12257 = vperm.xlu1 %15292, %v18896_v44   ;;  %12246 = vperm.xlu0 %15284, %v18896_v44  }
 0xf40   :  { %v17478_v10 = vpop.eup %17477 }
 0xf41   :  { %v18904_v7 = vmul.f32 %v17478_v10, %v17474_v13  ;;  %v17447_v10 = vld [vmem:[%s19126_s11 + $0x2d8] sm:$0xff]  }
 0xf43   :  { %15293 = vset.pattern.permute.xlu1 %v17841_v25  ;;  %15295 = vset.pattern.permute.xlu0 %v17839_v54 }
 0xf44   :  { %12269 = vperm.xlu1 %15293, %v18896_v44   ;;  %12261 = vperm.xlu0 %15295, %v18904_v7  }
 0xf48   :  { %15294 = vset.pattern.permute.xlu1 %v17840_v41  ;;  %15296 = vset.pattern.permute.xlu0 %v17842_v38 }
 0xf49   :  { %12281 = vperm.xlu0 %15296, %v18896_v44   ;;  %12251 = vperm.xlu1 %15294, %v18904_v7  }
 0xf4d   :  { %15297 = vset.pattern.permute.xlu1 %v17841_v25  ;;  %15299 = vset.pattern.permute.xlu0 %v17840_v41 }
 0xf4e   :  { %12273 = vperm.xlu1 %15297, %v18904_v7  }
 0xf52   :  { %15298 = vset.pattern.permute.xlu1 %v17842_v38 }
 0xf53   :  { %12285 = vperm.xlu1 %15298, %v18904_v7  }
 0xf57   :  { %15300 = vset.pattern.permute.xlu1 %v17839_v54 }
 0xfba   :  { %v12258_v49 = vpop.permute.xlu1 %12257  ;;  %v12247_v16 = vpop.permute.xlu0 %12246 }
 0xfbb   :  { %v12254_v8 = vmul.f32 %v12247_v16, %v18735_v50  ;;  %v12264_v23 = vmul.f32 %v12258_v49, %v18737_v39  ;;  %v17453_v49 = vld [vmem:[%s19126_s11 + $0x2c0] sm:$0xff]  }
 0xfbc   :  { %v17454_v16 = vld [vmem:[%s19126_s11 + $0x280] sm:$0xff]  }
 0xfbd   :  { %v12266_v56 = vadd.f32 %v12264_v23, %v12254_v8  ;;  %v15081_v23 = vpop.f32.mrf.mxu0 }
 0xfbf   :  { %v12270_v21 = vpop.permute.xlu1 %12269  ;;  %v12262_v30 = vpop.permute.xlu0 %12261 }
 0xfc0   :  { %v12265_v26 = vmul.f32 %v12262_v30, %v18739_v36  ;;  %v12276_v37 = vmul.f32 %v12270_v21, %v18744_v20 }
 0xfc2   :  { %v12278_v45 = vadd.f32 %v12276_v37, %v12266_v56 }
 0xfc4   :  { %v12252_v40 = vpop.permute.xlu1 %12251  ;;  %v12282_v28 = vpop.permute.xlu0 %12281 }
 0xfc5   :  { %v12255_v43 = vmul.f32 %v12252_v40, %v18742_v62  ;;  %v12288_v34 = vmul.f32 %v12282_v28, %v18752_v1  ;;  %v12503_v28 = vrot.slane %v18662_v24, %v18381_v51 }
 0xfc7   :  { %v12267_v48 = vadd.f32 %v12265_v26, %v12255_v43  ;;  %v12290_v13 = vadd.f32 %v12288_v34, %v12278_v45  ;;  %v15082_v43 = vpop.f32.mrf.mxu0 }
 0xfc8   :  { %v15083_v26 = vadd.f32 %v15082_v43, %v15081_v23  ;;  %v17458_v43 = vld [vmem:[%s19128_s13 + $0xa0] sm:$0xff]  }
 0xfc9   :  { %v12274_v2 = vpop.permute.xlu1 %12273 }
 0xfca   :  { %v12277_v11 = vmul.f32 %v12274_v2, %v18746_v15  ;;  %v15084_v2 = vpop.f32.mrf.mxu0  ;;  %v12731_v34 = vadd.f32 %v15083_v26, %v12503_v28  ;;  %v12313_v26 = vrot.slane %v18861_v58, %v18295_v31 }
 0xfcc   :  { %v12279_v0 = vadd.f32 %v12277_v11, %v12267_v48  ;;  %v15085_v37 = vpop.f32.mrf.mxu0 }
 0xfcd   :  { %v15086_v48 = vadd.f32 %v15085_v37, %v15084_v2 }
 0xfce   :  { %v12286_v60 = vpop.permute.xlu1 %12285 }
 0xfcf   :  { %v12289_v4 = vmul.f32 %v12286_v60, %v18757_v19 }
 0xfd1   :  { %v12291_v35 = vadd.f32 %v12289_v4, %v12279_v0  ;;  %v12734_v4 = vadd.f32 %v15086_v48, %v12503_v28  ;;  %v17459_v28 = vld [vmem:[%s19128_s13 + $0x98] sm:$0xff]  }
 0xfd3   :  { %v12292_v14 = vpack.c.bf16 %v12291_v35, %v12290_v13 }
 0xfd5   :  { %15235 = vmatmul.mubr.bf16.vlgmr.msra.gmra.mxu1 %v12292_v14 }
 0xfd6   :  { %15088 = vmatpush3.bf16.msra.mxu1 %v17440_v18  ;;  %12769 = vmatprep.mubr.bf16.mxu1 %v18422_v27  ;;  %v17446_v27 = vld [vmem:[%s19126_s11 + $0x2a0] sm:$0xff]  }
 0xfd7   :  { %15089 = vmatprep.subr.bf16.mxu1 %v17441_v63 }
 0xfda   :  { %15090 = vmatpush3.bf16.msra.mxu1 %v17442_v6 }
 0xfdb   :  { %15091 = vmatprep.subr.bf16.mxu1 %v17443_v46 }
 0xfde   :  { %15092 = vmatpush3.bf16.msra.mxu1 %v17444_v53 }
 0xfdf   :  { %15093 = vmatprep.subr.bf16.mxu1 %v17445_v22 }
 0xfe2   :  { %15094 = vmatpush3.bf16.msra.mxu1 %v17446_v27 }
 0xfe3   :  { %15095 = vmatprep.subr.bf16.mxu1 %v17447_v10 }
 0xfe6   :  { %15096 = vmatpush3.bf16.msra.mxu1 %v17448_v42 }
 0xfe7   :  { %15097 = vmatprep.subr.bf16.mxu1 %v17449_v55 }
 0xfea   :  { %15098 = vmatpush3.bf16.msra.mxu1 %v17450_v32 }
 0xfeb   :  { %15099 = vmatprep.subr.bf16.mxu1 %v17451_v3 }
 0xfee   :  { %15100 = vmatpush3.bf16.msra.mxu1 %v17452_v57 }
 0xfef   :  { %15101 = vmatprep.subr.bf16.mxu1 %v17453_v49 }
 0xff2   :  { %15102 = vmatpush3.bf16.msra.mxu1 %v17454_v16  ;;  %v17455_v16 = vld [vmem:[%s19128_s13 + $0xb8] sm:$0xff]  }
 0xff3   :  { %15239 = vmatpush3.bf16.msra.mxu0 %v17455_v16 }
 0xff4   :  { %15240 = vmatprep.subr.bf16.mxu0 %v17837_v33 }
 0xff5   :  { %12770 = vmatmul.mubr.bf16.vlgmr.msra.gmra.mxu1 %v18424_v12 }
0x1095   :  { %v18994_v21 = vpop.f32.mrf.mxu1 }
0x1096   :  { %v12397_v48 = vadd.f32 %v18994_v21, %v12313_v26 }
0x1097   :  { %v15236_v30 = vpop.f32.mrf.mxu1 }
0x1098   :  { %v17456_v30 = vld [vmem:[%s19128_s13 + $0xb0] sm:$0xff]  }
0x1099   :  { %v18996_v40 = vpop.f32.mrf.mxu1  ;;  %15241 = vmatpush3.bf16.msra.mxu0 %v17456_v30 }
0x109a   :  { %15242 = vmatprep.subr.bf16.mxu0 %v17837_v33  ;;  %v12400_v37 = vadd.f32 %v18996_v40, %v12313_v26  ;;  %v12408_v40 = vrot.slane %v18869_v59, %v18295_v31 }
0x109b   :  { %v15237_v8 = vpop.f32.mrf.mxu1 }
0x109c   :  { %v17457_v8 = vld [vmem:[%s19128_s13 + $0xa8] sm:$0xff]  }
0x109d   :  { %15243 = vmatpush3.bf16.msra.mxu0 %v17457_v8 }
0x109e   :  { %15244 = vmatprep.subr.bf16.mxu0 %v17837_v33 }
0x10a1   :  { %15245 = vmatpush3.bf16.msra.mxu0 %v17458_v43 }
0x10a2   :  { %15246 = vmatprep.subr.bf16.mxu0 %v17837_v33 }
0x10a5   :  { %15247 = vmatpush3.bf16.msra.mxu0 %v17459_v28 }
0x10a6   :  { %15248 = vmatprep.subr.bf16.mxu0 %v17837_v33 }
0x10b5   :  { %v15103_v11 = vpop.f32.mrf.mxu1 }
0x10b7   :  { %v15104_v56 = vpop.f32.mrf.mxu1 }
0x10b8   :  { %v15105_v60 = vadd.f32 %v15104_v56, %v15103_v11  ;;  %v12404_v11 = vmax.f32 %v12400_v37, 0.0  ;;  %v17461_v56 = vld [vmem:[%s19128_s13 + $0x88] sm:$0xff]   ;;  %v12964_v37 = vrot.slane %v18869_v59, %v18381_v51 }
0x10b9   :  { %v15106_v12 = vpop.f32.mrf.mxu1 }
0x10ba   :  { %v12772_v45 = vadd.f32 %v15105_v60, %v12731_v34  ;;  %v17462_v34 = vld [vmem:[%s19128_s13 + $0x80] sm:$0xff]   ;;  %v11840_v60 = vadd.f32 %v18863_v9, %v18867_v52 }
0x10bb   :  { %v15107_v0 = vpop.f32.mrf.mxu1 }
0x10bc   :  { %v15108_v13 = vadd.f32 %v15107_v0, %v15106_v12  ;;  %v12778_v35 = vsel %vm11665_vm1, %v12772_v45, -inf  ;;  %v12403_v12 = vmax.f32 %v12397_v48, 0.0  ;;  %v11858_v48 = vsel %vm11854_vm2, %v18877_v29, 0.0 }
0x10bd   :  { %12779 = vmax.xlane.f32.xlu1 %v12778_v35 }
0x10be   :  { %v12775_v18 = vadd.f32 %v15108_v13, %v12734_v4 }
0x10c0   :  { %v12781_v14 = vsel %vm11665_vm1, %v12775_v18, -inf }
0x10c1   :  { %12782 = vmax.xlane.f32.xlu0 %v12781_v14 }
0x1146   :  { %v12780_v24 = vpop.xlane.xlu1 %12779 }
0x1147   :  { %v12784_v63 = vsub.f32 %v12772_v45, %v12780_v24  ;;  %v12409_v45 = vmul.f32 %v12408_v40, %v12403_v12 }
0x1149   :  { %v12786_v6 = vmul.f32 1.442695, %v12784_v63  ;;  %v12411_v0 = vsel %vm11854_vm2, %v12409_v45, 0.0 }
0x114a   :  { %v12783_v46 = vpop.xlane.xlu0 %12782 }
0x114b   :  { %17479 = vpow2.f32 %v12786_v6  ;;  %v12785_v53 = vsub.f32 %v12775_v18, %v12783_v46 }
0x114d   :  { %v12788_v22 = vmul.f32 1.442695, %v12785_v53 }
0x114f   :  { %17481 = vpow2.f32 %v12788_v22 }
0x1158   :  { %v17480_v27 = vpop.eup %17479 }
0x1159   :  { %v12790_v10 = vsel %vm11665_vm1, %v17480_v27, 0.0 }
0x115a   :  { %12791 = vadd.xlane.f32.xlu0 %v12790_v10 }
0x115c   :  { %v17482_v42 = vpop.eup %17481 }
0x115d   :  { %v12793_v55 = vsel %vm11665_vm1, %v17482_v42, 0.0 }
0x115e   :  { %12794 = vadd.xlane.f32.xlu1 %v12793_v55 }
0x11e3   :  { %v12792_v32 = vpop.xlane.xlu0 %12791 }
0x11e4   :  { %17483 = vrcp.f32 %v12792_v32 }
0x11e7   :  { %v12795_v3 = vpop.xlane.xlu1 %12794 }
0x11e8   :  { %17485 = vrcp.f32 %v12795_v3 }
0x11f1   :  { %v17484_v57 = vpop.eup %17483 }
0x11f2   :  { %v19004_v49 = vmul.f32 %v17484_v57, %v17480_v27 }
0x11f4   :  { %12813 = vperm.xlu1 %15300, %v19004_v49   ;;  %12802 = vperm.xlu0 %15299, %v19004_v49  }
0x11f5   :  { %v17486_v23 = vpop.eup %17485 }
0x11f6   :  { %v19028_v2 = vmul.f32 %v17486_v23, %v17482_v42 }
0x11f8   :  { %15301 = vset.pattern.permute.xlu1 %v17841_v25  ;;  %15307 = vset.pattern.permute.xlu0 %v17842_v38 }
0x11f9   :  { %12825 = vperm.xlu1 %15301, %v19004_v49  }
0x11fd   :  { %15302 = vset.pattern.permute.xlu1 %v17842_v38 }
0x11fe   :  { %12837 = vperm.xlu1 %15302, %v19004_v49  }
0x1202   :  { %15303 = vset.pattern.permute.xlu1 %v17840_v41  ;;  %v17460_v41 = vld [vmem:[%s19128_s13 + $0x90] sm:$0xff]  }
0x1203   :  { %12807 = vperm.xlu1 %15303, %v19028_v2   ;;  %15249 = vmatpush3.bf16.msra.mxu0 %v17460_v41 }
0x1204   :  { %15250 = vmatprep.subr.bf16.mxu0 %v17837_v33 }
0x1207   :  { %15304 = vset.pattern.permute.xlu1 %v17839_v54  ;;  %15251 = vmatpush3.bf16.msra.mxu0 %v17461_v56  ;;  %v12410_v54 = vmul.f32 %v12408_v40, %v12404_v11 }
0x1208   :  { %12817 = vperm.xlu1 %15304, %v19028_v2   ;;  %15252 = vmatprep.subr.bf16.mxu0 %v17837_v33  ;;  %v11846_v33 = vmax.f32 %v11840_v60, 0.0 }
0x120a   :  { %v11852_v4 = vmul.f32 %v18874_v5, %v11846_v33 }
0x120b   :  { %15253 = vmatpush3.bf16.msra.mxu0 %v17462_v34 }
0x120c   :  { %15305 = vset.pattern.permute.xlu1 %v17841_v25  ;;  %v12414_v25 = vsel %vm11854_vm2, %v12410_v54, 0.0 }
0x120d   :  { %12829 = vperm.xlu1 %15305, %v19028_v2  }
0x1211   :  { %15306 = vset.pattern.permute.xlu1 %v17842_v38  ;;  %v11855_v38 = vsel %vm11854_vm2, %v11852_v4, 0.0 }
0x1212   :  { %12841 = vperm.xlu1 %15306, %v19028_v2  }
0x1213   :  { %12415 = vadd.xlane.f32.xlu0 %v12414_v25 }
0x1236   :  { %12412 = vadd.xlane.f32.xlu1 %v12411_v0 }
0x123a   :  { %11856 = vadd.xlane.f32.xlu1 %v11855_v38 }
0x126f   :  { %v12814_v13 = vpop.permute.xlu1 %12813  ;;  %v12803_v21 = vpop.permute.xlu0 %12802 }
0x1270   :  { %v12810_v63 = vmul.f32 %v12803_v21, %v18735_v50  ;;  %v12820_v9 = vmul.f32 %v12814_v13, %v18737_v39 }
0x1272   :  { %v12822_v22 = vadd.f32 %v12820_v9, %v12810_v63 }
0x1274   :  { %v12826_v35 = vpop.permute.xlu1 %12825 }
0x1275   :  { %v12832_v46 = vmul.f32 %v12826_v35, %v18744_v20 }
0x1277   :  { %v12834_v55 = vadd.f32 %v12832_v46, %v12822_v22 }
0x1279   :  { %v12838_v18 = vpop.permute.xlu1 %12837 }
0x127a   :  { %v12844_v27 = vmul.f32 %v12838_v18, %v18752_v1 }
0x127c   :  { %v12846_v3 = vadd.f32 %v12844_v27, %v12834_v55 }
0x127e   :  { %v12808_v14 = vpop.permute.xlu1 %12807 }
0x127f   :  { %v12811_v5 = vmul.f32 %v12808_v14, %v18742_v62 }
0x1283   :  { %v12818_v24 = vpop.permute.xlu1 %12817 }
0x1284   :  { %v12821_v52 = vmul.f32 %v12818_v24, %v18739_v36  ;;  %v19077_v36 = vld [vmem:[%s19131_s16] sm:$0x7]  ;;  %s17844_s16 = smov 2  }
0x1285   :  { %v12420_v62 = vrot.slane %v19077_v36, %v18295_v31  ;;  %v12869_v31 = vrot.slane %v18861_v58, %v18381_v51  ;;  %v12976_v33 = vrot.slane %v19077_v36, %v18381_v51  ;;  %v11864_v51 = vrot.slane %v19077_v36, %v18027_v17 }
0x1286   :  { %v12823_v10 = vadd.f32 %v12821_v52, %v12811_v5 }
0x1288   :  { %v12830_v6 = vpop.permute.xlu1 %12829 }
0x1289   :  { %v12833_v53 = vmul.f32 %v12830_v6, %v18746_v15 }
0x128b   :  { %v12835_v32 = vadd.f32 %v12833_v53, %v12823_v10 }
0x128d   :  { %v12842_v42 = vpop.permute.xlu1 %12841 }
0x128e   :  { %v12845_v50 = vmul.f32 %v12842_v42, %v18757_v19 }
0x1290   :  { %v12847_v39 = vadd.f32 %v12845_v50, %v12835_v32 }
0x1292   :  { %v12848_v57 = vpack.c.bf16 %v12847_v39, %v12846_v3 }
0x1294   :  { %15255 = vmatmul.mubr.bf16.vlgmr.msra.gmra.mxu0 %v12848_v57 }
0x129c   :  { %v12416_v8 = vpop.xlane.xlu0 %12415 }
0x129d   :  { %v12422_v23 = vadd.f32 %v12420_v62, %v12416_v8 }
0x129f   :  { %v14624_v43 = vmul.f32 -1.442695, %v12422_v23 }
0x12bf   :  { %v12413_v20 = vpop.xlane.xlu1 %12412 }
0x12c0   :  { %v12421_v15 = vadd.f32 %v12420_v62, %v12413_v20 }
0x12c2   :  { %v14623_v1 = vmul.f32 -1.442695, %v12421_v15 }
0x12c3   :  { %v11857_v9 = vpop.xlane.xlu1 %11856 }
0x12c4   :  { %17487 = vpow2.f32 %v14623_v1  ;;  %v11865_v6 = vadd.f32 %v11864_v51, %v11857_v9 }
0x12c6   :  { %v14501_v5 = vmul.f32 -1.442695, %v11865_v6 }
0x12d1   :  { %v17488_v16 = vpop.eup %17487 }
0x12d2   :  { %v12429_v30 = vadd.f32 1.0, %v17488_v16 }
0x12d4   :  { %17489 = vrcp.f32 %v12429_v30 }
0x12d5   :  { %17491 = vpow2.f32 %v14624_v43 }
0x12e1   :  { %v17490_v19 = vpop.eup %17489 }
0x12e2   :  { %12993 = vrot.lane.b32.xlu1 %v17490_v19, %s17843_s3  ;;  %v17492_v59 = vpop.eup %17491 }
0x12e3   :  { %v12430_v60 = vadd.f32 1.0, %v17492_v59 }
0x12e5   :  { %17493 = vrcp.f32 %v12430_v60 }
0x12e6   :  { %13016 = vrot.lane.b32.xlu1 %v18896_v44, %s17833_s26 }
0x12ea   :  { %13018 = vrot.lane.b32.xlu1 %v18904_v7, %s17833_s26  ;;  %s17845_s26 = smov 8  }
0x12f2   :  { %v17494_v12 = vpop.eup %17493 }
0x1354   :  { %v12952_v28 = vpop.f32.mrf.mxu0  ;;  %v12994_v42 = vpop.permute.xlu1 %12993 }
0x1355   :  { %v12953_v26 = vadd.f32 %v12952_v28, %v12869_v31 }
0x1356   :  { %v15256_v41 = vpop.f32.mrf.mxu0 }
0x1357   :  { %v12959_v11 = vmax.f32 %v12953_v26, 0.0 }
0x1358   :  { %v12955_v56 = vpop.f32.mrf.mxu0 }
0x1359   :  { %v12956_v40 = vadd.f32 %v12955_v56, %v12869_v31  ;;  %v12965_v44 = vmul.f32 %v12964_v37, %v12959_v11 }
0x135a   :  { %v15257_v54 = vpop.f32.mrf.mxu0 }
0x135b   :  { %v12960_v34 = vmax.f32 %v12956_v40, 0.0  ;;  %v12967_v7 = vsel %vm11854_vm2, %v12965_v44, 0.0 }
0x135c   :  { %12968 = vadd.xlane.f32.xlu0 %v12967_v7 }
0x135d   :  { %v12966_v25 = vmul.f32 %v12964_v37, %v12960_v34 }
0x135f   :  { %v12970_v58 = vsel %vm11854_vm2, %v12966_v25, 0.0 }
0x1360   :  { %12971 = vadd.xlane.f32.xlu0 %v12970_v58 }
0x1364   :  { %11859 = vadd.xlane.f32.xlu0 %v11858_v48 }
0x137a   :  { %12995 = vrot.lane.b32.xlu0 %v17494_v12, %s17843_s3 }
0x13e5   :  { %v12969_v45 = vpop.xlane.xlu0 %12968 }
0x13e6   :  { %v12977_v0 = vadd.f32 %v12976_v33, %v12969_v45 }
0x13e8   :  { %v14745_v4 = vmul.f32 -1.442695, %v12977_v0 }
0x13e9   :  { %v12972_v38 = vpop.xlane.xlu0 %12971 }
0x13ea   :  { %17495 = vpow2.f32 %v14745_v4  ;;  %v12978_v13 = vadd.f32 %v12976_v33, %v12972_v38 }
0x13ec   :  { %v14746_v35 = vmul.f32 -1.442695, %v12978_v13 }
0x13ed   :  { %v11860_v52 = vpop.xlane.xlu0 %11859 }
0x13ee   :  { %17497 = vpow2.f32 %v14746_v35  ;;  %v11866_v46 = vadd.f32 %v11864_v51, %v11860_v52 }
0x13f0   :  { %v14502_v53 = vmul.f32 -1.442695, %v11866_v46 }
0x13f1   :  { %v12996_v50 = vpop.permute.xlu0 %12995 }
0x13f7   :  { %v17496_v18 = vpop.eup %17495 }
0x13f8   :  { %v12985_v14 = vadd.f32 1.0, %v17496_v18 }
0x13fa   :  { %17499 = vrcp.f32 %v12985_v14 }
0x13fb   :  { %v17498_v29 = vpop.eup %17497 }
0x13fc   :  { %v12986_v24 = vadd.f32 1.0, %v17498_v29 }
0x13fe   :  { %17501 = vrcp.f32 %v12986_v24 }
0x13ff   :  { %17503 = vpow2.f32 %v14501_v5 }
0x1400   :  { %17505 = vpow2.f32 %v14502_v53 }
0x1407   :  { %v17500_v21 = vpop.eup %17499 }
0x1408   :  { %13001 = vrot.lane.b32.xlu1 %v17500_v21, %s17844_s16 }
0x140b   :  { %v17502_v63 = vpop.eup %17501 }
0x140c   :  { %13003 = vrot.lane.b32.xlu0 %v17502_v63, %s17844_s16  ;;  %13022 = vrot.lane.b32.xlu1 %v19004_v49, %s17845_s26  ;;  %v17504_v22 = vpop.eup %17503  ;;  %v13017_v49 = vpop.permute.xlu1 %13016 }
0x140d   :  { %v17506_v27 = vpop.eup %17505  ;;  %v11873_v10 = vadd.f32 1.0, %v17504_v22  ;;  %v13028_v36 = vsel %vm11665_vm1, %v18672_v61, %v13017_v49 }
0x140e   :  { %v11874_v55 = vadd.f32 1.0, %v17506_v27 }
0x140f   :  { %17507 = vrcp.f32 %v11873_v10 }
0x1410   :  { %13024 = vrot.lane.b32.xlu0 %v19028_v2, %s17845_s26  ;;  %17509 = vrcp.f32 %v11874_v55  ;;  %v13019_v2 = vpop.permute.xlu1 %13018 }
0x1411   :  { %v13029_v30 = vsel %vm11665_vm1, %v18695_v47, %v13019_v2 }
0x141c   :  { %v17508_v17 = vpop.eup %17507 }
0x141d   :  { %v13008_v32 = vsel %vm13007_vm3, %v17508_v17, %v12994_v42  ;;  %v17510_v39 = vpop.eup %17509 }
0x141e   :  { %v13009_v62 = vsel %vm13007_vm3, %v17510_v39, %v12996_v50 }
0x147a   :  { %v13002_v3 = vpop.permute.xlu1 %13001 }
0x147b   :  { %v13011_v57 = vsel %vm13010_vm4, %v13008_v32, %v13002_v3 }
0x147c   :  { %13014 = vst.msk [vmem:[%s19132_s17] sm:$0xff] %vm13013_vm5, %v13011_v57 }
0x147e   :  { %v13004_v20 = vpop.permute.xlu0 %13003  ;;  %v13023_v15 = vpop.permute.xlu1 %13022 }
0x147f   :  { %v13012_v1 = vsel %vm13010_vm4, %v13009_v62, %v13004_v20  ;;  %v13031_v16 = vsel %vm13030_vm6, %v13028_v36, %v13023_v15 }
0x1480   :  { %13015 = vst.msk [vmem:[%s19132_s17 + $0x8] sm:$0xff] %vm13013_vm5, %v13012_v1 }
0x1481   :  { %13034 = vst.msk [vmem:[%s19133_s18] sm:$0xff] %vm13033_vm7, %v13031_v16 }
0x1482   :  { %v13025_v19 = vpop.permute.xlu0 %13024 }
0x1483   :  { %v13032_v8 = vsel %vm13030_vm6, %v13029_v30, %v13025_v19 }
0x1484   :  { %13035 = vst.msk [vmem:[%s19133_s18 + $0x8] sm:$0xff] %vm13033_vm7, %v13032_v8 }
0x1485   :  { %13044 = vsyncpa [#allocation3], 1 }
0x1486   :  { %13045 = vsyncpa [#allocation5], 1 }
0x1487   :  { %13046 = vsyncpa [#allocation8], 1 }
0x1488   :  { %13047 = vsyncpa [#allocation11], 1 }
0x1489   :  { %13048 = vsyncpa [#allocation14], 1 }
0x148a   :  { %13049 = vsyncpa [#allocation17], 1 }
0x148b   :  { %13050 = vsyncpa [#allocation20], 1 }

</bundles_post_ra>
